<compile_context>
chip_gen: v5e
topology: v5e:2x2
jax: 0.10.0
libtpu: 0.0.40
codegen_flags: <defaults>
</compile_context>

<pallas_src>
import functools

import jax
import jax.numpy as jnp
from jax.experimental import pallas as pl
from jax.experimental.pallas import tpu as pltpu


def _round_up(x, m):
    return (x + m - 1) // m * m


# ----------------------------------------------------------------------------
# Per-generation VMEM budget
# ----------------------------------------------------------------------------
_VMEM_BUDGET = None


def _vmem_budget_bytes():
    """~48 MiB on v7x (64 MiB physical VMEM), ~96-100 MiB on v5e/v6e (128 MiB)."""
    global _VMEM_BUDGET
    if _VMEM_BUDGET is None:
        cap = 64 * 1024 * 1024  # conservative default (v7x per-TC VMEM)
        try:
            info = pltpu.get_tpu_info()
            for name in ("vmem_capacity_bytes", "vmem_size_bytes", "vmem_bytes"):
                v = getattr(info, name, None)
                if v:
                    cap = int(v)
                    break
        except Exception:
            pass
        _VMEM_BUDGET = min((cap * 3) // 4, 100 * 1024 * 1024)
    return _VMEM_BUDGET


def _pick_samples_per_block(n, rows, kp, l_lanes, c_store, has_res, budget):
    """Largest sample-group per grid step whose working set fits the budget."""
    divisors = [d for d in range(n, 0, -1) if n % d == 0]
    valid = [d for d in divisors if d == n or (d * rows) % 8 == 0]
    for d in valid:
        blk = d * rows
        need = (2 * blk * kp * 2                       # bf16 patches, double-buffered
                + 2 * (kp * l_lanes + l_lanes) * 4     # weights + bias (conservative)
                + 2 * blk * c_store * 2                # bf16 output, double-buffered
                + blk * l_lanes * 4                    # f32 accumulator value
                + (2 * blk * c_store * 2 if has_res else 0)
                + (2 << 20))                           # headroom
        if need <= budget:
            return d
    # TODO(synk): row-tiling with cross-tile IN accumulation for huge images.
    return valid[-1] if valid else 1


# ----------------------------------------------------------------------------
# Fused conv kernel: (blk_rows, Kp) @ (Kp, L) + bias, then epilogue.
#   mode: "in_relu" | "in_res" | "tanh" | "none"
#   phases: lane axis is grouped as (phases, cg) for the sub-pixel deconv;
#           InstanceNorm statistics reduce over rows AND phase groups.
#   n_blk samples per block; per-sample stats via static row slabs.
# ----------------------------------------------------------------------------
def _conv_fused_kernel(*refs, mode, phases, rows, n_blk, cout_store, eps):
    if mode == "in_res":
        x_ref, w_ref, b_ref, r_ref, o_ref = refs
    else:
        x_ref, w_ref, b_ref, o_ref = refs
        r_ref = None

    acc = jnp.dot(x_ref[...], w_ref[...], preferred_element_type=jnp.float32)
    acc = acc + b_ref[...]                       # (blk_rows, L) f32

    if mode == "tanh":
        o_ref[...] = jnp.tanh(acc[:, :cout_store]).astype(o_ref.dtype)
        return
    if mode == "none":
        o_ref[...] = acc[:, :cout_store].astype(o_ref.dtype)
        return

    l_lanes = acc.shape[1]
    cg = l_lanes // phases
    inv_cnt = 1.0 / float(rows * phases)

    for s in range(n_blk):
        a = acc[s * rows:(s + 1) * rows, :] if n_blk > 1 else acc

        # Single pass over acc: sum and sum-of-squares together.
        ssum = jnp.sum(a, axis=0, keepdims=True)           # (1, L)
        ssq = jnp.sum(a * a, axis=0, keepdims=True)        # (1, L)

        if phases > 1:
            # Cyclic lane rolls by multiples of cg sum the 4 phase groups and
            # broadcast the per-channel totals back to every phase lane.
            tot_s, tot_q = ssum, ssq
            for k_ in range(1, phases):
                tot_s = tot_s + pltpu.roll(ssum, shift=k_ * cg, axis=1)
                tot_q = tot_q + pltpu.roll(ssq, shift=k_ * cg, axis=1)
            ssum, ssq = tot_s, tot_q

        mean = ssum * inv_cnt
        var = jnp.maximum(ssq * inv_cnt - mean * mean, 0.0)
        inv = jax.lax.rsqrt(var + eps)

        y = (a - mean) * inv
        if mode == "in_relu":
            y = jnp.maximum(y, 0.0)
        y = y[:, :cout_store]
        if mode == "in_res":
            r = r_ref[pl.ds(s * rows, rows), :] if n_blk > 1 else r_ref[...]
            y = y + r.astype(jnp.float32)

        if n_blk > 1:
            o_ref[pl.ds(s * rows, rows), :] = y.astype(o_ref.dtype)
        else:
            o_ref[...] = y.astype(o_ref.dtype)


def _fused_conv_matmul(patches, wm, bias, *, n, rows, phases, cout_store, mode,
                       residual=None):
    """patches:(M,Kp) bf16, wm:(Kp,L) bf16, bias:(1,L) f32 -> (M, cout_store) bf16."""
    m_tot, kp = patches.shape
    l_lanes = wm.shape[1]
    budget = _vmem_budget_bytes()

    n_per = _pick_samples_per_block(n, rows, kp, l_lanes, cout_store,
                                    residual is not None, budget)
    blk_rows = n_per * rows
    n_blocks = n // n_per

    kern = functools.partial(_conv_fused_kernel, mode=mode, phases=phases,
                             rows=rows, n_blk=n_per, cout_store=cout_store,
                             eps=1e-5)

    in_specs = [
        pl.BlockSpec((blk_rows, kp), lambda i: (i, 0)),   # patch slab (pipelined)
        pl.BlockSpec((kp, l_lanes), lambda i: (0, 0)),    # weights stay resident
        pl.BlockSpec((1, l_lanes), lambda i: (0, 0)),     # bias stays resident
    ]
    operands = [patches, wm, bias]
    if residual is not None:
        in_specs.append(pl.BlockSpec((blk_rows, cout_store), lambda i: (i, 0)))
        operands.append(residual)

    bytes_accessed = (patches.size * 2 + wm.size * 2 + bias.size * 4
                      + m_tot * cout_store * 2)
    if residual is not None:
        bytes_accessed += residual.size * 2

    return pl.pallas_call(
        kern,
        out_shape=jax.ShapeDtypeStruct((m_tot, cout_store), jnp.bfloat16),
        grid=(n_blocks,),
        in_specs=in_specs,
        out_specs=pl.BlockSpec((blk_rows, cout_store), lambda i: (i, 0)),
        compiler_params=pltpu.CompilerParams(
            dimension_semantics=("parallel",),   # blocks are fully independent
            vmem_limit_bytes=budget,
        ),
        cost_estimate=pl.CostEstimate(
            flops=2 * m_tot * kp * l_lanes,
            transcendentals=m_tot * cout_store if mode == "tanh" else m_tot,
            bytes_accessed=bytes_accessed,
        ),
    )(*operands)


# ----------------------------------------------------------------------------
# Weight packing (done once, outside the jitted forward)
# ----------------------------------------------------------------------------
def pack_conv(w, b):
    """w: (cout, cin, kH, kW) torch Conv2d layout."""
    cout, cin, kh, kw = w.shape
    k = kh * kw * cin
    kp = _round_up(k, 128)
    l_lanes = _round_up(cout, 128)
    wm = jnp.transpose(w, (2, 3, 1, 0)).reshape(k, cout)
    wm = jnp.pad(wm, ((0, kp - k), (0, l_lanes - cout))).astype(jnp.bfloat16)
    bias = jnp.pad(b, (0, l_lanes - cout)).reshape(1, l_lanes).astype(jnp.float32)
    return {"wm": wm, "bias": bias, "cin": cin, "cout": cout,
            "k": (kh, kw), "kp": kp, "L": l_lanes}


def pack_deconv(w, b):
    """w: (cin, cout, 3, 3) torch ConvTranspose2d(k=3, s=2, p=1, op=1) layout.

    Re-expressed as a dense 2x2 sub-pixel conv: K = 4*cin input taps,
    lanes = 4 phase groups of cg = round_up(4*cout,128)//4 channels (packed).
    """
    cin, cout, kh, kw = w.shape
    assert kh == 3 and kw == 3
    cg = _round_up(4 * cout, 128) // 4
    l_lanes = 4 * cg
    k = 4 * cin
    kp = _round_up(k, 128)

    def tap(r, d):          # which kernel tap feeds output phase r from offset d
        if r == 0:
            return 1 if d == 0 else None
        return 2 if d == 0 else 0

    row_blocks = []
    for dh in (0, 1):
        for dw in (0, 1):
            cols = []
            for r in (0, 1):
                for q in (0, 1):
                    ti, tj = tap(r, dh), tap(q, dw)
                    if ti is None or tj is None:
                        blk = jnp.zeros((cin, cg), jnp.float32)
                    else:
                        blk = jnp.pad(w[:, :, ti, tj], ((0, 0), (0, cg - cout)))
                    cols.append(blk)
            row_blocks.append(jnp.concatenate(cols, axis=1))     # (cin, L)
    wm = jnp.concatenate(row_blocks, axis=0)                      # (4*cin, L)
    wm = jnp.pad(wm, ((0, kp - k), (0, 0))).astype(jnp.bfloat16)
    bias = jnp.tile(jnp.pad(b, (0, cg - cout)), 4).reshape(1, l_lanes)
    bias = bias.astype(jnp.float32)
    return {"wm": wm, "bias": bias, "cin": cin, "cout": cout, "cg": cg,
            "kp": kp, "L": l_lanes}


# ----------------------------------------------------------------------------
# Layer wrappers (NHWC bf16 glue; fused matmul + epilogue in Pallas)
# ----------------------------------------------------------------------------
def conv_layer(x, lyr, *, stride=1, pad=0, pad_mode="zero", mode="in_relu",
               residual=None):
    n, _, _, cin = x.shape
    kh, kw = lyr["k"]
    cout, kp = lyr["cout"], lyr["kp"]
    assert cin == lyr["cin"]

    xp = x
    if pad > 0:
        m = "reflect" if pad_mode == "reflect" else "constant"
        xp = jnp.pad(xp, ((0, 0), (pad, pad), (pad, pad), (0, 0)), mode=m)
    hp, wp = xp.shape[1], xp.shape[2]
    ho = (hp - kh) // stride + 1
    wo = (wp - kw) // stride + 1

    # TODO(synk): move this im2col in-kernel (tap loop over shifted pl.ds
    # windows) to remove the kh*kw HBM read amplification at full resolution.
    taps = [xp[:, i:i + stride * ho:stride, j:j + stride * wo:stride, :]
            for i in range(kh) for j in range(kw)]
    k = kh * kw * cin
    patches = jnp.stack(taps, axis=3).reshape(n * ho * wo, k)
    patches = jnp.pad(patches, ((0, 0), (0, kp - k))).astype(jnp.bfloat16)

    res2 = None
    if residual is not None:
        res2 = residual.reshape(n * ho * wo, cout).astype(jnp.bfloat16)

    out = _fused_conv_matmul(patches, lyr["wm"], lyr["bias"], n=n, rows=ho * wo,
                             phases=1, cout_store=cout, mode=mode, residual=res2)
    return out.reshape(n, ho, wo, cout)


def deconv_layer(x, lyr, *, mode="in_relu"):
    n, h, w_, cin = x.shape
    cout, cg, kp, l_lanes = lyr["cout"], lyr["cg"], lyr["kp"], lyr["L"]
    assert cin == lyr["cin"]

    # zero-pad bottom/right by 1, take 2x2 stride-1 taps (dense sub-pixel conv)
    xp = jnp.pad(x, ((0, 0), (0, 1), (0, 1), (0, 0)))
    taps = [xp[:, dh:dh + h, dw:dw + w_, :] for dh in (0, 1) for dw in (0, 1)]
    patches = jnp.stack(taps, axis=3).reshape(n * h * w_, 4 * cin)
    patches = jnp.pad(patches, ((0, 0), (0, kp - 4 * cin))).astype(jnp.bfloat16)

    out = _fused_conv_matmul(patches, lyr["wm"], lyr["bias"], n=n, rows=h * w_,
                             phases=4, cout_store=l_lanes, mode=mode)
    # depth-to-space: lane = (r*2+q)*cg + c  ->  out[n, 2m+r, 2l+q, c]
    out = out.reshape(n, h, w_, 2, 2, cg)[..., :cout]
    out = jnp.transpose(out, (0, 1, 3, 2, 4, 5)).reshape(n, 2 * h, 2 * w_, cout)
    return out


# ----------------------------------------------------------------------------
# Generator parameters + forward (same parameterization as the torch module)
# ----------------------------------------------------------------------------
def _init_conv(key, cout, cin, k):
    kw_, kb_ = jax.random.split(key)
    w = jax.random.normal(kw_, (cout, cin, k, k), jnp.float32) * 0.05
    b = jax.random.normal(kb_, (cout,), jnp.float32) * 0.05
    return w, b


def init_generator_params(key, start_in=3, start_out=16, end_out=3, n_resnet=3,
                          ends_kernel_size=7, mid_kernel_size=3):
    keys = jax.random.split(key, 3 + n_resnet + 3)
    params = {}
    params["head"] = _init_conv(keys[0], start_out, start_in, ends_kernel_size)
    c = start_out
    params["down"] = []
    for i in range(2):
        params["down"].append(_init_conv(keys[1 + i], c * 2, c, mid_kernel_size))
        c *= 2
    params["res"] = []
    for i in range(n_resnet):
        k1, k2 = jax.random.split(keys[3 + i])
        params["res"].append(
            (_init_conv(k1, c, c, mid_kernel_size),
             _init_conv(k2, c, c, mid_kernel_size)))
    params["up"] = []
    for i in range(2):
        kw_, kb_ = jax.random.split(keys[3 + n_resnet + i])
        w = jax.random.normal(kw_, (c, c // 2, mid_kernel_size, mid_kernel_size),
                              jnp.float32) * 0.05
        b = jax.random.normal(kb_, (c // 2,), jnp.float32) * 0.05
        params["up"].append((w, b))
        c //= 2
    params["tail"] = _init_conv(keys[3 + n_resnet + 2], end_out, c,
                                ends_kernel_size)
    return params


def pack_generator_params(p):
    """Pack torch-layout weights into Pallas matmul layouts (outside jit)."""
    return {
        "head": pack_conv(*p["head"]),
        "down": [pack_conv(w, b) for (w, b) in p["down"]],
        "res": [(pack_conv(*ca), pack_conv(*cb)) for (ca, cb) in p["res"]],
        "up": [pack_deconv(w, b) for (w, b) in p["up"]],
        "tail": pack_conv(*p["tail"]),
    }


def generator_forward(packed, x_nchw):
    # NCHW -> NHWC bf16 at the boundary only; activations stay NHWC bf16.
    x = jnp.transpose(x_nchw, (0, 2, 3, 1)).astype(jnp.bfloat16)

    # c7s1-C : ReflectionPad(3) -> Conv k7 -> InstanceNorm -> ReLU (fused)
    x = conv_layer(x, packed["head"], stride=1, pad=3, pad_mode="reflect",
                   mode="in_relu")

    # downsampling: Conv k3 s2 p1 -> IN -> ReLU (x2, fused)
    for lyr in packed["down"]:
        x = conv_layer(x, lyr, stride=2, pad=1, pad_mode="zero", mode="in_relu")

    # ResNet blocks: x + IN(Conv(ReLU(IN(Conv(ReflPad(x)))))) (fused epilogues)
    # TODO(synk): fuse each whole res block into one kernel (mid map fits VMEM).
    for (la, lb) in packed["res"]:
        r = x
        h = conv_layer(x, la, stride=1, pad=1, pad_mode="reflect",
                       mode="in_relu")
        x = conv_layer(h, lb, stride=1, pad=1, pad_mode="reflect",
                       mode="in_res", residual=r)

    # upsampling: ConvTranspose k3 s2 p1 op1 -> IN -> ReLU (sub-pixel, fused)
    for lyr in packed["up"]:
        x = deconv_layer(x, lyr, mode="in_relu")

    # c7s1-3 : ReflectionPad(3) -> Conv k7 -> Tanh (fused, 3-lane bf16 store)
    x = conv_layer(x, packed["tail"], stride=1, pad=3, pad_mode="reflect",
                   mode="tanh")

    return jnp.transpose(x, (0, 3, 1, 2)).astype(jnp.float32)   # back to NCHW


if __name__ == "__main__":
    key = jax.random.PRNGKey(0)
    k_x, k_p = jax.random.split(key)
    # small, module-consistent config: start_in=3, start_out=16, n_resnet=3
    x = jax.random.normal(k_x, (2, 3, 16, 16), jnp.float32)
    params = init_generator_params(k_p, start_in=3, start_out=16, end_out=3,
                                   n_resnet=3)
    packed = pack_generator_params(params)          # once, outside jit
    fwd = jax.jit(functools.partial(generator_forward, packed))
    y = jax.block_until_ready(fwd(x))
    assert y.shape == (2, 3, 16, 16), y.shape
    assert bool(jnp.all(jnp.isfinite(y)))
    print("KERNEL_OK")
</pallas_src>

<mosaic_0001>
module attributes {stable_mosaic.version = 11 : i64} {
  func.func @_conv_fused_kernel(%arg0: i32, %arg1: memref<512x256xbf16, #tpu.memory_space<vmem>>, %arg2: memref<256x128xbf16, #tpu.memory_space<vmem>>, %arg3: memref<1x128xf32, #tpu.memory_space<vmem>>, %arg4: memref<512x16xbf16, #tpu.memory_space<vmem>>) attributes {dimension_semantics = [#tpu.dimension_semantics<parallel>], iteration_bounds = array<i64: 1>, scalar_prefetch = 0 : i64, scratch_operands = 0 : i64, tpu.core_type = #tpu.core_type<tc>, window_params = [{transform_indices = @transform_0, window_bounds = array<i64: 512, 256>}, {pipeline_mode = #tpu.pipeline_mode<synchronous>, transform_indices = @transform_1, window_bounds = array<i64: 256, 128>}, {pipeline_mode = #tpu.pipeline_mode<synchronous>, transform_indices = @transform_2, window_bounds = array<i64: 1, 128>}, {transform_indices = @transform_3, window_bounds = array<i64: 512, 16>}]} {
    %c0 = arith.constant 0 : index
    %c0_0 = arith.constant 0 : index
    %0 = vector.load %arg1[%c0, %c0_0] : memref<512x256xbf16, #tpu.memory_space<vmem>>, vector<512x256xbf16>
    %c0_1 = arith.constant 0 : index
    %c0_2 = arith.constant 0 : index
    %1 = vector.load %arg2[%c0_1, %c0_2] : memref<256x128xbf16, #tpu.memory_space<vmem>>, vector<256x128xbf16>
    %cst = arith.constant dense<0.000000e+00> : vector<512x128xf32>
    %2 = tpu.matmul %0, %1, %cst {dimension_numbers = #tpu.dot_dimension_numbers<[1], [0], [0], [1], [0, 0, 1, 1], [], []>} : vector<512x256xbf16>, vector<256x128xbf16>, vector<512x128xf32> -> vector<512x128xf32>
    %c0_3 = arith.constant 0 : index
    %c0_4 = arith.constant 0 : index
    %3 = vector.load %arg3[%c0_3, %c0_4] : memref<1x128xf32, #tpu.memory_space<vmem>>, vector<1x128xf32>
    %4 = vector.broadcast %3 : vector<1x128xf32> to vector<512x128xf32>
    %5 = arith.addf %2, %4 : vector<512x128xf32>
    %6 = vector.extract_strided_slice %5 {offsets = [0, 0], sizes = [256, 128], strides = [1, 1]} : vector<512x128xf32> to vector<256x128xf32>
    %cst_5 = arith.constant dense<0.000000e+00> : vector<128xf32>
    %7 = vector.multi_reduction <add>, %6, %cst_5 [0] : vector<256x128xf32> to vector<128xf32>
    %8 = vector.shape_cast %7 : vector<128xf32> to vector<1x128xf32>
    %9 = arith.mulf %6, %6 : vector<256x128xf32>
    %cst_6 = arith.constant dense<0.000000e+00> : vector<128xf32>
    %10 = vector.multi_reduction <add>, %9, %cst_6 [0] : vector<256x128xf32> to vector<128xf32>
    %11 = vector.shape_cast %10 : vector<128xf32> to vector<1x128xf32>
    %cst_7 = arith.constant 3.906250e-03 : f32
    %12 = vector.broadcast %cst_7 : f32 to vector<1x128xf32>
    %13 = arith.mulf %8, %12 : vector<1x128xf32>
    %cst_8 = arith.constant 3.906250e-03 : f32
    %14 = vector.broadcast %cst_8 : f32 to vector<1x128xf32>
    %15 = arith.mulf %11, %14 : vector<1x128xf32>
    %16 = arith.mulf %13, %13 : vector<1x128xf32>
    %17 = arith.subf %15, %16 : vector<1x128xf32>
    %cst_9 = arith.constant 0.000000e+00 : f32
    %18 = vector.broadcast %cst_9 : f32 to vector<1x128xf32>
    %19 = arith.maximumf %17, %18 : vector<1x128xf32>
    %cst_10 = arith.constant 9.99999974E-6 : f32
    %20 = vector.broadcast %cst_10 : f32 to vector<1x128xf32>
    %21 = arith.addf %19, %20 : vector<1x128xf32>
    %22 = math.rsqrt %21 : vector<1x128xf32>
    %23 = vector.broadcast %13 : vector<1x128xf32> to vector<256x128xf32>
    %24 = arith.subf %6, %23 : vector<256x128xf32>
    %25 = vector.broadcast %22 : vector<1x128xf32> to vector<256x128xf32>
    %26 = arith.mulf %24, %25 : vector<256x128xf32>
    %cst_11 = arith.constant 0.000000e+00 : f32
    %27 = vector.broadcast %cst_11 : f32 to vector<256x128xf32>
    %28 = arith.maximumf %26, %27 : vector<256x128xf32>
    %29 = vector.extract_strided_slice %28 {offsets = [0, 0], sizes = [256, 16], strides = [1, 1]} : vector<256x128xf32> to vector<256x16xf32>
    %30 = arith.truncf %29 : vector<256x16xf32> to vector<256x16xbf16>
    %c0_12 = arith.constant 0 : index
    %c0_13 = arith.constant 0 : index
    %31 = vector.load %arg4[%c0_12, %c0_13] : memref<512x16xbf16, #tpu.memory_space<vmem>>, vector<256x16xbf16>
    tpu.vector_store %arg4[%c0_12, %c0_13], %30 {strides = array<i32>} : memref<512x16xbf16, #tpu.memory_space<vmem>>, vector<256x16xbf16>,
    %32 = vector.extract_strided_slice %5 {offsets = [256, 0], sizes = [256, 128], strides = [1, 1]} : vector<512x128xf32> to vector<256x128xf32>
    %cst_14 = arith.constant dense<0.000000e+00> : vector<128xf32>
    %33 = vector.multi_reduction <add>, %32, %cst_14 [0] : vector<256x128xf32> to vector<128xf32>
    %34 = vector.shape_cast %33 : vector<128xf32> to vector<1x128xf32>
    %35 = arith.mulf %32, %32 : vector<256x128xf32>
    %cst_15 = arith.constant dense<0.000000e+00> : vector<128xf32>
    %36 = vector.multi_reduction <add>, %35, %cst_15 [0] : vector<256x128xf32> to vector<128xf32>
    %37 = vector.shape_cast %36 : vector<128xf32> to vector<1x128xf32>
    %cst_16 = arith.constant 3.906250e-03 : f32
    %38 = vector.broadcast %cst_16 : f32 to vector<1x128xf32>
    %39 = arith.mulf %34, %38 : vector<1x128xf32>
    %cst_17 = arith.constant 3.906250e-03 : f32
    %40 = vector.broadcast %cst_17 : f32 to vector<1x128xf32>
    %41 = arith.mulf %37, %40 : vector<1x128xf32>
    %42 = arith.mulf %39, %39 : vector<1x128xf32>
    %43 = arith.subf %41, %42 : vector<1x128xf32>
    %cst_18 = arith.constant 0.000000e+00 : f32
    %44 = vector.broadcast %cst_18 : f32 to vector<1x128xf32>
    %45 = arith.maximumf %43, %44 : vector<1x128xf32>
    %cst_19 = arith.constant 9.99999974E-6 : f32
    %46 = vector.broadcast %cst_19 : f32 to vector<1x128xf32>
    %47 = arith.addf %45, %46 : vector<1x128xf32>
    %48 = math.rsqrt %47 : vector<1x128xf32>
    %49 = vector.broadcast %39 : vector<1x128xf32> to vector<256x128xf32>
    %50 = arith.subf %32, %49 : vector<256x128xf32>
    %51 = vector.broadcast %48 : vector<1x128xf32> to vector<256x128xf32>
    %52 = arith.mulf %50, %51 : vector<256x128xf32>
    %cst_20 = arith.constant 0.000000e+00 : f32
    %53 = vector.broadcast %cst_20 : f32 to vector<256x128xf32>
    %54 = arith.maximumf %52, %53 : vector<256x128xf32>
    %55 = vector.extract_strided_slice %54 {offsets = [0, 0], sizes = [256, 16], strides = [1, 1]} : vector<256x128xf32> to vector<256x16xf32>
    %56 = arith.truncf %55 : vector<256x16xf32> to vector<256x16xbf16>
    %c256 = arith.constant 256 : index
    %c0_21 = arith.constant 0 : index
    %57 = vector.load %arg4[%c256, %c0_21] : memref<512x16xbf16, #tpu.memory_space<vmem>>, vector<256x16xbf16>
    tpu.vector_store %arg4[%c256, %c0_21], %56 {strides = array<i32>} : memref<512x16xbf16, #tpu.memory_space<vmem>>, vector<256x16xbf16>,
    return
  }
  func.func @transform_0(%arg0: i32) -> (i32, i32) {
    %c0_i32 = arith.constant 0 : i32
    %c0_i32_0 = arith.constant 0 : i32
    return %arg0, %c0_i32 : i32, i32
  }
  func.func @transform_1(%arg0: i32) -> (i32, i32) {
    %c0_i32 = arith.constant 0 : i32
    %c0_i32_0 = arith.constant 0 : i32
    %c0_i32_1 = arith.constant 0 : i32
    return %c0_i32, %c0_i32_0 : i32, i32
  }
  func.func @transform_2(%arg0: i32) -> (i32, i32) {
    %c0_i32 = arith.constant 0 : i32
    %c0_i32_0 = arith.constant 0 : i32
    %c0_i32_1 = arith.constant 0 : i32
    return %c0_i32, %c0_i32_0 : i32, i32
  }
  func.func @transform_3(%arg0: i32) -> (i32, i32) {
    %c0_i32 = arith.constant 0 : i32
    %c0_i32_0 = arith.constant 0 : i32
    return %arg0, %c0_i32 : i32, i32
  }
}

module attributes {stable_mosaic.version = 11 : i64} {
  func.func @_conv_fused_kernel(%arg0: i32, %arg1: memref<128x256xbf16, #tpu.memory_space<vmem>>, %arg2: memref<256x128xbf16, #tpu.memory_space<vmem>>, %arg3: memref<1x128xf32, #tpu.memory_space<vmem>>, %arg4: memref<128x32xbf16, #tpu.memory_space<vmem>>) attributes {dimension_semantics = [#tpu.dimension_semantics<parallel>], iteration_bounds = array<i64: 1>, scalar_prefetch = 0 : i64, scratch_operands = 0 : i64, tpu.core_type = #tpu.core_type<tc>, window_params = [{transform_indices = @transform_0, window_bounds = array<i64: 128, 256>}, {pipeline_mode = #tpu.pipeline_mode<synchronous>, transform_indices = @transform_1, window_bounds = array<i64: 256, 128>}, {pipeline_mode = #tpu.pipeline_mode<synchronous>, transform_indices = @transform_2, window_bounds = array<i64: 1, 128>}, {transform_indices = @transform_3, window_bounds = array<i64: 128, 32>}]} {
    %c0 = arith.constant 0 : index
    %c0_0 = arith.constant 0 : index
    %0 = vector.load %arg1[%c0, %c0_0] : memref<128x256xbf16, #tpu.memory_space<vmem>>, vector<128x256xbf16>
    %c0_1 = arith.constant 0 : index
    %c0_2 = arith.constant 0 : index
    %1 = vector.load %arg2[%c0_1, %c0_2] : memref<256x128xbf16, #tpu.memory_space<vmem>>, vector<256x128xbf16>
    %cst = arith.constant dense<0.000000e+00> : vector<128x128xf32>
    %2 = tpu.matmul %0, %1, %cst {dimension_numbers = #tpu.dot_dimension_numbers<[1], [0], [0], [1], [0, 0, 1, 1], [], []>} : vector<128x256xbf16>, vector<256x128xbf16>, vector<128x128xf32> -> vector<128x128xf32>
    %c0_3 = arith.constant 0 : index
    %c0_4 = arith.constant 0 : index
    %3 = vector.load %arg3[%c0_3, %c0_4] : memref<1x128xf32, #tpu.memory_space<vmem>>, vector<1x128xf32>
    %4 = vector.broadcast %3 : vector<1x128xf32> to vector<128x128xf32>
    %5 = arith.addf %2, %4 : vector<128x128xf32>
    %6 = vector.extract_strided_slice %5 {offsets = [0, 0], sizes = [64, 128], strides = [1, 1]} : vector<128x128xf32> to vector<64x128xf32>
    %cst_5 = arith.constant dense<0.000000e+00> : vector<128xf32>
    %7 = vector.multi_reduction <add>, %6, %cst_5 [0] : vector<64x128xf32> to vector<128xf32>
    %8 = vector.shape_cast %7 : vector<128xf32> to vector<1x128xf32>
    %9 = arith.mulf %6, %6 : vector<64x128xf32>
    %cst_6 = arith.constant dense<0.000000e+00> : vector<128xf32>
    %10 = vector.multi_reduction <add>, %9, %cst_6 [0] : vector<64x128xf32> to vector<128xf32>
    %11 = vector.shape_cast %10 : vector<128xf32> to vector<1x128xf32>
    %cst_7 = arith.constant 1.562500e-02 : f32
    %12 = vector.broadcast %cst_7 : f32 to vector<1x128xf32>
    %13 = arith.mulf %8, %12 : vector<1x128xf32>
    %cst_8 = arith.constant 1.562500e-02 : f32
    %14 = vector.broadcast %cst_8 : f32 to vector<1x128xf32>
    %15 = arith.mulf %11, %14 : vector<1x128xf32>
    %16 = arith.mulf %13, %13 : vector<1x128xf32>
    %17 = arith.subf %15, %16 : vector<1x128xf32>
    %cst_9 = arith.constant 0.000000e+00 : f32
    %18 = vector.broadcast %cst_9 : f32 to vector<1x128xf32>
    %19 = arith.maximumf %17, %18 : vector<1x128xf32>
    %cst_10 = arith.constant 9.99999974E-6 : f32
    %20 = vector.broadcast %cst_10 : f32 to vector<1x128xf32>
    %21 = arith.addf %19, %20 : vector<1x128xf32>
    %22 = math.rsqrt %21 : vector<1x128xf32>
    %23 = vector.broadcast %13 : vector<1x128xf32> to vector<64x128xf32>
    %24 = arith.subf %6, %23 : vector<64x128xf32>
    %25 = vector.broadcast %22 : vector<1x128xf32> to vector<64x128xf32>
    %26 = arith.mulf %24, %25 : vector<64x128xf32>
    %cst_11 = arith.constant 0.000000e+00 : f32
    %27 = vector.broadcast %cst_11 : f32 to vector<64x128xf32>
    %28 = arith.maximumf %26, %27 : vector<64x128xf32>
    %29 = vector.extract_strided_slice %28 {offsets = [0, 0], sizes = [64, 32], strides = [1, 1]} : vector<64x128xf32> to vector<64x32xf32>
    %30 = arith.truncf %29 : vector<64x32xf32> to vector<64x32xbf16>
    %c0_12 = arith.constant 0 : index
    %c0_13 = arith.constant 0 : index
    %31 = vector.load %arg4[%c0_12, %c0_13] : memref<128x32xbf16, #tpu.memory_space<vmem>>, vector<64x32xbf16>
    tpu.vector_store %arg4[%c0_12, %c0_13], %30 {strides = array<i32>} : memref<128x32xbf16, #tpu.memory_space<vmem>>, vector<64x32xbf16>,
    %32 = vector.extract_strided_slice %5 {offsets = [64, 0], sizes = [64, 128], strides = [1, 1]} : vector<128x128xf32> to vector<64x128xf32>
    %cst_14 = arith.constant dense<0.000000e+00> : vector<128xf32>
    %33 = vector.multi_reduction <add>, %32, %cst_14 [0] : vector<64x128xf32> to vector<128xf32>
    %34 = vector.shape_cast %33 : vector<128xf32> to vector<1x128xf32>
    %35 = arith.mulf %32, %32 : vector<64x128xf32>
    %cst_15 = arith.constant dense<0.000000e+00> : vector<128xf32>
    %36 = vector.multi_reduction <add>, %35, %cst_15 [0] : vector<64x128xf32> to vector<128xf32>
    %37 = vector.shape_cast %36 : vector<128xf32> to vector<1x128xf32>
    %cst_16 = arith.constant 1.562500e-02 : f32
    %38 = vector.broadcast %cst_16 : f32 to vector<1x128xf32>
    %39 = arith.mulf %34, %38 : vector<1x128xf32>
    %cst_17 = arith.constant 1.562500e-02 : f32
    %40 = vector.broadcast %cst_17 : f32 to vector<1x128xf32>
    %41 = arith.mulf %37, %40 : vector<1x128xf32>
    %42 = arith.mulf %39, %39 : vector<1x128xf32>
    %43 = arith.subf %41, %42 : vector<1x128xf32>
    %cst_18 = arith.constant 0.000000e+00 : f32
    %44 = vector.broadcast %cst_18 : f32 to vector<1x128xf32>
    %45 = arith.maximumf %43, %44 : vector<1x128xf32>
    %cst_19 = arith.constant 9.99999974E-6 : f32
    %46 = vector.broadcast %cst_19 : f32 to vector<1x128xf32>
    %47 = arith.addf %45, %46 : vector<1x128xf32>
    %48 = math.rsqrt %47 : vector<1x128xf32>
    %49 = vector.broadcast %39 : vector<1x128xf32> to vector<64x128xf32>
    %50 = arith.subf %32, %49 : vector<64x128xf32>
    %51 = vector.broadcast %48 : vector<1x128xf32> to vector<64x128xf32>
    %52 = arith.mulf %50, %51 : vector<64x128xf32>
    %cst_20 = arith.constant 0.000000e+00 : f32
    %53 = vector.broadcast %cst_20 : f32 to vector<64x128xf32>
    %54 = arith.maximumf %52, %53 : vector<64x128xf32>
    %55 = vector.extract_strided_slice %54 {offsets = [0, 0], sizes = [64, 32], strides = [1, 1]} : vector<64x128xf32> to vector<64x32xf32>
    %56 = arith.truncf %55 : vector<64x32xf32> to vector<64x32xbf16>
    %c64 = arith.constant 64 : index
    %c0_21 = arith.constant 0 : index
    %57 = vector.load %arg4[%c64, %c0_21] : memref<128x32xbf16, #tpu.memory_space<vmem>>, vector<64x32xbf16>
    tpu.vector_store %arg4[%c64, %c0_21], %56 {strides = array<i32>} : memref<128x32xbf16, #tpu.memory_space<vmem>>, vector<64x32xbf16>,
    return
  }
  func.func @transform_0(%arg0: i32) -> (i32, i32) {
    %c0_i32 = arith.constant 0 : i32
    %c0_i32_0 = arith.constant 0 : i32
    return %arg0, %c0_i32 : i32, i32
  }
  func.func @transform_1(%arg0: i32) -> (i32, i32) {
    %c0_i32 = arith.constant 0 : i32
    %c0_i32_0 = arith.constant 0 : i32
    %c0_i32_1 = arith.constant 0 : i32
    return %c0_i32, %c0_i32_0 : i32, i32
  }
  func.func @transform_2(%arg0: i32) -> (i32, i32) {
    %c0_i32 = arith.constant 0 : i32
    %c0_i32_0 = arith.constant 0 : i32
    %c0_i32_1 = arith.constant 0 : i32
    return %c0_i32, %c0_i32_0 : i32, i32
  }
  func.func @transform_3(%arg0: i32) -> (i32, i32) {
    %c0_i32 = arith.constant 0 : i32
    %c0_i32_0 = arith.constant 0 : i32
    return %arg0, %c0_i32 : i32, i32
  }
}

module attributes {stable_mosaic.version = 11 : i64} {
  func.func @_conv_fused_kernel(%arg0: i32, %arg1: memref<32x384xbf16, #tpu.memory_space<vmem>>, %arg2: memref<384x128xbf16, #tpu.memory_space<vmem>>, %arg3: memref<1x128xf32, #tpu.memory_space<vmem>>, %arg4: memref<32x64xbf16, #tpu.memory_space<vmem>>) attributes {dimension_semantics = [#tpu.dimension_semantics<parallel>], iteration_bounds = array<i64: 1>, scalar_prefetch = 0 : i64, scratch_operands = 0 : i64, tpu.core_type = #tpu.core_type<tc>, window_params = [{transform_indices = @transform_0, window_bounds = array<i64: 32, 384>}, {pipeline_mode = #tpu.pipeline_mode<synchronous>, transform_indices = @transform_1, window_bounds = array<i64: 384, 128>}, {pipeline_mode = #tpu.pipeline_mode<synchronous>, transform_indices = @transform_2, window_bounds = array<i64: 1, 128>}, {transform_indices = @transform_3, window_bounds = array<i64: 32, 64>}]} {
    %c0 = arith.constant 0 : index
    %c0_0 = arith.constant 0 : index
    %0 = vector.load %arg1[%c0, %c0_0] : memref<32x384xbf16, #tpu.memory_space<vmem>>, vector<32x384xbf16>
    %c0_1 = arith.constant 0 : index
    %c0_2 = arith.constant 0 : index
    %1 = vector.load %arg2[%c0_1, %c0_2] : memref<384x128xbf16, #tpu.memory_space<vmem>>, vector<384x128xbf16>
    %cst = arith.constant dense<0.000000e+00> : vector<32x128xf32>
    %2 = tpu.matmul %0, %1, %cst {dimension_numbers = #tpu.dot_dimension_numbers<[1], [0], [0], [1], [0, 0, 1, 1], [], []>} : vector<32x384xbf16>, vector<384x128xbf16>, vector<32x128xf32> -> vector<32x128xf32>
    %c0_3 = arith.constant 0 : index
    %c0_4 = arith.constant 0 : index
    %3 = vector.load %arg3[%c0_3, %c0_4] : memref<1x128xf32, #tpu.memory_space<vmem>>, vector<1x128xf32>
    %4 = vector.broadcast %3 : vector<1x128xf32> to vector<32x128xf32>
    %5 = arith.addf %2, %4 : vector<32x128xf32>
    %6 = vector.extract_strided_slice %5 {offsets = [0, 0], sizes = [16, 128], strides = [1, 1]} : vector<32x128xf32> to vector<16x128xf32>
    %cst_5 = arith.constant dense<0.000000e+00> : vector<128xf32>
    %7 = vector.multi_reduction <add>, %6, %cst_5 [0] : vector<16x128xf32> to vector<128xf32>
    %8 = vector.shape_cast %7 : vector<128xf32> to vector<1x128xf32>
    %9 = arith.mulf %6, %6 : vector<16x128xf32>
    %cst_6 = arith.constant dense<0.000000e+00> : vector<128xf32>
    %10 = vector.multi_reduction <add>, %9, %cst_6 [0] : vector<16x128xf32> to vector<128xf32>
    %11 = vector.shape_cast %10 : vector<128xf32> to vector<1x128xf32>
    %cst_7 = arith.constant 6.250000e-02 : f32
    %12 = vector.broadcast %cst_7 : f32 to vector<1x128xf32>
    %13 = arith.mulf %8, %12 : vector<1x128xf32>
    %cst_8 = arith.constant 6.250000e-02 : f32
    %14 = vector.broadcast %cst_8 : f32 to vector<1x128xf32>
    %15 = arith.mulf %11, %14 : vector<1x128xf32>
    %16 = arith.mulf %13, %13 : vector<1x128xf32>
    %17 = arith.subf %15, %16 : vector<1x128xf32>
    %cst_9 = arith.constant 0.000000e+00 : f32
    %18 = vector.broadcast %cst_9 : f32 to vector<1x128xf32>
    %19 = arith.maximumf %17, %18 : vector<1x128xf32>
    %cst_10 = arith.constant 9.99999974E-6 : f32
    %20 = vector.broadcast %cst_10 : f32 to vector<1x128xf32>
    %21 = arith.addf %19, %20 : vector<1x128xf32>
    %22 = math.rsqrt %21 : vector<1x128xf32>
    %23 = vector.broadcast %13 : vector<1x128xf32> to vector<16x128xf32>
    %24 = arith.subf %6, %23 : vector<16x128xf32>
    %25 = vector.broadcast %22 : vector<1x128xf32> to vector<16x128xf32>
    %26 = arith.mulf %24, %25 : vector<16x128xf32>
    %cst_11 = arith.constant 0.000000e+00 : f32
    %27 = vector.broadcast %cst_11 : f32 to vector<16x128xf32>
    %28 = arith.maximumf %26, %27 : vector<16x128xf32>
    %29 = vector.extract_strided_slice %28 {offsets = [0, 0], sizes = [16, 64], strides = [1, 1]} : vector<16x128xf32> to vector<16x64xf32>
    %30 = arith.truncf %29 : vector<16x64xf32> to vector<16x64xbf16>
    %c0_12 = arith.constant 0 : index
    %c0_13 = arith.constant 0 : index
    %31 = vector.load %arg4[%c0_12, %c0_13] : memref<32x64xbf16, #tpu.memory_space<vmem>>, vector<16x64xbf16>
    tpu.vector_store %arg4[%c0_12, %c0_13], %30 {strides = array<i32>} : memref<32x64xbf16, #tpu.memory_space<vmem>>, vector<16x64xbf16>,
    %32 = vector.extract_strided_slice %5 {offsets = [16, 0], sizes = [16, 128], strides = [1, 1]} : vector<32x128xf32> to vector<16x128xf32>
    %cst_14 = arith.constant dense<0.000000e+00> : vector<128xf32>
    %33 = vector.multi_reduction <add>, %32, %cst_14 [0] : vector<16x128xf32> to vector<128xf32>
    %34 = vector.shape_cast %33 : vector<128xf32> to vector<1x128xf32>
    %35 = arith.mulf %32, %32 : vector<16x128xf32>
    %cst_15 = arith.constant dense<0.000000e+00> : vector<128xf32>
    %36 = vector.multi_reduction <add>, %35, %cst_15 [0] : vector<16x128xf32> to vector<128xf32>
    %37 = vector.shape_cast %36 : vector<128xf32> to vector<1x128xf32>
    %cst_16 = arith.constant 6.250000e-02 : f32
    %38 = vector.broadcast %cst_16 : f32 to vector<1x128xf32>
    %39 = arith.mulf %34, %38 : vector<1x128xf32>
    %cst_17 = arith.constant 6.250000e-02 : f32
    %40 = vector.broadcast %cst_17 : f32 to vector<1x128xf32>
    %41 = arith.mulf %37, %40 : vector<1x128xf32>
    %42 = arith.mulf %39, %39 : vector<1x128xf32>
    %43 = arith.subf %41, %42 : vector<1x128xf32>
    %cst_18 = arith.constant 0.000000e+00 : f32
    %44 = vector.broadcast %cst_18 : f32 to vector<1x128xf32>
    %45 = arith.maximumf %43, %44 : vector<1x128xf32>
    %cst_19 = arith.constant 9.99999974E-6 : f32
    %46 = vector.broadcast %cst_19 : f32 to vector<1x128xf32>
    %47 = arith.addf %45, %46 : vector<1x128xf32>
    %48 = math.rsqrt %47 : vector<1x128xf32>
    %49 = vector.broadcast %39 : vector<1x128xf32> to vector<16x128xf32>
    %50 = arith.subf %32, %49 : vector<16x128xf32>
    %51 = vector.broadcast %48 : vector<1x128xf32> to vector<16x128xf32>
    %52 = arith.mulf %50, %51 : vector<16x128xf32>
    %cst_20 = arith.constant 0.000000e+00 : f32
    %53 = vector.broadcast %cst_20 : f32 to vector<16x128xf32>
    %54 = arith.maximumf %52, %53 : vector<16x128xf32>
    %55 = vector.extract_strided_slice %54 {offsets = [0, 0], sizes = [16, 64], strides = [1, 1]} : vector<16x128xf32> to vector<16x64xf32>
    %56 = arith.truncf %55 : vector<16x64xf32> to vector<16x64xbf16>
    %c16 = arith.constant 16 : index
    %c0_21 = arith.constant 0 : index
    %57 = vector.load %arg4[%c16, %c0_21] : memref<32x64xbf16, #tpu.memory_space<vmem>>, vector<16x64xbf16>
    tpu.vector_store %arg4[%c16, %c0_21], %56 {strides = array<i32>} : memref<32x64xbf16, #tpu.memory_space<vmem>>, vector<16x64xbf16>,
    return
  }
  func.func @transform_0(%arg0: i32) -> (i32, i32) {
    %c0_i32 = arith.constant 0 : i32
    %c0_i32_0 = arith.constant 0 : i32
    return %arg0, %c0_i32 : i32, i32
  }
  func.func @transform_1(%arg0: i32) -> (i32, i32) {
    %c0_i32 = arith.constant 0 : i32
    %c0_i32_0 = arith.constant 0 : i32
    %c0_i32_1 = arith.constant 0 : i32
    return %c0_i32, %c0_i32_0 : i32, i32
  }
  func.func @transform_2(%arg0: i32) -> (i32, i32) {
    %c0_i32 = arith.constant 0 : i32
    %c0_i32_0 = arith.constant 0 : i32
    %c0_i32_1 = arith.constant 0 : i32
    return %c0_i32, %c0_i32_0 : i32, i32
  }
  func.func @transform_3(%arg0: i32) -> (i32, i32) {
    %c0_i32 = arith.constant 0 : i32
    %c0_i32_0 = arith.constant 0 : i32
    return %arg0, %c0_i32 : i32, i32
  }
}

module attributes {stable_mosaic.version = 11 : i64} {
  func.func @_conv_fused_kernel(%arg0: i32, %arg1: memref<32x640xbf16, #tpu.memory_space<vmem>>, %arg2: memref<640x128xbf16, #tpu.memory_space<vmem>>, %arg3: memref<1x128xf32, #tpu.memory_space<vmem>>, %arg4: memref<32x64xbf16, #tpu.memory_space<vmem>>) attributes {dimension_semantics = [#tpu.dimension_semantics<parallel>], iteration_bounds = array<i64: 1>, scalar_prefetch = 0 : i64, scratch_operands = 0 : i64, tpu.core_type = #tpu.core_type<tc>, window_params = [{transform_indices = @transform_0, window_bounds = array<i64: 32, 640>}, {pipeline_mode = #tpu.pipeline_mode<synchronous>, transform_indices = @transform_1, window_bounds = array<i64: 640, 128>}, {pipeline_mode = #tpu.pipeline_mode<synchronous>, transform_indices = @transform_2, window_bounds = array<i64: 1, 128>}, {transform_indices = @transform_3, window_bounds = array<i64: 32, 64>}]} {
    %c0 = arith.constant 0 : index
    %c0_0 = arith.constant 0 : index
    %0 = vector.load %arg1[%c0, %c0_0] : memref<32x640xbf16, #tpu.memory_space<vmem>>, vector<32x640xbf16>
    %c0_1 = arith.constant 0 : index
    %c0_2 = arith.constant 0 : index
    %1 = vector.load %arg2[%c0_1, %c0_2] : memref<640x128xbf16, #tpu.memory_space<vmem>>, vector<640x128xbf16>
    %cst = arith.constant dense<0.000000e+00> : vector<32x128xf32>
    %2 = tpu.matmul %0, %1, %cst {dimension_numbers = #tpu.dot_dimension_numbers<[1], [0], [0], [1], [0, 0, 1, 1], [], []>} : vector<32x640xbf16>, vector<640x128xbf16>, vector<32x128xf32> -> vector<32x128xf32>
    %c0_3 = arith.constant 0 : index
    %c0_4 = arith.constant 0 : index
    %3 = vector.load %arg3[%c0_3, %c0_4] : memref<1x128xf32, #tpu.memory_space<vmem>>, vector<1x128xf32>
    %4 = vector.broadcast %3 : vector<1x128xf32> to vector<32x128xf32>
    %5 = arith.addf %2, %4 : vector<32x128xf32>
    %6 = vector.extract_strided_slice %5 {offsets = [0, 0], sizes = [16, 128], strides = [1, 1]} : vector<32x128xf32> to vector<16x128xf32>
    %cst_5 = arith.constant dense<0.000000e+00> : vector<128xf32>
    %7 = vector.multi_reduction <add>, %6, %cst_5 [0] : vector<16x128xf32> to vector<128xf32>
    %8 = vector.shape_cast %7 : vector<128xf32> to vector<1x128xf32>
    %9 = arith.mulf %6, %6 : vector<16x128xf32>
    %cst_6 = arith.constant dense<0.000000e+00> : vector<128xf32>
    %10 = vector.multi_reduction <add>, %9, %cst_6 [0] : vector<16x128xf32> to vector<128xf32>
    %11 = vector.shape_cast %10 : vector<128xf32> to vector<1x128xf32>
    %cst_7 = arith.constant 6.250000e-02 : f32
    %12 = vector.broadcast %cst_7 : f32 to vector<1x128xf32>
    %13 = arith.mulf %8, %12 : vector<1x128xf32>
    %cst_8 = arith.constant 6.250000e-02 : f32
    %14 = vector.broadcast %cst_8 : f32 to vector<1x128xf32>
    %15 = arith.mulf %11, %14 : vector<1x128xf32>
    %16 = arith.mulf %13, %13 : vector<1x128xf32>
    %17 = arith.subf %15, %16 : vector<1x128xf32>
    %cst_9 = arith.constant 0.000000e+00 : f32
    %18 = vector.broadcast %cst_9 : f32 to vector<1x128xf32>
    %19 = arith.maximumf %17, %18 : vector<1x128xf32>
    %cst_10 = arith.constant 9.99999974E-6 : f32
    %20 = vector.broadcast %cst_10 : f32 to vector<1x128xf32>
    %21 = arith.addf %19, %20 : vector<1x128xf32>
    %22 = math.rsqrt %21 : vector<1x128xf32>
    %23 = vector.broadcast %13 : vector<1x128xf32> to vector<16x128xf32>
    %24 = arith.subf %6, %23 : vector<16x128xf32>
    %25 = vector.broadcast %22 : vector<1x128xf32> to vector<16x128xf32>
    %26 = arith.mulf %24, %25 : vector<16x128xf32>
    %cst_11 = arith.constant 0.000000e+00 : f32
    %27 = vector.broadcast %cst_11 : f32 to vector<16x128xf32>
    %28 = arith.maximumf %26, %27 : vector<16x128xf32>
    %29 = vector.extract_strided_slice %28 {offsets = [0, 0], sizes = [16, 64], strides = [1, 1]} : vector<16x128xf32> to vector<16x64xf32>
    %30 = arith.truncf %29 : vector<16x64xf32> to vector<16x64xbf16>
    %c0_12 = arith.constant 0 : index
    %c0_13 = arith.constant 0 : index
    %31 = vector.load %arg4[%c0_12, %c0_13] : memref<32x64xbf16, #tpu.memory_space<vmem>>, vector<16x64xbf16>
    tpu.vector_store %arg4[%c0_12, %c0_13], %30 {strides = array<i32>} : memref<32x64xbf16, #tpu.memory_space<vmem>>, vector<16x64xbf16>,
    %32 = vector.extract_strided_slice %5 {offsets = [16, 0], sizes = [16, 128], strides = [1, 1]} : vector<32x128xf32> to vector<16x128xf32>
    %cst_14 = arith.constant dense<0.000000e+00> : vector<128xf32>
    %33 = vector.multi_reduction <add>, %32, %cst_14 [0] : vector<16x128xf32> to vector<128xf32>
    %34 = vector.shape_cast %33 : vector<128xf32> to vector<1x128xf32>
    %35 = arith.mulf %32, %32 : vector<16x128xf32>
    %cst_15 = arith.constant dense<0.000000e+00> : vector<128xf32>
    %36 = vector.multi_reduction <add>, %35, %cst_15 [0] : vector<16x128xf32> to vector<128xf32>
    %37 = vector.shape_cast %36 : vector<128xf32> to vector<1x128xf32>
    %cst_16 = arith.constant 6.250000e-02 : f32
    %38 = vector.broadcast %cst_16 : f32 to vector<1x128xf32>
    %39 = arith.mulf %34, %38 : vector<1x128xf32>
    %cst_17 = arith.constant 6.250000e-02 : f32
    %40 = vector.broadcast %cst_17 : f32 to vector<1x128xf32>
    %41 = arith.mulf %37, %40 : vector<1x128xf32>
    %42 = arith.mulf %39, %39 : vector<1x128xf32>
    %43 = arith.subf %41, %42 : vector<1x128xf32>
    %cst_18 = arith.constant 0.000000e+00 : f32
    %44 = vector.broadcast %cst_18 : f32 to vector<1x128xf32>
    %45 = arith.maximumf %43, %44 : vector<1x128xf32>
    %cst_19 = arith.constant 9.99999974E-6 : f32
    %46 = vector.broadcast %cst_19 : f32 to vector<1x128xf32>
    %47 = arith.addf %45, %46 : vector<1x128xf32>
    %48 = math.rsqrt %47 : vector<1x128xf32>
    %49 = vector.broadcast %39 : vector<1x128xf32> to vector<16x128xf32>
    %50 = arith.subf %32, %49 : vector<16x128xf32>
    %51 = vector.broadcast %48 : vector<1x128xf32> to vector<16x128xf32>
    %52 = arith.mulf %50, %51 : vector<16x128xf32>
    %cst_20 = arith.constant 0.000000e+00 : f32
    %53 = vector.broadcast %cst_20 : f32 to vector<16x128xf32>
    %54 = arith.maximumf %52, %53 : vector<16x128xf32>
    %55 = vector.extract_strided_slice %54 {offsets = [0, 0], sizes = [16, 64], strides = [1, 1]} : vector<16x128xf32> to vector<16x64xf32>
    %56 = arith.truncf %55 : vector<16x64xf32> to vector<16x64xbf16>
    %c16 = arith.constant 16 : index
    %c0_21 = arith.constant 0 : index
    %57 = vector.load %arg4[%c16, %c0_21] : memref<32x64xbf16, #tpu.memory_space<vmem>>, vector<16x64xbf16>
    tpu.vector_store %arg4[%c16, %c0_21], %56 {strides = array<i32>} : memref<32x64xbf16, #tpu.memory_space<vmem>>, vector<16x64xbf16>,
    return
  }
  func.func @transform_0(%arg0: i32) -> (i32, i32) {
    %c0_i32 = arith.constant 0 : i32
    %c0_i32_0 = arith.constant 0 : i32
    return %arg0, %c0_i32 : i32, i32
  }
  func.func @transform_1(%arg0: i32) -> (i32, i32) {
    %c0_i32 = arith.constant 0 : i32
    %c0_i32_0 = arith.constant 0 : i32
    %c0_i32_1 = arith.constant 0 : i32
    return %c0_i32, %c0_i32_0 : i32, i32
  }
  func.func @transform_2(%arg0: i32) -> (i32, i32) {
    %c0_i32 = arith.constant 0 : i32
    %c0_i32_0 = arith.constant 0 : i32
    %c0_i32_1 = arith.constant 0 : i32
    return %c0_i32, %c0_i32_0 : i32, i32
  }
  func.func @transform_3(%arg0: i32) -> (i32, i32) {
    %c0_i32 = arith.constant 0 : i32
    %c0_i32_0 = arith.constant 0 : i32
    return %arg0, %c0_i32 : i32, i32
  }
}

module attributes {stable_mosaic.version = 11 : i64} {
  func.func @_conv_fused_kernel(%arg0: i32, %arg1: memref<32x640xbf16, #tpu.memory_space<vmem>>, %arg2: memref<640x128xbf16, #tpu.memory_space<vmem>>, %arg3: memref<1x128xf32, #tpu.memory_space<vmem>>, %arg4: memref<32x64xbf16, #tpu.memory_space<vmem>>, %arg5: memref<32x64xbf16, #tpu.memory_space<vmem>>) attributes {dimension_semantics = [#tpu.dimension_semantics<parallel>], iteration_bounds = array<i64: 1>, scalar_prefetch = 0 : i64, scratch_operands = 0 : i64, tpu.core_type = #tpu.core_type<tc>, window_params = [{transform_indices = @transform_0, window_bounds = array<i64: 32, 640>}, {pipeline_mode = #tpu.pipeline_mode<synchronous>, transform_indices = @transform_1, window_bounds = array<i64: 640, 128>}, {pipeline_mode = #tpu.pipeline_mode<synchronous>, transform_indices = @transform_2, window_bounds = array<i64: 1, 128>}, {transform_indices = @transform_3, window_bounds = array<i64: 32, 64>}, {transform_indices = @transform_4, window_bounds = array<i64: 32, 64>}]} {
    %c0 = arith.constant 0 : index
    %c0_0 = arith.constant 0 : index
    %0 = vector.load %arg1[%c0, %c0_0] : memref<32x640xbf16, #tpu.memory_space<vmem>>, vector<32x640xbf16>
    %c0_1 = arith.constant 0 : index
    %c0_2 = arith.constant 0 : index
    %1 = vector.load %arg2[%c0_1, %c0_2] : memref<640x128xbf16, #tpu.memory_space<vmem>>, vector<640x128xbf16>
    %cst = arith.constant dense<0.000000e+00> : vector<32x128xf32>
    %2 = tpu.matmul %0, %1, %cst {dimension_numbers = #tpu.dot_dimension_numbers<[1], [0], [0], [1], [0, 0, 1, 1], [], []>} : vector<32x640xbf16>, vector<640x128xbf16>, vector<32x128xf32> -> vector<32x128xf32>
    %c0_3 = arith.constant 0 : index
    %c0_4 = arith.constant 0 : index
    %3 = vector.load %arg3[%c0_3, %c0_4] : memref<1x128xf32, #tpu.memory_space<vmem>>, vector<1x128xf32>
    %4 = vector.broadcast %3 : vector<1x128xf32> to vector<32x128xf32>
    %5 = arith.addf %2, %4 : vector<32x128xf32>
    %6 = vector.extract_strided_slice %5 {offsets = [0, 0], sizes = [16, 128], strides = [1, 1]} : vector<32x128xf32> to vector<16x128xf32>
    %cst_5 = arith.constant dense<0.000000e+00> : vector<128xf32>
    %7 = vector.multi_reduction <add>, %6, %cst_5 [0] : vector<16x128xf32> to vector<128xf32>
    %8 = vector.shape_cast %7 : vector<128xf32> to vector<1x128xf32>
    %9 = arith.mulf %6, %6 : vector<16x128xf32>
    %cst_6 = arith.constant dense<0.000000e+00> : vector<128xf32>
    %10 = vector.multi_reduction <add>, %9, %cst_6 [0] : vector<16x128xf32> to vector<128xf32>
    %11 = vector.shape_cast %10 : vector<128xf32> to vector<1x128xf32>
    %cst_7 = arith.constant 6.250000e-02 : f32
    %12 = vector.broadcast %cst_7 : f32 to vector<1x128xf32>
    %13 = arith.mulf %8, %12 : vector<1x128xf32>
    %cst_8 = arith.constant 6.250000e-02 : f32
    %14 = vector.broadcast %cst_8 : f32 to vector<1x128xf32>
    %15 = arith.mulf %11, %14 : vector<1x128xf32>
    %16 = arith.mulf %13, %13 : vector<1x128xf32>
    %17 = arith.subf %15, %16 : vector<1x128xf32>
    %cst_9 = arith.constant 0.000000e+00 : f32
    %18 = vector.broadcast %cst_9 : f32 to vector<1x128xf32>
    %19 = arith.maximumf %17, %18 : vector<1x128xf32>
    %cst_10 = arith.constant 9.99999974E-6 : f32
    %20 = vector.broadcast %cst_10 : f32 to vector<1x128xf32>
    %21 = arith.addf %19, %20 : vector<1x128xf32>
    %22 = math.rsqrt %21 : vector<1x128xf32>
    %23 = vector.broadcast %13 : vector<1x128xf32> to vector<16x128xf32>
    %24 = arith.subf %6, %23 : vector<16x128xf32>
    %25 = vector.broadcast %22 : vector<1x128xf32> to vector<16x128xf32>
    %26 = arith.mulf %24, %25 : vector<16x128xf32>
    %27 = vector.extract_strided_slice %26 {offsets = [0, 0], sizes = [16, 64], strides = [1, 1]} : vector<16x128xf32> to vector<16x64xf32>
    %c0_11 = arith.constant 0 : index
    %c0_12 = arith.constant 0 : index
    %28 = vector.load %arg4[%c0_11, %c0_12] : memref<32x64xbf16, #tpu.memory_space<vmem>>, vector<16x64xbf16>
    %29 = arith.extf %28 : vector<16x64xbf16> to vector<16x64xf32>
    %30 = arith.addf %27, %29 : vector<16x64xf32>
    %31 = arith.truncf %30 : vector<16x64xf32> to vector<16x64xbf16>
    %c0_13 = arith.constant 0 : index
    %c0_14 = arith.constant 0 : index
    %32 = vector.load %arg5[%c0_13, %c0_14] : memref<32x64xbf16, #tpu.memory_space<vmem>>, vector<16x64xbf16>
    tpu.vector_store %arg5[%c0_13, %c0_14], %31 {strides = array<i32>} : memref<32x64xbf16, #tpu.memory_space<vmem>>, vector<16x64xbf16>,
    %33 = vector.extract_strided_slice %5 {offsets = [16, 0], sizes = [16, 128], strides = [1, 1]} : vector<32x128xf32> to vector<16x128xf32>
    %cst_15 = arith.constant dense<0.000000e+00> : vector<128xf32>
    %34 = vector.multi_reduction <add>, %33, %cst_15 [0] : vector<16x128xf32> to vector<128xf32>
    %35 = vector.shape_cast %34 : vector<128xf32> to vector<1x128xf32>
    %36 = arith.mulf %33, %33 : vector<16x128xf32>
    %cst_16 = arith.constant dense<0.000000e+00> : vector<128xf32>
    %37 = vector.multi_reduction <add>, %36, %cst_16 [0] : vector<16x128xf32> to vector<128xf32>
    %38 = vector.shape_cast %37 : vector<128xf32> to vector<1x128xf32>
    %cst_17 = arith.constant 6.250000e-02 : f32
    %39 = vector.broadcast %cst_17 : f32 to vector<1x128xf32>
    %40 = arith.mulf %35, %39 : vector<1x128xf32>
    %cst_18 = arith.constant 6.250000e-02 : f32
    %41 = vector.broadcast %cst_18 : f32 to vector<1x128xf32>
    %42 = arith.mulf %38, %41 : vector<1x128xf32>
    %43 = arith.mulf %40, %40 : vector<1x128xf32>
    %44 = arith.subf %42, %43 : vector<1x128xf32>
    %cst_19 = arith.constant 0.000000e+00 : f32
    %45 = vector.broadcast %cst_19 : f32 to vector<1x128xf32>
    %46 = arith.maximumf %44, %45 : vector<1x128xf32>
    %cst_20 = arith.constant 9.99999974E-6 : f32
    %47 = vector.broadcast %cst_20 : f32 to vector<1x128xf32>
    %48 = arith.addf %46, %47 : vector<1x128xf32>
    %49 = math.rsqrt %48 : vector<1x128xf32>
    %50 = vector.broadcast %40 : vector<1x128xf32> to vector<16x128xf32>
    %51 = arith.subf %33, %50 : vector<16x128xf32>
    %52 = vector.broadcast %49 : vector<1x128xf32> to vector<16x128xf32>
    %53 = arith.mulf %51, %52 : vector<16x128xf32>
    %54 = vector.extract_strided_slice %53 {offsets = [0, 0], sizes = [16, 64], strides = [1, 1]} : vector<16x128xf32> to vector<16x64xf32>
    %c16 = arith.constant 16 : index
    %c0_21 = arith.constant 0 : index
    %55 = vector.load %arg4[%c16, %c0_21] : memref<32x64xbf16, #tpu.memory_space<vmem>>, vector<16x64xbf16>
    %56 = arith.extf %55 : vector<16x64xbf16> to vector<16x64xf32>
    %57 = arith.addf %54, %56 : vector<16x64xf32>
    %58 = arith.truncf %57 : vector<16x64xf32> to vector<16x64xbf16>
    %c16_22 = arith.constant 16 : index
    %c0_23 = arith.constant 0 : index
    %59 = vector.load %arg5[%c16_22, %c0_23] : memref<32x64xbf16, #tpu.memory_space<vmem>>, vector<16x64xbf16>
    tpu.vector_store %arg5[%c16_22, %c0_23], %58 {strides = array<i32>} : memref<32x64xbf16, #tpu.memory_space<vmem>>, vector<16x64xbf16>,
    return
  }
  func.func @transform_0(%arg0: i32) -> (i32, i32) {
    %c0_i32 = arith.constant 0 : i32
    %c0_i32_0 = arith.constant 0 : i32
    return %arg0, %c0_i32 : i32, i32
  }
  func.func @transform_1(%arg0: i32) -> (i32, i32) {
    %c0_i32 = arith.constant 0 : i32
    %c0_i32_0 = arith.constant 0 : i32
    %c0_i32_1 = arith.constant 0 : i32
    return %c0_i32, %c0_i32_0 : i32, i32
  }
  func.func @transform_2(%arg0: i32) -> (i32, i32) {
    %c0_i32 = arith.constant 0 : i32
    %c0_i32_0 = arith.constant 0 : i32
    %c0_i32_1 = arith.constant 0 : i32
    return %c0_i32, %c0_i32_0 : i32, i32
  }
  func.func @transform_3(%arg0: i32) -> (i32, i32) {
    %c0_i32 = arith.constant 0 : i32
    %c0_i32_0 = arith.constant 0 : i32
    return %arg0, %c0_i32 : i32, i32
  }
  func.func @transform_4(%arg0: i32) -> (i32, i32) {
    %c0_i32 = arith.constant 0 : i32
    %c0_i32_0 = arith.constant 0 : i32
    return %arg0, %c0_i32 : i32, i32
  }
}

module attributes {stable_mosaic.version = 11 : i64} {
  func.func @_conv_fused_kernel(%arg0: i32, %arg1: memref<32x256xbf16, #tpu.memory_space<vmem>>, %arg2: memref<256x128xbf16, #tpu.memory_space<vmem>>, %arg3: memref<1x128xf32, #tpu.memory_space<vmem>>, %arg4: memref<32x128xbf16, #tpu.memory_space<vmem>>) attributes {dimension_semantics = [#tpu.dimension_semantics<parallel>], iteration_bounds = array<i64: 1>, scalar_prefetch = 0 : i64, scratch_operands = 0 : i64, tpu.core_type = #tpu.core_type<tc>, window_params = [{transform_indices = @transform_0, window_bounds = array<i64: 32, 256>}, {pipeline_mode = #tpu.pipeline_mode<synchronous>, transform_indices = @transform_1, window_bounds = array<i64: 256, 128>}, {pipeline_mode = #tpu.pipeline_mode<synchronous>, transform_indices = @transform_2, window_bounds = array<i64: 1, 128>}, {transform_indices = @transform_3, window_bounds = array<i64: 32, 128>}]} {
    %c0 = arith.constant 0 : index
    %c0_0 = arith.constant 0 : index
    %0 = vector.load %arg1[%c0, %c0_0] : memref<32x256xbf16, #tpu.memory_space<vmem>>, vector<32x256xbf16>
    %c0_1 = arith.constant 0 : index
    %c0_2 = arith.constant 0 : index
    %1 = vector.load %arg2[%c0_1, %c0_2] : memref<256x128xbf16, #tpu.memory_space<vmem>>, vector<256x128xbf16>
    %cst = arith.constant dense<0.000000e+00> : vector<32x128xf32>
    %2 = tpu.matmul %0, %1, %cst {dimension_numbers = #tpu.dot_dimension_numbers<[1], [0], [0], [1], [0, 0, 1, 1], [], []>} : vector<32x256xbf16>, vector<256x128xbf16>, vector<32x128xf32> -> vector<32x128xf32>
    %c0_3 = arith.constant 0 : index
    %c0_4 = arith.constant 0 : index
    %3 = vector.load %arg3[%c0_3, %c0_4] : memref<1x128xf32, #tpu.memory_space<vmem>>, vector<1x128xf32>
    %4 = vector.broadcast %3 : vector<1x128xf32> to vector<32x128xf32>
    %5 = arith.addf %2, %4 : vector<32x128xf32>
    %6 = vector.extract_strided_slice %5 {offsets = [0, 0], sizes = [16, 128], strides = [1, 1]} : vector<32x128xf32> to vector<16x128xf32>
    %cst_5 = arith.constant dense<0.000000e+00> : vector<128xf32>
    %7 = vector.multi_reduction <add>, %6, %cst_5 [0] : vector<16x128xf32> to vector<128xf32>
    %8 = vector.shape_cast %7 : vector<128xf32> to vector<1x128xf32>
    %9 = arith.mulf %6, %6 : vector<16x128xf32>
    %cst_6 = arith.constant dense<0.000000e+00> : vector<128xf32>
    %10 = vector.multi_reduction <add>, %9, %cst_6 [0] : vector<16x128xf32> to vector<128xf32>
    %11 = vector.shape_cast %10 : vector<128xf32> to vector<1x128xf32>
    %c32_i32 = arith.constant 32 : i32
    %12 = tpu.dynamic_rotate %8 by %c32_i32 dim 1 : vector<1x128xf32>, i32 -> vector<1x128xf32>
    %13 = arith.addf %8, %12 : vector<1x128xf32>
    %c32_i32_7 = arith.constant 32 : i32
    %14 = tpu.dynamic_rotate %11 by %c32_i32_7 dim 1 : vector<1x128xf32>, i32 -> vector<1x128xf32>
    %15 = arith.addf %11, %14 : vector<1x128xf32>
    %c64_i32 = arith.constant 64 : i32
    %16 = tpu.dynamic_rotate %8 by %c64_i32 dim 1 : vector<1x128xf32>, i32 -> vector<1x128xf32>
    %17 = arith.addf %13, %16 : vector<1x128xf32>
    %c64_i32_8 = arith.constant 64 : i32
    %18 = tpu.dynamic_rotate %11 by %c64_i32_8 dim 1 : vector<1x128xf32>, i32 -> vector<1x128xf32>
    %19 = arith.addf %15, %18 : vector<1x128xf32>
    %c96_i32 = arith.constant 96 : i32
    %20 = tpu.dynamic_rotate %8 by %c96_i32 dim 1 : vector<1x128xf32>, i32 -> vector<1x128xf32>
    %21 = arith.addf %17, %20 : vector<1x128xf32>
    %c96_i32_9 = arith.constant 96 : i32
    %22 = tpu.dynamic_rotate %11 by %c96_i32_9 dim 1 : vector<1x128xf32>, i32 -> vector<1x128xf32>
    %23 = arith.addf %19, %22 : vector<1x128xf32>
    %cst_10 = arith.constant 1.562500e-02 : f32
    %24 = vector.broadcast %cst_10 : f32 to vector<1x128xf32>
    %25 = arith.mulf %21, %24 : vector<1x128xf32>
    %cst_11 = arith.constant 1.562500e-02 : f32
    %26 = vector.broadcast %cst_11 : f32 to vector<1x128xf32>
    %27 = arith.mulf %23, %26 : vector<1x128xf32>
    %28 = arith.mulf %25, %25 : vector<1x128xf32>
    %29 = arith.subf %27, %28 : vector<1x128xf32>
    %cst_12 = arith.constant 0.000000e+00 : f32
    %30 = vector.broadcast %cst_12 : f32 to vector<1x128xf32>
    %31 = arith.maximumf %29, %30 : vector<1x128xf32>
    %cst_13 = arith.constant 9.99999974E-6 : f32
    %32 = vector.broadcast %cst_13 : f32 to vector<1x128xf32>
    %33 = arith.addf %31, %32 : vector<1x128xf32>
    %34 = math.rsqrt %33 : vector<1x128xf32>
    %35 = vector.broadcast %25 : vector<1x128xf32> to vector<16x128xf32>
    %36 = arith.subf %6, %35 : vector<16x128xf32>
    %37 = vector.broadcast %34 : vector<1x128xf32> to vector<16x128xf32>
    %38 = arith.mulf %36, %37 : vector<16x128xf32>
    %cst_14 = arith.constant 0.000000e+00 : f32
    %39 = vector.broadcast %cst_14 : f32 to vector<16x128xf32>
    %40 = arith.maximumf %38, %39 : vector<16x128xf32>
    %41 = arith.truncf %40 : vector<16x128xf32> to vector<16x128xbf16>
    %c0_15 = arith.constant 0 : index
    %c0_16 = arith.constant 0 : index
    %42 = vector.load %arg4[%c0_15, %c0_16] : memref<32x128xbf16, #tpu.memory_space<vmem>>, vector<16x128xbf16>
    tpu.vector_store %arg4[%c0_15, %c0_16], %41 {strides = array<i32>} : memref<32x128xbf16, #tpu.memory_space<vmem>>, vector<16x128xbf16>,
    %43 = vector.extract_strided_slice %5 {offsets = [16, 0], sizes = [16, 128], strides = [1, 1]} : vector<32x128xf32> to vector<16x128xf32>
    %cst_17 = arith.constant dense<0.000000e+00> : vector<128xf32>
    %44 = vector.multi_reduction <add>, %43, %cst_17 [0] : vector<16x128xf32> to vector<128xf32>
    %45 = vector.shape_cast %44 : vector<128xf32> to vector<1x128xf32>
    %46 = arith.mulf %43, %43 : vector<16x128xf32>
    %cst_18 = arith.constant dense<0.000000e+00> : vector<128xf32>
    %47 = vector.multi_reduction <add>, %46, %cst_18 [0] : vector<16x128xf32> to vector<128xf32>
    %48 = vector.shape_cast %47 : vector<128xf32> to vector<1x128xf32>
    %c32_i32_19 = arith.constant 32 : i32
    %49 = tpu.dynamic_rotate %45 by %c32_i32_19 dim 1 : vector<1x128xf32>, i32 -> vector<1x128xf32>
    %50 = arith.addf %45, %49 : vector<1x128xf32>
    %c32_i32_20 = arith.constant 32 : i32
    %51 = tpu.dynamic_rotate %48 by %c32_i32_20 dim 1 : vector<1x128xf32>, i32 -> vector<1x128xf32>
    %52 = arith.addf %48, %51 : vector<1x128xf32>
    %c64_i32_21 = arith.constant 64 : i32
    %53 = tpu.dynamic_rotate %45 by %c64_i32_21 dim 1 : vector<1x128xf32>, i32 -> vector<1x128xf32>
    %54 = arith.addf %50, %53 : vector<1x128xf32>
    %c64_i32_22 = arith.constant 64 : i32
    %55 = tpu.dynamic_rotate %48 by %c64_i32_22 dim 1 : vector<1x128xf32>, i32 -> vector<1x128xf32>
    %56 = arith.addf %52, %55 : vector<1x128xf32>
    %c96_i32_23 = arith.constant 96 : i32
    %57 = tpu.dynamic_rotate %45 by %c96_i32_23 dim 1 : vector<1x128xf32>, i32 -> vector<1x128xf32>
    %58 = arith.addf %54, %57 : vector<1x128xf32>
    %c96_i32_24 = arith.constant 96 : i32
    %59 = tpu.dynamic_rotate %48 by %c96_i32_24 dim 1 : vector<1x128xf32>, i32 -> vector<1x128xf32>
    %60 = arith.addf %56, %59 : vector<1x128xf32>
    %cst_25 = arith.constant 1.562500e-02 : f32
    %61 = vector.broadcast %cst_25 : f32 to vector<1x128xf32>
    %62 = arith.mulf %58, %61 : vector<1x128xf32>
    %cst_26 = arith.constant 1.562500e-02 : f32
    %63 = vector.broadcast %cst_26 : f32 to vector<1x128xf32>
    %64 = arith.mulf %60, %63 : vector<1x128xf32>
    %65 = arith.mulf %62, %62 : vector<1x128xf32>
    %66 = arith.subf %64, %65 : vector<1x128xf32>
    %cst_27 = arith.constant 0.000000e+00 : f32
    %67 = vector.broadcast %cst_27 : f32 to vector<1x128xf32>
    %68 = arith.maximumf %66, %67 : vector<1x128xf32>
    %cst_28 = arith.constant 9.99999974E-6 : f32
    %69 = vector.broadcast %cst_28 : f32 to vector<1x128xf32>
    %70 = arith.addf %68, %69 : vector<1x128xf32>
    %71 = math.rsqrt %70 : vector<1x128xf32>
    %72 = vector.broadcast %62 : vector<1x128xf32> to vector<16x128xf32>
    %73 = arith.subf %43, %72 : vector<16x128xf32>
    %74 = vector.broadcast %71 : vector<1x128xf32> to vector<16x128xf32>
    %75 = arith.mulf %73, %74 : vector<16x128xf32>
    %cst_29 = arith.constant 0.000000e+00 : f32
    %76 = vector.broadcast %cst_29 : f32 to vector<16x128xf32>
    %77 = arith.maximumf %75, %76 : vector<16x128xf32>
    %78 = arith.truncf %77 : vector<16x128xf32> to vector<16x128xbf16>
    %c16 = arith.constant 16 : index
    %c0_30 = arith.constant 0 : index
    %79 = vector.load %arg4[%c16, %c0_30] : memref<32x128xbf16, #tpu.memory_space<vmem>>, vector<16x128xbf16>
    tpu.vector_store %arg4[%c16, %c0_30], %78 {strides = array<i32>} : memref<32x128xbf16, #tpu.memory_space<vmem>>, vector<16x128xbf16>,
    return
  }
  func.func @transform_0(%arg0: i32) -> (i32, i32) {
    %c0_i32 = arith.constant 0 : i32
    %c0_i32_0 = arith.constant 0 : i32
    return %arg0, %c0_i32 : i32, i32
  }
  func.func @transform_1(%arg0: i32) -> (i32, i32) {
    %c0_i32 = arith.constant 0 : i32
    %c0_i32_0 = arith.constant 0 : i32
    %c0_i32_1 = arith.constant 0 : i32
    return %c0_i32, %c0_i32_0 : i32, i32
  }
  func.func @transform_2(%arg0: i32) -> (i32, i32) {
    %c0_i32 = arith.constant 0 : i32
    %c0_i32_0 = arith.constant 0 : i32
    %c0_i32_1 = arith.constant 0 : i32
    return %c0_i32, %c0_i32_0 : i32, i32
  }
  func.func @transform_3(%arg0: i32) -> (i32, i32) {
    %c0_i32 = arith.constant 0 : i32
    %c0_i32_0 = arith.constant 0 : i32
    return %arg0, %c0_i32 : i32, i32
  }
}

module attributes {stable_mosaic.version = 11 : i64} {
  func.func @_conv_fused_kernel(%arg0: i32, %arg1: memref<128x128xbf16, #tpu.memory_space<vmem>>, %arg2: memref<128x128xbf16, #tpu.memory_space<vmem>>, %arg3: memref<1x128xf32, #tpu.memory_space<vmem>>, %arg4: memref<128x128xbf16, #tpu.memory_space<vmem>>) attributes {dimension_semantics = [#tpu.dimension_semantics<parallel>], iteration_bounds = array<i64: 1>, scalar_prefetch = 0 : i64, scratch_operands = 0 : i64, tpu.core_type = #tpu.core_type<tc>, window_params = [{transform_indices = @transform_0, window_bounds = array<i64: 128, 128>}, {pipeline_mode = #tpu.pipeline_mode<synchronous>, transform_indices = @transform_1, window_bounds = array<i64: 128, 128>}, {pipeline_mode = #tpu.pipeline_mode<synchronous>, transform_indices = @transform_2, window_bounds = array<i64: 1, 128>}, {transform_indices = @transform_3, window_bounds = array<i64: 128, 128>}]} {
    %c0 = arith.constant 0 : index
    %c0_0 = arith.constant 0 : index
    %0 = vector.load %arg1[%c0, %c0_0] : memref<128x128xbf16, #tpu.memory_space<vmem>>, vector<128x128xbf16>
    %c0_1 = arith.constant 0 : index
    %c0_2 = arith.constant 0 : index
    %1 = vector.load %arg2[%c0_1, %c0_2] : memref<128x128xbf16, #tpu.memory_space<vmem>>, vector<128x128xbf16>
    %cst = arith.constant dense<0.000000e+00> : vector<128x128xf32>
    %2 = tpu.matmul %0, %1, %cst {dimension_numbers = #tpu.dot_dimension_numbers<[1], [0], [0], [1], [0, 0, 1, 1], [], []>} : vector<128x128xbf16>, vector<128x128xbf16>, vector<128x128xf32> -> vector<128x128xf32>
    %c0_3 = arith.constant 0 : index
    %c0_4 = arith.constant 0 : index
    %3 = vector.load %arg3[%c0_3, %c0_4] : memref<1x128xf32, #tpu.memory_space<vmem>>, vector<1x128xf32>
    %4 = vector.broadcast %3 : vector<1x128xf32> to vector<128x128xf32>
    %5 = arith.addf %2, %4 : vector<128x128xf32>
    %6 = vector.extract_strided_slice %5 {offsets = [0, 0], sizes = [64, 128], strides = [1, 1]} : vector<128x128xf32> to vector<64x128xf32>
    %cst_5 = arith.constant dense<0.000000e+00> : vector<128xf32>
    %7 = vector.multi_reduction <add>, %6, %cst_5 [0] : vector<64x128xf32> to vector<128xf32>
    %8 = vector.shape_cast %7 : vector<128xf32> to vector<1x128xf32>
    %9 = arith.mulf %6, %6 : vector<64x128xf32>
    %cst_6 = arith.constant dense<0.000000e+00> : vector<128xf32>
    %10 = vector.multi_reduction <add>, %9, %cst_6 [0] : vector<64x128xf32> to vector<128xf32>
    %11 = vector.shape_cast %10 : vector<128xf32> to vector<1x128xf32>
    %c32_i32 = arith.constant 32 : i32
    %12 = tpu.dynamic_rotate %8 by %c32_i32 dim 1 : vector<1x128xf32>, i32 -> vector<1x128xf32>
    %13 = arith.addf %8, %12 : vector<1x128xf32>
    %c32_i32_7 = arith.constant 32 : i32
    %14 = tpu.dynamic_rotate %11 by %c32_i32_7 dim 1 : vector<1x128xf32>, i32 -> vector<1x128xf32>
    %15 = arith.addf %11, %14 : vector<1x128xf32>
    %c64_i32 = arith.constant 64 : i32
    %16 = tpu.dynamic_rotate %8 by %c64_i32 dim 1 : vector<1x128xf32>, i32 -> vector<1x128xf32>
    %17 = arith.addf %13, %16 : vector<1x128xf32>
    %c64_i32_8 = arith.constant 64 : i32
    %18 = tpu.dynamic_rotate %11 by %c64_i32_8 dim 1 : vector<1x128xf32>, i32 -> vector<1x128xf32>
    %19 = arith.addf %15, %18 : vector<1x128xf32>
    %c96_i32 = arith.constant 96 : i32
    %20 = tpu.dynamic_rotate %8 by %c96_i32 dim 1 : vector<1x128xf32>, i32 -> vector<1x128xf32>
    %21 = arith.addf %17, %20 : vector<1x128xf32>
    %c96_i32_9 = arith.constant 96 : i32
    %22 = tpu.dynamic_rotate %11 by %c96_i32_9 dim 1 : vector<1x128xf32>, i32 -> vector<1x128xf32>
    %23 = arith.addf %19, %22 : vector<1x128xf32>
    %cst_10 = arith.constant 3.906250e-03 : f32
    %24 = vector.broadcast %cst_10 : f32 to vector<1x128xf32>
    %25 = arith.mulf %21, %24 : vector<1x128xf32>
    %cst_11 = arith.constant 3.906250e-03 : f32
    %26 = vector.broadcast %cst_11 : f32 to vector<1x128xf32>
    %27 = arith.mulf %23, %26 : vector<1x128xf32>
    %28 = arith.mulf %25, %25 : vector<1x128xf32>
    %29 = arith.subf %27, %28 : vector<1x128xf32>
    %cst_12 = arith.constant 0.000000e+00 : f32
    %30 = vector.broadcast %cst_12 : f32 to vector<1x128xf32>
    %31 = arith.maximumf %29, %30 : vector<1x128xf32>
    %cst_13 = arith.constant 9.99999974E-6 : f32
    %32 = vector.broadcast %cst_13 : f32 to vector<1x128xf32>
    %33 = arith.addf %31, %32 : vector<1x128xf32>
    %34 = math.rsqrt %33 : vector<1x128xf32>
    %35 = vector.broadcast %25 : vector<1x128xf32> to vector<64x128xf32>
    %36 = arith.subf %6, %35 : vector<64x128xf32>
    %37 = vector.broadcast %34 : vector<1x128xf32> to vector<64x128xf32>
    %38 = arith.mulf %36, %37 : vector<64x128xf32>
    %cst_14 = arith.constant 0.000000e+00 : f32
    %39 = vector.broadcast %cst_14 : f32 to vector<64x128xf32>
    %40 = arith.maximumf %38, %39 : vector<64x128xf32>
    %41 = arith.truncf %40 : vector<64x128xf32> to vector<64x128xbf16>
    %c0_15 = arith.constant 0 : index
    %c0_16 = arith.constant 0 : index
    %42 = vector.load %arg4[%c0_15, %c0_16] : memref<128x128xbf16, #tpu.memory_space<vmem>>, vector<64x128xbf16>
    tpu.vector_store %arg4[%c0_15, %c0_16], %41 {strides = array<i32>} : memref<128x128xbf16, #tpu.memory_space<vmem>>, vector<64x128xbf16>,
    %43 = vector.extract_strided_slice %5 {offsets = [64, 0], sizes = [64, 128], strides = [1, 1]} : vector<128x128xf32> to vector<64x128xf32>
    %cst_17 = arith.constant dense<0.000000e+00> : vector<128xf32>
    %44 = vector.multi_reduction <add>, %43, %cst_17 [0] : vector<64x128xf32> to vector<128xf32>
    %45 = vector.shape_cast %44 : vector<128xf32> to vector<1x128xf32>
    %46 = arith.mulf %43, %43 : vector<64x128xf32>
    %cst_18 = arith.constant dense<0.000000e+00> : vector<128xf32>
    %47 = vector.multi_reduction <add>, %46, %cst_18 [0] : vector<64x128xf32> to vector<128xf32>
    %48 = vector.shape_cast %47 : vector<128xf32> to vector<1x128xf32>
    %c32_i32_19 = arith.constant 32 : i32
    %49 = tpu.dynamic_rotate %45 by %c32_i32_19 dim 1 : vector<1x128xf32>, i32 -> vector<1x128xf32>
    %50 = arith.addf %45, %49 : vector<1x128xf32>
    %c32_i32_20 = arith.constant 32 : i32
    %51 = tpu.dynamic_rotate %48 by %c32_i32_20 dim 1 : vector<1x128xf32>, i32 -> vector<1x128xf32>
    %52 = arith.addf %48, %51 : vector<1x128xf32>
    %c64_i32_21 = arith.constant 64 : i32
    %53 = tpu.dynamic_rotate %45 by %c64_i32_21 dim 1 : vector<1x128xf32>, i32 -> vector<1x128xf32>
    %54 = arith.addf %50, %53 : vector<1x128xf32>
    %c64_i32_22 = arith.constant 64 : i32
    %55 = tpu.dynamic_rotate %48 by %c64_i32_22 dim 1 : vector<1x128xf32>, i32 -> vector<1x128xf32>
    %56 = arith.addf %52, %55 : vector<1x128xf32>
    %c96_i32_23 = arith.constant 96 : i32
    %57 = tpu.dynamic_rotate %45 by %c96_i32_23 dim 1 : vector<1x128xf32>, i32 -> vector<1x128xf32>
    %58 = arith.addf %54, %57 : vector<1x128xf32>
    %c96_i32_24 = arith.constant 96 : i32
    %59 = tpu.dynamic_rotate %48 by %c96_i32_24 dim 1 : vector<1x128xf32>, i32 -> vector<1x128xf32>
    %60 = arith.addf %56, %59 : vector<1x128xf32>
    %cst_25 = arith.constant 3.906250e-03 : f32
    %61 = vector.broadcast %cst_25 : f32 to vector<1x128xf32>
    %62 = arith.mulf %58, %61 : vector<1x128xf32>
    %cst_26 = arith.constant 3.906250e-03 : f32
    %63 = vector.broadcast %cst_26 : f32 to vector<1x128xf32>
    %64 = arith.mulf %60, %63 : vector<1x128xf32>
    %65 = arith.mulf %62, %62 : vector<1x128xf32>
    %66 = arith.subf %64, %65 : vector<1x128xf32>
    %cst_27 = arith.constant 0.000000e+00 : f32
    %67 = vector.broadcast %cst_27 : f32 to vector<1x128xf32>
    %68 = arith.maximumf %66, %67 : vector<1x128xf32>
    %cst_28 = arith.constant 9.99999974E-6 : f32
    %69 = vector.broadcast %cst_28 : f32 to vector<1x128xf32>
    %70 = arith.addf %68, %69 : vector<1x128xf32>
    %71 = math.rsqrt %70 : vector<1x128xf32>
    %72 = vector.broadcast %62 : vector<1x128xf32> to vector<64x128xf32>
    %73 = arith.subf %43, %72 : vector<64x128xf32>
    %74 = vector.broadcast %71 : vector<1x128xf32> to vector<64x128xf32>
    %75 = arith.mulf %73, %74 : vector<64x128xf32>
    %cst_29 = arith.constant 0.000000e+00 : f32
    %76 = vector.broadcast %cst_29 : f32 to vector<64x128xf32>
    %77 = arith.maximumf %75, %76 : vector<64x128xf32>
    %78 = arith.truncf %77 : vector<64x128xf32> to vector<64x128xbf16>
    %c64 = arith.constant 64 : index
    %c0_30 = arith.constant 0 : index
    %79 = vector.load %arg4[%c64, %c0_30] : memref<128x128xbf16, #tpu.memory_space<vmem>>, vector<64x128xbf16>
    tpu.vector_store %arg4[%c64, %c0_30], %78 {strides = array<i32>} : memref<128x128xbf16, #tpu.memory_space<vmem>>, vector<64x128xbf16>,
    return
  }
  func.func @transform_0(%arg0: i32) -> (i32, i32) {
    %c0_i32 = arith.constant 0 : i32
    %c0_i32_0 = arith.constant 0 : i32
    return %arg0, %c0_i32 : i32, i32
  }
  func.func @transform_1(%arg0: i32) -> (i32, i32) {
    %c0_i32 = arith.constant 0 : i32
    %c0_i32_0 = arith.constant 0 : i32
    %c0_i32_1 = arith.constant 0 : i32
    return %c0_i32, %c0_i32_0 : i32, i32
  }
  func.func @transform_2(%arg0: i32) -> (i32, i32) {
    %c0_i32 = arith.constant 0 : i32
    %c0_i32_0 = arith.constant 0 : i32
    %c0_i32_1 = arith.constant 0 : i32
    return %c0_i32, %c0_i32_0 : i32, i32
  }
  func.func @transform_3(%arg0: i32) -> (i32, i32) {
    %c0_i32 = arith.constant 0 : i32
    %c0_i32_0 = arith.constant 0 : i32
    return %arg0, %c0_i32 : i32, i32
  }
}

module attributes {stable_mosaic.version = 11 : i64} {
  func.func @_conv_fused_kernel(%arg0: i32, %arg1: memref<512x896xbf16, #tpu.memory_space<vmem>>, %arg2: memref<896x128xbf16, #tpu.memory_space<vmem>>, %arg3: memref<1x128xf32, #tpu.memory_space<vmem>>, %arg4: memref<512x3xbf16, #tpu.memory_space<vmem>>) attributes {dimension_semantics = [#tpu.dimension_semantics<parallel>], iteration_bounds = array<i64: 1>, scalar_prefetch = 0 : i64, scratch_operands = 0 : i64, tpu.core_type = #tpu.core_type<tc>, window_params = [{transform_indices = @transform_0, window_bounds = array<i64: 512, 896>}, {pipeline_mode = #tpu.pipeline_mode<synchronous>, transform_indices = @transform_1, window_bounds = array<i64: 896, 128>}, {pipeline_mode = #tpu.pipeline_mode<synchronous>, transform_indices = @transform_2, window_bounds = array<i64: 1, 128>}, {transform_indices = @transform_3, window_bounds = array<i64: 512, 3>}]} {
    %c0 = arith.constant 0 : index
    %c0_0 = arith.constant 0 : index
    %0 = vector.load %arg1[%c0, %c0_0] : memref<512x896xbf16, #tpu.memory_space<vmem>>, vector<512x896xbf16>
    %c0_1 = arith.constant 0 : index
    %c0_2 = arith.constant 0 : index
    %1 = vector.load %arg2[%c0_1, %c0_2] : memref<896x128xbf16, #tpu.memory_space<vmem>>, vector<896x128xbf16>
    %cst = arith.constant dense<0.000000e+00> : vector<512x128xf32>
    %2 = tpu.matmul %0, %1, %cst {dimension_numbers = #tpu.dot_dimension_numbers<[1], [0], [0], [1], [0, 0, 1, 1], [], []>} : vector<512x896xbf16>, vector<896x128xbf16>, vector<512x128xf32> -> vector<512x128xf32>
    %c0_3 = arith.constant 0 : index
    %c0_4 = arith.constant 0 : index
    %3 = vector.load %arg3[%c0_3, %c0_4] : memref<1x128xf32, #tpu.memory_space<vmem>>, vector<1x128xf32>
    %4 = vector.broadcast %3 : vector<1x128xf32> to vector<512x128xf32>
    %5 = arith.addf %2, %4 : vector<512x128xf32>
    %6 = vector.extract_strided_slice %5 {offsets = [0, 0], sizes = [512, 3], strides = [1, 1]} : vector<512x128xf32> to vector<512x3xf32>
    %7 = math.tanh %6 : vector<512x3xf32>
    %8 = arith.truncf %7 : vector<512x3xf32> to vector<512x3xbf16>
    %c0_5 = arith.constant 0 : index
    %c0_6 = arith.constant 0 : index
    %9 = vector.load %arg4[%c0_5, %c0_6] : memref<512x3xbf16, #tpu.memory_space<vmem>>, vector<512x3xbf16>
    tpu.vector_store %arg4[%c0_5, %c0_6], %8 {strides = array<i32>} : memref<512x3xbf16, #tpu.memory_space<vmem>>, vector<512x3xbf16>,
    return
  }
  func.func @transform_0(%arg0: i32) -> (i32, i32) {
    %c0_i32 = arith.constant 0 : i32
    %c0_i32_0 = arith.constant 0 : i32
    return %arg0, %c0_i32 : i32, i32
  }
  func.func @transform_1(%arg0: i32) -> (i32, i32) {
    %c0_i32 = arith.constant 0 : i32
    %c0_i32_0 = arith.constant 0 : i32
    %c0_i32_1 = arith.constant 0 : i32
    return %c0_i32, %c0_i32_0 : i32, i32
  }
  func.func @transform_2(%arg0: i32) -> (i32, i32) {
    %c0_i32 = arith.constant 0 : i32
    %c0_i32_0 = arith.constant 0 : i32
    %c0_i32_1 = arith.constant 0 : i32
    return %c0_i32, %c0_i32_0 : i32, i32
  }
  func.func @transform_3(%arg0: i32) -> (i32, i32) {
    %c0_i32 = arith.constant 0 : i32
    %c0_i32_0 = arith.constant 0 : i32
    return %arg0, %c0_i32 : i32, i32
  }
}

</mosaic_0001>

<bundles_post_ra>
// kernel: generator_forward.12
= control target key start
LH: loop header
LB: loop body
LE: loop exit
PB: predicated region body
PF: predicated region fallthrough
CT: control target
= control target key end

     0   :  { %vm1118_vm3 = vcmask 125952   ;;  %s3255_s1 = inlined_call_operand.vmem [shape: bf16[256,128], index: 1, kind: input, shape index: {}]   ;;  %s3256_s2 = inlined_call_operand.vmem [shape: f32[1,128], index: 2, kind: input, shape index: {}]   ;;  %s3257_s0 = inlined_call_operand.vmem [shape: bf16[512,256], index: 0, kind: input, shape index: {}]   ;;  %s3258_s3 = inlined_call_operand.vmem [shape: bf16[512,16], index: 3, kind: output, shape index: {}]  }
   0x1   :  { %v1828_v0 = vld [vmem:[%s3255_s1 + $0x38] sm:$0xff]  ;;  %v1827_v2 = vld [vmem:[%s3255_s1 + $0x30] sm:$0xff]  ;;  %v1826_v4 = vld [vmem:[%s3255_s1 + $0x28] sm:$0xff] }
   0x2   :  { %v1836_v1 = vld [vmem:[%s3255_s1 + $0x78] sm:$0xff]  ;;  %530 = vmatpush.bf16.msra.mxu0 %v1828_v0  ;;  %1837 = vmatpush.bf16.msra.mxu2 %v1828_v0  ;;  %v1835_v3 = vld [vmem:[%s3255_s1 + $0x70] sm:$0xff]  ;;  %v1834_v5 = vld [vmem:[%s3255_s1 + $0x68] sm:$0xff] }
   0x3   :  { %699 = vmatpush.bf16.msra.mxu1 %v1836_v1  ;;  %1845 = vmatpush.bf16.msra.mxu3 %v1836_v1  ;;  %v1825_v6 = vld [vmem:[%s3255_s1 + $0x20] sm:$0xff]  ;;  %v1824_v8 = vld [vmem:[%s3255_s1 + $0x18] sm:$0xff]  ;;  %v1823_v10 = vld [vmem:[%s3255_s1 + $0x10] sm:$0xff] }
   0x4   :  { %v1833_v7 = vld [vmem:[%s3255_s1 + $0x60] sm:$0xff]  ;;  %v1832_v9 = vld [vmem:[%s3255_s1 + $0x58] sm:$0xff]  ;;  %v1831_v11 = vld [vmem:[%s3255_s1 + $0x50] sm:$0xff] }
   0x5   :  { %v1822_v12 = vld [vmem:[%s3255_s1 + $0x8] sm:$0xff]  ;;  %v1821_v14 = vld [vmem:[%s3255_s1] sm:$0xff]  ;;  %v1447_v28 = vld [vmem:[%s3257_s0 + $0x10] sm:$0xf] }
   0x6   :  { %531 = vmatpush.bf16.msra.mxu0 %v1827_v2  ;;  %1838 = vmatpush.bf16.msra.mxu2 %v1827_v2  ;;  %v1830_v13 = vld [vmem:[%s3255_s1 + $0x48] sm:$0xff]  ;;  %v1829_v15 = vld [vmem:[%s3255_s1 + $0x40] sm:$0xff]  ;;  %v1760_v29 = vld [vmem:[%s3257_s0 + $0x14] sm:$0xf0] }
   0x7   :  { %700 = vmatpush.bf16.msra.mxu1 %v1835_v3  ;;  %1846 = vmatpush.bf16.msra.mxu3 %v1835_v3  ;;  %v1439_v16 = vld [vmem:[%s3257_s0] sm:$0xf]  ;;  %v1758_v17 = vld [vmem:[%s3257_s0 + $0x4] sm:$0xf0]  ;;  %v1757_v20 = vld [vmem:[%s3257_s0 + $0x4] sm:$0xf]  ;;  %v1448_v36 = vor.u32 %v1760_v29, %v1447_v28 }
   0x8   :  { %v1567_v18 = vld [vmem:[%s3257_s0 + $0x100] sm:$0xf]  ;;  %v1790_v19 = vld [vmem:[%s3257_s0 + $0x104] sm:$0xf0]  ;;  %v1441_v21 = vld [vmem:[%s3257_s0 + $0x8] sm:$0xf0]  ;;  %v1440_v24 = vor.u32 %v1758_v17, %v1439_v16 }
   0x9   :  { %v1789_v22 = vld [vmem:[%s3257_s0 + $0x104] sm:$0xf]  ;;  %v1569_v23 = vld [vmem:[%s3257_s0 + $0x108] sm:$0xf0]  ;;  %v1568_v25 = vor.u32 %v1790_v19, %v1567_v18  ;;  %v1444_v26 = vor.u32 %v1757_v20, %v1441_v21  ;;  %v1575_v30 = vld [vmem:[%s3257_s0 + $0x110] sm:$0xf] }
   0xa   :  { %532 = vmatpush.bf16.msra.mxu0 %v1826_v4  ;;  %1839 = vmatpush.bf16.msra.mxu2 %v1826_v4  ;;  %v1572_v27 = vor.u32 %v1789_v22, %v1569_v23  ;;  %v1792_v31 = vld [vmem:[%s3257_s0 + $0x114] sm:$0xf0]  ;;  %v1759_v32 = vld [vmem:[%s3257_s0 + $0x14] sm:$0xf]  ;;  %v1449_v33 = vld [vmem:[%s3257_s0 + $0x18] sm:$0xf0] }
   0xb   :  { %701 = vmatpush.bf16.msra.mxu1 %v1834_v5  ;;  %1847 = vmatpush.bf16.msra.mxu3 %v1834_v5  ;;  %v1791_v34 = vld [vmem:[%s3257_s0 + $0x114] sm:$0xf]  ;;  %v1577_v35 = vld [vmem:[%s3257_s0 + $0x118] sm:$0xf0]  ;;  %v1576_v37 = vor.u32 %v1792_v31, %v1575_v30  ;;  %v1452_v38 = vor.u32 %v1759_v32, %v1449_v33  ;;  %v1455_v40 = vld [vmem:[%s3257_s0 + $0x20] sm:$0xf] }
   0xc   :  { %v1580_v39 = vor.u32 %v1791_v34, %v1577_v35  ;;  %v1762_v41 = vld [vmem:[%s3257_s0 + $0x24] sm:$0xf0]  ;;  %v1583_v42 = vld [vmem:[%s3257_s0 + $0x120] sm:$0xf]  ;;  %v1761_v44 = vld [vmem:[%s3257_s0 + $0x24] sm:$0xf] }
   0xd   :  { %v1794_v43 = vld [vmem:[%s3257_s0 + $0x124] sm:$0xf0]  ;;  %v1457_v45 = vld [vmem:[%s3257_s0 + $0x28] sm:$0xf0]  ;;  %v1793_v46 = vld [vmem:[%s3257_s0 + $0x124] sm:$0xf]  ;;  %v1456_v48 = vor.u32 %v1762_v41, %v1455_v40 }
   0xe   :  { %533 = vmatpush.bf16.msra.mxu0 %v1825_v6  ;;  %1840 = vmatpush.bf16.msra.mxu2 %v1825_v6  ;;  %v1585_v47 = vld [vmem:[%s3257_s0 + $0x128] sm:$0xf0]  ;;  %v1584_v49 = vor.u32 %v1794_v43, %v1583_v42  ;;  %v1460_v50 = vor.u32 %v1761_v44, %v1457_v45  ;;  %v1463_v52 = vld [vmem:[%s3257_s0 + $0x30] sm:$0xf]  ;;  %v1764_v53 = vld [vmem:[%s3257_s0 + $0x34] sm:$0xf0] }
   0xf   :  { %702 = vmatpush.bf16.msra.mxu1 %v1833_v7  ;;  %1848 = vmatpush.bf16.msra.mxu3 %v1833_v7  ;;  %v1588_v51 = vor.u32 %v1793_v46, %v1585_v47  ;;  %v1591_v54 = vld [vmem:[%s3257_s0 + $0x130] sm:$0xf]  ;;  %v1796_v55 = vld [vmem:[%s3257_s0 + $0x134] sm:$0xf0]  ;;  %v1763_v56 = vld [vmem:[%s3257_s0 + $0x34] sm:$0xf]  ;;  %v1464_v60 = vor.u32 %v1764_v53, %v1463_v52 }
  0x10   :  { %v1465_v57 = vld [vmem:[%s3257_s0 + $0x38] sm:$0xf0]  ;;  %v1795_v58 = vld [vmem:[%s3257_s0 + $0x134] sm:$0xf]  ;;  %v1592_v61 = vor.u32 %v1796_v55, %v1591_v54  ;;  %v1471_v0 = vld [vmem:[%s3257_s0 + $0x40] sm:$0xf] }
  0x11   :  { %v1593_v59 = vld [vmem:[%s3257_s0 + $0x138] sm:$0xf0]  ;;  %v1468_v62 = vor.u32 %v1763_v56, %v1465_v57  ;;  %v1766_v1 = vld [vmem:[%s3257_s0 + $0x44] sm:$0xf0]  ;;  %v1599_v2 = vld [vmem:[%s3257_s0 + $0x140] sm:$0xf] }
  0x12   :  { %534 = vmatpush.bf16.msra.mxu0 %v1824_v8  ;;  %1841 = vmatpush.bf16.msra.mxu2 %v1824_v8  ;;  %v1596_v63 = vor.u32 %v1795_v58, %v1593_v59  ;;  %v1798_v3 = vld [vmem:[%s3257_s0 + $0x144] sm:$0xf0]  ;;  %v1765_v4 = vld [vmem:[%s3257_s0 + $0x44] sm:$0xf]  ;;  %v1473_v5 = vld [vmem:[%s3257_s0 + $0x48] sm:$0xf0]  ;;  %v1472_v8 = vor.u32 %v1766_v1, %v1471_v0 }
  0x13   :  { %703 = vmatpush.bf16.msra.mxu1 %v1832_v9  ;;  %1849 = vmatpush.bf16.msra.mxu3 %v1832_v9  ;;  %v1797_v6 = vld [vmem:[%s3257_s0 + $0x144] sm:$0xf]  ;;  %v1601_v7 = vld [vmem:[%s3257_s0 + $0x148] sm:$0xf0]  ;;  %v1600_v9 = vor.u32 %v1798_v3, %v1599_v2  ;;  %v1767_v16 = vld [vmem:[%s3257_s0 + $0x54] sm:$0xf] }
  0x14   :  { %v1481_v17 = vld [vmem:[%s3257_s0 + $0x58] sm:$0xf0]  ;;  %v1799_v18 = vld [vmem:[%s3257_s0 + $0x154] sm:$0xf]  ;;  %v1769_v28 = vld [vmem:[%s3257_s0 + $0x64] sm:$0xf] }
  0x15   :  { %v1609_v19 = vld [vmem:[%s3257_s0 + $0x158] sm:$0xf0]  ;;  %v1484_v22 = vor.u32 %v1767_v16, %v1481_v17  ;;  %v1489_v29 = vld [vmem:[%s3257_s0 + $0x68] sm:$0xf0]  ;;  %v1801_v30 = vld [vmem:[%s3257_s0 + $0x164] sm:$0xf] }
  0x16   :  { %535 = vmatpush.bf16.msra.mxu0 %v1823_v10  ;;  %1842 = vmatpush.bf16.msra.mxu2 %v1823_v10  ;;  %v1476_v10 = vor.u32 %v1765_v4, %v1473_v5  ;;  %v1612_v23 = vor.u32 %v1799_v18, %v1609_v19  ;;  %v1617_v31 = vld [vmem:[%s3257_s0 + $0x168] sm:$0xf0]  ;;  %v1492_v34 = vor.u32 %v1769_v28, %v1489_v29  ;;  %v1771_v40 = vld [vmem:[%s3257_s0 + $0x74] sm:$0xf]  ;;  %v1497_v41 = vld [vmem:[%s3257_s0 + $0x78] sm:$0xf0] }
  0x17   :  { %704 = vmatpush.bf16.msra.mxu1 %v1831_v11  ;;  %1850 = vmatpush.bf16.msra.mxu3 %v1831_v11  ;;  %v1604_v11 = vor.u32 %v1797_v6, %v1601_v7  ;;  %v1620_v35 = vor.u32 %v1801_v30, %v1617_v31  ;;  %v1803_v42 = vld [vmem:[%s3257_s0 + $0x174] sm:$0xf]  ;;  %v1625_v43 = vld [vmem:[%s3257_s0 + $0x178] sm:$0xf0]  ;;  %v1500_v46 = vor.u32 %v1771_v40, %v1497_v41  ;;  %v1806_v52 = vld [vmem:[%s3257_s0 + $0x184] sm:$0xf0] }
  0x18   :  { %v1628_v47 = vor.u32 %v1803_v42, %v1625_v43  ;;  %v1773_v53 = vld [vmem:[%s3257_s0 + $0x84] sm:$0xf]  ;;  %v1505_v54 = vld [vmem:[%s3257_s0 + $0x88] sm:$0xf0]  ;;  %v1641_v16 = vld [vmem:[%s3257_s0 + $0x198] sm:$0xf0] }
  0x19   :  { %v1805_v55 = vld [vmem:[%s3257_s0 + $0x184] sm:$0xf]  ;;  %v1633_v56 = vld [vmem:[%s3257_s0 + $0x188] sm:$0xf0]  ;;  %v1810_v40 = vld [vmem:[%s3257_s0 + $0x1a4] sm:$0xf0] }
  0x1a   :  { %536 = vmatpush.bf16.msra.mxu0 %v1822_v12  ;;  %1843 = vmatpush.bf16.msra.mxu2 %v1822_v12  ;;  %v1479_v12 = vld [vmem:[%s3257_s0 + $0x50] sm:$0xf]  ;;  %v1777_v41 = vld [vmem:[%s3257_s0 + $0xa4] sm:$0xf]  ;;  %v1521_v42 = vld [vmem:[%s3257_s0 + $0xa8] sm:$0xf0] }
  0x1b   :  { %705 = vmatpush.bf16.msra.mxu1 %v1830_v13  ;;  %1851 = vmatpush.bf16.msra.mxu3 %v1830_v13  ;;  %v1768_v13 = vld [vmem:[%s3257_s0 + $0x54] sm:$0xf0]  ;;  %v1809_v43 = vld [vmem:[%s3257_s0 + $0x1a4] sm:$0xf] }
  0x1c   :  { %v1480_v20 = vor.u32 %v1768_v13, %v1479_v12  ;;  %v1808_v12 = vld [vmem:[%s3257_s0 + $0x194] sm:$0xf0]  ;;  %v1775_v13 = vld [vmem:[%s3257_s0 + $0x94] sm:$0xf] }
  0x1e   :  { %537 = vmatpush.bf16.msra.mxu0 %v1821_v14  ;;  %1844 = vmatpush.bf16.msra.mxu2 %v1821_v14  ;;  %v1607_v14 = vld [vmem:[%s3257_s0 + $0x150] sm:$0xf] }
  0x1f   :  { %706 = vmatpush.bf16.msra.mxu1 %v1829_v15  ;;  %1852 = vmatpush.bf16.msra.mxu3 %v1829_v15  ;;  %v1800_v15 = vld [vmem:[%s3257_s0 + $0x154] sm:$0xf0] }
  0x20   :  { %v1608_v21 = vor.u32 %v1800_v15, %v1607_v14  ;;  %v1513_v14 = vld [vmem:[%s3257_s0 + $0x98] sm:$0xf0]  ;;  %v1807_v15 = vld [vmem:[%s3257_s0 + $0x194] sm:$0xf] }
  0x21   :  { %538 = vmatmul.bf16.vlgmr.msra.gmra.mxu0 %v1440_v24  ;;  %618 = vmatmul.bf16.vlgmr.msra.gmra.mxu2 %v1568_v25  ;;  %v1487_v24 = vld [vmem:[%s3257_s0 + $0x60] sm:$0xf]  ;;  %v1770_v25 = vld [vmem:[%s3257_s0 + $0x64] sm:$0xf0] }
  0x22   :  { %707 = vmatmul.bf16.vlgmr.msra.gmra.mxu1 %v1444_v26  ;;  %787 = vmatmul.bf16.vlgmr.msra.gmra.mxu3 %v1572_v27  ;;  %v1615_v26 = vld [vmem:[%s3257_s0 + $0x160] sm:$0xf]  ;;  %v1802_v27 = vld [vmem:[%s3257_s0 + $0x164] sm:$0xf0]  ;;  %v1488_v32 = vor.u32 %v1770_v25, %v1487_v24  ;;  %v1644_v24 = vor.u32 %v1807_v15, %v1641_v16 }
  0x23   :  { %v1616_v33 = vor.u32 %v1802_v27, %v1615_v26 }
  0x31   :  { %543 = vmatmul.bf16.gmra.mxu0 %v1448_v36  ;;  %623 = vmatmul.bf16.gmra.mxu2 %v1576_v37  ;;  %v1495_v36 = vld [vmem:[%s3257_s0 + $0x70] sm:$0xf]  ;;  %v1772_v37 = vld [vmem:[%s3257_s0 + $0x74] sm:$0xf0] }
  0x32   :  { %712 = vmatmul.bf16.gmra.mxu1 %v1452_v38  ;;  %792 = vmatmul.bf16.gmra.mxu3 %v1580_v39  ;;  %v1623_v38 = vld [vmem:[%s3257_s0 + $0x170] sm:$0xf]  ;;  %v1804_v39 = vld [vmem:[%s3257_s0 + $0x174] sm:$0xf0]  ;;  %v1496_v44 = vor.u32 %v1772_v37, %v1495_v36  ;;  %v1519_v37 = vld [vmem:[%s3257_s0 + $0xa0] sm:$0xf] }
  0x33   :  { %v1624_v45 = vor.u32 %v1804_v39, %v1623_v38  ;;  %v1778_v38 = vld [vmem:[%s3257_s0 + $0xa4] sm:$0xf0]  ;;  %v1647_v39 = vld [vmem:[%s3257_s0 + $0x1a0] sm:$0xf] }
  0x41   :  { %548 = vmatmul.bf16.gmra.mxu0 %v1456_v48  ;;  %628 = vmatmul.bf16.gmra.mxu2 %v1584_v49  ;;  %v2122_v48 = vld [vmem:[%s3256_s2] ss:$0 sm:$0xff] }
  0x42   :  { %717 = vmatmul.bf16.gmra.mxu1 %v1460_v50  ;;  %797 = vmatmul.bf16.gmra.mxu3 %v1588_v51  ;;  %v1503_v49 = vld [vmem:[%s3257_s0 + $0x80] sm:$0xf]  ;;  %v1774_v50 = vld [vmem:[%s3257_s0 + $0x84] sm:$0xf0] }
  0x43   :  { %v1631_v51 = vld [vmem:[%s3257_s0 + $0x180] sm:$0xf]  ;;  %v1504_v57 = vor.u32 %v1774_v50, %v1503_v49  ;;  %v1520_v49 = vor.u32 %v1778_v38, %v1519_v37  ;;  %v1648_v50 = vor.u32 %v1810_v40, %v1647_v39  ;;  %v1782_v38 = vld [vmem:[%s3257_s0 + $0xc4] sm:$0xf0] }
  0x44   :  { %v1632_v58 = vor.u32 %v1806_v52, %v1631_v51  ;;  %v1524_v52 = vor.u32 %v1777_v41, %v1521_v42  ;;  %v1535_v37 = vld [vmem:[%s3257_s0 + $0xc0] sm:$0xf]  ;;  %v1814_v40 = vld [vmem:[%s3257_s0 + $0x1c4] sm:$0xf0]  ;;  %v1781_v41 = vld [vmem:[%s3257_s0 + $0xc4] sm:$0xf] }
  0x45   :  { %v1663_v39 = vld [vmem:[%s3257_s0 + $0x1c0] sm:$0xf]  ;;  %v1537_v42 = vld [vmem:[%s3257_s0 + $0xc8] sm:$0xf0] }
  0x51   :  { %553 = vmatmul.bf16.gmra.mxu0 %v1464_v60  ;;  %633 = vmatmul.bf16.gmra.mxu2 %v1592_v61  ;;  %v1508_v60 = vor.u32 %v1773_v53, %v1505_v54  ;;  %v1636_v61 = vor.u32 %v1805_v55, %v1633_v56 }
  0x52   :  { %722 = vmatmul.bf16.gmra.mxu1 %v1468_v62  ;;  %802 = vmatmul.bf16.gmra.mxu3 %v1596_v63 }
  0x61   :  { %558 = vmatmul.bf16.gmra.mxu0 %v1472_v8  ;;  %638 = vmatmul.bf16.gmra.mxu2 %v1600_v9  ;;  %v1511_v9 = vld [vmem:[%s3257_s0 + $0x90] sm:$0xf] }
  0x62   :  { %727 = vmatmul.bf16.gmra.mxu1 %v1476_v10  ;;  %807 = vmatmul.bf16.gmra.mxu3 %v1604_v11  ;;  %v1776_v10 = vld [vmem:[%s3257_s0 + $0x94] sm:$0xf0]  ;;  %v1639_v11 = vld [vmem:[%s3257_s0 + $0x190] sm:$0xf] }
  0x71   :  { %563 = vmatmul.bf16.gmra.mxu0 %v1480_v20  ;;  %643 = vmatmul.bf16.gmra.mxu2 %v1608_v21  ;;  %v1512_v20 = vor.u32 %v1776_v10, %v1511_v9  ;;  %v1640_v21 = vor.u32 %v1808_v12, %v1639_v11  ;;  %v1779_v9 = vld [vmem:[%s3257_s0 + $0xb4] sm:$0xf]  ;;  %v1529_v10 = vld [vmem:[%s3257_s0 + $0xb8] sm:$0xf0] }
  0x72   :  { %732 = vmatmul.bf16.gmra.mxu1 %v1484_v22  ;;  %812 = vmatmul.bf16.gmra.mxu3 %v1612_v23  ;;  %v1516_v23 = vor.u32 %v1775_v13, %v1513_v14  ;;  %v1811_v11 = vld [vmem:[%s3257_s0 + $0x1b4] sm:$0xf]  ;;  %v1657_v12 = vld [vmem:[%s3257_s0 + $0x1b8] sm:$0xf0] }
  0x81   :  { %568 = vmatmul.bf16.gmra.mxu0 %v1488_v32  ;;  %648 = vmatmul.bf16.gmra.mxu2 %v1616_v33 }
  0x82   :  { %737 = vmatmul.bf16.gmra.mxu1 %v1492_v34  ;;  %817 = vmatmul.bf16.gmra.mxu3 %v1620_v35 }
  0x91   :  { %573 = vmatmul.bf16.gmra.mxu0 %v1496_v44  ;;  %653 = vmatmul.bf16.gmra.mxu2 %v1624_v45  ;;  %v1649_v44 = vld [vmem:[%s3257_s0 + $0x1a8] sm:$0xf0] }
  0x92   :  { %742 = vmatmul.bf16.gmra.mxu1 %v1500_v46  ;;  %822 = vmatmul.bf16.gmra.mxu3 %v1628_v47  ;;  %v1652_v53 = vor.u32 %v1809_v43, %v1649_v44  ;;  %v1813_v43 = vld [vmem:[%s3257_s0 + $0x1c4] sm:$0xf]  ;;  %v1665_v44 = vld [vmem:[%s3257_s0 + $0x1c8] sm:$0xf0] }
  0x9e   :  { %v539_v59 = vpop.f32.mrf.mxu0 }
  0x9f   :  { %v540_v62 = vadd.f32 %v2122_v48, %v539_v59  ;;  %v708_v63 = vpop.f32.mrf.mxu1 }
  0xa1   :  { %v2149_v0 = vadd.f32 %v708_v63, %v540_v62  ;;  %578 = vmatmul.bf16.gmra.mxu0 %v1504_v57  ;;  %658 = vmatmul.bf16.gmra.mxu2 %v1632_v58 }
  0xa2   :  { %747 = vmatmul.bf16.gmra.mxu1 %v1508_v60  ;;  %827 = vmatmul.bf16.gmra.mxu3 %v1636_v61 }
  0xa3   :  { %3295 = vst [vmem:[#allocation2_spill] sm:$0xff] %v2149_v0 }
  0xa4   :  { %v619_v1 = vpop.f32.mrf.mxu2 }
  0xa5   :  { %v620_v2 = vadd.f32 %v2122_v48, %v619_v1  ;;  %v788_v3 = vpop.f32.mrf.mxu3 }
  0xa6   :  { %v541_v4 = vpop.f32.mrf.mxu0 }
  0xa7   :  { %v2152_v5 = vadd.f32 %v788_v3, %v620_v2  ;;  %v542_v6 = vadd.f32 %v2122_v48, %v541_v4  ;;  %v710_v7 = vpop.f32.mrf.mxu1  ;;  %v1527_v3 = vld [vmem:[%s3257_s0 + $0xb0] sm:$0xf]  ;;  %v1780_v4 = vld [vmem:[%s3257_s0 + $0xb4] sm:$0xf0] }
  0xa8   :  { %v1528_v16 = vor.u32 %v1780_v4, %v1527_v3 }
  0xa9   :  { %3296 = vst [vmem:[#allocation3_spill] sm:$0xff] %v2152_v5  ;;  %v2155_v8 = vadd.f32 %v710_v7, %v542_v6  ;;  %v1655_v6 = vld [vmem:[%s3257_s0 + $0x1b0] sm:$0xf]  ;;  %v1812_v7 = vld [vmem:[%s3257_s0 + $0x1b4] sm:$0xf0] }
  0xab   :  { %3297 = vst [vmem:[#allocation4_spill] sm:$0xff] %v2155_v8 }
  0xac   :  { %v621_v17 = vpop.f32.mrf.mxu2 }
  0xad   :  { %v622_v18 = vadd.f32 %v2122_v48, %v621_v17  ;;  %v790_v19 = vpop.f32.mrf.mxu3  ;;  %v1656_v17 = vor.u32 %v1812_v7, %v1655_v6 }
  0xae   :  { %v544_v22 = vpop.f32.mrf.mxu0 }
  0xaf   :  { %v2182_v25 = vadd.f32 %v790_v19, %v622_v18  ;;  %v545_v26 = vadd.f32 %v2122_v48, %v544_v22  ;;  %v713_v27 = vpop.f32.mrf.mxu1  ;;  %v1532_v19 = vor.u32 %v1779_v9, %v1529_v10  ;;  %v1543_v9 = vld [vmem:[%s3257_s0 + $0xd0] sm:$0xf]  ;;  %v1784_v10 = vld [vmem:[%s3257_s0 + $0xd4] sm:$0xf0] }
  0xb1   :  { %3298 = vst [vmem:[#allocation5_spill] sm:$0xff] %v2182_v25  ;;  %v2185_v28 = vadd.f32 %v713_v27, %v545_v26  ;;  %583 = vmatmul.bf16.gmra.mxu0 %v1512_v20  ;;  %663 = vmatmul.bf16.gmra.mxu2 %v1640_v21  ;;  %v1660_v20 = vor.u32 %v1811_v11, %v1657_v12  ;;  %v1671_v11 = vld [vmem:[%s3257_s0 + $0x1d0] sm:$0xf]  ;;  %v1816_v12 = vld [vmem:[%s3257_s0 + $0x1d4] sm:$0xf0] }
  0xb2   :  { %752 = vmatmul.bf16.gmra.mxu1 %v1516_v23  ;;  %832 = vmatmul.bf16.gmra.mxu3 %v1644_v24 }
  0xb4   :  { %v624_v29 = vpop.f32.mrf.mxu2 }
  0xb5   :  { %v625_v30 = vadd.f32 %v2122_v48, %v624_v29  ;;  %v793_v31 = vpop.f32.mrf.mxu3 }
  0xb6   :  { %v546_v32 = vpop.f32.mrf.mxu0 }
  0xb7   :  { %v2188_v33 = vadd.f32 %v793_v31, %v625_v30  ;;  %v547_v34 = vadd.f32 %v2122_v48, %v546_v32  ;;  %v715_v35 = vpop.f32.mrf.mxu1 }
  0xb9   :  { %3299 = vst [vmem:[#allocation6_spill] sm:$0xff] %v2188_v33  ;;  %v2191_v36 = vadd.f32 %v715_v35, %v547_v34 }
  0xbb   :  { %3300 = vst [vmem:[#allocation7_spill] sm:$0xff] %v2191_v36 }
  0xbc   :  { %v626_v45 = vpop.f32.mrf.mxu2 }
  0xbd   :  { %v627_v46 = vadd.f32 %v2122_v48, %v626_v45  ;;  %v795_v47 = vpop.f32.mrf.mxu3 }
  0xbe   :  { %v549_v51 = vpop.f32.mrf.mxu0 }
  0xbf   :  { %v2218_v54 = vadd.f32 %v795_v47, %v627_v46  ;;  %v550_v55 = vadd.f32 %v2122_v48, %v549_v51  ;;  %v718_v56 = vpop.f32.mrf.mxu1 }
  0xc1   :  { %v2221_v57 = vadd.f32 %v718_v56, %v550_v55  ;;  %588 = vmatmul.bf16.gmra.mxu0 %v1520_v49  ;;  %668 = vmatmul.bf16.gmra.mxu2 %v1648_v50  ;;  %v1536_v49 = vor.u32 %v1782_v38, %v1535_v37  ;;  %v1664_v50 = vor.u32 %v1814_v40, %v1663_v39 }
  0xc2   :  { %757 = vmatmul.bf16.gmra.mxu1 %v1524_v52  ;;  %837 = vmatmul.bf16.gmra.mxu3 %v1652_v53  ;;  %v1540_v52 = vor.u32 %v1781_v41, %v1537_v42  ;;  %v1668_v53 = vor.u32 %v1813_v43, %v1665_v44 }
  0xc3   :  { %3301 = vst [vmem:[#allocation8_spill] sm:$0xff] %v2221_v57 }
  0xc4   :  { %v629_v58 = vpop.f32.mrf.mxu2 }
  0xc5   :  { %v630_v59 = vadd.f32 %v2122_v48, %v629_v58  ;;  %v798_v60 = vpop.f32.mrf.mxu3 }
  0xc6   :  { %v551_v61 = vpop.f32.mrf.mxu0 }
  0xc7   :  { %v2224_v62 = vadd.f32 %v798_v60, %v630_v59  ;;  %v552_v63 = vadd.f32 %v2122_v48, %v551_v61  ;;  %v720_v1 = vpop.f32.mrf.mxu1 }
  0xc9   :  { %v2227_v2 = vadd.f32 %v720_v1, %v552_v63 }
  0xcb   :  { %3302 = vst [vmem:[#allocation9_spill] sm:$0xff] %v2227_v2 }
  0xcc   :  { %v631_v13 = vpop.f32.mrf.mxu2 }
  0xcd   :  { %v632_v14 = vadd.f32 %v2122_v48, %v631_v13  ;;  %v800_v15 = vpop.f32.mrf.mxu3  ;;  %v1783_v13 = vld [vmem:[%s3257_s0 + $0xd4] sm:$0xf] }
  0xce   :  { %v554_v18 = vpop.f32.mrf.mxu0 }
  0xcf   :  { %v2254_v21 = vadd.f32 %v800_v15, %v632_v14  ;;  %v555_v22 = vadd.f32 %v2122_v48, %v554_v18  ;;  %v723_v23 = vpop.f32.mrf.mxu1  ;;  %v1545_v14 = vld [vmem:[%s3257_s0 + $0xd8] sm:$0xf0]  ;;  %v1815_v15 = vld [vmem:[%s3257_s0 + $0x1d4] sm:$0xf] }
  0xd1   :  { %v2257_v24 = vadd.f32 %v723_v23, %v555_v22  ;;  %593 = vmatmul.bf16.gmra.mxu0 %v1528_v16  ;;  %673 = vmatmul.bf16.gmra.mxu2 %v1656_v17  ;;  %v1673_v16 = vld [vmem:[%s3257_s0 + $0x1d8] sm:$0xf0]  ;;  %v1672_v22 = vor.u32 %v1816_v12, %v1671_v11 }
  0xd2   :  { %762 = vmatmul.bf16.gmra.mxu1 %v1532_v19  ;;  %842 = vmatmul.bf16.gmra.mxu3 %v1660_v20  ;;  %v1544_v20 = vor.u32 %v1784_v10, %v1543_v9 }
  0xd3   :  { %3303 = vst [vmem:[#allocation10_spill] sm:$0xff] %v2257_v24 }
  0xd4   :  { %v634_v26 = vpop.f32.mrf.mxu2 }
  0xd5   :  { %v635_v27 = vadd.f32 %v2122_v48, %v634_v26  ;;  %v803_v29 = vpop.f32.mrf.mxu3  ;;  %v1548_v26 = vor.u32 %v1783_v13, %v1545_v14 }
  0xd6   :  { %v556_v30 = vpop.f32.mrf.mxu0 }
  0xd7   :  { %v2260_v31 = vadd.f32 %v803_v29, %v635_v27  ;;  %v557_v32 = vadd.f32 %v2122_v48, %v556_v30  ;;  %v725_v34 = vpop.f32.mrf.mxu1  ;;  %v1676_v27 = vor.u32 %v1815_v15, %v1673_v16 }
  0xd9   :  { %v2263_v35 = vadd.f32 %v725_v34, %v557_v32 }
  0xdb   :  { %3304 = vst [vmem:[#allocation11_spill] sm:$0xff] %v2263_v35 }
  0xdc   :  { %v636_v45 = vpop.f32.mrf.mxu2 }
  0xdd   :  { %v637_v46 = vadd.f32 %v2122_v48, %v636_v45  ;;  %v805_v47 = vpop.f32.mrf.mxu3  ;;  %v1551_v45 = vld [vmem:[%s3257_s0 + $0xe0] sm:$0xf] }
  0xde   :  { %v559_v51 = vpop.f32.mrf.mxu0 }
  0xdf   :  { %v2290_v55 = vadd.f32 %v805_v47, %v637_v46  ;;  %v560_v56 = vadd.f32 %v2122_v48, %v559_v51  ;;  %v728_v58 = vpop.f32.mrf.mxu1  ;;  %v1786_v46 = vld [vmem:[%s3257_s0 + $0xe4] sm:$0xf0]  ;;  %v1679_v47 = vld [vmem:[%s3257_s0 + $0x1e0] sm:$0xf]  ;;  %v1553_v51 = vld [vmem:[%s3257_s0 + $0xe8] sm:$0xf0] }
  0xe1   :  { %v2293_v59 = vadd.f32 %v728_v58, %v560_v56  ;;  %598 = vmatmul.bf16.gmra.mxu0 %v1536_v49  ;;  %678 = vmatmul.bf16.gmra.mxu2 %v1664_v50  ;;  %v1818_v49 = vld [vmem:[%s3257_s0 + $0x1e4] sm:$0xf0]  ;;  %v1785_v50 = vld [vmem:[%s3257_s0 + $0xe4] sm:$0xf] }
  0xe2   :  { %767 = vmatmul.bf16.gmra.mxu1 %v1540_v52  ;;  %847 = vmatmul.bf16.gmra.mxu3 %v1668_v53  ;;  %v1817_v52 = vld [vmem:[%s3257_s0 + $0x1e4] sm:$0xf]  ;;  %v1681_v53 = vld [vmem:[%s3257_s0 + $0x1e8] sm:$0xf0] }
  0xe3   :  { %3305 = vst [vmem:[#allocation12_spill] sm:$0xff] %v2293_v59 }
  0xe4   :  { %v639_v60 = vpop.f32.mrf.mxu2 }
  0xe5   :  { %v640_v61 = vadd.f32 %v2122_v48, %v639_v60  ;;  %v808_v63 = vpop.f32.mrf.mxu3 }
  0xe6   :  { %v561_v1 = vpop.f32.mrf.mxu0 }
  0xe7   :  { %v2296_v3 = vadd.f32 %v808_v63, %v640_v61  ;;  %v562_v4 = vadd.f32 %v2122_v48, %v561_v1  ;;  %v730_v6 = vpop.f32.mrf.mxu1  ;;  %v1552_v61 = vor.u32 %v1786_v46, %v1551_v45  ;;  %v1680_v63 = vor.u32 %v1818_v49, %v1679_v47 }
  0xe9   :  { %v2299_v7 = vadd.f32 %v730_v6, %v562_v4  ;;  %v1556_v4 = vor.u32 %v1785_v50, %v1553_v51  ;;  %v1684_v6 = vor.u32 %v1817_v52, %v1681_v53 }
  0xeb   :  { %3306 = vst [vmem:[#allocation13_spill] sm:$0xff] %v2299_v7 }
  0xec   :  { %v641_v17 = vpop.f32.mrf.mxu2 }
  0xed   :  { %v642_v18 = vadd.f32 %v2122_v48, %v641_v17  ;;  %v810_v19 = vpop.f32.mrf.mxu3 }
  0xee   :  { %v564_v23 = vpop.f32.mrf.mxu0 }
  0xef   :  { %v2326_v29 = vadd.f32 %v810_v19, %v642_v18  ;;  %v565_v30 = vadd.f32 %v2122_v48, %v564_v23  ;;  %v733_v32 = vpop.f32.mrf.mxu1  ;;  %v1788_v23 = vld [vmem:[%s3257_s0 + $0xf4] sm:$0xf0] }
  0xf1   :  { %3307 = vst [vmem:[#allocation14_spill] sm:$0xff] %v2326_v29  ;;  %v2329_v34 = vadd.f32 %v733_v32, %v565_v30  ;;  %603 = vmatmul.bf16.gmra.mxu0 %v1544_v20  ;;  %683 = vmatmul.bf16.gmra.mxu2 %v1672_v22  ;;  %v1559_v22 = vld [vmem:[%s3257_s0 + $0xf0] sm:$0xf]  ;;  %v1787_v30 = vld [vmem:[%s3257_s0 + $0xf4] sm:$0xf] }
  0xf2   :  { %772 = vmatmul.bf16.gmra.mxu1 %v1548_v26  ;;  %852 = vmatmul.bf16.gmra.mxu3 %v1676_v27  ;;  %v1687_v26 = vld [vmem:[%s3257_s0 + $0x1f0] sm:$0xf]  ;;  %v1820_v27 = vld [vmem:[%s3257_s0 + $0x1f4] sm:$0xf0]  ;;  %v1561_v32 = vld [vmem:[%s3257_s0 + $0xf8] sm:$0xf0] }
  0xf3   :  { %v1688_v45 = vor.u32 %v1820_v27, %v1687_v26  ;;  %v1564_v47 = vor.u32 %v1787_v30, %v1561_v32 }
  0xf4   :  { %v644_v37 = vpop.f32.mrf.mxu2 }
  0xf5   :  { %v645_v38 = vadd.f32 %v2122_v48, %v644_v37  ;;  %v813_v39 = vpop.f32.mrf.mxu3  ;;  %v1819_v37 = vld [vmem:[%s3257_s0 + $0x1f4] sm:$0xf] }
  0xf6   :  { %v566_v40 = vpop.f32.mrf.mxu0 }
  0xf7   :  { %v2332_v41 = vadd.f32 %v813_v39, %v645_v38  ;;  %v567_v42 = vadd.f32 %v2122_v48, %v566_v40  ;;  %v735_v43 = vpop.f32.mrf.mxu1  ;;  %v1689_v38 = vld [vmem:[%s3257_s0 + $0x1f8] sm:$0xf0] }
  0xf8   :  { %v1692_v49 = vor.u32 %v1819_v37, %v1689_v38 }
  0xf9   :  { %v2335_v44 = vadd.f32 %v735_v43, %v567_v42  ;;  %v1560_v43 = vor.u32 %v1788_v23, %v1559_v22 }
  0xfc   :  { %v646_v56 = vpop.f32.mrf.mxu2 }
  0xfd   :  { %v647_v58 = vadd.f32 %v2122_v48, %v646_v56  ;;  %v815_v60 = vpop.f32.mrf.mxu3 }
  0xfe   :  { %v569_v1 = vpop.f32.mrf.mxu0 }
  0xff   :  { %v2362_v9 = vadd.f32 %v815_v60, %v647_v58  ;;  %v570_v10 = vadd.f32 %v2122_v48, %v569_v1  ;;  %v738_v11 = vpop.f32.mrf.mxu1 }
 0x101   :  { %v2365_v12 = vadd.f32 %v738_v11, %v570_v10  ;;  %608 = vmatmul.bf16.gmra.mxu0 %v1552_v61  ;;  %688 = vmatmul.bf16.gmra.mxu2 %v1680_v63 }
 0x102   :  { %777 = vmatmul.bf16.gmra.mxu1 %v1556_v4  ;;  %857 = vmatmul.bf16.gmra.mxu3 %v1684_v6 }
 0x103   :  { %3308 = vst [vmem:[#allocation15_spill] sm:$0xff] %v2365_v12 }
 0x104   :  { %v649_v13 = vpop.f32.mrf.mxu2 }
 0x105   :  { %v650_v14 = vadd.f32 %v2122_v48, %v649_v13  ;;  %v818_v15 = vpop.f32.mrf.mxu3 }
 0x106   :  { %v571_v16 = vpop.f32.mrf.mxu0 }
 0x107   :  { %v2368_v17 = vadd.f32 %v818_v15, %v650_v14  ;;  %v572_v18 = vadd.f32 %v2122_v48, %v571_v16  ;;  %v740_v19 = vpop.f32.mrf.mxu1 }
 0x109   :  { %v2371_v20 = vadd.f32 %v740_v19, %v572_v18 }
 0x10b   :  { %3309 = vst [vmem:[#allocation16_spill] sm:$0xff] %v2371_v20 }
 0x10c   :  { %v651_v39 = vpop.f32.mrf.mxu2 }
 0x10d   :  { %v652_v40 = vadd.f32 %v2122_v48, %v651_v39  ;;  %v820_v42 = vpop.f32.mrf.mxu3 }
 0x10e   :  { %v574_v46 = vpop.f32.mrf.mxu0 }
 0x10f   :  { %v2398_v50 = vadd.f32 %v820_v42, %v652_v40  ;;  %v575_v51 = vadd.f32 %v2122_v48, %v574_v46  ;;  %v743_v52 = vpop.f32.mrf.mxu1 }
 0x111   :  { %3310 = vst [vmem:[#allocation17_spill] sm:$0xff] %v2398_v50  ;;  %v2401_v53 = vadd.f32 %v743_v52, %v575_v51  ;;  %613 = vmatmul.bf16.gmra.mxu0 %v1560_v43  ;;  %693 = vmatmul.bf16.gmra.mxu2 %v1688_v45 }
 0x112   :  { %782 = vmatmul.bf16.gmra.mxu1 %v1564_v47  ;;  %862 = vmatmul.bf16.gmra.mxu3 %v1692_v49 }
 0x113   :  { %3311 = vst [vmem:[#allocation18_spill] sm:$0xff] %v2401_v53 }
 0x114   :  { %v654_v56 = vpop.f32.mrf.mxu2 }
 0x115   :  { %v655_v58 = vadd.f32 %v2122_v48, %v654_v56  ;;  %v823_v60 = vpop.f32.mrf.mxu3 }
 0x116   :  { %v576_v61 = vpop.f32.mrf.mxu0 }
 0x117   :  { %v2404_v63 = vadd.f32 %v823_v60, %v655_v58  ;;  %v577_v1 = vadd.f32 %v2122_v48, %v576_v61  ;;  %v745_v4 = vpop.f32.mrf.mxu1 }
 0x119   :  { %3312 = vst [vmem:[#allocation19_spill] sm:$0xff] %v2404_v63  ;;  %v2407_v6 = vadd.f32 %v745_v4, %v577_v1 }
 0x11b   :  { %3313 = vst [vmem:[#allocation20_spill] sm:$0xff] %v2407_v6 }
 0x11c   :  { %v656_v10 = vpop.f32.mrf.mxu2 }
 0x11d   :  { %v657_v11 = vadd.f32 %v2122_v48, %v656_v10  ;;  %v825_v13 = vpop.f32.mrf.mxu3 }
 0x11e   :  { %v579_v14 = vpop.f32.mrf.mxu0 }
 0x11f   :  { %v2410_v15 = vadd.f32 %v825_v13, %v657_v11  ;;  %v580_v16 = vadd.f32 %v2122_v48, %v579_v14  ;;  %v748_v18 = vpop.f32.mrf.mxu1 }
 0x121   :  { %3314 = vst [vmem:[#allocation21_spill] sm:$0xff] %v2410_v15  ;;  %v2413_v19 = vadd.f32 %v748_v18, %v580_v16 }
 0x123   :  { %3315 = vst [vmem:[#allocation22_spill] sm:$0xff] %v2413_v19 }
 0x124   :  { %v659_v22 = vpop.f32.mrf.mxu2 }
 0x125   :  { %v660_v23 = vadd.f32 %v2122_v48, %v659_v22  ;;  %v828_v26 = vpop.f32.mrf.mxu3 }
 0x126   :  { %v581_v27 = vpop.f32.mrf.mxu0 }
 0x127   :  { %v2416_v30 = vadd.f32 %v828_v26, %v660_v23  ;;  %v582_v32 = vadd.f32 %v2122_v48, %v581_v27  ;;  %v750_v37 = vpop.f32.mrf.mxu1 }
 0x129   :  { %3316 = vst [vmem:[#allocation23_spill] sm:$0xff] %v2416_v30  ;;  %v2419_v38 = vadd.f32 %v750_v37, %v582_v32 }
 0x12b   :  { %3317 = vst [vmem:[#allocation24_spill] sm:$0xff] %v2419_v38 }
 0x12c   :  { %v661_v39 = vpop.f32.mrf.mxu2 }
 0x12d   :  { %v662_v40 = vadd.f32 %v2122_v48, %v661_v39  ;;  %v830_v42 = vpop.f32.mrf.mxu3 }
 0x12e   :  { %v584_v43 = vpop.f32.mrf.mxu0 }
 0x12f   :  { %v2422_v45 = vadd.f32 %v830_v42, %v662_v40  ;;  %v585_v46 = vadd.f32 %v2122_v48, %v584_v43  ;;  %v753_v47 = vpop.f32.mrf.mxu1 }
 0x131   :  { %3318 = vst [vmem:[#allocation25_spill] sm:$0xff] %v2422_v45  ;;  %v2425_v49 = vadd.f32 %v753_v47, %v585_v46 }
 0x134   :  { %v664_v51 = vpop.f32.mrf.mxu2 }
 0x135   :  { %v665_v52 = vadd.f32 %v2122_v48, %v664_v51  ;;  %v833_v56 = vpop.f32.mrf.mxu3 }
 0x136   :  { %v586_v58 = vpop.f32.mrf.mxu0 }
 0x137   :  { %v2428_v60 = vadd.f32 %v833_v56, %v665_v52  ;;  %v587_v61 = vadd.f32 %v2122_v48, %v586_v58  ;;  %v755_v1 = vpop.f32.mrf.mxu1  ;;  %v906_v58 = vmul.f32 %v2155_v8, %v2155_v8 }
 0x139   :  { %3319 = vst [vmem:[#allocation26_spill] sm:$0xff] %v2428_v60  ;;  %v2431_v4 = vadd.f32 %v755_v1, %v587_v61  ;;  %v905_v1 = vmul.f32 %v2149_v0, %v2149_v0 }
 0x13c   :  { %v666_v10 = vpop.f32.mrf.mxu2 }
 0x13d   :  { %v667_v11 = vadd.f32 %v2122_v48, %v666_v10  ;;  %v835_v13 = vpop.f32.mrf.mxu3  ;;  %v907_v10 = vmul.f32 %v2185_v28, %v2185_v28 }
 0x13e   :  { %v589_v14 = vpop.f32.mrf.mxu0 }
 0x13f   :  { %v2434_v16 = vadd.f32 %v835_v13, %v667_v11  ;;  %v590_v18 = vadd.f32 %v2122_v48, %v589_v14  ;;  %v758_v22 = vpop.f32.mrf.mxu1  ;;  %v868_v13 = vadd.f32 %v2155_v8, %v2149_v0  ;;  %v910_v8 = vmul.f32 %v2227_v2, %v2227_v2 }
 0x141   :  { %3320 = vst [vmem:[#allocation27_spill] sm:$0xff] %v2434_v16  ;;  %v2437_v23 = vadd.f32 %v758_v22, %v590_v18  ;;  %v937_v18 = vadd.f32 %v906_v58, %v905_v1  ;;  %v908_v22 = vmul.f32 %v2191_v36, %v2191_v36  ;;  %v911_v1 = vmul.f32 %v2257_v24, %v2257_v24 }
 0x144   :  { %v669_v26 = vpop.f32.mrf.mxu2 }
 0x145   :  { %v670_v27 = vadd.f32 %v2122_v48, %v669_v26  ;;  %v838_v32 = vpop.f32.mrf.mxu3 }
 0x146   :  { %v2440_v37 = vpop.f32.mrf.mxu0 }
 0x147   :  { %v2442_v39 = vadd.f32 %v838_v32, %v670_v27  ;;  %v2444_v40 = vpop.f32.mrf.mxu1  ;;  %v869_v27 = vadd.f32 %v868_v13, %v2185_v28  ;;  %v938_v32 = vadd.f32 %v937_v18, %v907_v10 }
 0x149   :  { %3321 = vst [vmem:[#allocation28_spill] sm:$0xff] %v2442_v39  ;;  %v870_v39 = vadd.f32 %v869_v27, %v2191_v36 }
 0x14b   :  { %v871_v0 = vadd.f32 %v870_v39, %v2221_v57  ;;  %v913_v39 = vmul.f32 %v2293_v59, %v2293_v59 }
 0x14c   :  { %v2446_v42 = vpop.f32.mrf.mxu2 }
 0x14d   :  { %v2452_v47 = vpop.f32.mrf.mxu3  ;;  %v872_v10 = vadd.f32 %v871_v0, %v2227_v2  ;;  %v914_v0 = vmul.f32 %v2299_v7, %v2299_v7 }
 0x14e   :  { %v2448_v43 = vpop.f32.mrf.mxu0  ;;  %3322 = vst [vmem:[#allocation29_spill] sm:$0xff] %v2452_v47  ;;  %v939_v47 = vadd.f32 %v938_v32, %v908_v22  ;;  %v912_v22 = vmul.f32 %v2263_v35, %v2263_v35 }
 0x14f   :  { %v2450_v46 = vpop.f32.mrf.mxu1  ;;  %v873_v27 = vadd.f32 %v872_v10, %v2257_v24 }
 0x154   :  { %v2454_v51 = vpop.f32.mrf.mxu2 }
 0x155   :  { %v2462_v61 = vpop.f32.mrf.mxu3 }
 0x156   :  { %v2456_v52 = vpop.f32.mrf.mxu0  ;;  %3323 = vst [vmem:[#allocation30_spill] sm:$0xff] %v2462_v61  ;;  %v909_v61 = vmul.f32 %v2221_v57, %v2221_v57 }
 0x157   :  { %v2458_v56 = vpop.f32.mrf.mxu1 }
 0x158   :  { %v940_v58 = vadd.f32 %v939_v47, %v909_v61  ;;  %v874_v61 = vadd.f32 %v873_v27, %v2263_v35  ;;  %v916_v27 = vmul.f32 %v2335_v44, %v2335_v44 }
 0x15a   :  { %v941_v18 = vadd.f32 %v940_v58, %v910_v8  ;;  %v875_v2 = vadd.f32 %v874_v61, %v2293_v59  ;;  %v915_v58 = vmul.f32 %v2329_v34, %v2329_v34  ;;  %v919_v59 = vmul.f32 %v2401_v53, %v2401_v53 }
 0x15c   :  { %v2476_v26 = vpop.f32.mrf.mxu2  ;;  %v942_v32 = vadd.f32 %v941_v18, %v911_v1  ;;  %v876_v1 = vadd.f32 %v875_v2, %v2299_v7  ;;  %v918_v2 = vmul.f32 %v2371_v20, %v2371_v20 }
 0x15d   :  { %3324 = vst [vmem:[#allocation31_spill] sm:$0xff] %v2476_v26  ;;  %v2487_v16 = vpop.f32.mrf.mxu3 }
 0x15e   :  { %v2468_v11 = vpop.f32.mrf.mxu0  ;;  %v943_v57 = vadd.f32 %v942_v32, %v912_v22  ;;  %v877_v32 = vadd.f32 %v876_v1, %v2329_v34 }
 0x15f   :  { %v2472_v14 = vpop.f32.mrf.mxu1 }
 0x160   :  { %v944_v8 = vadd.f32 %v943_v57, %v913_v39  ;;  %v917_v57 = vmul.f32 %v2365_v12, %v2365_v12  ;;  %v878_v39 = vadd.f32 %v877_v32, %v2335_v44 }
 0x162   :  { %v945_v18 = vadd.f32 %v944_v8, %v914_v0  ;;  %v879_v0 = vadd.f32 %v878_v39, %v2365_v12  ;;  %v921_v39 = vmul.f32 %v2413_v19, %v2413_v19 }
 0x164   :  { %v2499_v47 = vpop.f32.mrf.mxu2  ;;  %v946_v35 = vadd.f32 %v945_v18, %v915_v58  ;;  %v880_v58 = vadd.f32 %v879_v0, %v2371_v20  ;;  %v922_v0 = vmul.f32 %v2419_v38, %v2419_v38  ;;  %v597_v20 = vadd.f32 %v2122_v48, %v2456_v52 }
 0x165   :  { %v2514_v22 = vpop.f32.mrf.mxu3  ;;  %v1192_v52 = vmul.f32 %v2224_v62, %v2224_v62 }
 0x166   :  { %v2489_v26 = vpop.f32.mrf.mxu0  ;;  %v947_v61 = vadd.f32 %v946_v35, %v916_v27  ;;  %v920_v35 = vmul.f32 %v2407_v6, %v2407_v6  ;;  %v881_v27 = vadd.f32 %v880_v58, %v2401_v53  ;;  %v923_v53 = vmul.f32 %v2425_v49, %v2425_v49 }
 0x167   :  { %v2492_v13 = vpop.f32.mrf.mxu1 }
 0x168   :  { %v948_v8 = vadd.f32 %v947_v61, %v917_v57  ;;  %v882_v61 = vadd.f32 %v881_v27, %v2407_v6 }
 0x16a   :  { %v949_v18 = vadd.f32 %v948_v8, %v918_v2  ;;  %v592_v2 = vadd.f32 %v2122_v48, %v2440_v37  ;;  %v1151_v8 = vadd.f32 %v2182_v25, %v2152_v5  ;;  %v883_v58 = vadd.f32 %v882_v61, %v2413_v19 }
 0x16b   :  { %v1188_v37 = vmul.f32 %v2152_v5, %v2152_v5  ;;  %v924_v19 = vmul.f32 %v2431_v4, %v2431_v4 }
 0x16c   :  { %v2522_v7 = vpop.f32.mrf.mxu2  ;;  %v950_v32 = vadd.f32 %v949_v18, %v919_v59  ;;  %v1189_v59 = vmul.f32 %v2182_v25, %v2182_v25  ;;  %v1152_v6 = vadd.f32 %v1151_v8, %v2188_v33  ;;  %v1190_v25 = vmul.f32 %v2188_v33, %v2188_v33 }
 0x16d   :  { %v2537_v57 = vpop.f32.mrf.mxu3  ;;  %v884_v61 = vadd.f32 %v883_v58, %v2419_v38  ;;  %v1191_v33 = vmul.f32 %v2218_v54, %v2218_v54 }
 0x16e   :  { %v2507_v36 = vpop.f32.mrf.mxu0  ;;  %v951_v12 = vadd.f32 %v950_v32, %v920_v35  ;;  %v595_v35 = vadd.f32 %v2122_v48, %v2448_v43  ;;  %v2566_v43 = vadd.f32 %v2444_v40, %v592_v2  ;;  %v1220_v5 = vadd.f32 %v1189_v59, %v1188_v37 }
 0x16f   :  { %v2510_v10 = vpop.f32.mrf.mxu1  ;;  %v1153_v8 = vadd.f32 %v1152_v6, %v2218_v54  ;;  %v885_v58 = vadd.f32 %v884_v61, %v2425_v49  ;;  %v600_v40 = vadd.f32 %v2122_v48, %v2468_v11  ;;  %v2588_v61 = vadd.f32 %v2458_v56, %v597_v20 }
 0x170   :  { %v952_v18 = vadd.f32 %v951_v12, %v921_v39  ;;  %v1221_v2 = vadd.f32 %v1220_v5, %v1190_v25  ;;  %v1193_v5 = vmul.f32 %v2254_v21, %v2254_v21  ;;  %v602_v11 = vadd.f32 %v2122_v48, %v2489_v26 }
 0x171   :  { %v886_v6 = vadd.f32 %v885_v58, %v2431_v4  ;;  %v1154_v59 = vadd.f32 %v1153_v8, %v2224_v62  ;;  %v2601_v20 = vadd.f32 %v2472_v14, %v600_v40  ;;  %v605_v58 = vadd.f32 %v2122_v48, %v2507_v36 }
 0x172   :  { %v953_v39 = vadd.f32 %v952_v18, %v922_v0  ;;  %v925_v0 = vmul.f32 %v2437_v23, %v2437_v23  ;;  %v2577_v18 = vadd.f32 %v2450_v46, %v595_v35  ;;  %v1222_v35 = vadd.f32 %v1221_v2, %v1191_v33 }
 0x173   :  { %v887_v25 = vadd.f32 %v886_v6, %v2437_v23  ;;  %v1194_v26 = vmul.f32 %v2260_v31, %v2260_v31 }
 0x174   :  { %v2553_v27 = vpop.f32.mrf.mxu2  ;;  %v954_v38 = vadd.f32 %v953_v39, %v923_v53  ;;  %v926_v53 = vmul.f32 %v2566_v43, %v2566_v43  ;;  %v1155_v39 = vadd.f32 %v1154_v59, %v2254_v21  ;;  %v1223_v8 = vadd.f32 %v1222_v35, %v1192_v52 }
 0x175   :  { %v2590_v46 = vpop.f32.mrf.mxu3  ;;  %v888_v33 = vadd.f32 %v887_v25, %v2566_v43  ;;  %v928_v59 = vmul.f32 %v2588_v61, %v2588_v61  ;;  %v2615_v52 = vadd.f32 %v2492_v13, %v602_v11  ;;  %v1195_v25 = vmul.f32 %v2290_v55, %v2290_v55 }
 0x176   :  { %v2527_v24 = vpop.f32.mrf.mxu0  ;;  %v955_v37 = vadd.f32 %v954_v38, %v924_v19  ;;  %v927_v38 = vmul.f32 %v2577_v18, %v2577_v18  ;;  %v1156_v6 = vadd.f32 %v1155_v39, %v2260_v31  ;;  %v1224_v14 = vadd.f32 %v1223_v8, %v1193_v5 }
 0x177   :  { %v2530_v1 = vpop.f32.mrf.mxu1  ;;  %v889_v40 = vadd.f32 %v888_v33, %v2577_v18  ;;  %v607_v36 = vadd.f32 %v2122_v48, %v2527_v24  ;;  %v929_v39 = vmul.f32 %v2601_v20, %v2601_v20  ;;  %v2626_v5 = vadd.f32 %v2510_v10, %v605_v58 }
 0x178   :  { %v956_v19 = vadd.f32 %v955_v37, %v925_v0  ;;  %v1157_v35 = vadd.f32 %v1156_v6, %v2290_v55  ;;  %v1225_v11 = vadd.f32 %v1224_v14, %v1194_v26  ;;  %v1196_v24 = vmul.f32 %v2296_v3, %v2296_v3 }
 0x179   :  { %v1197_v26 = vmul.f32 %v2326_v29, %v2326_v29 }
 0x17a   :  { %v957_v0 = vadd.f32 %v956_v19, %v926_v53  ;;  %v890_v19 = vadd.f32 %v889_v40, %v2588_v61  ;;  %v1158_v8 = vadd.f32 %v1157_v35, %v2296_v3  ;;  %v1226_v58 = vadd.f32 %v1225_v11, %v1195_v25 }
 0x17c   :  { %v2611_v37 = vpop.f32.mrf.mxu2  ;;  %v958_v53 = vadd.f32 %v957_v0, %v927_v38  ;;  %v891_v6 = vadd.f32 %v890_v19, %v2601_v20  ;;  %v930_v38 = vmul.f32 %v2615_v52, %v2615_v52  ;;  %v2636_v0 = vadd.f32 %v2530_v1, %v607_v36 }
 0x17d   :  { %v2642_v40 = vpop.f32.mrf.mxu3  ;;  %v1227_v25 = vadd.f32 %v1226_v58, %v1196_v24 }
 0x17e   :  { %v609_v32 = vpop.f32.mrf.mxu0  ;;  %v959_v33 = vadd.f32 %v958_v53, %v928_v59  ;;  %v892_v35 = vadd.f32 %v891_v6, %v2615_v52  ;;  %v931_v53 = vmul.f32 %v2626_v5, %v2626_v5 }
 0x17f   :  { %v2561_v12 = vpop.f32.mrf.mxu1  ;;  %v610_v13 = vadd.f32 %v2122_v48, %v609_v32  ;;  %v1159_v32 = vadd.f32 %v1158_v8, %v2326_v29  ;;  %v1228_v29 = vadd.f32 %v1227_v25, %v1197_v26 }
 0x180   :  { %v960_v14 = vadd.f32 %v959_v33, %v929_v39  ;;  %v1198_v39 = vmul.f32 %v2332_v41, %v2332_v41  ;;  %v893_v8 = vadd.f32 %v892_v35, %v2626_v5  ;;  %v932_v33 = vmul.f32 %v2636_v0, %v2636_v0 }
 0x181   :  { %v2648_v1 = vadd.f32 %v2561_v12, %v610_v13  ;;  %v1160_v19 = vadd.f32 %v1159_v32, %v2332_v41  ;;  %v1199_v13 = vmul.f32 %v2362_v9, %v2362_v9 }
 0x182   :  { %v961_v11 = vadd.f32 %v960_v14, %v930_v38  ;;  %v894_v32 = vadd.f32 %v893_v8, %v2636_v0 }
 0x183   :  { %v1161_v12 = vadd.f32 %v1160_v19, %v2362_v9  ;;  %v933_v38 = vmul.f32 %v2648_v1, %v2648_v1 }
 0x184   :  { %v2662_v24 = vpop.f32.mrf.mxu2  ;;  %v962_v58 = vadd.f32 %v961_v11, %v931_v53  ;;  %v895_v35 = vadd.f32 %v894_v32, %v2648_v1  ;;  %v1201_v11 = vmul.f32 %v2398_v50, %v2398_v50  ;;  %v1202_v32 = vmul.f32 %v2404_v63, %v2404_v63 }
 0x186   :  { %v611_v56 = vpop.f32.mrf.mxu0  ;;  %v963_v26 = vadd.f32 %v962_v58, %v932_v33  ;;  %v2683_v58 = vpop.f32.mrf.mxu3 }
 0x187   :  { %v780_v2 = vpop.f32.mrf.mxu1  ;;  %v612_v10 = vadd.f32 %v2122_v48, %v611_v56 }
 0x189   :  { %v2657_v6 = vadd.f32 %v780_v2, %v612_v10  ;;  %v1162_v2 = vadd.f32 %v1161_v12, %v2368_v17  ;;  %v1200_v10 = vmul.f32 %v2368_v17, %v2368_v17 }
 0x18b   :  { %v934_v25 = vmul.f32 %v2657_v6, %v2657_v6  ;;  %v1163_v19 = vadd.f32 %v1162_v2, %v2398_v50 }
 0x18d   :  { %v1164_v12 = vadd.f32 %v1163_v19, %v2404_v63  ;;  %v2697_v63 = vpop.f32.mrf.mxu2 }
 0x18e   :  { %v614_v59 = vpop.f32.mrf.mxu0 }
 0x18f   :  { %v615_v56 = vadd.f32 %v2122_v48, %v614_v59  ;;  %v783_v36 = vpop.f32.mrf.mxu1  ;;  %v1229_v59 = vadd.f32 %v1228_v29, %v1198_v39  ;;  %v896_v29 = vadd.f32 %v895_v35, %v2657_v6  ;;  %v1165_v35 = vadd.f32 %v1164_v12, %v2410_v15 }
 0x191   :  { %v2667_v14 = vadd.f32 %v783_v36, %v615_v56  ;;  %v1230_v53 = vadd.f32 %v1229_v59, %v1199_v13  ;;  %v964_v36 = vadd.f32 %v963_v26, %v933_v38  ;;  %v1166_v50 = vadd.f32 %v1165_v35, %v2416_v30 }
 0x193   :  { %v935_v39 = vmul.f32 %v2667_v14, %v2667_v14  ;;  %v1231_v33 = vadd.f32 %v1230_v53, %v1200_v10  ;;  %v965_v59 = vadd.f32 %v964_v36, %v934_v25  ;;  %v897_v2 = vadd.f32 %v896_v29, %v2667_v14 }
 0x194   :  { %v1204_v36 = vmul.f32 %v2416_v30, %v2416_v30 }
 0x195   :  { %v1232_v26 = vadd.f32 %v1231_v33, %v1201_v11  ;;  %v966_v10 = vadd.f32 %v965_v59, %v935_v39  ;;  %v672_v39 = vadd.f32 %v2122_v48, %v2446_v42  ;;  %v1205_v59 = vmul.f32 %v2422_v45, %v2422_v45  ;;  %v3326_v42 = vld [vmem:[#allocation29_spill] sm:$0xff] }
 0x196   :  { %v616_v56 = vpop.f32.mrf.mxu0 }
 0x197   :  { %v617_v8 = vadd.f32 %v2122_v48, %v616_v56  ;;  %v785_v13 = vpop.f32.mrf.mxu1  ;;  %v1203_v56 = vmul.f32 %v2410_v15, %v2410_v15  ;;  %v1233_v25 = vadd.f32 %v1232_v26, %v1202_v32  ;;  %v675_v32 = vadd.f32 %v2122_v48, %v2454_v51 }
 0x199   :  { %v2688_v38 = vadd.f32 %v785_v13, %v617_v8  ;;  %v1167_v8 = vadd.f32 %v1166_v50, %v2422_v45  ;;  %v1234_v33 = vadd.f32 %v1233_v25, %v1203_v56  ;;  %v1206_v50 = vmul.f32 %v2428_v60, %v2428_v60  ;;  %v3327_v25 = vld [vmem:[#allocation31_spill] sm:$0xff] }
 0x19a   :  { %v2713_v56 = vadd.f32 %v3326_v42, %v672_v39 }
 0x19b   :  { %v898_v53 = vadd.f32 %v897_v2, %v2688_v38  ;;  %v936_v19 = vmul.f32 %v2688_v38, %v2688_v38  ;;  %v1168_v2 = vadd.f32 %v1167_v8, %v2428_v60  ;;  %v1235_v26 = vadd.f32 %v1234_v33, %v1204_v36  ;;  %v860_v8 = vpop.f32.mrf.mxu3 }
 0x19d   :  { %v899_v11 = vrot.slane %v898_v53, 4  ;;  %v967_v29 = vadd.f32 %v966_v10, %v936_v19  ;;  %v3325_v10 = vld [vmem:[#allocation27_spill] sm:$0xff]  ;;  %v1236_v51 = vadd.f32 %v1235_v26, %v1205_v59  ;;  %v694_v26 = vpop.f32.mrf.mxu2 }
 0x19e   :  { %v1169_v19 = vadd.f32 %v1168_v2, %v3325_v10  ;;  %v1207_v36 = vmul.f32 %v3325_v10, %v3325_v10 }
 0x19f   :  { %v900_v12 = vadd.f32 %v899_v11, %v898_v53  ;;  %v968_v13 = vrot.slane %v967_v29, 4  ;;  %v1858_v53 = vld [vmem:[%s3256_s2] ss:$0 sm:$0xff]  ;;  %v1237_v15 = vadd.f32 %v1236_v51, %v1206_v50 }
 0x1a0   :  { %v677_v11 = vadd.f32 %v1858_v53, %v3327_v25  ;;  %v680_v39 = vadd.f32 %v1858_v53, %v2499_v47  ;;  %v1209_v47 = vmul.f32 %v2713_v56, %v2713_v56 }
 0x1a1   :  { %v901_v35 = vrot.slane %v900_v12, 2  ;;  %v969_v30 = vadd.f32 %v968_v13, %v967_v29  ;;  %v3328_v29 = vld [vmem:[#allocation28_spill] sm:$0xff]  ;;  %v3329_v13 = vld [vmem:[#allocation30_spill] sm:$0xff] }
 0x1a2   :  { %v1170_v33 = vadd.f32 %v1169_v19, %v3328_v29  ;;  %v2723_v2 = vadd.f32 %v3329_v13, %v675_v32  ;;  %v1208_v25 = vmul.f32 %v3328_v29, %v3328_v29  ;;  %v2730_v59 = vadd.f32 %v2487_v16, %v677_v11 }
 0x1a3   :  { %v902_v45 = vadd.f32 %v901_v35, %v900_v12  ;;  %v970_v48 = vrot.slane %v969_v30, 2  ;;  %v682_v35 = vadd.f32 %v1858_v53, %v2522_v7  ;;  %v1238_v32 = vadd.f32 %v1237_v15, %v1207_v36 }
 0x1a4   :  { %v1171_v12 = vadd.f32 %v1170_v33, %v2713_v56  ;;  %v2737_v50 = vadd.f32 %v2514_v22, %v680_v39  ;;  %v1210_v7 = vmul.f32 %v2723_v2, %v2723_v2  ;;  %v687_v11 = vadd.f32 %v1858_v53, %v2611_v37 }
 0x1a5   :  { %v903_v42 = vrot.slane %v902_v45, 1  ;;  %v971_v60 = vadd.f32 %v970_v48, %v969_v30  ;;  %v685_v48 = vadd.f32 %v1858_v53, %v2553_v27  ;;  %v1239_v16 = vadd.f32 %v1238_v32, %v1208_v25  ;;  %v863_v27 = vpop.f32.mrf.mxu3 }
 0x1a6   :  { %v1172_v30 = vadd.f32 %v1171_v12, %v2723_v2  ;;  %3330 = vst [vmem:[#allocation29_spill] sm:$0xff] %v2737_v50  ;;  %v2746_v15 = vadd.f32 %v2537_v57, %v682_v35  ;;  %v1212_v37 = vmul.f32 %v2737_v50, %v2737_v50  ;;  %v2762_v35 = vadd.f32 %v2642_v40, %v687_v11 }
 0x1a7   :  { %v904_v19 = vadd.f32 %v903_v42, %v902_v45  ;;  %v972_v10 = vrot.slane %v971_v60, 1  ;;  %v1240_v13 = vadd.f32 %v1239_v16, %v1209_v47  ;;  %v2755_v39 = vadd.f32 %v2590_v46, %v685_v48 }
 0x1a8   :  { %v1173_v45 = vadd.f32 %v1172_v30, %v2730_v59  ;;  %3331 = vst [vmem:[#allocation31_spill] sm:$0xff] %v2746_v15  ;;  %v690_v42 = vadd.f32 %v1858_v53, %v2662_v24  ;;  %v1213_v46 = vmul.f32 %v2746_v15, %v2746_v15  ;;  %v696_v30 = vpop.f32.mrf.mxu2 }
 0x1a9   :  { %v973_v51 = vadd.f32 %v972_v10, %v971_v60  ;;  %v2740_v33 = vmul.f32 0.00390625, %v904_v19  ;;  %v1211_v60 = vmul.f32 %v2730_v59, %v2730_v59  ;;  %3332 = vst [vmem:[#allocation28_spill] sm:$0xff] %v2755_v39  ;;  %v1241_v25 = vadd.f32 %v1240_v13, %v1210_v7 }
 0x1aa   :  { %v1174_v10 = vadd.f32 %v1173_v45, %v2737_v50  ;;  %3333 = vst [vmem:[#allocation30_spill] sm:$0xff] %v2762_v35  ;;  %v692_v19 = vadd.f32 %v1858_v53, %v2697_v63  ;;  %v2769_v48 = vadd.f32 %v2683_v58, %v690_v42  ;;  %v1214_v40 = vmul.f32 %v2755_v39, %v2755_v39 }
 0x1ab   :  { %v975_v36 = vmul.f32 0.00390625, %v973_v51  ;;  %v976_v22 = vmul.f32 %v2740_v33, %v2740_v33  ;;  %v1242_v47 = vadd.f32 %v1241_v25, %v1211_v60  ;;  %v695_v51 = vadd.f32 %v1858_v53, %v694_v26 }
 0x1ac   :  { %v1175_v12 = vadd.f32 %v1174_v10, %v2746_v15  ;;  %3334 = vst [vmem:[#allocation32_spill] sm:$0xff] %v2769_v48  ;;  %v2774_v63 = vadd.f32 %v860_v8, %v692_v19  ;;  %v697_v11 = vadd.f32 %v1858_v53, %v696_v30  ;;  %v1216_v60 = vmul.f32 %v2769_v48, %v2769_v48 }
 0x1ad   :  { %v977_v57 = vsub.f32 %v975_v36, %v976_v22  ;;  %v1243_v7 = vadd.f32 %v1242_v47, %v1212_v37  ;;  %v1215_v22 = vmul.f32 %v2762_v35, %v2762_v35  ;;  %v2779_v58 = vadd.f32 %v863_v27, %v695_v51  ;;  %v865_v10 = vpop.f32.mrf.mxu3 }
 0x1ae   :  { %v1176_v24 = vadd.f32 %v1175_v12, %v2755_v39  ;;  %3335 = vst [vmem:[#allocation33_spill] sm:$0xff] %v2774_v63  ;;  %v1217_v53 = vmul.f32 %v2774_v63, %v2774_v63 }
 0x1af   :  { %v978_v32 = vmax.f32 %v977_v57, 0.0  ;;  %v1244_v36 = vadd.f32 %v1243_v7, %v1213_v46  ;;  %3336 = vst [vmem:[#allocation34_spill] sm:$0xff] %v2779_v58  ;;  %v2784_v57 = vadd.f32 %v865_v10, %v697_v11  ;;  %v1218_v27 = vmul.f32 %v2779_v58, %v2779_v58 }
 0x1b0   :  { %v1177_v45 = vadd.f32 %v1176_v24, %v2762_v35 }
 0x1b1   :  { %v979_v16 = vadd.f32 1e-05, %v978_v32  ;;  %v1245_v26 = vadd.f32 %v1244_v36, %v1214_v40  ;;  %3337 = vst [vmem:[#allocation35_spill] sm:$0xff] %v2784_v57  ;;  %v1219_v30 = vmul.f32 %v2784_v57, %v2784_v57 }
 0x1b2   :  { %v1178_v13 = vadd.f32 %v1177_v45, %v2769_v48 }
 0x1b3   :  { %1854 = vrsqrt.f32 %v979_v16  ;;  %v1246_v8 = vadd.f32 %v1245_v26, %v1215_v22  ;;  %vm986_vm1 = vweird.f32 %v979_v16 }
 0x1b4   :  { %v1179_v42 = vadd.f32 %v1178_v13, %v2774_v63 }
 0x1b5   :  { %v1247_v12 = vadd.f32 %v1246_v8, %v1216_v60  ;;  %v3338_v60 = vld [vmem:[#allocation2_spill] sm:$0xff] }
 0x1b6   :  { %v1180_v37 = vadd.f32 %v1179_v42, %v2779_v58  ;;  %v990_v10 = vsub.f32 %v3338_v60, %v2740_v33  ;;  %v3339_v42 = vld [vmem:[#allocation4_spill] sm:$0xff]  ;;  %v1001_v60 = vsub.f32 %v2335_v44, %v2740_v33 }
 0x1b7   :  { %v1248_v47 = vadd.f32 %v1247_v12, %v1217_v53  ;;  %v991_v8 = vsub.f32 %v3339_v42, %v2740_v33  ;;  %v3340_v12 = vld [vmem:[#allocation7_spill] sm:$0xff]  ;;  %v3352_v58 = vld [vmem:[#allocation24_spill] sm:$0xff] }
 0x1b8   :  { %v1181_v32 = vadd.f32 %v1180_v37, %v2784_v57  ;;  %v992_v37 = vsub.f32 %v2185_v28, %v2740_v33  ;;  %v3346_v28 = vld [vmem:[#allocation13_spill] sm:$0xff] }
 0x1b9   :  { %v1855_v25 = vpop.eup %1854  ;;  %v1249_v24 = vadd.f32 %v1248_v47, %v1218_v27  ;;  %v993_v27 = vsub.f32 %v3340_v12, %v2740_v33 }
 0x1ba   :  { %v981_v19 = vmul.f32 %v1855_v25, %v979_v16  ;;  %v1182_v7 = vrot.slane %v1181_v32, 4  ;;  %vm987_vm0 = vweird.f32 %v1855_v25  ;;  %v3342_v16 = vld [vmem:[#allocation9_spill] sm:$0xff] }
 0x1bb   :  { %v1250_v40 = vadd.f32 %v1249_v24, %v1219_v30  ;;  %vm988_vm2 = vmor %vm986_vm1, %vm987_vm0  ;;  %v995_v47 = vsub.f32 %v3342_v16, %v2740_v33  ;;  %v3344_v24 = vld [vmem:[#allocation11_spill] sm:$0xff]  ;;  %v3348_v16 = vld [vmem:[#allocation16_spill] sm:$0xff] }
 0x1bc   :  { %v982_v46 = vmul.f32 %v1855_v25, %v981_v19  ;;  %v1183_v11 = vadd.f32 %v1182_v7, %v1181_v32  ;;  %v3341_v19 = vld [vmem:[#allocation8_spill] sm:$0xff] }
 0x1bd   :  { %v1251_v36 = vrot.slane %v1250_v40, 4  ;;  %v994_v32 = vsub.f32 %v3341_v19, %v2740_v33  ;;  %v3345_v7 = vld [vmem:[#allocation12_spill] sm:$0xff] }
 0x1be   :  { %v983_v51 = vmul.f32 0.5, %v982_v46  ;;  %v1184_v13 = vrot.slane %v1183_v11, 2  ;;  %v3343_v46 = vld [vmem:[#allocation10_spill] sm:$0xff] }
 0x1bf   :  { %v1252_v26 = vadd.f32 %v1251_v36, %v1250_v40  ;;  %v996_v30 = vsub.f32 %v3343_v46, %v2740_v33  ;;  %v998_v40 = vsub.f32 %v3345_v7, %v2740_v33  ;;  %v1000_v36 = vsub.f32 %v2329_v34, %v2740_v33 }
 0x1c0   :  { %v984_v45 = vsub.f32 1.5, %v983_v51  ;;  %v997_v51 = vsub.f32 %v3344_v24, %v2740_v33  ;;  %v1003_v46 = vsub.f32 %v3348_v16, %v2740_v33  ;;  %v3349_v24 = vld [vmem:[#allocation18_spill] sm:$0xff]  ;;  %v1008_v16 = vsub.f32 %v2425_v49, %v2740_v33 }
 0x1c1   :  { %v1004_v7 = vsub.f32 %v3349_v24, %v2740_v33 }
 0x1c2   :  { %v985_v22 = vmul.f32 %v1855_v25, %v984_v45  ;;  %v999_v45 = vsub.f32 %v3346_v28, %v2740_v33  ;;  %v3350_v28 = vld [vmem:[#allocation20_spill] sm:$0xff] }
 0x1c3   :  { %v1005_v44 = vsub.f32 %v3350_v28, %v2740_v33 }
 0x1c4   :  { %v2798_v53 = vsel %vm988_vm2, %v1855_v25, %v985_v22  ;;  %v1185_v25 = vadd.f32 %v1184_v13, %v1183_v11  ;;  %v1253_v22 = vrot.slane %v1252_v26, 2  ;;  %v3347_v11 = vld [vmem:[#allocation15_spill] sm:$0xff] }
 0x1c5   :  { %v1022_v42 = vmul.f32 %v990_v10, %v2798_v53  ;;  %v1023_v12 = vmul.f32 %v991_v8, %v2798_v53  ;;  %v1024_v19 = vmul.f32 %v992_v37, %v2798_v53  ;;  %v1002_v13 = vsub.f32 %v3347_v11, %v2740_v33  ;;  %v3351_v10 = vld [vmem:[#allocation22_spill] sm:$0xff] }
 0x1c6   :  { %v1025_v34 = vmul.f32 %v993_v27, %v2798_v53  ;;  %v1006_v57 = vsub.f32 %v3351_v10, %v2740_v33  ;;  %v1026_v8 = vmul.f32 %v994_v32, %v2798_v53  ;;  %v1186_v37 = vrot.slane %v1185_v25, 1 }
 0x1c7   :  { %v1007_v11 = vsub.f32 %v3352_v58, %v2740_v33  ;;  %v1027_v63 = vmul.f32 %v995_v47, %v2798_v53  ;;  %v1254_v24 = vadd.f32 %v1253_v22, %v1252_v26  ;;  %v1028_v27 = vmul.f32 %v996_v30, %v2798_v53 }
 0x1c8   :  { %v1054_v48 = vmax.f32 %v1022_v42, 0.0  ;;  %v1055_v35 = vmax.f32 %v1023_v12, 0.0  ;;  %v1056_v28 = vmax.f32 %v1024_v19, 0.0  ;;  %v1009_v10 = vsub.f32 %v2431_v4, %v2740_v33 }
 0x1c9   :  { %v1010_v32 = vsub.f32 %v2437_v23, %v2740_v33  ;;  %v1029_v39 = vmul.f32 %v997_v51, %v2798_v53  ;;  %v1057_v58 = vmax.f32 %v1025_v34, 0.0  ;;  %v1030_v15 = vmul.f32 %v998_v40, %v2798_v53 }
 0x1ca   :  { %v1058_v49 = vmax.f32 %v1026_v8, 0.0  ;;  %v1187_v47 = vadd.f32 %v1186_v37, %v1185_v25  ;;  %v1031_v26 = vmul.f32 %v999_v45, %v2798_v53  ;;  %v1032_v30 = vmul.f32 %v1000_v36, %v2798_v53 }
 0x1cb   :  { %v1059_v22 = vmax.f32 %v1027_v63, 0.0  ;;  %v1255_v42 = vrot.slane %v1254_v24, 1  ;;  %v1060_v12 = vmax.f32 %v1028_v27, 0.0  ;;  %v1086_v19 = vpack.c.bf16 %v1054_v48, %v1054_v48 }
 0x1cc   :  { %v1087_v4 = vpack.c.bf16 %v1055_v35, %v1055_v35  ;;  %v1088_v50 = vpack.c.bf16 %v1056_v28, %v1056_v28  ;;  %v1011_v23 = vsub.f32 %v2566_v43, %v2740_v33  ;;  %v1033_v51 = vmul.f32 %v1001_v60, %v2798_v53 }
 0x1cd   :  { %v1061_v34 = vmax.f32 %v1029_v39, 0.0  ;;  %v1089_v40 = vpack.c.bf16 %v1057_v58, %v1057_v58  ;;  %v1034_v8 = vmul.f32 %v1002_v13, %v2798_v53  ;;  %v1062_v25 = vmax.f32 %v1030_v15, 0.0  ;;  %1119 = vst.msk [vmem:[%s3258_s3] sm:$0xf] %vm1118_vm3, %v1086_v19 }
 0x1ce   :  { %v1090_v37 = vpack.c.bf16 %v1058_v49, %v1058_v49  ;;  %v2857_v63 = vmul.f32 0.00390625, %v1187_v47  ;;  %v1012_v35 = vsub.f32 %v2577_v18, %v2740_v33  ;;  %v1035_v43 = vmul.f32 %v1003_v46, %v2798_v53  ;;  %1120 = vst.msk [vmem:[%s3258_s3 + $0x4] sm:$0xf] %vm1118_vm3, %v1087_v4 }
 0x1cf   :  { %v1063_v48 = vmax.f32 %v1031_v26, 0.0  ;;  %v1091_v45 = vpack.c.bf16 %v1059_v22, %v1059_v22  ;;  %v1036_v15 = vmul.f32 %v1004_v7, %v2798_v53  ;;  %v1064_v39 = vmax.f32 %v1032_v30, 0.0  ;;  %1121 = vst.msk [vmem:[%s3258_s3 + $0x8] sm:$0xf] %vm1118_vm3, %v1088_v50 }
 0x1d0   :  { %v1092_v36 = vpack.c.bf16 %v1060_v12, %v1060_v12  ;;  %v1256_v60 = vadd.f32 %v1255_v42, %v1254_v24  ;;  %v1013_v18 = vsub.f32 %v2588_v61, %v2740_v33  ;;  %v1037_v13 = vmul.f32 %v1005_v44, %v2798_v53  ;;  %1122 = vst.msk [vmem:[%s3258_s3 + $0xc] sm:$0xf] %vm1118_vm3, %v1089_v40 }
 0x1d1   :  { %v1065_v46 = vmax.f32 %v1033_v51, 0.0  ;;  %v1093_v27 = vpack.c.bf16 %v1061_v34, %v1061_v34  ;;  %v1038_v7 = vmul.f32 %v1006_v57, %v2798_v53  ;;  %v1066_v28 = vmax.f32 %v1034_v8, 0.0  ;;  %1123 = vst.msk [vmem:[%s3258_s3 + $0x10] sm:$0xf] %vm1118_vm3, %v1090_v37 }
 0x1d2   :  { %v1094_v58 = vpack.c.bf16 %v1062_v25, %v1062_v25  ;;  %v1259_v61 = vmul.f32 %v2857_v63, %v2857_v63  ;;  %v1014_v50 = vsub.f32 %v2601_v20, %v2740_v33  ;;  %v1039_v44 = vmul.f32 %v1007_v11, %v2798_v53  ;;  %1124 = vst.msk [vmem:[%s3258_s3 + $0x14] sm:$0xf] %vm1118_vm3, %v1091_v45 }
 0x1d3   :  { %v1067_v24 = vmax.f32 %v1035_v43, 0.0  ;;  %v1095_v49 = vpack.c.bf16 %v1063_v48, %v1063_v48  ;;  %v1040_v57 = vmul.f32 %v1008_v16, %v2798_v53  ;;  %v1068_v47 = vmax.f32 %v1036_v15, 0.0  ;;  %1125 = vst.msk [vmem:[%s3258_s3 + $0x18] sm:$0xf] %vm1118_vm3, %v1092_v36 }
 0x1d4   :  { %v1096_v26 = vpack.c.bf16 %v1064_v39, %v1064_v39  ;;  %v1258_v30 = vmul.f32 0.00390625, %v1256_v60  ;;  %v1015_v20 = vsub.f32 %v2615_v52, %v2740_v33  ;;  %v1041_v11 = vmul.f32 %v1009_v10, %v2798_v53  ;;  %1126 = vst.msk [vmem:[%s3258_s3 + $0x1c] sm:$0xf] %vm1118_vm3, %v1093_v27 }
 0x1d5   :  { %v1069_v22 = vmax.f32 %v1037_v13, 0.0  ;;  %v1097_v42 = vpack.c.bf16 %v1065_v46, %v1065_v46  ;;  %v1042_v16 = vmul.f32 %v1010_v32, %v2798_v53  ;;  %v1070_v12 = vmax.f32 %v1038_v7, 0.0  ;;  %1127 = vst.msk [vmem:[%s3258_s3 + $0x20] sm:$0xf] %vm1118_vm3, %v1094_v58 }
 0x1d6   :  { %v1098_v19 = vpack.c.bf16 %v1066_v28, %v1066_v28  ;;  %v1260_v4 = vsub.f32 %v1258_v30, %v1259_v61  ;;  %v1016_v52 = vsub.f32 %v2626_v5, %v2740_v33  ;;  %v1043_v10 = vmul.f32 %v1011_v23, %v2798_v53  ;;  %1128 = vst.msk [vmem:[%s3258_s3 + $0x24] sm:$0xf] %vm1118_vm3, %v1095_v49 }
 0x1d7   :  { %v1071_v51 = vmax.f32 %v1039_v44, 0.0  ;;  %v1099_v34 = vpack.c.bf16 %v1067_v24, %v1067_v24  ;;  %v1044_v32 = vmul.f32 %v1012_v35, %v2798_v53  ;;  %v1072_v40 = vmax.f32 %v1040_v57, 0.0  ;;  %1129 = vst.msk [vmem:[%s3258_s3 + $0x28] sm:$0xf] %vm1118_vm3, %v1096_v26 }
 0x1d8   :  { %v1100_v8 = vpack.c.bf16 %v1068_v47, %v1068_v47  ;;  %v1261_v25 = vmax.f32 %v1260_v4, 0.0  ;;  %v1017_v5 = vsub.f32 %v2636_v0, %v2740_v33  ;;  %v1045_v23 = vmul.f32 %v1013_v18, %v2798_v53  ;;  %1130 = vst.msk [vmem:[%s3258_s3 + $0x2c] sm:$0xf] %vm1118_vm3, %v1097_v42 }
 0x1d9   :  { %v1073_v37 = vmax.f32 %v1041_v11, 0.0  ;;  %v1101_v43 = vpack.c.bf16 %v1069_v22, %v1069_v22  ;;  %v1046_v35 = vmul.f32 %v1014_v50, %v2798_v53  ;;  %v1074_v48 = vmax.f32 %v1042_v16, 0.0  ;;  %1131 = vst.msk [vmem:[%s3258_s3 + $0x30] sm:$0xf] %vm1118_vm3, %v1098_v19 }
 0x1da   :  { %v1102_v45 = vpack.c.bf16 %v1070_v12, %v1070_v12  ;;  %v2933_v15 = vadd.f32 1e-05, %v1261_v25  ;;  %v1018_v0 = vsub.f32 %v2648_v1, %v2740_v33  ;;  %v1047_v39 = vmul.f32 %v1015_v20, %v2798_v53  ;;  %1132 = vst.msk [vmem:[%s3258_s3 + $0x34] sm:$0xf] %vm1118_vm3, %v1099_v34 }
 0x1db   :  { %v1075_v36 = vmax.f32 %v1043_v10, 0.0  ;;  %v1103_v60 = vpack.c.bf16 %v1071_v51, %v1071_v51  ;;  %v1048_v18 = vmul.f32 %v1016_v52, %v2798_v53  ;;  %v1076_v13 = vmax.f32 %v1044_v32, 0.0  ;;  %1133 = vst.msk [vmem:[%s3258_s3 + $0x38] sm:$0xf] %vm1118_vm3, %v1100_v8 }
 0x1dc   :  { %v1104_v46 = vpack.c.bf16 %v1072_v40, %v1072_v40  ;;  %1856 = vrsqrt.f32 %v2933_v15  ;;  %v1019_v1 = vsub.f32 %v2657_v6, %v2740_v33  ;;  %v1049_v27 = vmul.f32 %v1017_v5, %v2798_v53  ;;  %1134 = vst.msk [vmem:[%s3258_s3 + $0x3c] sm:$0xf] %vm1118_vm3, %v1101_v43 }
 0x1dd   :  { %v1077_v7 = vmax.f32 %v1045_v23, 0.0  ;;  %v1105_v28 = vpack.c.bf16 %v1073_v37, %v1073_v37  ;;  %v1020_v58 = vsub.f32 %v2667_v14, %v2740_v33  ;;  %v1050_v61 = vmul.f32 %v1018_v0, %v2798_v53  ;;  %1135 = vst.msk [vmem:[%s3258_s3 + $0x40] sm:$0xf] %vm1118_vm3, %v1102_v45  ;;  %v3353_v37 = vld [vmem:[#allocation3_spill] sm:$0xff]  ;;  %v3355_v45 = vld [vmem:[#allocation6_spill] sm:$0xff] }
 0x1de   :  { %v1078_v50 = vmax.f32 %v1046_v35, 0.0  ;;  %v1106_v44 = vpack.c.bf16 %v1074_v48, %v1074_v48  ;;  %v1021_v6 = vsub.f32 %v2688_v38, %v2740_v33  ;;  %v1051_v24 = vmul.f32 %v1019_v1, %v2798_v53  ;;  %1136 = vst.msk [vmem:[%s3258_s3 + $0x44] sm:$0xf] %vm1118_vm3, %v1103_v60  ;;  %v3354_v35 = vld [vmem:[#allocation5_spill] sm:$0xff] }
 0x1df   :  { %v1079_v49 = vmax.f32 %v1047_v39, 0.0  ;;  %v1107_v57 = vpack.c.bf16 %v1075_v36, %v1075_v36  ;;  %v1052_v14 = vmul.f32 %v1020_v58, %v2798_v53  ;;  %v1080_v47 = vmax.f32 %v1048_v18, 0.0  ;;  %1137 = vst.msk [vmem:[%s3258_s3 + $0x48] sm:$0xf] %vm1118_vm3, %v1104_v46 }
 0x1e0   :  { %v1108_v26 = vpack.c.bf16 %v1076_v13, %v1076_v13  ;;  %v1053_v38 = vmul.f32 %v1021_v6, %v2798_v53  ;;  %v1081_v33 = vmax.f32 %v1049_v27, 0.0  ;;  %v1109_v30 = vpack.c.bf16 %v1077_v7, %v1077_v7  ;;  %1138 = vst.msk [vmem:[%s3258_s3 + $0x4c] sm:$0xf] %vm1118_vm3, %v1105_v28 }
 0x1e1   :  { %v1082_v11 = vmax.f32 %v1050_v61, 0.0  ;;  %v1110_v22 = vpack.c.bf16 %v1078_v50, %v1078_v50  ;;  %1139 = vst.msk [vmem:[%s3258_s3 + $0x50] sm:$0xf] %vm1118_vm3, %v1106_v44  ;;  %v1083_v42 = vmax.f32 %v1051_v24, 0.0  ;;  %v1111_v16 = vpack.c.bf16 %v1079_v49, %v1079_v49  ;;  %v3356_v50 = vld [vmem:[#allocation14_spill] sm:$0xff] }
 0x1e2   :  { %v1857_v20 = vpop.eup %1856  ;;  %1140 = vst.msk [vmem:[%s3258_s3 + $0x54] sm:$0xf] %vm1118_vm3, %v1107_v57  ;;  %v1084_v12 = vmax.f32 %v1052_v14, 0.0  ;;  %v1112_v19 = vpack.c.bf16 %v1080_v47, %v1080_v47  ;;  %v1085_v4 = vmax.f32 %v1053_v38, 0.0  ;;  %v1113_v52 = vpack.c.bf16 %v1081_v33, %v1081_v33 }
 0x1e3   :  { %v1264_v53 = vmul.f32 %v1857_v20, %v2933_v15  ;;  %1141 = vst.msk [vmem:[%s3258_s3 + $0x58] sm:$0xf] %vm1118_vm3, %v1108_v26  ;;  %v1114_v51 = vpack.c.bf16 %v1082_v11, %v1082_v11  ;;  %v1115_v34 = vpack.c.bf16 %v1083_v42, %v1083_v42  ;;  %vm1270_vm4 = vweird.f32 %v1857_v20 }
 0x1e4   :  { %1142 = vst.msk [vmem:[%s3258_s3 + $0x5c] sm:$0xf] %vm1118_vm3, %v1109_v30  ;;  %v1116_v40 = vpack.c.bf16 %v1084_v12, %v1084_v12  ;;  %v1117_v8 = vpack.c.bf16 %v1085_v4, %v1085_v4  ;;  %vm1269_vm5 = vweird.f32 %v2933_v15  ;;  %v1273_v43 = vsub.f32 %v3353_v37, %v2857_v63  ;;  %v3359_v4 = vld [vmem:[#allocation21_spill] sm:$0xff] }
 0x1e5   :  { %v1265_v10 = vmul.f32 %v1857_v20, %v1264_v53  ;;  %1143 = vst.msk [vmem:[%s3258_s3 + $0x60] sm:$0xf] %vm1118_vm3, %v1110_v22  ;;  %vm1271_vm6 = vmor %vm1269_vm5, %vm1270_vm4  ;;  %v1274_v48 = vsub.f32 %v3354_v35, %v2857_v63  ;;  %v1275_v0 = vsub.f32 %v3355_v45, %v2857_v63  ;;  %v1276_v39 = vsub.f32 %v2218_v54, %v2857_v63  ;;  %v3361_v37 = vld [vmem:[#allocation25_spill] sm:$0xff] }
 0x1e6   :  { %1144 = vst.msk [vmem:[%s3258_s3 + $0x64] sm:$0xf] %vm1118_vm3, %v1111_v16  ;;  %v1277_v36 = vsub.f32 %v2224_v62, %v2857_v63  ;;  %v1278_v13 = vsub.f32 %v2254_v21, %v2857_v63  ;;  %v1279_v1 = vsub.f32 %v2260_v31, %v2857_v63  ;;  %v1280_v54 = vsub.f32 %v2290_v55, %v2857_v63  ;;  %v3358_v16 = vld [vmem:[#allocation19_spill] sm:$0xff] }
 0x1e7   :  { %v1266_v32 = vmul.f32 0.5, %v1265_v10  ;;  %1145 = vst.msk [vmem:[%s3258_s3 + $0x68] sm:$0xf] %vm1118_vm3, %v1112_v19  ;;  %v1281_v62 = vsub.f32 %v2296_v3, %v2857_v63  ;;  %v1282_v44 = vsub.f32 %v3356_v50, %v2857_v63  ;;  %v1283_v31 = vsub.f32 %v2332_v41, %v2857_v63 }
 0x1e8   :  { %1146 = vst.msk [vmem:[%s3258_s3 + $0x6c] sm:$0xf] %vm1118_vm3, %v1113_v52  ;;  %v1284_v55 = vsub.f32 %v2362_v9, %v2857_v63  ;;  %v1285_v57 = vsub.f32 %v2368_v17, %v2857_v63  ;;  %v1287_v53 = vsub.f32 %v3358_v16, %v2857_v63  ;;  %v1288_v52 = vsub.f32 %v3359_v4, %v2857_v63 }
 0x1e9   :  { %1147 = vst.msk [vmem:[%s3258_s3 + $0x70] sm:$0xf] %vm1118_vm3, %v1114_v51  ;;  %v1267_v25 = vsub.f32 1.5, %v1266_v32  ;;  %v3360_v32 = vld [vmem:[#allocation23_spill] sm:$0xff] }
 0x1ea   :  { %1148 = vst.msk [vmem:[%s3258_s3 + $0x74] sm:$0xf] %vm1118_vm3, %v1115_v34 }
 0x1eb   :  { %1149 = vst.msk [vmem:[%s3258_s3 + $0x78] sm:$0xf] %vm1118_vm3, %v1116_v40  ;;  %v1268_v5 = vmul.f32 %v1857_v20, %v1267_v25  ;;  %v1289_v40 = vsub.f32 %v3360_v32, %v2857_v63 }
 0x1ec   :  { %1150 = vst.msk [vmem:[%s3258_s3 + $0x7c] sm:$0xf] %vm1118_vm3, %v1117_v8 }
 0x1ed   :  { %v3029_v23 = vsel %vm1271_vm6, %v1857_v20, %v1268_v5  ;;  %v3357_v20 = vld [vmem:[#allocation17_spill] sm:$0xff] }
 0x1ee   :  { %v1305_v15 = vmul.f32 %v1273_v43, %v3029_v23  ;;  %v1306_v60 = vmul.f32 %v1274_v48, %v3029_v23  ;;  %v1307_v18 = vmul.f32 %v1275_v0, %v3029_v23  ;;  %v1308_v46 = vmul.f32 %v1276_v39, %v3029_v23  ;;  %v3362_v0 = vld [vmem:[#allocation26_spill] sm:$0xff] }
 0x1ef   :  { %v1309_v27 = vmul.f32 %v1277_v36, %v3029_v23  ;;  %v1310_v7 = vmul.f32 %v1278_v13, %v3029_v23  ;;  %v1311_v28 = vmul.f32 %v1279_v1, %v3029_v23  ;;  %v1312_v6 = vmul.f32 %v1280_v54, %v3029_v23 }
 0x1f0   :  { %v1337_v58 = vmax.f32 %v1305_v15, 0.0  ;;  %v1338_v61 = vmax.f32 %v1306_v60, 0.0  ;;  %v1339_v21 = vmax.f32 %v1307_v18, 0.0  ;;  %v1340_v24 = vmax.f32 %v1308_v46, 0.0  ;;  %v3363_v18 = vld [vmem:[#allocation27_spill] sm:$0xff] }
 0x1f1   :  { %v1313_v3 = vmul.f32 %v1281_v62, %v3029_v23  ;;  %v1341_v49 = vmax.f32 %v1309_v27, 0.0  ;;  %v1314_v14 = vmul.f32 %v1282_v44, %v3029_v23  ;;  %v1315_v47 = vmul.f32 %v1283_v31, %v3029_v23 }
 0x1f2   :  { %v1342_v26 = vmax.f32 %v1310_v7, 0.0  ;;  %v1343_v38 = vmax.f32 %v1311_v28, 0.0  ;;  %v1369_v33 = vpack.c.bf16 %v1337_v58, %v1337_v58  ;;  %v1370_v41 = vpack.c.bf16 %v1338_v61, %v1338_v61 }
 0x1f3   :  { %v1371_v30 = vpack.c.bf16 %v1339_v21, %v1339_v21  ;;  %v1286_v11 = vsub.f32 %v3357_v20, %v2857_v63  ;;  %v1316_v9 = vmul.f32 %v1284_v55, %v3029_v23  ;;  %v1344_v22 = vmax.f32 %v1312_v6, 0.0 }
 0x1f4   :  { %v1372_v42 = vpack.c.bf16 %v1340_v24, %v1340_v24  ;;  %v1317_v17 = vmul.f32 %v1285_v57, %v3029_v23  ;;  %v1345_v12 = vmax.f32 %v1313_v3, 0.0  ;;  %v1373_v19 = vpack.c.bf16 %v1341_v49, %v1341_v49  ;;  %1401 = vst.msk [vmem:[%s3258_s3 + $0x80] sm:$0xf] %vm1118_vm3, %v1369_v33 }
 0x1f5   :  { %v1318_v10 = vmul.f32 %v1286_v11, %v3029_v23  ;;  %v1346_v51 = vmax.f32 %v1314_v14, 0.0  ;;  %v1374_v34 = vpack.c.bf16 %v1342_v26, %v1342_v26  ;;  %1402 = vst.msk [vmem:[%s3258_s3 + $0x84] sm:$0xf] %vm1118_vm3, %v1370_v41  ;;  %v1319_v8 = vmul.f32 %v1287_v53, %v3029_v23 }
 0x1f6   :  { %v1347_v25 = vmax.f32 %v1315_v47, 0.0  ;;  %v1375_v5 = vpack.c.bf16 %v1343_v38, %v1343_v38  ;;  %1403 = vst.msk [vmem:[%s3258_s3 + $0x88] sm:$0xf] %vm1118_vm3, %v1371_v30  ;;  %v1290_v43 = vsub.f32 %v3361_v37, %v2857_v63  ;;  %v1320_v35 = vmul.f32 %v1288_v52, %v3029_v23  ;;  %v3366_v30 = vld [vmem:[#allocation28_spill] sm:$0xff] }
 0x1f7   :  { %v1348_v48 = vmax.f32 %v1316_v9, 0.0  ;;  %v1376_v45 = vpack.c.bf16 %v1344_v22, %v1344_v22  ;;  %1404 = vst.msk [vmem:[%s3258_s3 + $0x8c] sm:$0xf] %vm1118_vm3, %v1372_v42  ;;  %v1291_v39 = vsub.f32 %v3362_v0, %v2857_v63  ;;  %v1321_v36 = vmul.f32 %v1289_v40, %v3029_v23  ;;  %v3367_v42 = vld [vmem:[#allocation30_spill] sm:$0xff] }
 0x1f8   :  { %v1349_v15 = vmax.f32 %v1317_v17, 0.0  ;;  %v1377_v60 = vpack.c.bf16 %v1345_v12, %v1345_v12  ;;  %1405 = vst.msk [vmem:[%s3258_s3 + $0x90] sm:$0xf] %vm1118_vm3, %v1373_v19  ;;  %v1292_v13 = vsub.f32 %v3363_v18, %v2857_v63  ;;  %v1322_v46 = vmul.f32 %v1290_v43, %v3029_v23  ;;  %v3368_v19 = vld [vmem:[#allocation32_spill] sm:$0xff] }
 0x1f9   :  { %v1350_v1 = vmax.f32 %v1318_v10, 0.0  ;;  %v1378_v27 = vpack.c.bf16 %v1346_v51, %v1346_v51  ;;  %1406 = vst.msk [vmem:[%s3258_s3 + $0x94] sm:$0xf] %vm1118_vm3, %v1374_v34  ;;  %v1293_v54 = vsub.f32 %v3328_v29, %v2857_v63  ;;  %v1323_v62 = vmul.f32 %v1291_v39, %v3029_v23  ;;  %v3369_v34 = vld [vmem:[#allocation33_spill] sm:$0xff] }
 0x1fa   :  { %v1351_v7 = vmax.f32 %v1319_v8, 0.0  ;;  %v1379_v28 = vpack.c.bf16 %v1347_v25, %v1347_v25  ;;  %1407 = vst.msk [vmem:[%s3258_s3 + $0x98] sm:$0xf] %vm1118_vm3, %v1375_v5  ;;  %v1294_v58 = vsub.f32 %v2713_v56, %v2857_v63  ;;  %v1324_v61 = vmul.f32 %v1292_v13, %v3029_v23  ;;  %v3370_v5 = vld [vmem:[#allocation34_spill] sm:$0xff] }
 0x1fb   :  { %v1352_v21 = vmax.f32 %v1320_v35, 0.0  ;;  %v1380_v50 = vpack.c.bf16 %v1348_v48, %v1348_v48  ;;  %1408 = vst.msk [vmem:[%s3258_s3 + $0x9c] sm:$0xf] %vm1118_vm3, %v1376_v45  ;;  %v1295_v29 = vsub.f32 %v2723_v2, %v2857_v63  ;;  %v1325_v44 = vmul.f32 %v1293_v54, %v3029_v23  ;;  %v3364_v2 = vld [vmem:[#allocation29_spill] sm:$0xff]  ;;  %v3371_v45 = vld [vmem:[#allocation35_spill] sm:$0xff] }
 0x1fc   :  { %v1353_v31 = vmax.f32 %v1321_v36, 0.0  ;;  %v1381_v6 = vpack.c.bf16 %v1349_v15, %v1349_v15  ;;  %1409 = vst.msk [vmem:[%s3258_s3 + $0xa0] sm:$0xf] %vm1118_vm3, %v1377_v60  ;;  %v1296_v56 = vsub.f32 %v2730_v59, %v2857_v63  ;;  %v1326_v24 = vmul.f32 %v1294_v58, %v3029_v23  ;;  %v3365_v59 = vld [vmem:[#allocation31_spill] sm:$0xff] }
 0x1fd   :  { %v1354_v55 = vmax.f32 %v1322_v46, 0.0  ;;  %v1382_v3 = vpack.c.bf16 %v1350_v1, %v1350_v1  ;;  %1410 = vst.msk [vmem:[%s3258_s3 + $0xa4] sm:$0xf] %vm1118_vm3, %v1378_v27  ;;  %v1297_v49 = vsub.f32 %v3364_v2, %v2857_v63  ;;  %v1327_v57 = vmul.f32 %v1295_v29, %v3029_v23 }
 0x1fe   :  { %v1355_v14 = vmax.f32 %v1323_v62, 0.0  ;;  %v1383_v47 = vpack.c.bf16 %v1351_v7, %v1351_v7  ;;  %1411 = vst.msk [vmem:[%s3258_s3 + $0xa8] sm:$0xf] %vm1118_vm3, %v1379_v28  ;;  %v1298_v26 = vsub.f32 %v3365_v59, %v2857_v63  ;;  %v1328_v38 = vmul.f32 %v1296_v56, %v3029_v23 }
 0x1ff   :  { %v1356_v33 = vmax.f32 %v1324_v61, 0.0  ;;  %v1384_v41 = vpack.c.bf16 %v1352_v21, %v1352_v21  ;;  %1412 = vst.msk [vmem:[%s3258_s3 + $0xac] sm:$0xf] %vm1118_vm3, %v1380_v50  ;;  %v1299_v20 = vsub.f32 %v3366_v30, %v2857_v63  ;;  %v1329_v11 = vmul.f32 %v1297_v49, %v3029_v23 }
 0x200   :  { %v1357_v9 = vmax.f32 %v1325_v44, 0.0  ;;  %v1385_v22 = vpack.c.bf16 %v1353_v31, %v1353_v31  ;;  %1413 = vst.msk [vmem:[%s3258_s3 + $0xb0] sm:$0xf] %vm1118_vm3, %v1381_v6  ;;  %v1300_v16 = vsub.f32 %v3367_v42, %v2857_v63  ;;  %v1330_v53 = vmul.f32 %v1298_v26, %v3029_v23 }
 0x201   :  { %v1358_v17 = vmax.f32 %v1326_v24, 0.0  ;;  %v1386_v12 = vpack.c.bf16 %v1354_v55, %v1354_v55  ;;  %1414 = vst.msk [vmem:[%s3258_s3 + $0xb4] sm:$0xf] %vm1118_vm3, %v1382_v3  ;;  %v1301_v4 = vsub.f32 %v3368_v19, %v2857_v63  ;;  %v1331_v52 = vmul.f32 %v1299_v20, %v3029_v23 }
 0x202   :  { %v1359_v10 = vmax.f32 %v1327_v57, 0.0  ;;  %v1387_v51 = vpack.c.bf16 %v1355_v14, %v1355_v14  ;;  %1415 = vst.msk [vmem:[%s3258_s3 + $0xb8] sm:$0xf] %vm1118_vm3, %v1383_v47  ;;  %v1302_v32 = vsub.f32 %v3369_v34, %v2857_v63  ;;  %v1332_v40 = vmul.f32 %v1300_v16, %v3029_v23 }
 0x203   :  { %v1360_v8 = vmax.f32 %v1328_v38, 0.0  ;;  %v1388_v25 = vpack.c.bf16 %v1356_v33, %v1356_v33  ;;  %1416 = vst.msk [vmem:[%s3258_s3 + $0xbc] sm:$0xf] %vm1118_vm3, %v1384_v41  ;;  %v1303_v37 = vsub.f32 %v3370_v5, %v2857_v63  ;;  %v1333_v43 = vmul.f32 %v1301_v4, %v3029_v23 }
 0x204   :  { %v1361_v35 = vmax.f32 %v1329_v11, 0.0  ;;  %v1389_v48 = vpack.c.bf16 %v1357_v9, %v1357_v9  ;;  %1417 = vst.msk [vmem:[%s3258_s3 + $0xc0] sm:$0xf] %vm1118_vm3, %v1385_v22  ;;  %v1304_v0 = vsub.f32 %v3371_v45, %v2857_v63  ;;  %v1334_v39 = vmul.f32 %v1302_v32, %v3029_v23 }
 0x205   :  { %v1362_v36 = vmax.f32 %v1330_v53, 0.0  ;;  %v1390_v15 = vpack.c.bf16 %v1358_v17, %v1358_v17  ;;  %1418 = vst.msk [vmem:[%s3258_s3 + $0xc4] sm:$0xf] %vm1118_vm3, %v1386_v12  ;;  %v1335_v60 = vmul.f32 %v1303_v37, %v3029_v23  ;;  %v1363_v18 = vmax.f32 %v1331_v52, 0.0 }
 0x206   :  { %v1391_v13 = vpack.c.bf16 %v1359_v10, %v1359_v10  ;;  %1419 = vst.msk [vmem:[%s3258_s3 + $0xc8] sm:$0xf] %vm1118_vm3, %v1387_v51  ;;  %v1336_v63 = vmul.f32 %v1304_v0, %v3029_v23  ;;  %v1364_v46 = vmax.f32 %v1332_v40, 0.0  ;;  %v1392_v1 = vpack.c.bf16 %v1360_v8, %v1360_v8 }
 0x207   :  { %1420 = vst.msk [vmem:[%s3258_s3 + $0xcc] sm:$0xf] %vm1118_vm3, %v1388_v25  ;;  %v1365_v27 = vmax.f32 %v1333_v43, 0.0  ;;  %v1393_v54 = vpack.c.bf16 %v1361_v35, %v1361_v35  ;;  %v1366_v62 = vmax.f32 %v1334_v39, 0.0  ;;  %v1394_v7 = vpack.c.bf16 %v1362_v36, %v1362_v36 }
 0x208   :  { %1421 = vst.msk [vmem:[%s3258_s3 + $0xd0] sm:$0xf] %vm1118_vm3, %v1389_v48  ;;  %v1367_v23 = vmax.f32 %v1335_v60, 0.0  ;;  %v1395_v28 = vpack.c.bf16 %v1363_v18, %v1363_v18  ;;  %v1368_v58 = vmax.f32 %v1336_v63, 0.0  ;;  %v1396_v61 = vpack.c.bf16 %v1364_v46, %v1364_v46 }
 0x209   :  { %1422 = vst.msk [vmem:[%s3258_s3 + $0xd4] sm:$0xf] %vm1118_vm3, %v1390_v15  ;;  %v1397_v21 = vpack.c.bf16 %v1365_v27, %v1365_v27  ;;  %v1398_v50 = vpack.c.bf16 %v1366_v62, %v1366_v62 }
 0x20a   :  { %1423 = vst.msk [vmem:[%s3258_s3 + $0xd8] sm:$0xf] %vm1118_vm3, %v1391_v13  ;;  %v1399_v29 = vpack.c.bf16 %v1367_v23, %v1367_v23  ;;  %v1400_v44 = vpack.c.bf16 %v1368_v58, %v1368_v58 }
 0x20b   :  { %1424 = vst.msk [vmem:[%s3258_s3 + $0xdc] sm:$0xf] %vm1118_vm3, %v1392_v1 }
 0x20c   :  { %1425 = vst.msk [vmem:[%s3258_s3 + $0xe0] sm:$0xf] %vm1118_vm3, %v1393_v54 }
 0x20d   :  { %1426 = vst.msk [vmem:[%s3258_s3 + $0xe4] sm:$0xf] %vm1118_vm3, %v1394_v7 }
 0x20e   :  { %1427 = vst.msk [vmem:[%s3258_s3 + $0xe8] sm:$0xf] %vm1118_vm3, %v1395_v28 }
 0x20f   :  { %1428 = vst.msk [vmem:[%s3258_s3 + $0xec] sm:$0xf] %vm1118_vm3, %v1396_v61 }
 0x210   :  { %1429 = vst.msk [vmem:[%s3258_s3 + $0xf0] sm:$0xf] %vm1118_vm3, %v1397_v21 }
 0x211   :  { %1430 = vst.msk [vmem:[%s3258_s3 + $0xf4] sm:$0xf] %vm1118_vm3, %v1398_v50 }
 0x212   :  { %1431 = vst.msk [vmem:[%s3258_s3 + $0xf8] sm:$0xf] %vm1118_vm3, %v1399_v29 }
 0x213   :  { %1432 = vst.msk [vmem:[%s3258_s3 + $0xfc] sm:$0xf] %vm1118_vm3, %v1400_v44 }

// kernel: generator_forward.13
= control target key start
LH: loop header
LB: loop body
LE: loop exit
PB: predicated region body
PF: predicated region fallthrough
CT: control target
= control target key end

     0   :  { %vm422_vm3 = vcmask 257024   ;;  %s1063_s1 = inlined_call_operand.vmem [shape: bf16[256,128], index: 1, kind: input, shape index: {}]   ;;  %s1064_s2 = inlined_call_operand.vmem [shape: f32[1,128], index: 2, kind: input, shape index: {}]   ;;  %s1065_s0 = inlined_call_operand.vmem [shape: bf16[128,256], index: 0, kind: input, shape index: {}]   ;;  %s1066_s3 = inlined_call_operand.vmem [shape: bf16[128,32], index: 3, kind: output, shape index: {}]  }
   0x1   :  { %v676_v0 = vld [vmem:[%s1063_s1 + $0x38] sm:$0xff]  ;;  %v675_v2 = vld [vmem:[%s1063_s1 + $0x30] sm:$0xff]  ;;  %v674_v4 = vld [vmem:[%s1063_s1 + $0x28] sm:$0xff] }
   0x2   :  { %v684_v1 = vld [vmem:[%s1063_s1 + $0x78] sm:$0xff]  ;;  %242 = vmatpush.bf16.msra.mxu0 %v676_v0  ;;  %685 = vmatpush.bf16.msra.mxu2 %v676_v0  ;;  %v683_v3 = vld [vmem:[%s1063_s1 + $0x70] sm:$0xff]  ;;  %v682_v5 = vld [vmem:[%s1063_s1 + $0x68] sm:$0xff] }
   0x3   :  { %291 = vmatpush.bf16.msra.mxu1 %v684_v1  ;;  %693 = vmatpush.bf16.msra.mxu3 %v684_v1  ;;  %v673_v6 = vld [vmem:[%s1063_s1 + $0x20] sm:$0xff]  ;;  %v672_v8 = vld [vmem:[%s1063_s1 + $0x18] sm:$0xff]  ;;  %v671_v10 = vld [vmem:[%s1063_s1 + $0x10] sm:$0xff] }
   0x4   :  { %v681_v7 = vld [vmem:[%s1063_s1 + $0x60] sm:$0xff]  ;;  %v680_v9 = vld [vmem:[%s1063_s1 + $0x58] sm:$0xff]  ;;  %v679_v11 = vld [vmem:[%s1063_s1 + $0x50] sm:$0xff] }
   0x5   :  { %v670_v12 = vld [vmem:[%s1063_s1 + $0x8] sm:$0xff]  ;;  %v669_v14 = vld [vmem:[%s1063_s1] sm:$0xff]  ;;  %v535_v28 = vld [vmem:[%s1065_s0 + $0x10] sm:$0xf] }
   0x6   :  { %243 = vmatpush.bf16.msra.mxu0 %v675_v2  ;;  %686 = vmatpush.bf16.msra.mxu2 %v675_v2  ;;  %v678_v13 = vld [vmem:[%s1063_s1 + $0x48] sm:$0xff]  ;;  %v677_v15 = vld [vmem:[%s1063_s1 + $0x40] sm:$0xff]  ;;  %v656_v29 = vld [vmem:[%s1065_s0 + $0x14] sm:$0xf0] }
   0x7   :  { %292 = vmatpush.bf16.msra.mxu1 %v683_v3  ;;  %694 = vmatpush.bf16.msra.mxu3 %v683_v3  ;;  %v527_v16 = vld [vmem:[%s1065_s0] sm:$0xf]  ;;  %v654_v17 = vld [vmem:[%s1065_s0 + $0x4] sm:$0xf0]  ;;  %v653_v20 = vld [vmem:[%s1065_s0 + $0x4] sm:$0xf]  ;;  %v536_v36 = vor.u32 %v656_v29, %v535_v28 }
   0x8   :  { %v559_v18 = vld [vmem:[%s1065_s0 + $0x40] sm:$0xf]  ;;  %v662_v19 = vld [vmem:[%s1065_s0 + $0x44] sm:$0xf0]  ;;  %v529_v21 = vld [vmem:[%s1065_s0 + $0x8] sm:$0xf0]  ;;  %v528_v24 = vor.u32 %v654_v17, %v527_v16 }
   0x9   :  { %v661_v22 = vld [vmem:[%s1065_s0 + $0x44] sm:$0xf]  ;;  %v561_v23 = vld [vmem:[%s1065_s0 + $0x48] sm:$0xf0]  ;;  %v560_v25 = vor.u32 %v662_v19, %v559_v18  ;;  %v532_v26 = vor.u32 %v653_v20, %v529_v21  ;;  %v567_v30 = vld [vmem:[%s1065_s0 + $0x50] sm:$0xf] }
   0xa   :  { %244 = vmatpush.bf16.msra.mxu0 %v674_v4  ;;  %687 = vmatpush.bf16.msra.mxu2 %v674_v4  ;;  %v564_v27 = vor.u32 %v661_v22, %v561_v23  ;;  %v664_v31 = vld [vmem:[%s1065_s0 + $0x54] sm:$0xf0]  ;;  %v655_v32 = vld [vmem:[%s1065_s0 + $0x14] sm:$0xf]  ;;  %v537_v33 = vld [vmem:[%s1065_s0 + $0x18] sm:$0xf0] }
   0xb   :  { %293 = vmatpush.bf16.msra.mxu1 %v682_v5  ;;  %695 = vmatpush.bf16.msra.mxu3 %v682_v5  ;;  %v663_v34 = vld [vmem:[%s1065_s0 + $0x54] sm:$0xf]  ;;  %v569_v35 = vld [vmem:[%s1065_s0 + $0x58] sm:$0xf0]  ;;  %v568_v37 = vor.u32 %v664_v31, %v567_v30  ;;  %v540_v38 = vor.u32 %v655_v32, %v537_v33  ;;  %v543_v40 = vld [vmem:[%s1065_s0 + $0x20] sm:$0xf] }
   0xc   :  { %v572_v39 = vor.u32 %v663_v34, %v569_v35  ;;  %v658_v41 = vld [vmem:[%s1065_s0 + $0x24] sm:$0xf0]  ;;  %v575_v42 = vld [vmem:[%s1065_s0 + $0x60] sm:$0xf]  ;;  %v657_v44 = vld [vmem:[%s1065_s0 + $0x24] sm:$0xf] }
   0xd   :  { %v666_v43 = vld [vmem:[%s1065_s0 + $0x64] sm:$0xf0]  ;;  %v545_v45 = vld [vmem:[%s1065_s0 + $0x28] sm:$0xf0]  ;;  %v665_v46 = vld [vmem:[%s1065_s0 + $0x64] sm:$0xf]  ;;  %v544_v48 = vor.u32 %v658_v41, %v543_v40 }
   0xe   :  { %245 = vmatpush.bf16.msra.mxu0 %v673_v6  ;;  %688 = vmatpush.bf16.msra.mxu2 %v673_v6  ;;  %v577_v47 = vld [vmem:[%s1065_s0 + $0x68] sm:$0xf0]  ;;  %v576_v49 = vor.u32 %v666_v43, %v575_v42  ;;  %v548_v50 = vor.u32 %v657_v44, %v545_v45  ;;  %v551_v52 = vld [vmem:[%s1065_s0 + $0x30] sm:$0xf]  ;;  %v660_v53 = vld [vmem:[%s1065_s0 + $0x34] sm:$0xf0] }
   0xf   :  { %294 = vmatpush.bf16.msra.mxu1 %v681_v7  ;;  %696 = vmatpush.bf16.msra.mxu3 %v681_v7  ;;  %v580_v51 = vor.u32 %v665_v46, %v577_v47  ;;  %v583_v54 = vld [vmem:[%s1065_s0 + $0x70] sm:$0xf]  ;;  %v668_v55 = vld [vmem:[%s1065_s0 + $0x74] sm:$0xf0]  ;;  %v659_v56 = vld [vmem:[%s1065_s0 + $0x34] sm:$0xf]  ;;  %v552_v60 = vor.u32 %v660_v53, %v551_v52 }
  0x10   :  { %v553_v57 = vld [vmem:[%s1065_s0 + $0x38] sm:$0xf0]  ;;  %v667_v58 = vld [vmem:[%s1065_s0 + $0x74] sm:$0xf]  ;;  %v584_v61 = vor.u32 %v668_v55, %v583_v54  ;;  %v873_v18 = vld [vmem:[%s1064_s2] ss:$0 sm:$0xff] }
  0x11   :  { %v585_v59 = vld [vmem:[%s1065_s0 + $0x78] sm:$0xf0]  ;;  %v556_v62 = vor.u32 %v659_v56, %v553_v57 }
  0x12   :  { %246 = vmatpush.bf16.msra.mxu0 %v672_v8  ;;  %689 = vmatpush.bf16.msra.mxu2 %v672_v8  ;;  %v588_v63 = vor.u32 %v667_v58, %v585_v59 }
  0x13   :  { %295 = vmatpush.bf16.msra.mxu1 %v680_v9  ;;  %697 = vmatpush.bf16.msra.mxu3 %v680_v9 }
  0x16   :  { %247 = vmatpush.bf16.msra.mxu0 %v671_v10  ;;  %690 = vmatpush.bf16.msra.mxu2 %v671_v10 }
  0x17   :  { %296 = vmatpush.bf16.msra.mxu1 %v679_v11  ;;  %698 = vmatpush.bf16.msra.mxu3 %v679_v11 }
  0x1a   :  { %248 = vmatpush.bf16.msra.mxu0 %v670_v12  ;;  %691 = vmatpush.bf16.msra.mxu2 %v670_v12 }
  0x1b   :  { %297 = vmatpush.bf16.msra.mxu1 %v678_v13  ;;  %699 = vmatpush.bf16.msra.mxu3 %v678_v13 }
  0x1e   :  { %249 = vmatpush.bf16.msra.mxu0 %v669_v14  ;;  %692 = vmatpush.bf16.msra.mxu2 %v669_v14 }
  0x1f   :  { %298 = vmatpush.bf16.msra.mxu1 %v677_v15  ;;  %700 = vmatpush.bf16.msra.mxu3 %v677_v15 }
  0x21   :  { %250 = vmatmul.bf16.vlgmr.msra.gmra.mxu0 %v528_v24  ;;  %270 = vmatmul.bf16.vlgmr.msra.gmra.mxu2 %v560_v25 }
  0x22   :  { %299 = vmatmul.bf16.vlgmr.msra.gmra.mxu1 %v532_v26  ;;  %319 = vmatmul.bf16.vlgmr.msra.gmra.mxu3 %v564_v27 }
  0x31   :  { %255 = vmatmul.bf16.gmra.mxu0 %v536_v36  ;;  %275 = vmatmul.bf16.gmra.mxu2 %v568_v37 }
  0x32   :  { %304 = vmatmul.bf16.gmra.mxu1 %v540_v38  ;;  %324 = vmatmul.bf16.gmra.mxu3 %v572_v39 }
  0x41   :  { %260 = vmatmul.bf16.gmra.mxu0 %v544_v48  ;;  %280 = vmatmul.bf16.gmra.mxu2 %v576_v49 }
  0x42   :  { %309 = vmatmul.bf16.gmra.mxu1 %v548_v50  ;;  %329 = vmatmul.bf16.gmra.mxu3 %v580_v51 }
  0x51   :  { %265 = vmatmul.bf16.gmra.mxu0 %v552_v60  ;;  %285 = vmatmul.bf16.gmra.mxu2 %v584_v61 }
  0x52   :  { %314 = vmatmul.bf16.gmra.mxu1 %v556_v62  ;;  %334 = vmatmul.bf16.gmra.mxu3 %v588_v63 }
  0x9e   :  { %v251_v0 = vpop.f32.mrf.mxu0 }
  0x9f   :  { %v300_v1 = vpop.f32.mrf.mxu1  ;;  %v252_v22 = vadd.f32 %v873_v18, %v251_v0 }
  0xa1   :  { %v881_v28 = vadd.f32 %v300_v1, %v252_v22 }
  0xa3   :  { %v353_v39 = vmul.f32 %v881_v28, %v881_v28 }
  0xa4   :  { %v271_v2 = vpop.f32.mrf.mxu2 }
  0xa5   :  { %v320_v3 = vpop.f32.mrf.mxu3  ;;  %v272_v32 = vadd.f32 %v873_v18, %v271_v2 }
  0xa6   :  { %v253_v4 = vpop.f32.mrf.mxu0 }
  0xa7   :  { %v302_v5 = vpop.f32.mrf.mxu1  ;;  %v254_v20 = vadd.f32 %v873_v18, %v253_v4  ;;  %v906_v48 = vadd.f32 %v320_v3, %v272_v32 }
  0xa9   :  { %v878_v26 = vadd.f32 %v302_v5, %v254_v20  ;;  %v444_v62 = vmul.f32 %v906_v48, %v906_v48 }
  0xab   :  { %v354_v35 = vmul.f32 %v878_v26, %v878_v26  ;;  %v340_v43 = vadd.f32 %v878_v26, %v881_v28 }
  0xac   :  { %v273_v6 = vpop.f32.mrf.mxu2 }
  0xad   :  { %v322_v7 = vpop.f32.mrf.mxu3  ;;  %v274_v29 = vadd.f32 %v873_v18, %v273_v6  ;;  %v361_v51 = vadd.f32 %v354_v35, %v353_v39 }
  0xae   :  { %v256_v8 = vpop.f32.mrf.mxu0 }
  0xaf   :  { %v305_v9 = vpop.f32.mrf.mxu1  ;;  %v257_v24 = vadd.f32 %v873_v18, %v256_v8  ;;  %v896_v40 = vadd.f32 %v322_v7, %v274_v29 }
  0xb1   :  { %v884_v30 = vadd.f32 %v305_v9, %v257_v24  ;;  %v445_v55 = vmul.f32 %v896_v40, %v896_v40  ;;  %v431_v63 = vadd.f32 %v896_v40, %v906_v48 }
  0xb3   :  { %v355_v44 = vmul.f32 %v884_v30, %v884_v30  ;;  %v341_v52 = vadd.f32 %v340_v43, %v884_v30  ;;  %v452_v8 = vadd.f32 %v445_v55, %v444_v62 }
  0xb4   :  { %v276_v10 = vpop.f32.mrf.mxu2 }
  0xb5   :  { %v325_v11 = vpop.f32.mrf.mxu3  ;;  %v277_v33 = vadd.f32 %v873_v18, %v276_v10  ;;  %v362_v58 = vadd.f32 %v361_v51, %v355_v44 }
  0xb6   :  { %v258_v12 = vpop.f32.mrf.mxu0 }
  0xb7   :  { %v307_v13 = vpop.f32.mrf.mxu1  ;;  %v259_v27 = vadd.f32 %v873_v18, %v258_v12  ;;  %v908_v49 = vadd.f32 %v325_v11, %v277_v33 }
  0xb9   :  { %v891_v36 = vadd.f32 %v307_v13, %v259_v27  ;;  %v446_v0 = vmul.f32 %v908_v49, %v908_v49  ;;  %v432_v9 = vadd.f32 %v431_v63, %v908_v49 }
  0xbb   :  { %v356_v53 = vmul.f32 %v891_v36, %v891_v36  ;;  %v342_v59 = vadd.f32 %v341_v52, %v891_v36 }
  0xbc   :  { %v278_v14 = vpop.f32.mrf.mxu2 }
  0xbd   :  { %v327_v15 = vpop.f32.mrf.mxu3  ;;  %v279_v41 = vadd.f32 %v873_v18, %v278_v14  ;;  %v363_v3 = vadd.f32 %v362_v58, %v356_v53 }
  0xbe   :  { %v261_v16 = vpop.f32.mrf.mxu0 }
  0xbf   :  { %v310_v17 = vpop.f32.mrf.mxu1  ;;  %v262_v31 = vadd.f32 %v873_v18, %v261_v16  ;;  %v918_v56 = vadd.f32 %v327_v15, %v279_v41 }
  0xc1   :  { %v903_v45 = vadd.f32 %v310_v17, %v262_v31  ;;  %v447_v10 = vmul.f32 %v918_v56, %v918_v56  ;;  %v453_v17 = vadd.f32 %v452_v8, %v446_v0  ;;  %v433_v22 = vadd.f32 %v432_v9, %v918_v56 }
  0xc3   :  { %v357_v60 = vmul.f32 %v903_v45, %v903_v45  ;;  %v343_v4 = vadd.f32 %v342_v59, %v903_v45  ;;  %v454_v27 = vadd.f32 %v453_v17, %v447_v10 }
  0xc4   :  { %v281_v19 = vpop.f32.mrf.mxu2 }
  0xc5   :  { %v330_v21 = vpop.f32.mrf.mxu3  ;;  %v282_v50 = vadd.f32 %v873_v18, %v281_v19  ;;  %v364_v13 = vadd.f32 %v363_v3, %v357_v60 }
  0xc6   :  { %v263_v23 = vpop.f32.mrf.mxu0 }
  0xc7   :  { %v312_v25 = vpop.f32.mrf.mxu1  ;;  %v264_v37 = vadd.f32 %v873_v18, %v263_v23  ;;  %v932_v1 = vadd.f32 %v330_v21, %v282_v50 }
  0xc9   :  { %v914_v54 = vadd.f32 %v312_v25, %v264_v37  ;;  %v448_v19 = vmul.f32 %v932_v1, %v932_v1  ;;  %v434_v31 = vadd.f32 %v433_v22, %v932_v1 }
  0xcb   :  { %v358_v5 = vmul.f32 %v914_v54, %v914_v54  ;;  %v344_v14 = vadd.f32 %v343_v4, %v914_v54  ;;  %v455_v35 = vadd.f32 %v454_v27, %v448_v19 }
  0xcc   :  { %v283_v34 = vpop.f32.mrf.mxu2 }
  0xcd   :  { %v332_v38 = vpop.f32.mrf.mxu3  ;;  %v284_v57 = vadd.f32 %v873_v18, %v283_v34  ;;  %v365_v23 = vadd.f32 %v364_v13, %v358_v5 }
  0xce   :  { %v266_v42 = vpop.f32.mrf.mxu0 }
  0xcf   :  { %v267_v46 = vadd.f32 %v873_v18, %v266_v42  ;;  %v315_v47 = vpop.f32.mrf.mxu1  ;;  %v941_v11 = vadd.f32 %v332_v38, %v284_v57 }
  0xd1   :  { %v924_v61 = vadd.f32 %v315_v47, %v267_v46  ;;  %v449_v29 = vmul.f32 %v941_v11, %v941_v11  ;;  %v435_v39 = vadd.f32 %v434_v31, %v941_v11 }
  0xd3   :  { %v359_v15 = vmul.f32 %v924_v61, %v924_v61  ;;  %v345_v24 = vadd.f32 %v344_v14, %v924_v61  ;;  %v456_v44 = vadd.f32 %v455_v35, %v449_v29 }
  0xd4   :  { %v286_v2 = vpop.f32.mrf.mxu2 }
  0xd5   :  { %v287_v6 = vadd.f32 %v873_v18, %v286_v2  ;;  %v335_v7 = vpop.f32.mrf.mxu3  ;;  %v366_v32 = vadd.f32 %v365_v23, %v359_v15 }
  0xd6   :  { %v268_v12 = vpop.f32.mrf.mxu0 }
  0xd7   :  { %v269_v16 = vadd.f32 %v873_v18, %v268_v12  ;;  %v949_v20 = vadd.f32 %v335_v7, %v287_v6  ;;  %v317_v21 = vpop.f32.mrf.mxu1 }
  0xd9   :  { %v953_v25 = vadd.f32 %v317_v21, %v269_v16  ;;  %v450_v37 = vmul.f32 %v949_v20, %v949_v20  ;;  %v436_v47 = vadd.f32 %v435_v39, %v949_v20 }
  0xdb   :  { %v346_v33 = vadd.f32 %v345_v24, %v953_v25  ;;  %v360_v34 = vmul.f32 %v953_v25, %v953_v25  ;;  %v457_v53 = vadd.f32 %v456_v44, %v450_v37 }
  0xdc   :  { %v288_v38 = vpop.f32.mrf.mxu2 }
  0xdd   :  { %v347_v41 = vrot.slane %v346_v33, 4  ;;  %v367_v42 = vadd.f32 %v366_v32, %v360_v34  ;;  %v289_v43 = vadd.f32 %v873_v18, %v288_v38  ;;  %v337_v46 = vpop.f32.mrf.mxu3 }
  0xdf   :  { %v348_v50 = vadd.f32 %v347_v41, %v346_v33  ;;  %v368_v51 = vrot.slane %v367_v42, 4  ;;  %v966_v52 = vadd.f32 %v337_v46, %v289_v43 }
  0xe1   :  { %v349_v55 = vrot.slane %v348_v50, 2  ;;  %v369_v57 = vadd.f32 %v368_v51, %v367_v42  ;;  %v437_v58 = vadd.f32 %v436_v47, %v966_v52  ;;  %v451_v59 = vmul.f32 %v966_v52, %v966_v52 }
  0xe3   :  { %v350_v60 = vadd.f32 %v349_v55, %v348_v50  ;;  %v370_v62 = vrot.slane %v369_v57, 2  ;;  %v438_v63 = vrot.slane %v437_v58, 4  ;;  %v458_v18 = vadd.f32 %v457_v53, %v451_v59 }
  0xe5   :  { %v351_v0 = vrot.slane %v350_v60, 1  ;;  %v371_v2 = vadd.f32 %v370_v62, %v369_v57  ;;  %v439_v3 = vadd.f32 %v438_v63, %v437_v58  ;;  %v459_v4 = vrot.slane %v458_v18, 4 }
  0xe7   :  { %v352_v5 = vadd.f32 %v351_v0, %v350_v60  ;;  %v372_v6 = vrot.slane %v371_v2, 1  ;;  %v440_v7 = vrot.slane %v439_v3, 2  ;;  %v460_v8 = vadd.f32 %v459_v4, %v458_v18 }
  0xe9   :  { %v373_v9 = vadd.f32 %v372_v6, %v371_v2  ;;  %v374_v10 = vmul.f32 0.015625, %v352_v5  ;;  %v441_v12 = vadd.f32 %v440_v7, %v439_v3  ;;  %v461_v13 = vrot.slane %v460_v8, 2 }
  0xeb   :  { %v375_v14 = vmul.f32 0.015625, %v373_v9  ;;  %v376_v15 = vmul.f32 %v374_v10, %v374_v10  ;;  %v442_v17 = vrot.slane %v441_v12, 1  ;;  %v462_v19 = vadd.f32 %v461_v13, %v460_v8 }
  0xec   :  { %v390_v46 = vsub.f32 %v881_v28, %v374_v10  ;;  %v391_v47 = vsub.f32 %v878_v26, %v374_v10  ;;  %v392_v50 = vsub.f32 %v884_v30, %v374_v10  ;;  %v393_v51 = vsub.f32 %v891_v36, %v374_v10 }
  0xed   :  { %v377_v16 = vsub.f32 %v375_v14, %v376_v15  ;;  %v443_v22 = vadd.f32 %v442_v17, %v441_v12  ;;  %v463_v23 = vrot.slane %v462_v19, 1  ;;  %v394_v53 = vsub.f32 %v903_v45, %v374_v10 }
  0xee   :  { %v395_v55 = vsub.f32 %v914_v54, %v374_v10  ;;  %v396_v58 = vsub.f32 %v924_v61, %v374_v10  ;;  %v397_v59 = vsub.f32 %v953_v25, %v374_v10 }
  0xef   :  { %v378_v21 = vmax.f32 %v377_v16, 0.0  ;;  %v971_v27 = vmul.f32 0.015625, %v443_v22  ;;  %v464_v29 = vadd.f32 %v463_v23, %v462_v19 }
  0xf1   :  { %v379_v24 = vadd.f32 1e-05, %v378_v21  ;;  %v467_v31 = vmul.f32 %v971_v27, %v971_v27  ;;  %v466_v32 = vmul.f32 0.015625, %v464_v29  ;;  %v481_v21 = vsub.f32 %v906_v48, %v971_v27 }
  0xf2   :  { %v482_v22 = vsub.f32 %v896_v40, %v971_v27  ;;  %v483_v23 = vsub.f32 %v908_v49, %v971_v27  ;;  %v485_v29 = vsub.f32 %v932_v1, %v971_v27  ;;  %v486_v48 = vsub.f32 %v941_v11, %v971_v27 }
  0xf3   :  { %702 = vrsqrt.f32 %v379_v24  ;;  %v468_v33 = vsub.f32 %v466_v32, %v467_v31  ;;  %vm386_vm1 = vweird.f32 %v379_v24  ;;  %v487_v32 = vsub.f32 %v949_v20, %v971_v27 }
  0xf5   :  { %v469_v34 = vmax.f32 %v468_v33, 0.0  ;;  %v488_v33 = vsub.f32 %v966_v52, %v971_v27 }
  0xf7   :  { %v470_v38 = vadd.f32 1e-05, %v469_v34 }
  0xf9   :  { %v703_v35 = vpop.eup %702  ;;  %704 = vrsqrt.f32 %v470_v38  ;;  %vm477_vm5 = vweird.f32 %v470_v38 }
  0xfa   :  { %v381_v37 = vmul.f32 %v703_v35, %v379_v24  ;;  %vm387_vm0 = vweird.f32 %v703_v35  ;;  %v484_v24 = vsub.f32 %v918_v56, %v971_v27 }
  0xfb   :  { %vm388_vm2 = vmor %vm386_vm1, %vm387_vm0 }
  0xfc   :  { %v382_v39 = vmul.f32 %v703_v35, %v381_v37 }
  0xfe   :  { %v383_v41 = vmul.f32 0.5, %v382_v39 }
  0xff   :  { %v705_v43 = vpop.eup %704 }
 0x100   :  { %v384_v42 = vsub.f32 1.5, %v383_v41  ;;  %v472_v60 = vmul.f32 %v705_v43, %v470_v38  ;;  %vm478_vm4 = vweird.f32 %v705_v43 }
 0x101   :  { %vm479_vm6 = vmor %vm477_vm5, %vm478_vm4 }
 0x102   :  { %v385_v44 = vmul.f32 %v703_v35, %v384_v42  ;;  %v473_v12 = vmul.f32 %v705_v43, %v472_v60 }
 0x104   :  { %v389_v57 = vsel %vm388_vm2, %v703_v35, %v385_v44  ;;  %v474_v15 = vmul.f32 0.5, %v473_v12 }
 0x105   :  { %v398_v62 = vmul.f32 %v390_v46, %v389_v57  ;;  %v399_v63 = vmul.f32 %v391_v47, %v389_v57  ;;  %v400_v28 = vmul.f32 %v392_v50, %v389_v57  ;;  %v401_v18 = vmul.f32 %v393_v51, %v389_v57 }
 0x106   :  { %v402_v26 = vmul.f32 %v394_v53, %v389_v57  ;;  %v403_v0 = vmul.f32 %v395_v55, %v389_v57  ;;  %v404_v2 = vmul.f32 %v396_v58, %v389_v57  ;;  %v405_v30 = vmul.f32 %v397_v59, %v389_v57 }
 0x107   :  { %v406_v3 = vmax.f32 %v398_v62, 0.0  ;;  %v407_v36 = vmax.f32 %v399_v63, 0.0  ;;  %v408_v4 = vmax.f32 %v400_v28, 0.0  ;;  %v409_v45 = vmax.f32 %v401_v18, 0.0 }
 0x108   :  { %v410_v5 = vmax.f32 %v402_v26, 0.0  ;;  %v411_v54 = vmax.f32 %v403_v0, 0.0  ;;  %v412_v6 = vmax.f32 %v404_v2, 0.0  ;;  %v413_v8 = vmax.f32 %v405_v30, 0.0 }
 0x109   :  { %v414_v61 = vpack.c.bf16 %v406_v3, %v406_v3  ;;  %v415_v7 = vpack.c.bf16 %v407_v36, %v407_v36  ;;  %v416_v25 = vpack.c.bf16 %v408_v4, %v408_v4  ;;  %v417_v9 = vpack.c.bf16 %v409_v45, %v409_v45 }
 0x10a   :  { %v418_v10 = vpack.c.bf16 %v410_v5, %v410_v5  ;;  %v419_v13 = vpack.c.bf16 %v411_v54, %v411_v54  ;;  %v420_v14 = vpack.c.bf16 %v412_v6, %v412_v6  ;;  %v421_v16 = vpack.c.bf16 %v413_v8, %v413_v8 }
 0x10b   :  { %423 = vst.msk [vmem:[%s1066_s3] sm:$0xf] %vm422_vm3, %v414_v61  ;;  %v475_v17 = vsub.f32 1.5, %v474_v15 }
 0x10c   :  { %424 = vst.msk [vmem:[%s1066_s3 + $0x4] sm:$0xf] %vm422_vm3, %v415_v7 }
 0x10d   :  { %425 = vst.msk [vmem:[%s1066_s3 + $0x8] sm:$0xf] %vm422_vm3, %v416_v25  ;;  %v476_v19 = vmul.f32 %v705_v43, %v475_v17 }
 0x10e   :  { %426 = vst.msk [vmem:[%s1066_s3 + $0xc] sm:$0xf] %vm422_vm3, %v417_v9 }
 0x10f   :  { %427 = vst.msk [vmem:[%s1066_s3 + $0x10] sm:$0xf] %vm422_vm3, %v418_v10  ;;  %v480_v31 = vsel %vm479_vm6, %v705_v43, %v476_v19 }
 0x110   :  { %428 = vst.msk [vmem:[%s1066_s3 + $0x14] sm:$0xf] %vm422_vm3, %v419_v13  ;;  %v489_v40 = vmul.f32 %v481_v21, %v480_v31  ;;  %v490_v34 = vmul.f32 %v482_v22, %v480_v31  ;;  %v491_v35 = vmul.f32 %v483_v23, %v480_v31  ;;  %v492_v49 = vmul.f32 %v484_v24, %v480_v31 }
 0x111   :  { %429 = vst.msk [vmem:[%s1066_s3 + $0x18] sm:$0xf] %vm422_vm3, %v420_v14  ;;  %v493_v37 = vmul.f32 %v485_v29, %v480_v31  ;;  %v494_v38 = vmul.f32 %v486_v48, %v480_v31  ;;  %v495_v56 = vmul.f32 %v487_v32, %v480_v31  ;;  %v496_v39 = vmul.f32 %v488_v33, %v480_v31 }
 0x112   :  { %430 = vst.msk [vmem:[%s1066_s3 + $0x1c] sm:$0xf] %vm422_vm3, %v421_v16  ;;  %v497_v41 = vmax.f32 %v489_v40, 0.0  ;;  %v498_v1 = vmax.f32 %v490_v34, 0.0  ;;  %v499_v42 = vmax.f32 %v491_v35, 0.0  ;;  %v500_v43 = vmax.f32 %v492_v49, 0.0 }
 0x113   :  { %v501_v44 = vmax.f32 %v493_v37, 0.0  ;;  %v502_v11 = vmax.f32 %v494_v38, 0.0  ;;  %v503_v46 = vmax.f32 %v495_v56, 0.0  ;;  %v504_v51 = vmax.f32 %v496_v39, 0.0 }
 0x114   :  { %v505_v47 = vpack.c.bf16 %v497_v41, %v497_v41  ;;  %v506_v20 = vpack.c.bf16 %v498_v1, %v498_v1  ;;  %v507_v50 = vpack.c.bf16 %v499_v42, %v499_v42  ;;  %v508_v52 = vpack.c.bf16 %v500_v43, %v500_v43 }
 0x115   :  { %v509_v27 = vpack.c.bf16 %v501_v44, %v501_v44  ;;  %v510_v53 = vpack.c.bf16 %v502_v11, %v502_v11  ;;  %v511_v55 = vpack.c.bf16 %v503_v46, %v503_v46  ;;  %v512_v57 = vpack.c.bf16 %v504_v51, %v504_v51 }
 0x116   :  { %513 = vst.msk [vmem:[%s1066_s3 + $0x20] sm:$0xf] %vm422_vm3, %v505_v47 }
 0x117   :  { %514 = vst.msk [vmem:[%s1066_s3 + $0x24] sm:$0xf] %vm422_vm3, %v506_v20 }
 0x118   :  { %515 = vst.msk [vmem:[%s1066_s3 + $0x28] sm:$0xf] %vm422_vm3, %v507_v50 }
 0x119   :  { %516 = vst.msk [vmem:[%s1066_s3 + $0x2c] sm:$0xf] %vm422_vm3, %v508_v52 }
 0x11a   :  { %517 = vst.msk [vmem:[%s1066_s3 + $0x30] sm:$0xf] %vm422_vm3, %v509_v27 }
 0x11b   :  { %518 = vst.msk [vmem:[%s1066_s3 + $0x34] sm:$0xf] %vm422_vm3, %v510_v53 }
 0x11c   :  { %519 = vst.msk [vmem:[%s1066_s3 + $0x38] sm:$0xf] %vm422_vm3, %v511_v55 }
 0x11d   :  { %520 = vst.msk [vmem:[%s1066_s3 + $0x3c] sm:$0xf] %vm422_vm3, %v512_v57 }

// kernel: generator_forward.14
= control target key start
LH: loop header
LB: loop body
LE: loop exit
PB: predicated region body
PF: predicated region fallthrough
CT: control target
= control target key end

     0   :  { %vm347_vm3 = vcmask 519168   ;;  %s730_s1 = inlined_call_operand.vmem [shape: bf16[384,128], index: 1, kind: input, shape index: {}]   ;;  %s731_s2 = inlined_call_operand.vmem [shape: f32[1,128], index: 2, kind: input, shape index: {}]   ;;  %s732_s0 = inlined_call_operand.vmem [shape: bf16[32,384], index: 0, kind: input, shape index: {}]   ;;  %s733_s3 = inlined_call_operand.vmem [shape: bf16[32,64], index: 3, kind: output, shape index: {}]  }
   0x1   :  { %v529_v0 = vld [vmem:[%s730_s1 + $0x38] sm:$0xff]  ;;  %v528_v3 = vld [vmem:[%s730_s1 + $0x30] sm:$0xff]  ;;  %v527_v6 = vld [vmem:[%s730_s1 + $0x28] sm:$0xff] }
   0x2   :  { %v537_v1 = vld [vmem:[%s730_s1 + $0x78] sm:$0xff]  ;;  %250 = vmatpush.bf16.msra.mxu0 %v529_v0  ;;  %v536_v4 = vld [vmem:[%s730_s1 + $0x70] sm:$0xff]  ;;  %546 = vmatpush.bf16.msra.mxu3 %v529_v0  ;;  %v535_v7 = vld [vmem:[%s730_s1 + $0x68] sm:$0xff] }
   0x3   :  { %v545_v2 = vld [vmem:[%s730_s1 + $0xb8] sm:$0xff]  ;;  %269 = vmatpush.bf16.msra.mxu1 %v537_v1  ;;  %v544_v5 = vld [vmem:[%s730_s1 + $0xb0] sm:$0xff]  ;;  %v543_v8 = vld [vmem:[%s730_s1 + $0xa8] sm:$0xff] }
   0x4   :  { %288 = vmatpush.bf16.msra.mxu2 %v545_v2  ;;  %v526_v9 = vld [vmem:[%s730_s1 + $0x20] sm:$0xff]  ;;  %v525_v12 = vld [vmem:[%s730_s1 + $0x18] sm:$0xff]  ;;  %v524_v15 = vld [vmem:[%s730_s1 + $0x10] sm:$0xff] }
   0x5   :  { %v534_v10 = vld [vmem:[%s730_s1 + $0x60] sm:$0xff]  ;;  %v533_v13 = vld [vmem:[%s730_s1 + $0x58] sm:$0xff]  ;;  %v532_v16 = vld [vmem:[%s730_s1 + $0x50] sm:$0xff] }
   0x6   :  { %251 = vmatpush.bf16.msra.mxu0 %v528_v3  ;;  %547 = vmatpush.bf16.msra.mxu3 %v528_v3  ;;  %v542_v11 = vld [vmem:[%s730_s1 + $0xa0] sm:$0xff]  ;;  %v541_v14 = vld [vmem:[%s730_s1 + $0x98] sm:$0xff]  ;;  %v540_v17 = vld [vmem:[%s730_s1 + $0x90] sm:$0xff] }
   0x7   :  { %270 = vmatpush.bf16.msra.mxu1 %v536_v4  ;;  %v523_v18 = vld [vmem:[%s730_s1 + $0x8] sm:$0xff]  ;;  %v522_v21 = vld [vmem:[%s730_s1] sm:$0xff]  ;;  %v400_v27 = vld [vmem:[%s732_s0 + $0xc] sm:$0xf0] }
   0x8   :  { %289 = vmatpush.bf16.msra.mxu2 %v544_v5  ;;  %v531_v19 = vld [vmem:[%s730_s1 + $0x48] sm:$0xff]  ;;  %v530_v22 = vld [vmem:[%s730_s1 + $0x40] sm:$0xff]  ;;  %v518_v29 = vld [vmem:[%s732_s0 + $0x10] sm:$0xf0] }
   0x9   :  { %v539_v20 = vld [vmem:[%s730_s1 + $0x88] sm:$0xff]  ;;  %v538_v23 = vld [vmem:[%s730_s1 + $0x80] sm:$0xff]  ;;  %v410_v30 = vld [vmem:[%s732_s0 + $0x18] sm:$0xf] }
   0xa   :  { %252 = vmatpush.bf16.msra.mxu0 %v527_v6  ;;  %548 = vmatpush.bf16.msra.mxu3 %v527_v6  ;;  %v398_v24 = vld [vmem:[%s732_s0] sm:$0xf]  ;;  %v517_v25 = vld [vmem:[%s732_s0 + $0x8] sm:$0xf0]  ;;  %v516_v26 = vld [vmem:[%s732_s0 + $0x4] sm:$0xf] }
   0xb   :  { %271 = vmatpush.bf16.msra.mxu1 %v535_v7  ;;  %v406_v28 = vld [vmem:[%s732_s0 + $0x8] sm:$0xf]  ;;  %v520_v31 = vld [vmem:[%s732_s0 + $0x20] sm:$0xf0]  ;;  %v399_v32 = vor.u32 %v517_v25, %v398_v24  ;;  %v403_v33 = vor.u32 %v516_v26, %v400_v27  ;;  %v519_v36 = vld [vmem:[%s732_s0 + $0x1c] sm:$0xf] }
   0xc   :  { %290 = vmatpush.bf16.msra.mxu2 %v543_v8  ;;  %v407_v34 = vor.u32 %v518_v29, %v406_v28  ;;  %v411_v35 = vor.u32 %v520_v31, %v410_v30  ;;  %v412_v37 = vld [vmem:[%s732_s0 + $0x24] sm:$0xf0]  ;;  %v418_v38 = vld [vmem:[%s732_s0 + $0x20] sm:$0xf]  ;;  %v521_v39 = vld [vmem:[%s732_s0 + $0x28] sm:$0xf0] }
   0xd   :  { %v415_v40 = vor.u32 %v519_v36, %v412_v37  ;;  %v419_v41 = vor.u32 %v521_v39, %v418_v38  ;;  %v554_v44 = vld [vmem:[%s731_s2] ss:$0 sm:$0xff] }
   0xe   :  { %253 = vmatpush.bf16.msra.mxu0 %v526_v9  ;;  %549 = vmatpush.bf16.msra.mxu3 %v526_v9 }
   0xf   :  { %272 = vmatpush.bf16.msra.mxu1 %v534_v10 }
  0x10   :  { %291 = vmatpush.bf16.msra.mxu2 %v542_v11 }
  0x12   :  { %254 = vmatpush.bf16.msra.mxu0 %v525_v12  ;;  %550 = vmatpush.bf16.msra.mxu3 %v525_v12 }
  0x13   :  { %273 = vmatpush.bf16.msra.mxu1 %v533_v13 }
  0x14   :  { %292 = vmatpush.bf16.msra.mxu2 %v541_v14 }
  0x16   :  { %255 = vmatpush.bf16.msra.mxu0 %v524_v15  ;;  %551 = vmatpush.bf16.msra.mxu3 %v524_v15 }
  0x17   :  { %274 = vmatpush.bf16.msra.mxu1 %v532_v16 }
  0x18   :  { %293 = vmatpush.bf16.msra.mxu2 %v540_v17 }
  0x1a   :  { %256 = vmatpush.bf16.msra.mxu0 %v523_v18  ;;  %552 = vmatpush.bf16.msra.mxu3 %v523_v18 }
  0x1b   :  { %275 = vmatpush.bf16.msra.mxu1 %v531_v19 }
  0x1c   :  { %294 = vmatpush.bf16.msra.mxu2 %v539_v20 }
  0x1e   :  { %257 = vmatpush.bf16.msra.mxu0 %v522_v21  ;;  %553 = vmatpush.bf16.msra.mxu3 %v522_v21 }
  0x1f   :  { %276 = vmatpush.bf16.msra.mxu1 %v530_v22 }
  0x20   :  { %295 = vmatpush.bf16.msra.mxu2 %v538_v23 }
  0x21   :  { %258 = vmatmul.bf16.vlgmr.msra.gmra.mxu0 %v399_v32  ;;  %263 = vmatmul.bf16.vlgmr.msra.gmra.mxu3 %v411_v35 }
  0x22   :  { %277 = vmatmul.bf16.vlgmr.msra.gmra.mxu1 %v403_v33 }
  0x23   :  { %296 = vmatmul.bf16.vlgmr.msra.gmra.mxu2 %v407_v34 }
  0x32   :  { %282 = vmatmul.bf16.gmra.mxu1 %v415_v40 }
  0x33   :  { %301 = vmatmul.bf16.gmra.mxu2 %v419_v41 }
  0x9e   :  { %v259_v42 = vpop.f32.mrf.mxu0 }
  0x9f   :  { %v278_v43 = vpop.f32.mrf.mxu1  ;;  %v260_v45 = vadd.f32 %v554_v44, %v259_v42 }
  0xa1   :  { %v279_v49 = vadd.f32 %v278_v43, %v260_v45 }
  0xa4   :  { %v264_v53 = vpop.f32.mrf.mxu3 }
  0xa5   :  { %v265_v0 = vadd.f32 %v554_v44, %v264_v53 }
  0xa6   :  { %v297_v46 = vpop.f32.mrf.mxu2  ;;  %v261_v47 = vpop.f32.mrf.mxu0 }
  0xa7   :  { %v280_v48 = vpop.f32.mrf.mxu1  ;;  %v262_v50 = vadd.f32 %v554_v44, %v261_v47  ;;  %v690_v51 = vadd.f32 %v297_v46, %v279_v49 }
  0xa9   :  { %v281_v52 = vadd.f32 %v280_v48, %v262_v50  ;;  %v314_v57 = vmul.f32 %v690_v51, %v690_v51 }
  0xac   :  { %v266_v4 = vpop.f32.mrf.mxu3 }
  0xad   :  { %v267_v11 = vadd.f32 %v554_v44, %v266_v4 }
  0xae   :  { %v299_v54 = vpop.f32.mrf.mxu2 }
  0xaf   :  { %v692_v55 = vadd.f32 %v299_v54, %v281_v52  ;;  %v283_v56 = vpop.f32.mrf.mxu1 }
  0xb0   :  { %v284_v7 = vadd.f32 %v283_v56, %v265_v0 }
  0xb1   :  { %v307_v58 = vadd.f32 %v692_v55, %v690_v51  ;;  %v315_v59 = vmul.f32 %v692_v55, %v692_v55 }
  0xb3   :  { %v308_v60 = vrot.slane %v307_v58, 4  ;;  %v316_v61 = vadd.f32 %v315_v59, %v314_v57 }
  0xb5   :  { %v309_v62 = vadd.f32 %v308_v60, %v307_v58  ;;  %v317_v63 = vrot.slane %v316_v61, 4 }
  0xb6   :  { %v302_v1 = vpop.f32.mrf.mxu2 }
  0xb7   :  { %v310_v2 = vrot.slane %v309_v62, 2  ;;  %v318_v3 = vadd.f32 %v317_v63, %v316_v61  ;;  %v285_v8 = vpop.f32.mrf.mxu1  ;;  %v700_v15 = vadd.f32 %v302_v1, %v284_v7 }
  0xb8   :  { %v286_v14 = vadd.f32 %v285_v8, %v267_v11 }
  0xb9   :  { %v311_v5 = vadd.f32 %v310_v2, %v309_v62  ;;  %v319_v6 = vrot.slane %v318_v3, 2  ;;  %v357_v22 = vmul.f32 %v700_v15, %v700_v15 }
  0xbb   :  { %v312_v9 = vrot.slane %v311_v5, 1  ;;  %v320_v10 = vadd.f32 %v319_v6, %v318_v3 }
  0xbd   :  { %v313_v12 = vadd.f32 %v312_v9, %v311_v5  ;;  %v321_v13 = vrot.slane %v320_v10, 1 }
  0xbe   :  { %v304_v16 = vpop.f32.mrf.mxu2 }
  0xbf   :  { %v322_v17 = vadd.f32 %v321_v13, %v320_v10  ;;  %v323_v18 = vmul.f32 0.0625, %v313_v12  ;;  %v702_v19 = vadd.f32 %v304_v16, %v286_v14 }
  0xc1   :  { %v324_v20 = vmul.f32 0.0625, %v322_v17  ;;  %v325_v21 = vmul.f32 %v323_v18, %v323_v18  ;;  %v350_v23 = vadd.f32 %v702_v19, %v700_v15  ;;  %v358_v24 = vmul.f32 %v702_v19, %v702_v19 }
  0xc2   :  { %v339_v54 = vsub.f32 %v690_v51, %v323_v18  ;;  %v340_v56 = vsub.f32 %v692_v55, %v323_v18 }
  0xc3   :  { %v326_v25 = vsub.f32 %v324_v20, %v325_v21  ;;  %v351_v26 = vrot.slane %v350_v23, 4  ;;  %v359_v27 = vadd.f32 %v358_v24, %v357_v22 }
  0xc5   :  { %v327_v28 = vmax.f32 %v326_v25, 0.0  ;;  %v352_v29 = vadd.f32 %v351_v26, %v350_v23  ;;  %v360_v30 = vrot.slane %v359_v27, 4 }
  0xc7   :  { %v328_v31 = vadd.f32 1e-05, %v327_v28  ;;  %v353_v32 = vrot.slane %v352_v29, 2  ;;  %v361_v33 = vadd.f32 %v360_v30, %v359_v27 }
  0xc9   :  { %555 = vrsqrt.f32 %v328_v31  ;;  %v354_v34 = vadd.f32 %v353_v32, %v352_v29  ;;  %v362_v35 = vrot.slane %v361_v33, 2  ;;  %vm335_vm1 = vweird.f32 %v328_v31 }
  0xcb   :  { %v355_v36 = vrot.slane %v354_v34, 1  ;;  %v363_v37 = vadd.f32 %v362_v35, %v361_v33 }
  0xcd   :  { %v356_v38 = vadd.f32 %v355_v36, %v354_v34  ;;  %v364_v39 = vrot.slane %v363_v37, 1 }
  0xcf   :  { %v556_v40 = vpop.eup %555  ;;  %v365_v42 = vadd.f32 %v364_v39, %v363_v37  ;;  %v366_v43 = vmul.f32 0.0625, %v356_v38 }
  0xd0   :  { %v330_v41 = vmul.f32 %v556_v40, %v328_v31  ;;  %vm336_vm0 = vweird.f32 %v556_v40 }
  0xd1   :  { %v367_v45 = vmul.f32 0.0625, %v365_v42  ;;  %v368_v46 = vmul.f32 %v366_v43, %v366_v43  ;;  %vm337_vm2 = vmor %vm335_vm1, %vm336_vm0  ;;  %v382_v4 = vsub.f32 %v700_v15, %v366_v43  ;;  %v383_v5 = vsub.f32 %v702_v19, %v366_v43 }
  0xd2   :  { %v331_v44 = vmul.f32 %v556_v40, %v330_v41 }
  0xd3   :  { %v369_v48 = vsub.f32 %v367_v45, %v368_v46 }
  0xd4   :  { %v332_v47 = vmul.f32 0.5, %v331_v44 }
  0xd5   :  { %v370_v50 = vmax.f32 %v369_v48, 0.0 }
  0xd6   :  { %v333_v49 = vsub.f32 1.5, %v332_v47 }
  0xd7   :  { %v371_v53 = vadd.f32 1e-05, %v370_v50 }
  0xd8   :  { %v334_v52 = vmul.f32 %v556_v40, %v333_v49 }
  0xd9   :  { %557 = vrsqrt.f32 %v371_v53  ;;  %vm378_vm5 = vweird.f32 %v371_v53 }
  0xda   :  { %v338_v57 = vsel %vm337_vm2, %v556_v40, %v334_v52 }
  0xdb   :  { %v341_v58 = vmul.f32 %v339_v54, %v338_v57  ;;  %v342_v59 = vmul.f32 %v340_v56, %v338_v57 }
  0xdd   :  { %v343_v60 = vmax.f32 %v341_v58, 0.0  ;;  %v344_v61 = vmax.f32 %v342_v59, 0.0 }
  0xdf   :  { %v345_v62 = vpack.c.bf16 %v343_v60, %v343_v60  ;;  %v346_v63 = vpack.c.bf16 %v344_v61, %v344_v61  ;;  %v558_v0 = vpop.eup %557 }
  0xe0   :  { %v373_v1 = vmul.f32 %v558_v0, %v371_v53  ;;  %vm379_vm4 = vweird.f32 %v558_v0 }
  0xe1   :  { %348 = vst.msk [vmem:[%s733_s3] sm:$0xf] %vm347_vm3, %v345_v62  ;;  %vm380_vm6 = vmor %vm378_vm5, %vm379_vm4 }
  0xe2   :  { %349 = vst.msk [vmem:[%s733_s3 + $0x4] sm:$0xf] %vm347_vm3, %v346_v63  ;;  %v374_v51 = vmul.f32 %v558_v0, %v373_v1 }
  0xe4   :  { %v375_v55 = vmul.f32 0.5, %v374_v51 }
  0xe6   :  { %v376_v2 = vsub.f32 1.5, %v375_v55 }
  0xe8   :  { %v377_v3 = vmul.f32 %v558_v0, %v376_v2 }
  0xea   :  { %v381_v6 = vsel %vm380_vm6, %v558_v0, %v377_v3 }
  0xeb   :  { %v384_v7 = vmul.f32 %v382_v4, %v381_v6  ;;  %v385_v8 = vmul.f32 %v383_v5, %v381_v6 }
  0xed   :  { %v386_v9 = vmax.f32 %v384_v7, 0.0  ;;  %v387_v10 = vmax.f32 %v385_v8, 0.0 }
  0xef   :  { %v388_v11 = vpack.c.bf16 %v386_v9, %v386_v9  ;;  %v389_v12 = vpack.c.bf16 %v387_v10, %v387_v10 }
  0xf1   :  { %390 = vst.msk [vmem:[%s733_s3 + $0x8] sm:$0xf] %vm347_vm3, %v388_v11 }
  0xf2   :  { %391 = vst.msk [vmem:[%s733_s3 + $0xc] sm:$0xf] %vm347_vm3, %v389_v12 }

// kernel: generator_forward.15
= control target key start
LH: loop header
LB: loop body
LE: loop exit
PB: predicated region body
PF: predicated region fallthrough
CT: control target
= control target key end

     0   :  { %vm537_vm6 = vcmask 519168   ;;  %s1088_s1 = inlined_call_operand.vmem [shape: bf16[640,128], index: 1, kind: input, shape index: {}]   ;;  %s1089_s2 = inlined_call_operand.vmem [shape: f32[1,128], index: 2, kind: input, shape index: {}]   ;;  %s1090_s0 = inlined_call_operand.vmem [shape: bf16[32,640], index: 0, kind: input, shape index: {}]   ;;  %s1091_s3 = inlined_call_operand.vmem [shape: bf16[32,64], index: 3, kind: output, shape index: {}]  }
   0x1   :  { %v803_v0 = vld [vmem:[%s1088_s1 + $0x38] sm:$0xff]  ;;  %v802_v4 = vld [vmem:[%s1088_s1 + $0x30] sm:$0xff]  ;;  %v801_v8 = vld [vmem:[%s1088_s1 + $0x28] sm:$0xff] }
   0x2   :  { %v811_v1 = vld [vmem:[%s1088_s1 + $0x78] sm:$0xff]  ;;  %402 = vmatpush.bf16.msra.mxu0 %v803_v0  ;;  %v810_v5 = vld [vmem:[%s1088_s1 + $0x70] sm:$0xff]  ;;  %v809_v9 = vld [vmem:[%s1088_s1 + $0x68] sm:$0xff] }
   0x3   :  { %v819_v2 = vld [vmem:[%s1088_s1 + $0xb8] sm:$0xff]  ;;  %421 = vmatpush.bf16.msra.mxu1 %v811_v1  ;;  %v818_v6 = vld [vmem:[%s1088_s1 + $0xb0] sm:$0xff]  ;;  %v817_v10 = vld [vmem:[%s1088_s1 + $0xa8] sm:$0xff] }
   0x4   :  { %v827_v3 = vld [vmem:[%s1088_s1 + $0xf8] sm:$0xff]  ;;  %440 = vmatpush.bf16.msra.mxu2 %v819_v2  ;;  %v826_v7 = vld [vmem:[%s1088_s1 + $0xf0] sm:$0xff]  ;;  %v825_v11 = vld [vmem:[%s1088_s1 + $0xe8] sm:$0xff] }
   0x5   :  { %459 = vmatpush.bf16.msra.mxu3 %v827_v3  ;;  %v800_v12 = vld [vmem:[%s1088_s1 + $0x20] sm:$0xff]  ;;  %v799_v16 = vld [vmem:[%s1088_s1 + $0x18] sm:$0xff]  ;;  %v798_v20 = vld [vmem:[%s1088_s1 + $0x10] sm:$0xff] }
   0x6   :  { %403 = vmatpush.bf16.msra.mxu0 %v802_v4  ;;  %v808_v13 = vld [vmem:[%s1088_s1 + $0x60] sm:$0xff]  ;;  %v807_v17 = vld [vmem:[%s1088_s1 + $0x58] sm:$0xff]  ;;  %v806_v21 = vld [vmem:[%s1088_s1 + $0x50] sm:$0xff] }
   0x7   :  { %422 = vmatpush.bf16.msra.mxu1 %v810_v5  ;;  %v816_v14 = vld [vmem:[%s1088_s1 + $0xa0] sm:$0xff]  ;;  %v815_v18 = vld [vmem:[%s1088_s1 + $0x98] sm:$0xff]  ;;  %v814_v22 = vld [vmem:[%s1088_s1 + $0x90] sm:$0xff] }
   0x8   :  { %441 = vmatpush.bf16.msra.mxu2 %v818_v6  ;;  %v824_v15 = vld [vmem:[%s1088_s1 + $0xe0] sm:$0xff]  ;;  %v823_v19 = vld [vmem:[%s1088_s1 + $0xd8] sm:$0xff]  ;;  %v822_v23 = vld [vmem:[%s1088_s1 + $0xd0] sm:$0xff] }
   0x9   :  { %460 = vmatpush.bf16.msra.mxu3 %v826_v7  ;;  %v797_v24 = vld [vmem:[%s1088_s1 + $0x8] sm:$0xff]  ;;  %v796_v28 = vld [vmem:[%s1088_s1] sm:$0xff]  ;;  %v788_v33 = vld [vmem:[%s1090_s0 + $0x10] sm:$0xf0] }
   0xa   :  { %404 = vmatpush.bf16.msra.mxu0 %v801_v8  ;;  %v805_v25 = vld [vmem:[%s1088_s1 + $0x48] sm:$0xff]  ;;  %v804_v29 = vld [vmem:[%s1088_s1 + $0x40] sm:$0xff]  ;;  %v590_v35 = vld [vmem:[%s1090_s0 + $0x14] sm:$0xf0] }
   0xb   :  { %423 = vmatpush.bf16.msra.mxu1 %v809_v9  ;;  %v813_v26 = vld [vmem:[%s1088_s1 + $0x88] sm:$0xff]  ;;  %v812_v30 = vld [vmem:[%s1088_s1 + $0x80] sm:$0xff]  ;;  %v789_v37 = vld [vmem:[%s1090_s0 + $0x18] sm:$0xf0] }
   0xc   :  { %442 = vmatpush.bf16.msra.mxu2 %v817_v10  ;;  %v821_v27 = vld [vmem:[%s1088_s1 + $0xc8] sm:$0xff]  ;;  %v820_v31 = vld [vmem:[%s1088_s1 + $0xc0] sm:$0xff]  ;;  %v835_v40 = vld [vmem:[%s1088_s1 + $0x138] sm:$0xff] }
   0xd   :  { %461 = vmatpush.bf16.msra.mxu3 %v825_v11  ;;  %v588_v32 = vld [vmem:[%s1090_s0] sm:$0xf]  ;;  %v786_v34 = vld [vmem:[%s1090_s0 + $0x4] sm:$0xf]  ;;  %v596_v36 = vld [vmem:[%s1090_s0 + $0x8] sm:$0xf] }
   0xe   :  { %405 = vmatpush.bf16.msra.mxu0 %v800_v12  ;;  %v787_v38 = vld [vmem:[%s1090_s0 + $0xc] sm:$0xf]  ;;  %v598_v39 = vld [vmem:[%s1090_s0 + $0x1c] sm:$0xf0]  ;;  %v589_v41 = vor.u32 %v788_v33, %v588_v32  ;;  %v593_v42 = vor.u32 %v786_v34, %v590_v35  ;;  %v597_v43 = vor.u32 %v789_v37, %v596_v36  ;;  %v834_v45 = vld [vmem:[%s1088_s1 + $0x130] sm:$0xff] }
   0xf   :  { %424 = vmatpush.bf16.msra.mxu1 %v808_v13  ;;  %v601_v44 = vor.u32 %v787_v38, %v598_v39  ;;  %v833_v46 = vld [vmem:[%s1088_s1 + $0x128] sm:$0xff]  ;;  %v832_v47 = vld [vmem:[%s1088_s1 + $0x120] sm:$0xff]  ;;  %v793_v49 = vld [vmem:[%s1090_s0 + $0x38] sm:$0xf0] }
  0x10   :  { %443 = vmatpush.bf16.msra.mxu2 %v816_v14  ;;  %v608_v48 = vld [vmem:[%s1090_s0 + $0x28] sm:$0xf]  ;;  %v791_v50 = vld [vmem:[%s1090_s0 + $0x2c] sm:$0xf]  ;;  %v610_v51 = vld [vmem:[%s1090_s0 + $0x3c] sm:$0xf0] }
  0x11   :  { %462 = vmatpush.bf16.msra.mxu3 %v824_v15  ;;  %v616_v52 = vld [vmem:[%s1090_s0 + $0x30] sm:$0xf]  ;;  %v794_v53 = vld [vmem:[%s1090_s0 + $0x40] sm:$0xf0]  ;;  %v792_v54 = vld [vmem:[%s1090_s0 + $0x34] sm:$0xf]  ;;  %v609_v57 = vor.u32 %v793_v49, %v608_v48  ;;  %v613_v58 = vor.u32 %v791_v50, %v610_v51 }
  0x12   :  { %406 = vmatpush.bf16.msra.mxu0 %v799_v16  ;;  %v618_v55 = vld [vmem:[%s1090_s0 + $0x44] sm:$0xf0]  ;;  %v831_v56 = vld [vmem:[%s1088_s1 + $0x118] sm:$0xff]  ;;  %v617_v59 = vor.u32 %v794_v53, %v616_v52  ;;  %v830_v61 = vld [vmem:[%s1088_s1 + $0x110] sm:$0xff] }
  0x13   :  { %425 = vmatpush.bf16.msra.mxu1 %v807_v17  ;;  %v621_v60 = vor.u32 %v792_v54, %v618_v55  ;;  %v829_v62 = vld [vmem:[%s1088_s1 + $0x108] sm:$0xff]  ;;  %v828_v63 = vld [vmem:[%s1088_s1 + $0x100] sm:$0xff]  ;;  %v604_v0 = vld [vmem:[%s1090_s0 + $0x10] sm:$0xf] }
  0x14   :  { %444 = vmatpush.bf16.msra.mxu2 %v815_v18  ;;  %v790_v1 = vld [vmem:[%s1090_s0 + $0x20] sm:$0xf0]  ;;  %v624_v2 = vld [vmem:[%s1090_s0 + $0x38] sm:$0xf]  ;;  %v795_v3 = vld [vmem:[%s1090_s0 + $0x48] sm:$0xf0] }
  0x15   :  { %463 = vmatpush.bf16.msra.mxu3 %v823_v19  ;;  %v605_v4 = vor.u32 %v790_v1, %v604_v0  ;;  %v625_v5 = vor.u32 %v795_v3, %v624_v2  ;;  %v844_v16 = vld [vmem:[%s1089_s2] ss:$0 sm:$0xff] }
  0x16   :  { %407 = vmatpush.bf16.msra.mxu0 %v798_v20 }
  0x17   :  { %426 = vmatpush.bf16.msra.mxu1 %v806_v21 }
  0x18   :  { %445 = vmatpush.bf16.msra.mxu2 %v814_v22 }
  0x19   :  { %464 = vmatpush.bf16.msra.mxu3 %v822_v23 }
  0x1a   :  { %408 = vmatpush.bf16.msra.mxu0 %v797_v24 }
  0x1b   :  { %427 = vmatpush.bf16.msra.mxu1 %v805_v25 }
  0x1c   :  { %446 = vmatpush.bf16.msra.mxu2 %v813_v26 }
  0x1d   :  { %465 = vmatpush.bf16.msra.mxu3 %v821_v27 }
  0x1e   :  { %409 = vmatpush.bf16.msra.mxu0 %v796_v28 }
  0x1f   :  { %428 = vmatpush.bf16.msra.mxu1 %v804_v29 }
  0x20   :  { %447 = vmatpush.bf16.msra.mxu2 %v812_v30 }
  0x21   :  { %466 = vmatpush.bf16.msra.mxu3 %v820_v31  ;;  %410 = vmatmul.bf16.vlgmr.msra.gmra.mxu0 %v589_v41 }
  0x22   :  { %478 = vmatpush.bf16.msrb.mxu0 %v835_v40  ;;  %429 = vmatmul.bf16.vlgmr.msra.gmra.mxu1 %v593_v42 }
  0x23   :  { %836 = vmatpush.bf16.msrb.mxu1 %v835_v40  ;;  %448 = vmatmul.bf16.vlgmr.msra.gmra.mxu2 %v597_v43 }
  0x24   :  { %467 = vmatmul.bf16.vlgmr.msra.gmra.mxu3 %v601_v44 }
  0x26   :  { %479 = vmatpush.bf16.msrb.mxu0 %v834_v45 }
  0x27   :  { %837 = vmatpush.bf16.msrb.mxu1 %v834_v45 }
  0x2a   :  { %480 = vmatpush.bf16.msrb.mxu0 %v833_v46 }
  0x2b   :  { %838 = vmatpush.bf16.msrb.mxu1 %v833_v46 }
  0x2e   :  { %481 = vmatpush.bf16.msrb.mxu0 %v832_v47 }
  0x2f   :  { %839 = vmatpush.bf16.msrb.mxu1 %v832_v47 }
  0x31   :  { %415 = vmatmul.bf16.gmra.mxu0 %v609_v57 }
  0x32   :  { %482 = vmatpush.bf16.msrb.mxu0 %v831_v56  ;;  %434 = vmatmul.bf16.gmra.mxu1 %v613_v58 }
  0x33   :  { %840 = vmatpush.bf16.msrb.mxu1 %v831_v56  ;;  %453 = vmatmul.bf16.gmra.mxu2 %v617_v59 }
  0x34   :  { %472 = vmatmul.bf16.gmra.mxu3 %v621_v60 }
  0x36   :  { %483 = vmatpush.bf16.msrb.mxu0 %v830_v61 }
  0x37   :  { %841 = vmatpush.bf16.msrb.mxu1 %v830_v61 }
  0x3a   :  { %484 = vmatpush.bf16.msrb.mxu0 %v829_v62 }
  0x3b   :  { %842 = vmatpush.bf16.msrb.mxu1 %v829_v62 }
  0x3e   :  { %485 = vmatpush.bf16.msrb.mxu0 %v828_v63 }
  0x3f   :  { %843 = vmatpush.bf16.msrb.mxu1 %v828_v63 }
  0x41   :  { %486 = vmatmul.bf16.vlgmr.msrb.gmra.mxu0 %v605_v4 }
  0x42   :  { %491 = vmatmul.bf16.vlgmr.msrb.gmra.mxu1 %v625_v5 }
  0x9e   :  { %v411_v6 = vpop.f32.mrf.mxu0 }
  0x9f   :  { %v430_v7 = vpop.f32.mrf.mxu1  ;;  %v412_v20 = vadd.f32 %v844_v16, %v411_v6 }
  0xa1   :  { %v431_v25 = vadd.f32 %v430_v7, %v412_v20 }
  0xa6   :  { %v449_v8 = vpop.f32.mrf.mxu2  ;;  %v413_v10 = vpop.f32.mrf.mxu0 }
  0xa7   :  { %v468_v9 = vpop.f32.mrf.mxu3  ;;  %v432_v11 = vpop.f32.mrf.mxu1  ;;  %v414_v23 = vadd.f32 %v844_v16, %v413_v10  ;;  %v450_v28 = vadd.f32 %v449_v8, %v431_v25 }
  0xa9   :  { %v433_v32 = vadd.f32 %v432_v11, %v414_v23  ;;  %v469_v36 = vadd.f32 %v468_v9, %v450_v28 }
  0xae   :  { %v451_v12 = vpop.f32.mrf.mxu2  ;;  %v416_v13 = vpop.f32.mrf.mxu0 }
  0xaf   :  { %v435_v14 = vpop.f32.mrf.mxu1  ;;  %v470_v15 = vpop.f32.mrf.mxu3  ;;  %v417_v21 = vadd.f32 %v844_v16, %v416_v13  ;;  %v452_v34 = vadd.f32 %v451_v12, %v433_v32 }
  0xb1   :  { %v436_v26 = vadd.f32 %v435_v14, %v417_v21  ;;  %v471_v41 = vadd.f32 %v470_v15, %v452_v34 }
  0xb6   :  { %v454_v17 = vpop.f32.mrf.mxu2  ;;  %v418_v18 = vpop.f32.mrf.mxu0 }
  0xb7   :  { %v437_v19 = vpop.f32.mrf.mxu1  ;;  %v473_v22 = vpop.f32.mrf.mxu3  ;;  %v419_v24 = vadd.f32 %v844_v16, %v418_v18  ;;  %v455_v29 = vadd.f32 %v454_v17, %v436_v26 }
  0xb9   :  { %v438_v33 = vadd.f32 %v437_v19, %v419_v24  ;;  %v474_v37 = vadd.f32 %v473_v22, %v455_v29 }
  0xbe   :  { %v456_v27 = vpop.f32.mrf.mxu2  ;;  %v487_v30 = vpop.f32.mrf.mxu0 }
  0xbf   :  { %v492_v31 = vpop.f32.mrf.mxu1  ;;  %v457_v35 = vadd.f32 %v456_v27, %v438_v33  ;;  %v475_v38 = vpop.f32.mrf.mxu3  ;;  %v1052_v39 = vadd.f32 %v487_v30, %v469_v36 }
  0xc0   :  { %v1054_v40 = vadd.f32 %v492_v31, %v474_v37 }
  0xc1   :  { %v476_v42 = vadd.f32 %v475_v38, %v457_v35  ;;  %v504_v47 = vmul.f32 %v1052_v39, %v1052_v39 }
  0xc2   :  { %v547_v48 = vmul.f32 %v1054_v40, %v1054_v40 }
  0xc6   :  { %v489_v43 = vpop.f32.mrf.mxu0 }
  0xc7   :  { %v494_v44 = vpop.f32.mrf.mxu1  ;;  %v1056_v45 = vadd.f32 %v489_v43, %v471_v41 }
  0xc8   :  { %v1058_v46 = vadd.f32 %v494_v44, %v476_v42 }
  0xc9   :  { %v497_v49 = vadd.f32 %v1056_v45, %v1052_v39  ;;  %v505_v50 = vmul.f32 %v1056_v45, %v1056_v45 }
  0xca   :  { %v540_v51 = vadd.f32 %v1058_v46, %v1054_v40  ;;  %v548_v52 = vmul.f32 %v1058_v46, %v1058_v46 }
  0xcb   :  { %v498_v53 = vrot.slane %v497_v49, 4  ;;  %v506_v54 = vadd.f32 %v505_v50, %v504_v47 }
  0xcc   :  { %v541_v55 = vrot.slane %v540_v51, 4  ;;  %v549_v56 = vadd.f32 %v548_v52, %v547_v48 }
  0xcd   :  { %v499_v57 = vadd.f32 %v498_v53, %v497_v49  ;;  %v507_v58 = vrot.slane %v506_v54, 4 }
  0xce   :  { %v542_v59 = vadd.f32 %v541_v55, %v540_v51  ;;  %v550_v60 = vrot.slane %v549_v56, 4 }
  0xcf   :  { %v500_v61 = vrot.slane %v499_v57, 2  ;;  %v508_v62 = vadd.f32 %v507_v58, %v506_v54 }
  0xd0   :  { %v543_v63 = vrot.slane %v542_v59, 2  ;;  %v551_v0 = vadd.f32 %v550_v60, %v549_v56 }
  0xd1   :  { %v501_v1 = vadd.f32 %v500_v61, %v499_v57  ;;  %v509_v2 = vrot.slane %v508_v62, 2 }
  0xd2   :  { %v544_v3 = vadd.f32 %v543_v63, %v542_v59  ;;  %v552_v4 = vrot.slane %v551_v0, 2 }
  0xd3   :  { %v502_v5 = vrot.slane %v501_v1, 1  ;;  %v510_v6 = vadd.f32 %v509_v2, %v508_v62 }
  0xd4   :  { %v545_v7 = vrot.slane %v544_v3, 1  ;;  %v553_v8 = vadd.f32 %v552_v4, %v551_v0 }
  0xd5   :  { %v503_v9 = vadd.f32 %v502_v5, %v501_v1  ;;  %v511_v10 = vrot.slane %v510_v6, 1 }
  0xd6   :  { %v546_v11 = vadd.f32 %v545_v7, %v544_v3  ;;  %v554_v12 = vrot.slane %v553_v8, 1 }
  0xd7   :  { %v512_v13 = vadd.f32 %v511_v10, %v510_v6  ;;  %v513_v14 = vmul.f32 0.0625, %v503_v9 }
  0xd8   :  { %v555_v15 = vadd.f32 %v554_v12, %v553_v8  ;;  %v556_v16 = vmul.f32 0.0625, %v546_v11 }
  0xd9   :  { %v514_v17 = vmul.f32 0.0625, %v512_v13  ;;  %v515_v18 = vmul.f32 %v513_v14, %v513_v14  ;;  %v529_v38 = vsub.f32 %v1052_v39, %v513_v14  ;;  %v530_v41 = vsub.f32 %v1056_v45, %v513_v14 }
  0xda   :  { %v557_v19 = vmul.f32 0.0625, %v555_v15  ;;  %v558_v20 = vmul.f32 %v556_v16, %v556_v16  ;;  %v572_v44 = vsub.f32 %v1054_v40, %v556_v16  ;;  %v573_v47 = vsub.f32 %v1058_v46, %v556_v16 }
  0xdb   :  { %v516_v21 = vsub.f32 %v514_v17, %v515_v18 }
  0xdc   :  { %v559_v22 = vsub.f32 %v557_v19, %v558_v20 }
  0xdd   :  { %v517_v23 = vmax.f32 %v516_v21, 0.0 }
  0xde   :  { %v560_v24 = vmax.f32 %v559_v22, 0.0 }
  0xdf   :  { %v518_v25 = vadd.f32 1e-05, %v517_v23 }
  0xe0   :  { %v561_v26 = vadd.f32 1e-05, %v560_v24 }
  0xe1   :  { %845 = vrsqrt.f32 %v518_v25  ;;  %vm525_vm2 = vweird.f32 %v518_v25 }
  0xe2   :  { %847 = vrsqrt.f32 %v561_v26  ;;  %vm568_vm4 = vweird.f32 %v561_v26 }
  0xe7   :  { %v846_v27 = vpop.eup %845 }
  0xe8   :  { %v848_v28 = vpop.eup %847  ;;  %v520_v29 = vmul.f32 %v846_v27, %v518_v25  ;;  %vm526_vm0 = vweird.f32 %v846_v27 }
  0xe9   :  { %v563_v30 = vmul.f32 %v848_v28, %v561_v26  ;;  %vm569_vm1 = vweird.f32 %v848_v28  ;;  %vm527_vm3 = vmor %vm525_vm2, %vm526_vm0 }
  0xea   :  { %v521_v31 = vmul.f32 %v846_v27, %v520_v29  ;;  %vm570_vm5 = vmor %vm568_vm4, %vm569_vm1 }
  0xeb   :  { %v564_v32 = vmul.f32 %v848_v28, %v563_v30 }
  0xec   :  { %v522_v33 = vmul.f32 0.5, %v521_v31 }
  0xed   :  { %v565_v34 = vmul.f32 0.5, %v564_v32 }
  0xee   :  { %v523_v35 = vsub.f32 1.5, %v522_v33 }
  0xef   :  { %v566_v36 = vsub.f32 1.5, %v565_v34 }
  0xf0   :  { %v524_v37 = vmul.f32 %v846_v27, %v523_v35 }
  0xf1   :  { %v567_v42 = vmul.f32 %v848_v28, %v566_v36 }
  0xf2   :  { %v528_v43 = vsel %vm527_vm3, %v846_v27, %v524_v37 }
  0xf3   :  { %v531_v48 = vmul.f32 %v529_v38, %v528_v43  ;;  %v532_v49 = vmul.f32 %v530_v41, %v528_v43  ;;  %v571_v50 = vsel %vm570_vm5, %v848_v28, %v567_v42 }
  0xf4   :  { %v574_v51 = vmul.f32 %v572_v44, %v571_v50  ;;  %v575_v52 = vmul.f32 %v573_v47, %v571_v50 }
  0xf5   :  { %v533_v53 = vmax.f32 %v531_v48, 0.0  ;;  %v534_v54 = vmax.f32 %v532_v49, 0.0 }
  0xf6   :  { %v576_v55 = vmax.f32 %v574_v51, 0.0  ;;  %v577_v39 = vmax.f32 %v575_v52, 0.0 }
  0xf7   :  { %v535_v56 = vpack.c.bf16 %v533_v53, %v533_v53  ;;  %v536_v45 = vpack.c.bf16 %v534_v54, %v534_v54 }
  0xf8   :  { %v578_v57 = vpack.c.bf16 %v576_v55, %v576_v55  ;;  %v579_v58 = vpack.c.bf16 %v577_v39, %v577_v39 }
  0xf9   :  { %538 = vst.msk [vmem:[%s1091_s3] sm:$0xf] %vm537_vm6, %v535_v56 }
  0xfa   :  { %539 = vst.msk [vmem:[%s1091_s3 + $0x4] sm:$0xf] %vm537_vm6, %v536_v45 }
  0xfb   :  { %580 = vst.msk [vmem:[%s1091_s3 + $0x8] sm:$0xf] %vm537_vm6, %v578_v57 }
  0xfc   :  { %581 = vst.msk [vmem:[%s1091_s3 + $0xc] sm:$0xf] %vm537_vm6, %v579_v58 }

// kernel: generator_forward.16
= control target key start
LH: loop header
LB: loop body
LE: loop exit
PB: predicated region body
PF: predicated region fallthrough
CT: control target
= control target key end

     0   :  { %vm544_vm6 = vcmask 519168   ;;  %s1119_s1 = inlined_call_operand.vmem [shape: bf16[640,128], index: 1, kind: input, shape index: {}]   ;;  %s1120_s2 = inlined_call_operand.vmem [shape: f32[1,128], index: 2, kind: input, shape index: {}]   ;;  %s1121_s0 = inlined_call_operand.vmem [shape: bf16[32,640], index: 0, kind: input, shape index: {}]   ;;  %s1122_s3 = inlined_call_operand.vmem [shape: bf16[32,64], index: 3, kind: input, shape index: {}]   ;;  %s1123_s4 = inlined_call_operand.vmem [shape: bf16[32,64], index: 4, kind: output, shape index: {}]  }
   0x1   :  { %v814_v0 = vld [vmem:[%s1119_s1 + $0x38] sm:$0xff]  ;;  %v813_v4 = vld [vmem:[%s1119_s1 + $0x30] sm:$0xff]  ;;  %v812_v8 = vld [vmem:[%s1119_s1 + $0x28] sm:$0xff] }
   0x2   :  { %v822_v1 = vld [vmem:[%s1119_s1 + $0x78] sm:$0xff]  ;;  %405 = vmatpush.bf16.msra.mxu0 %v814_v0  ;;  %v821_v5 = vld [vmem:[%s1119_s1 + $0x70] sm:$0xff]  ;;  %v820_v9 = vld [vmem:[%s1119_s1 + $0x68] sm:$0xff] }
   0x3   :  { %v830_v2 = vld [vmem:[%s1119_s1 + $0xb8] sm:$0xff]  ;;  %424 = vmatpush.bf16.msra.mxu1 %v822_v1  ;;  %v829_v6 = vld [vmem:[%s1119_s1 + $0xb0] sm:$0xff]  ;;  %v828_v10 = vld [vmem:[%s1119_s1 + $0xa8] sm:$0xff] }
   0x4   :  { %v838_v3 = vld [vmem:[%s1119_s1 + $0xf8] sm:$0xff]  ;;  %443 = vmatpush.bf16.msra.mxu2 %v830_v2  ;;  %v837_v7 = vld [vmem:[%s1119_s1 + $0xf0] sm:$0xff]  ;;  %v836_v11 = vld [vmem:[%s1119_s1 + $0xe8] sm:$0xff] }
   0x5   :  { %462 = vmatpush.bf16.msra.mxu3 %v838_v3  ;;  %v811_v12 = vld [vmem:[%s1119_s1 + $0x20] sm:$0xff]  ;;  %v810_v16 = vld [vmem:[%s1119_s1 + $0x18] sm:$0xff]  ;;  %v809_v20 = vld [vmem:[%s1119_s1 + $0x10] sm:$0xff] }
   0x6   :  { %406 = vmatpush.bf16.msra.mxu0 %v813_v4  ;;  %v819_v13 = vld [vmem:[%s1119_s1 + $0x60] sm:$0xff]  ;;  %v818_v17 = vld [vmem:[%s1119_s1 + $0x58] sm:$0xff]  ;;  %v817_v21 = vld [vmem:[%s1119_s1 + $0x50] sm:$0xff] }
   0x7   :  { %425 = vmatpush.bf16.msra.mxu1 %v821_v5  ;;  %v827_v14 = vld [vmem:[%s1119_s1 + $0xa0] sm:$0xff]  ;;  %v826_v18 = vld [vmem:[%s1119_s1 + $0x98] sm:$0xff]  ;;  %v825_v22 = vld [vmem:[%s1119_s1 + $0x90] sm:$0xff] }
   0x8   :  { %444 = vmatpush.bf16.msra.mxu2 %v829_v6  ;;  %v835_v15 = vld [vmem:[%s1119_s1 + $0xe0] sm:$0xff]  ;;  %v834_v19 = vld [vmem:[%s1119_s1 + $0xd8] sm:$0xff]  ;;  %v833_v23 = vld [vmem:[%s1119_s1 + $0xd0] sm:$0xff] }
   0x9   :  { %463 = vmatpush.bf16.msra.mxu3 %v837_v7  ;;  %v808_v24 = vld [vmem:[%s1119_s1 + $0x8] sm:$0xff]  ;;  %v807_v28 = vld [vmem:[%s1119_s1] sm:$0xff]  ;;  %v799_v33 = vld [vmem:[%s1121_s0 + $0x10] sm:$0xf0] }
   0xa   :  { %407 = vmatpush.bf16.msra.mxu0 %v812_v8  ;;  %v816_v25 = vld [vmem:[%s1119_s1 + $0x48] sm:$0xff]  ;;  %v815_v29 = vld [vmem:[%s1119_s1 + $0x40] sm:$0xff]  ;;  %v601_v35 = vld [vmem:[%s1121_s0 + $0x14] sm:$0xf0] }
   0xb   :  { %426 = vmatpush.bf16.msra.mxu1 %v820_v9  ;;  %v824_v26 = vld [vmem:[%s1119_s1 + $0x88] sm:$0xff]  ;;  %v823_v30 = vld [vmem:[%s1119_s1 + $0x80] sm:$0xff]  ;;  %v800_v37 = vld [vmem:[%s1121_s0 + $0x18] sm:$0xf0] }
   0xc   :  { %445 = vmatpush.bf16.msra.mxu2 %v828_v10  ;;  %v832_v27 = vld [vmem:[%s1119_s1 + $0xc8] sm:$0xff]  ;;  %v831_v31 = vld [vmem:[%s1119_s1 + $0xc0] sm:$0xff]  ;;  %v846_v40 = vld [vmem:[%s1119_s1 + $0x138] sm:$0xff] }
   0xd   :  { %464 = vmatpush.bf16.msra.mxu3 %v836_v11  ;;  %v599_v32 = vld [vmem:[%s1121_s0] sm:$0xf]  ;;  %v797_v34 = vld [vmem:[%s1121_s0 + $0x4] sm:$0xf]  ;;  %v607_v36 = vld [vmem:[%s1121_s0 + $0x8] sm:$0xf] }
   0xe   :  { %408 = vmatpush.bf16.msra.mxu0 %v811_v12  ;;  %v798_v38 = vld [vmem:[%s1121_s0 + $0xc] sm:$0xf]  ;;  %v609_v39 = vld [vmem:[%s1121_s0 + $0x1c] sm:$0xf0]  ;;  %v600_v41 = vor.u32 %v799_v33, %v599_v32  ;;  %v604_v42 = vor.u32 %v797_v34, %v601_v35  ;;  %v608_v43 = vor.u32 %v800_v37, %v607_v36  ;;  %v845_v45 = vld [vmem:[%s1119_s1 + $0x130] sm:$0xff] }
   0xf   :  { %427 = vmatpush.bf16.msra.mxu1 %v819_v13  ;;  %v612_v44 = vor.u32 %v798_v38, %v609_v39  ;;  %v844_v46 = vld [vmem:[%s1119_s1 + $0x128] sm:$0xff]  ;;  %v843_v47 = vld [vmem:[%s1119_s1 + $0x120] sm:$0xff]  ;;  %v804_v49 = vld [vmem:[%s1121_s0 + $0x38] sm:$0xf0] }
  0x10   :  { %446 = vmatpush.bf16.msra.mxu2 %v827_v14  ;;  %v619_v48 = vld [vmem:[%s1121_s0 + $0x28] sm:$0xf]  ;;  %v802_v50 = vld [vmem:[%s1121_s0 + $0x2c] sm:$0xf]  ;;  %v621_v51 = vld [vmem:[%s1121_s0 + $0x3c] sm:$0xf0] }
  0x11   :  { %465 = vmatpush.bf16.msra.mxu3 %v835_v15  ;;  %v627_v52 = vld [vmem:[%s1121_s0 + $0x30] sm:$0xf]  ;;  %v805_v53 = vld [vmem:[%s1121_s0 + $0x40] sm:$0xf0]  ;;  %v803_v54 = vld [vmem:[%s1121_s0 + $0x34] sm:$0xf]  ;;  %v620_v57 = vor.u32 %v804_v49, %v619_v48  ;;  %v624_v58 = vor.u32 %v802_v50, %v621_v51 }
  0x12   :  { %409 = vmatpush.bf16.msra.mxu0 %v810_v16  ;;  %v629_v55 = vld [vmem:[%s1121_s0 + $0x44] sm:$0xf0]  ;;  %v842_v56 = vld [vmem:[%s1119_s1 + $0x118] sm:$0xff]  ;;  %v628_v59 = vor.u32 %v805_v53, %v627_v52  ;;  %v841_v61 = vld [vmem:[%s1119_s1 + $0x110] sm:$0xff] }
  0x13   :  { %428 = vmatpush.bf16.msra.mxu1 %v818_v17  ;;  %v632_v60 = vor.u32 %v803_v54, %v629_v55  ;;  %v840_v62 = vld [vmem:[%s1119_s1 + $0x108] sm:$0xff]  ;;  %v839_v63 = vld [vmem:[%s1119_s1 + $0x100] sm:$0xff]  ;;  %v615_v0 = vld [vmem:[%s1121_s0 + $0x10] sm:$0xf] }
  0x14   :  { %447 = vmatpush.bf16.msra.mxu2 %v826_v18  ;;  %v801_v1 = vld [vmem:[%s1121_s0 + $0x20] sm:$0xf0]  ;;  %v635_v2 = vld [vmem:[%s1121_s0 + $0x38] sm:$0xf]  ;;  %v806_v3 = vld [vmem:[%s1121_s0 + $0x48] sm:$0xf0] }
  0x15   :  { %466 = vmatpush.bf16.msra.mxu3 %v834_v19  ;;  %v616_v4 = vor.u32 %v801_v1, %v615_v0  ;;  %v636_v5 = vor.u32 %v806_v3, %v635_v2  ;;  %v864_v16 = vld [vmem:[%s1120_s2] ss:$0 sm:$0xff] }
  0x16   :  { %410 = vmatpush.bf16.msra.mxu0 %v809_v20 }
  0x17   :  { %429 = vmatpush.bf16.msra.mxu1 %v817_v21 }
  0x18   :  { %448 = vmatpush.bf16.msra.mxu2 %v825_v22 }
  0x19   :  { %467 = vmatpush.bf16.msra.mxu3 %v833_v23 }
  0x1a   :  { %411 = vmatpush.bf16.msra.mxu0 %v808_v24 }
  0x1b   :  { %430 = vmatpush.bf16.msra.mxu1 %v816_v25 }
  0x1c   :  { %449 = vmatpush.bf16.msra.mxu2 %v824_v26 }
  0x1d   :  { %468 = vmatpush.bf16.msra.mxu3 %v832_v27 }
  0x1e   :  { %412 = vmatpush.bf16.msra.mxu0 %v807_v28 }
  0x1f   :  { %431 = vmatpush.bf16.msra.mxu1 %v815_v29 }
  0x20   :  { %450 = vmatpush.bf16.msra.mxu2 %v823_v30 }
  0x21   :  { %469 = vmatpush.bf16.msra.mxu3 %v831_v31  ;;  %413 = vmatmul.bf16.vlgmr.msra.gmra.mxu0 %v600_v41 }
  0x22   :  { %481 = vmatpush.bf16.msrb.mxu0 %v846_v40  ;;  %432 = vmatmul.bf16.vlgmr.msra.gmra.mxu1 %v604_v42 }
  0x23   :  { %856 = vmatpush.bf16.msrb.mxu1 %v846_v40  ;;  %451 = vmatmul.bf16.vlgmr.msra.gmra.mxu2 %v608_v43 }
  0x24   :  { %470 = vmatmul.bf16.vlgmr.msra.gmra.mxu3 %v612_v44 }
  0x26   :  { %482 = vmatpush.bf16.msrb.mxu0 %v845_v45 }
  0x27   :  { %857 = vmatpush.bf16.msrb.mxu1 %v845_v45 }
  0x2a   :  { %483 = vmatpush.bf16.msrb.mxu0 %v844_v46 }
  0x2b   :  { %858 = vmatpush.bf16.msrb.mxu1 %v844_v46 }
  0x2e   :  { %484 = vmatpush.bf16.msrb.mxu0 %v843_v47 }
  0x2f   :  { %859 = vmatpush.bf16.msrb.mxu1 %v843_v47 }
  0x31   :  { %418 = vmatmul.bf16.gmra.mxu0 %v620_v57 }
  0x32   :  { %485 = vmatpush.bf16.msrb.mxu0 %v842_v56  ;;  %437 = vmatmul.bf16.gmra.mxu1 %v624_v58 }
  0x33   :  { %860 = vmatpush.bf16.msrb.mxu1 %v842_v56  ;;  %456 = vmatmul.bf16.gmra.mxu2 %v628_v59 }
  0x34   :  { %475 = vmatmul.bf16.gmra.mxu3 %v632_v60 }
  0x36   :  { %486 = vmatpush.bf16.msrb.mxu0 %v841_v61 }
  0x37   :  { %861 = vmatpush.bf16.msrb.mxu1 %v841_v61 }
  0x3a   :  { %487 = vmatpush.bf16.msrb.mxu0 %v840_v62 }
  0x3b   :  { %862 = vmatpush.bf16.msrb.mxu1 %v840_v62 }
  0x3e   :  { %488 = vmatpush.bf16.msrb.mxu0 %v839_v63 }
  0x3f   :  { %863 = vmatpush.bf16.msrb.mxu1 %v839_v63 }
  0x41   :  { %489 = vmatmul.bf16.vlgmr.msrb.gmra.mxu0 %v616_v4 }
  0x42   :  { %494 = vmatmul.bf16.vlgmr.msrb.gmra.mxu1 %v636_v5 }
  0x9e   :  { %v414_v6 = vpop.f32.mrf.mxu0 }
  0x9f   :  { %v433_v7 = vpop.f32.mrf.mxu1  ;;  %v415_v20 = vadd.f32 %v864_v16, %v414_v6 }
  0xa1   :  { %v434_v25 = vadd.f32 %v433_v7, %v415_v20 }
  0xa6   :  { %v452_v8 = vpop.f32.mrf.mxu2  ;;  %v416_v10 = vpop.f32.mrf.mxu0 }
  0xa7   :  { %v471_v9 = vpop.f32.mrf.mxu3  ;;  %v435_v11 = vpop.f32.mrf.mxu1  ;;  %v417_v23 = vadd.f32 %v864_v16, %v416_v10  ;;  %v453_v28 = vadd.f32 %v452_v8, %v434_v25 }
  0xa9   :  { %v436_v32 = vadd.f32 %v435_v11, %v417_v23  ;;  %v472_v36 = vadd.f32 %v471_v9, %v453_v28 }
  0xae   :  { %v454_v12 = vpop.f32.mrf.mxu2  ;;  %v419_v13 = vpop.f32.mrf.mxu0 }
  0xaf   :  { %v438_v14 = vpop.f32.mrf.mxu1  ;;  %v473_v15 = vpop.f32.mrf.mxu3  ;;  %v420_v21 = vadd.f32 %v864_v16, %v419_v13  ;;  %v455_v34 = vadd.f32 %v454_v12, %v436_v32 }
  0xb1   :  { %v439_v26 = vadd.f32 %v438_v14, %v420_v21  ;;  %v474_v41 = vadd.f32 %v473_v15, %v455_v34  ;;  %v848_v34 = vld [vmem:[%s1122_s3] sm:$0xff]  }
  0xb6   :  { %v457_v17 = vpop.f32.mrf.mxu2  ;;  %v421_v18 = vpop.f32.mrf.mxu0 }
  0xb7   :  { %v440_v19 = vpop.f32.mrf.mxu1  ;;  %v476_v22 = vpop.f32.mrf.mxu3  ;;  %v422_v24 = vadd.f32 %v864_v16, %v421_v18  ;;  %v458_v29 = vadd.f32 %v457_v17, %v439_v26 }
  0xb9   :  { %v441_v33 = vadd.f32 %v440_v19, %v422_v24  ;;  %v477_v37 = vadd.f32 %v476_v22, %v458_v29 }
  0xbe   :  { %v459_v27 = vpop.f32.mrf.mxu2  ;;  %v490_v30 = vpop.f32.mrf.mxu0 }
  0xbf   :  { %v495_v31 = vpop.f32.mrf.mxu1  ;;  %v460_v35 = vadd.f32 %v459_v27, %v441_v33  ;;  %v478_v38 = vpop.f32.mrf.mxu3  ;;  %v1077_v39 = vadd.f32 %v490_v30, %v472_v36  ;;  %v855_v36 = vld [vmem:[%s1122_s3 + $0x8] sm:$0xff]  }
  0xc0   :  { %v1079_v40 = vadd.f32 %v495_v31, %v477_v37 }
  0xc1   :  { %v479_v42 = vadd.f32 %v478_v38, %v460_v35  ;;  %v507_v47 = vmul.f32 %v1077_v39, %v1077_v39  ;;  %v849_v38 = vunpack.c.l.bf16 %v848_v34 }
  0xc2   :  { %v554_v48 = vmul.f32 %v1079_v40, %v1079_v40 }
  0xc6   :  { %v492_v43 = vpop.f32.mrf.mxu0 }
  0xc7   :  { %v497_v44 = vpop.f32.mrf.mxu1  ;;  %v1081_v45 = vadd.f32 %v492_v43, %v474_v41  ;;  %v850_v43 = vunpack.c.h.bf16 %v848_v34 }
  0xc8   :  { %v1083_v46 = vadd.f32 %v497_v44, %v479_v42  ;;  %v853_v44 = vunpack.c.l.bf16 %v855_v36 }
  0xc9   :  { %v500_v49 = vadd.f32 %v1081_v45, %v1077_v39  ;;  %v508_v50 = vmul.f32 %v1081_v45, %v1081_v45 }
  0xca   :  { %v547_v51 = vadd.f32 %v1083_v46, %v1079_v40  ;;  %v555_v52 = vmul.f32 %v1083_v46, %v1083_v46 }
  0xcb   :  { %v501_v53 = vrot.slane %v500_v49, 4  ;;  %v509_v54 = vadd.f32 %v508_v50, %v507_v47 }
  0xcc   :  { %v548_v55 = vrot.slane %v547_v51, 4  ;;  %v556_v56 = vadd.f32 %v555_v52, %v554_v48 }
  0xcd   :  { %v502_v57 = vadd.f32 %v501_v53, %v500_v49  ;;  %v510_v58 = vrot.slane %v509_v54, 4  ;;  %v854_v53 = vunpack.c.h.bf16 %v855_v36 }
  0xce   :  { %v549_v59 = vadd.f32 %v548_v55, %v547_v51  ;;  %v557_v60 = vrot.slane %v556_v56, 4 }
  0xcf   :  { %v503_v61 = vrot.slane %v502_v57, 2  ;;  %v511_v62 = vadd.f32 %v510_v58, %v509_v54 }
  0xd0   :  { %v550_v63 = vrot.slane %v549_v59, 2  ;;  %v558_v0 = vadd.f32 %v557_v60, %v556_v56 }
  0xd1   :  { %v504_v1 = vadd.f32 %v503_v61, %v502_v57  ;;  %v512_v2 = vrot.slane %v511_v62, 2 }
  0xd2   :  { %v551_v3 = vadd.f32 %v550_v63, %v549_v59  ;;  %v559_v4 = vrot.slane %v558_v0, 2 }
  0xd3   :  { %v505_v5 = vrot.slane %v504_v1, 1  ;;  %v513_v6 = vadd.f32 %v512_v2, %v511_v62 }
  0xd4   :  { %v552_v7 = vrot.slane %v551_v3, 1  ;;  %v560_v8 = vadd.f32 %v559_v4, %v558_v0 }
  0xd5   :  { %v506_v9 = vadd.f32 %v505_v5, %v504_v1  ;;  %v514_v10 = vrot.slane %v513_v6, 1 }
  0xd6   :  { %v553_v11 = vadd.f32 %v552_v7, %v551_v3  ;;  %v561_v12 = vrot.slane %v560_v8, 1 }
  0xd7   :  { %v515_v13 = vadd.f32 %v514_v10, %v513_v6  ;;  %v516_v14 = vmul.f32 0.0625, %v506_v9 }
  0xd8   :  { %v562_v15 = vadd.f32 %v561_v12, %v560_v8  ;;  %v563_v16 = vmul.f32 0.0625, %v553_v11 }
  0xd9   :  { %v517_v17 = vmul.f32 0.0625, %v515_v13  ;;  %v518_v18 = vmul.f32 %v516_v14, %v516_v14  ;;  %v532_v47 = vsub.f32 %v1077_v39, %v516_v14  ;;  %v533_v48 = vsub.f32 %v1081_v45, %v516_v14 }
  0xda   :  { %v564_v19 = vmul.f32 0.0625, %v562_v15  ;;  %v565_v20 = vmul.f32 %v563_v16, %v563_v16  ;;  %v579_v51 = vsub.f32 %v1079_v40, %v563_v16  ;;  %v580_v52 = vsub.f32 %v1083_v46, %v563_v16 }
  0xdb   :  { %v519_v21 = vsub.f32 %v517_v17, %v518_v18 }
  0xdc   :  { %v566_v22 = vsub.f32 %v564_v19, %v565_v20 }
  0xdd   :  { %v520_v23 = vmax.f32 %v519_v21, 0.0 }
  0xde   :  { %v567_v24 = vmax.f32 %v566_v22, 0.0 }
  0xdf   :  { %v521_v25 = vadd.f32 1e-05, %v520_v23 }
  0xe0   :  { %v568_v26 = vadd.f32 1e-05, %v567_v24 }
  0xe1   :  { %865 = vrsqrt.f32 %v521_v25  ;;  %vm528_vm2 = vweird.f32 %v521_v25 }
  0xe2   :  { %867 = vrsqrt.f32 %v568_v26  ;;  %vm575_vm4 = vweird.f32 %v568_v26 }
  0xe7   :  { %v866_v27 = vpop.eup %865 }
  0xe8   :  { %v868_v28 = vpop.eup %867  ;;  %v523_v29 = vmul.f32 %v866_v27, %v521_v25  ;;  %vm529_vm0 = vweird.f32 %v866_v27 }
  0xe9   :  { %v570_v30 = vmul.f32 %v868_v28, %v568_v26  ;;  %vm576_vm1 = vweird.f32 %v868_v28  ;;  %vm530_vm3 = vmor %vm528_vm2, %vm529_vm0 }
  0xea   :  { %v524_v31 = vmul.f32 %v866_v27, %v523_v29  ;;  %vm577_vm5 = vmor %vm575_vm4, %vm576_vm1 }
  0xeb   :  { %v571_v32 = vmul.f32 %v868_v28, %v570_v30 }
  0xec   :  { %v525_v33 = vmul.f32 0.5, %v524_v31 }
  0xed   :  { %v572_v35 = vmul.f32 0.5, %v571_v32 }
  0xee   :  { %v526_v37 = vsub.f32 1.5, %v525_v33 }
  0xef   :  { %v573_v41 = vsub.f32 1.5, %v572_v35 }
  0xf0   :  { %v527_v42 = vmul.f32 %v866_v27, %v526_v37 }
  0xf1   :  { %v574_v49 = vmul.f32 %v868_v28, %v573_v41 }
  0xf2   :  { %v531_v50 = vsel %vm530_vm3, %v866_v27, %v527_v42 }
  0xf3   :  { %v534_v54 = vmul.f32 %v532_v47, %v531_v50  ;;  %v535_v55 = vmul.f32 %v533_v48, %v531_v50  ;;  %v578_v56 = vsel %vm577_vm5, %v868_v28, %v574_v49 }
  0xf4   :  { %v581_v57 = vmul.f32 %v579_v51, %v578_v56  ;;  %v582_v58 = vmul.f32 %v580_v52, %v578_v56 }
  0xf5   :  { %v540_v59 = vadd.f32 %v849_v38, %v534_v54  ;;  %v541_v60 = vadd.f32 %v850_v43, %v535_v55 }
  0xf6   :  { %v587_v39 = vadd.f32 %v853_v44, %v581_v57  ;;  %v588_v61 = vadd.f32 %v854_v53, %v582_v58 }
  0xf7   :  { %v542_v45 = vpack.c.bf16 %v540_v59, %v540_v59  ;;  %v543_v62 = vpack.c.bf16 %v541_v60, %v541_v60 }
  0xf8   :  { %v589_v63 = vpack.c.bf16 %v587_v39, %v587_v39  ;;  %v590_v0 = vpack.c.bf16 %v588_v61, %v588_v61 }
  0xf9   :  { %545 = vst.msk [vmem:[%s1123_s4] sm:$0xf] %vm544_vm6, %v542_v45 }
  0xfa   :  { %546 = vst.msk [vmem:[%s1123_s4 + $0x4] sm:$0xf] %vm544_vm6, %v543_v62 }
  0xfb   :  { %591 = vst.msk [vmem:[%s1123_s4 + $0x8] sm:$0xf] %vm544_vm6, %v589_v63 }
  0xfc   :  { %592 = vst.msk [vmem:[%s1123_s4 + $0xc] sm:$0xf] %vm544_vm6, %v590_v0 }

// kernel: generator_forward.21
= control target key start
LH: loop header
LB: loop body
LE: loop exit
PB: predicated region body
PF: predicated region fallthrough
CT: control target
= control target key end

     0   :  { %s473_s7 = smov 96   ;;  %s599_s1 = inlined_call_operand.vmem [shape: bf16[256,128], index: 1, kind: input, shape index: {}]   ;;  %s600_s2 = inlined_call_operand.vmem [shape: f32[1,128], index: 2, kind: input, shape index: {}]   ;;  %s601_s0 = inlined_call_operand.vmem [shape: bf16[32,256], index: 0, kind: input, shape index: {}]   ;;  %s602_s3 = inlined_call_operand.vmem [shape: bf16[32,128], index: 3, kind: output, shape index: {}]  }
   0x1   :  { %v427_v0 = vld [vmem:[%s599_s1 + $0x38] sm:$0xff]  ;;  %v426_v2 = vld [vmem:[%s599_s1 + $0x30] sm:$0xff]  ;;  %v425_v4 = vld [vmem:[%s599_s1 + $0x28] sm:$0xff] }
   0x2   :  { %v435_v1 = vld [vmem:[%s599_s1 + $0x78] sm:$0xff]  ;;  %170 = vmatpush.bf16.msra.mxu0 %v427_v0  ;;  %447 = vmatpush.bf16.msra.mxu2 %v427_v0  ;;  %v434_v3 = vld [vmem:[%s599_s1 + $0x70] sm:$0xff]  ;;  %v433_v5 = vld [vmem:[%s599_s1 + $0x68] sm:$0xff] }
   0x3   :  { %189 = vmatpush.bf16.msra.mxu1 %v435_v1  ;;  %455 = vmatpush.bf16.msra.mxu3 %v435_v1  ;;  %v424_v6 = vld [vmem:[%s599_s1 + $0x20] sm:$0xff]  ;;  %v423_v8 = vld [vmem:[%s599_s1 + $0x18] sm:$0xff]  ;;  %v422_v10 = vld [vmem:[%s599_s1 + $0x10] sm:$0xff] }
   0x4   :  { %v432_v7 = vld [vmem:[%s599_s1 + $0x60] sm:$0xff]  ;;  %v431_v9 = vld [vmem:[%s599_s1 + $0x58] sm:$0xff]  ;;  %v430_v11 = vld [vmem:[%s599_s1 + $0x50] sm:$0xff] }
   0x5   :  { %v421_v12 = vld [vmem:[%s599_s1 + $0x8] sm:$0xff]  ;;  %v420_v14 = vld [vmem:[%s599_s1] sm:$0xff]  ;;  %v346_v18 = vld [vmem:[%s601_s0 + $0x10] sm:$0xf] }
   0x6   :  { %171 = vmatpush.bf16.msra.mxu0 %v426_v2  ;;  %448 = vmatpush.bf16.msra.mxu2 %v426_v2  ;;  %v429_v13 = vld [vmem:[%s599_s1 + $0x48] sm:$0xff]  ;;  %v428_v15 = vld [vmem:[%s599_s1 + $0x40] sm:$0xff]  ;;  %v419_v19 = vld [vmem:[%s601_s0 + $0x14] sm:$0xf0] }
   0x7   :  { %190 = vmatpush.bf16.msra.mxu1 %v434_v3  ;;  %456 = vmatpush.bf16.msra.mxu3 %v434_v3  ;;  %v338_v16 = vld [vmem:[%s601_s0] sm:$0xf]  ;;  %v417_v17 = vld [vmem:[%s601_s0 + $0x4] sm:$0xf0]  ;;  %v416_v20 = vld [vmem:[%s601_s0 + $0x4] sm:$0xf]  ;;  %v347_v25 = vor.u32 %v419_v19, %v346_v18 }
   0x8   :  { %v340_v21 = vld [vmem:[%s601_s0 + $0x8] sm:$0xf0]  ;;  %v418_v22 = vld [vmem:[%s601_s0 + $0x14] sm:$0xf]  ;;  %v348_v23 = vld [vmem:[%s601_s0 + $0x18] sm:$0xf0]  ;;  %v339_v24 = vor.u32 %v417_v17, %v338_v16 }
   0x9   :  { %v343_v26 = vor.u32 %v416_v20, %v340_v21  ;;  %v351_v27 = vor.u32 %v418_v22, %v348_v23  ;;  %v466_v29 = vld [vmem:[%s600_s2] ss:$0 sm:$0xff]  ;;  %s471_s0 = smov 64   ;;  %s472_s2 = smov 32  }
   0xa   :  { %172 = vmatpush.bf16.msra.mxu0 %v425_v4  ;;  %449 = vmatpush.bf16.msra.mxu2 %v425_v4 }
   0xb   :  { %191 = vmatpush.bf16.msra.mxu1 %v433_v5  ;;  %457 = vmatpush.bf16.msra.mxu3 %v433_v5 }
   0xe   :  { %173 = vmatpush.bf16.msra.mxu0 %v424_v6  ;;  %450 = vmatpush.bf16.msra.mxu2 %v424_v6 }
   0xf   :  { %192 = vmatpush.bf16.msra.mxu1 %v432_v7  ;;  %458 = vmatpush.bf16.msra.mxu3 %v432_v7 }
  0x12   :  { %174 = vmatpush.bf16.msra.mxu0 %v423_v8  ;;  %451 = vmatpush.bf16.msra.mxu2 %v423_v8 }
  0x13   :  { %193 = vmatpush.bf16.msra.mxu1 %v431_v9  ;;  %459 = vmatpush.bf16.msra.mxu3 %v431_v9 }
  0x16   :  { %175 = vmatpush.bf16.msra.mxu0 %v422_v10  ;;  %452 = vmatpush.bf16.msra.mxu2 %v422_v10 }
  0x17   :  { %194 = vmatpush.bf16.msra.mxu1 %v430_v11  ;;  %460 = vmatpush.bf16.msra.mxu3 %v430_v11 }
  0x1a   :  { %176 = vmatpush.bf16.msra.mxu0 %v421_v12  ;;  %453 = vmatpush.bf16.msra.mxu2 %v421_v12 }
  0x1b   :  { %195 = vmatpush.bf16.msra.mxu1 %v429_v13  ;;  %461 = vmatpush.bf16.msra.mxu3 %v429_v13 }
  0x1e   :  { %177 = vmatpush.bf16.msra.mxu0 %v420_v14  ;;  %454 = vmatpush.bf16.msra.mxu2 %v420_v14 }
  0x1f   :  { %196 = vmatpush.bf16.msra.mxu1 %v428_v15  ;;  %462 = vmatpush.bf16.msra.mxu3 %v428_v15 }
  0x21   :  { %178 = vmatmul.bf16.vlgmr.msra.gmra.mxu0 %v339_v24  ;;  %183 = vmatmul.bf16.vlgmr.msra.gmra.mxu2 %v347_v25 }
  0x22   :  { %197 = vmatmul.bf16.vlgmr.msra.gmra.mxu1 %v343_v26  ;;  %202 = vmatmul.bf16.vlgmr.msra.gmra.mxu3 %v351_v27 }
  0x9e   :  { %v179_v28 = vpop.f32.mrf.mxu0 }
  0x9f   :  { %v198_v30 = vpop.f32.mrf.mxu1  ;;  %v180_v31 = vadd.f32 %v466_v29, %v179_v28 }
  0xa1   :  { %v569_v35 = vadd.f32 %v198_v30, %v180_v31 }
  0xa3   :  { %v215_v40 = vmul.f32 %v569_v35, %v569_v35 }
  0xa4   :  { %v184_v32 = vpop.f32.mrf.mxu2 }
  0xa5   :  { %v203_v33 = vpop.f32.mrf.mxu3  ;;  %v185_v36 = vadd.f32 %v466_v29, %v184_v32 }
  0xa6   :  { %v181_v34 = vpop.f32.mrf.mxu0 }
  0xa7   :  { %v182_v37 = vadd.f32 %v466_v29, %v181_v34  ;;  %v200_v38 = vpop.f32.mrf.mxu1  ;;  %v579_v43 = vadd.f32 %v203_v33, %v185_v36 }
  0xa9   :  { %v571_v39 = vadd.f32 %v200_v38, %v182_v37  ;;  %v277_v51 = vmul.f32 %v579_v43, %v579_v43 }
  0xab   :  { %v208_v41 = vadd.f32 %v571_v39, %v569_v35  ;;  %v216_v42 = vmul.f32 %v571_v39, %v571_v39 }
  0xac   :  { %v186_v44 = vpop.f32.mrf.mxu2 }
  0xad   :  { %v209_v45 = vrot.slane %v208_v41, 4  ;;  %v217_v46 = vadd.f32 %v216_v42, %v215_v40  ;;  %v187_v47 = vadd.f32 %v466_v29, %v186_v44  ;;  %v205_v48 = vpop.f32.mrf.mxu3 }
  0xaf   :  { %v210_v49 = vadd.f32 %v209_v45, %v208_v41  ;;  %v218_v50 = vrot.slane %v217_v46, 4  ;;  %v583_v52 = vadd.f32 %v205_v48, %v187_v47 }
  0xb1   :  { %v211_v53 = vrot.slane %v210_v49, 2  ;;  %v219_v54 = vadd.f32 %v218_v50, %v217_v46  ;;  %v270_v55 = vadd.f32 %v583_v52, %v579_v43  ;;  %v278_v56 = vmul.f32 %v583_v52, %v583_v52 }
  0xb3   :  { %v212_v57 = vadd.f32 %v211_v53, %v210_v49  ;;  %v220_v58 = vrot.slane %v219_v54, 2  ;;  %v271_v59 = vrot.slane %v270_v55, 4  ;;  %v279_v60 = vadd.f32 %v278_v56, %v277_v51 }
  0xb5   :  { %v272_v61 = vadd.f32 %v271_v59, %v270_v55  ;;  %v280_v62 = vrot.slane %v279_v60, 4  ;;  %v213_v63 = vrot.slane %v212_v57, 1  ;;  %v221_v3 = vadd.f32 %v220_v58, %v219_v54 }
  0xb7   :  { %v273_v0 = vrot.slane %v272_v61, 2  ;;  %v281_v1 = vadd.f32 %v280_v62, %v279_v60  ;;  %v214_v2 = vadd.f32 %v213_v63, %v212_v57  ;;  %v222_v7 = vrot.slane %v221_v3, 1 }
  0xb9   :  { %v274_v4 = vadd.f32 %v273_v0, %v272_v61  ;;  %v282_v5 = vrot.slane %v281_v1, 2  ;;  %230 = vrot.lane.b32.xlu1 %v214_v2, %s471_s0  ;;  %224 = vrot.lane.b32.xlu0 %v214_v2, %s472_s2  ;;  %v223_v10 = vadd.f32 %v222_v7, %v221_v3 }
  0xbb   :  { %v275_v6 = vrot.slane %v274_v4, 1  ;;  %v283_v9 = vadd.f32 %v282_v5, %v281_v1 }
  0xbd   :  { %v276_v8 = vadd.f32 %v275_v6, %v274_v4  ;;  %v284_v11 = vrot.slane %v283_v9, 1 }
  0xbf   :  { %292 = vrot.lane.b32.xlu2 %v276_v8, %s471_s0  ;;  %v285_v12 = vadd.f32 %v284_v11, %v283_v9 }
  0xc1   :  { %236 = vrot.lane.b32.xlu1 %v214_v2, %s473_s7  ;;  %233 = vrot.lane.b32.xlu0 %v223_v10, %s471_s0 }
  0xc7   :  { %289 = vrot.lane.b32.xlu2 %v285_v12, %s472_s2 }
  0xc9   :  { %227 = vrot.lane.b32.xlu1 %v223_v10, %s472_s2  ;;  %286 = vrot.lane.b32.xlu0 %v276_v8, %s472_s2 }
  0xcf   :  { %295 = vrot.lane.b32.xlu2 %v285_v12, %s471_s0 }
  0xd1   :  { %239 = vrot.lane.b32.xlu1 %v223_v10, %s473_s7  ;;  %298 = vrot.lane.b32.xlu0 %v276_v8, %s473_s7 }
  0xd7   :  { %301 = vrot.lane.b32.xlu2 %v285_v12, %s473_s7 }
 0x119   :  { %v293_v13 = vpop.permute.xlu2 %292 }
 0x121   :  { %v290_v16 = vpop.permute.xlu2 %289 }
 0x122   :  { %v291_v27 = vadd.f32 %v290_v16, %v285_v12 }
 0x129   :  { %v296_v19 = vpop.permute.xlu2 %295 }
 0x12a   :  { %v297_v29 = vadd.f32 %v296_v19, %v291_v27 }
 0x12b   :  { %v231_v14 = vpop.permute.xlu1 %230  ;;  %v225_v15 = vpop.permute.xlu0 %224 }
 0x12c   :  { %v226_v20 = vadd.f32 %v225_v15, %v214_v2 }
 0x12e   :  { %v232_v23 = vadd.f32 %v231_v14, %v226_v20 }
 0x131   :  { %v302_v28 = vpop.permute.xlu2 %301 }
 0x132   :  { %v303_v36 = vadd.f32 %v302_v28, %v297_v29 }
 0x133   :  { %v237_v17 = vpop.permute.xlu1 %236  ;;  %v234_v18 = vpop.permute.xlu0 %233 }
 0x134   :  { %v238_v24 = vadd.f32 %v237_v17, %v232_v23  ;;  %v305_v44 = vmul.f32 0.015625, %v303_v36 }
 0x136   :  { %v242_v30 = vmul.f32 0.015625, %v238_v24 }
 0x138   :  { %v244_v40 = vmul.f32 %v242_v30, %v242_v30  ;;  %v258_v62 = vperm.slane %v242_v30, 0 }
 0x13a   :  { %v259_v4 = vsub.f32 %v569_v35, %v258_v62  ;;  %v260_v5 = vsub.f32 %v571_v39, %v258_v62 }
 0x13b   :  { %v228_v21 = vpop.permute.xlu1 %227  ;;  %v287_v22 = vpop.permute.xlu0 %286 }
 0x13c   :  { %v229_v25 = vadd.f32 %v228_v21, %v223_v10  ;;  %v288_v26 = vadd.f32 %v287_v22, %v276_v8 }
 0x13e   :  { %v235_v31 = vadd.f32 %v234_v18, %v229_v25  ;;  %v294_v32 = vadd.f32 %v293_v13, %v288_v26 }
 0x143   :  { %v240_v33 = vpop.permute.xlu1 %239  ;;  %v299_v34 = vpop.permute.xlu0 %298 }
 0x144   :  { %v241_v37 = vadd.f32 %v240_v33, %v235_v31  ;;  %v300_v38 = vadd.f32 %v299_v34, %v294_v32 }
 0x146   :  { %v243_v41 = vmul.f32 0.015625, %v241_v37  ;;  %v304_v42 = vmul.f32 0.015625, %v300_v38 }
 0x148   :  { %v245_v45 = vsub.f32 %v243_v41, %v244_v40  ;;  %v306_v46 = vmul.f32 %v304_v42, %v304_v42  ;;  %v320_v63 = vperm.slane %v304_v42, 0 }
 0x14a   :  { %v246_v47 = vmax.f32 %v245_v45, 0.0  ;;  %v307_v48 = vsub.f32 %v305_v44, %v306_v46  ;;  %v321_v8 = vsub.f32 %v579_v43, %v320_v63  ;;  %v322_v11 = vsub.f32 %v583_v52, %v320_v63 }
 0x14c   :  { %v247_v49 = vadd.f32 1e-05, %v246_v47  ;;  %v308_v50 = vmax.f32 %v307_v48, 0.0 }
 0x14e   :  { %467 = vrsqrt.f32 %v247_v49  ;;  %v309_v51 = vadd.f32 1e-05, %v308_v50  ;;  %vm254_vm1 = vweird.f32 %v247_v49 }
 0x150   :  { %469 = vrsqrt.f32 %v309_v51  ;;  %vm316_vm4 = vweird.f32 %v309_v51 }
 0x154   :  { %v468_v53 = vpop.eup %467 }
 0x155   :  { %v249_v54 = vmul.f32 %v468_v53, %v247_v49  ;;  %vm255_vm0 = vweird.f32 %v468_v53 }
 0x156   :  { %v470_v55 = vpop.eup %469  ;;  %vm256_vm3 = vmor %vm254_vm1, %vm255_vm0 }
 0x157   :  { %v250_v56 = vmul.f32 %v468_v53, %v249_v54  ;;  %v311_v57 = vmul.f32 %v470_v55, %v309_v51  ;;  %vm317_vm2 = vweird.f32 %v470_v55 }
 0x158   :  { %vm318_vm5 = vmor %vm316_vm4, %vm317_vm2 }
 0x159   :  { %v251_v58 = vmul.f32 0.5, %v250_v56  ;;  %v312_v59 = vmul.f32 %v470_v55, %v311_v57 }
 0x15b   :  { %v252_v60 = vsub.f32 1.5, %v251_v58  ;;  %v313_v61 = vmul.f32 0.5, %v312_v59 }
 0x15d   :  { %v253_v0 = vmul.f32 %v468_v53, %v252_v60  ;;  %v314_v1 = vsub.f32 1.5, %v313_v61 }
 0x15f   :  { %v257_v2 = vsel %vm256_vm3, %v468_v53, %v253_v0  ;;  %v315_v3 = vmul.f32 %v470_v55, %v314_v1 }
 0x160   :  { %v261_v6 = vperm.slane %v257_v2, 0 }
 0x161   :  { %v319_v7 = vsel %vm318_vm5, %v470_v55, %v315_v3 }
 0x162   :  { %v262_v9 = vmul.f32 %v261_v6, %v259_v4  ;;  %v263_v10 = vmul.f32 %v261_v6, %v260_v5  ;;  %v323_v12 = vperm.slane %v319_v7, 0 }
 0x164   :  { %v264_v13 = vmax.f32 %v262_v9, 0.0  ;;  %v265_v14 = vmax.f32 %v263_v10, 0.0  ;;  %v324_v15 = vmul.f32 %v323_v12, %v321_v8  ;;  %v325_v16 = vmul.f32 %v323_v12, %v322_v11 }
 0x166   :  { %v439_v17 = vpack.c.bf16 %v265_v14, %v264_v13  ;;  %v326_v18 = vmax.f32 %v324_v15, 0.0  ;;  %v327_v19 = vmax.f32 %v325_v16, 0.0 }
 0x168   :  { %440 = vst [vmem:[%s602_s3] sm:$0xff] %v439_v17   ;;  %v444_v35 = vpack.c.bf16 %v327_v19, %v326_v18 }
 0x16a   :  { %446 = vst [vmem:[%s602_s3 + $0x8] sm:$0xff] %v444_v35  }

// kernel: generator_forward.22
= control target key start
LH: loop header
LB: loop body
LE: loop exit
PB: predicated region body
PF: predicated region fallthrough
CT: control target
= control target key end

     0   :  { %s580_s18 = smov 96   ;;  %s778_s1 = inlined_call_operand.vmem [shape: bf16[128,128], index: 1, kind: input, shape index: {}]   ;;  %s779_s2 = inlined_call_operand.vmem [shape: f32[1,128], index: 2, kind: input, shape index: {}]   ;;  %s780_s0 = inlined_call_operand.vmem [shape: bf16[128,128], index: 0, kind: input, shape index: {}]   ;;  %s781_s3 = inlined_call_operand.vmem [shape: bf16[128,128], index: 3, kind: output, shape index: {}]  }
   0x1   :  { %v498_v0 = vld [vmem:[%s778_s1 + $0x38] sm:$0xff]  ;;  %v497_v1 = vld [vmem:[%s778_s1 + $0x30] sm:$0xff]  ;;  %v496_v2 = vld [vmem:[%s778_s1 + $0x28] sm:$0xff] }
   0x2   :  { %146 = vmatpush.bf16.msra.mxu0 %v498_v0  ;;  %546 = vmatpush.bf16.msra.mxu1 %v498_v0  ;;  %v495_v3 = vld [vmem:[%s778_s1 + $0x20] sm:$0xff]  ;;  %v494_v4 = vld [vmem:[%s778_s1 + $0x18] sm:$0xff]  ;;  %v493_v5 = vld [vmem:[%s778_s1 + $0x10] sm:$0xff] }
   0x3   :  { %547 = vmatpush.bf16.msra.mxu2 %v498_v0  ;;  %548 = vmatpush.bf16.msra.mxu3 %v498_v0  ;;  %v492_v6 = vld [vmem:[%s778_s1 + $0x8] sm:$0xff]  ;;  %v491_v7 = vld [vmem:[%s778_s1] sm:$0xff]  ;;  %v485_v9 = vld [vmem:[%s780_s0 + $0x10] sm:$0xff] }
   0x4   :  { %v483_v8 = vld [vmem:[%s780_s0] sm:$0xff]  ;;  %v489_v11 = vld [vmem:[%s780_s0 + $0x30] sm:$0xff]  ;;  %v484_v12 = vld [vmem:[%s780_s0 + $0x8] sm:$0xff] }
   0x5   :  { %v487_v10 = vld [vmem:[%s780_s0 + $0x20] sm:$0xff]  ;;  %v486_v13 = vld [vmem:[%s780_s0 + $0x18] sm:$0xff]  ;;  %v488_v14 = vld [vmem:[%s780_s0 + $0x28] sm:$0xff] }
   0x6   :  { %147 = vmatpush.bf16.msra.mxu0 %v497_v1  ;;  %549 = vmatpush.bf16.msra.mxu1 %v497_v1  ;;  %v490_v15 = vld [vmem:[%s780_s0 + $0x38] sm:$0xff]  ;;  %v573_v22 = vld [vmem:[%s779_s2] ss:$0 sm:$0xff]  ;;  %s578_s0 = smov 64   ;;  %s579_s2 = smov 32  }
   0x7   :  { %550 = vmatpush.bf16.msra.mxu2 %v497_v1  ;;  %551 = vmatpush.bf16.msra.mxu3 %v497_v1 }
   0xa   :  { %148 = vmatpush.bf16.msra.mxu0 %v496_v2  ;;  %552 = vmatpush.bf16.msra.mxu1 %v496_v2 }
   0xb   :  { %553 = vmatpush.bf16.msra.mxu2 %v496_v2  ;;  %554 = vmatpush.bf16.msra.mxu3 %v496_v2 }
   0xe   :  { %149 = vmatpush.bf16.msra.mxu0 %v495_v3  ;;  %555 = vmatpush.bf16.msra.mxu1 %v495_v3 }
   0xf   :  { %556 = vmatpush.bf16.msra.mxu2 %v495_v3  ;;  %557 = vmatpush.bf16.msra.mxu3 %v495_v3 }
  0x12   :  { %150 = vmatpush.bf16.msra.mxu0 %v494_v4  ;;  %558 = vmatpush.bf16.msra.mxu1 %v494_v4 }
  0x13   :  { %559 = vmatpush.bf16.msra.mxu2 %v494_v4  ;;  %560 = vmatpush.bf16.msra.mxu3 %v494_v4 }
  0x16   :  { %151 = vmatpush.bf16.msra.mxu0 %v493_v5  ;;  %561 = vmatpush.bf16.msra.mxu1 %v493_v5 }
  0x17   :  { %562 = vmatpush.bf16.msra.mxu2 %v493_v5  ;;  %563 = vmatpush.bf16.msra.mxu3 %v493_v5 }
  0x1a   :  { %152 = vmatpush.bf16.msra.mxu0 %v492_v6  ;;  %564 = vmatpush.bf16.msra.mxu1 %v492_v6 }
  0x1b   :  { %565 = vmatpush.bf16.msra.mxu2 %v492_v6  ;;  %566 = vmatpush.bf16.msra.mxu3 %v492_v6 }
  0x1e   :  { %153 = vmatpush.bf16.msra.mxu0 %v491_v7  ;;  %567 = vmatpush.bf16.msra.mxu1 %v491_v7 }
  0x1f   :  { %568 = vmatpush.bf16.msra.mxu2 %v491_v7  ;;  %569 = vmatpush.bf16.msra.mxu3 %v491_v7 }
  0x21   :  { %154 = vmatmul.bf16.vlgmr.msra.gmra.mxu0 %v483_v8  ;;  %164 = vmatmul.bf16.vlgmr.msra.gmra.mxu1 %v485_v9 }
  0x22   :  { %174 = vmatmul.bf16.vlgmr.msra.gmra.mxu2 %v487_v10  ;;  %184 = vmatmul.bf16.vlgmr.msra.gmra.mxu3 %v489_v11 }
  0x31   :  { %159 = vmatmul.bf16.gmra.mxu0 %v484_v12  ;;  %169 = vmatmul.bf16.gmra.mxu1 %v486_v13 }
  0x32   :  { %179 = vmatmul.bf16.gmra.mxu2 %v488_v14  ;;  %189 = vmatmul.bf16.gmra.mxu3 %v490_v15 }
  0x9e   :  { %v155_v16 = vpop.f32.mrf.mxu0  ;;  %v165_v17 = vpop.f32.mrf.mxu1 }
  0x9f   :  { %v654_v28 = vadd.f32 %v573_v22, %v155_v16  ;;  %v670_v39 = vadd.f32 %v573_v22, %v165_v17 }
  0xa1   :  { %v208_v31 = vmul.f32 %v654_v28, %v654_v28  ;;  %v212_v51 = vmul.f32 %v670_v39, %v670_v39 }
  0xa5   :  { %v175_v18 = vpop.f32.mrf.mxu2  ;;  %v185_v19 = vpop.f32.mrf.mxu3 }
  0xa6   :  { %v157_v20 = vpop.f32.mrf.mxu0  ;;  %v167_v21 = vpop.f32.mrf.mxu1  ;;  %v666_v36 = vadd.f32 %v573_v22, %v175_v18  ;;  %v700_v63 = vadd.f32 %v573_v22, %v185_v19 }
  0xa7   :  { %v652_v26 = vadd.f32 %v573_v22, %v157_v20  ;;  %v677_v44 = vadd.f32 %v573_v22, %v167_v21 }
  0xa8   :  { %v318_v48 = vmul.f32 %v666_v36, %v666_v36  ;;  %v322_v14 = vmul.f32 %v700_v63, %v700_v63 }
  0xa9   :  { %v209_v30 = vmul.f32 %v652_v26, %v652_v26  ;;  %v195_v32 = vadd.f32 %v652_v26, %v654_v28  ;;  %v213_v57 = vmul.f32 %v677_v44, %v677_v44 }
  0xab   :  { %v216_v40 = vadd.f32 %v209_v30, %v208_v31 }
  0xad   :  { %v177_v23 = vpop.f32.mrf.mxu2  ;;  %v187_v24 = vpop.f32.mrf.mxu3 }
  0xae   :  { %v160_v25 = vpop.f32.mrf.mxu0  ;;  %v170_v27 = vpop.f32.mrf.mxu1  ;;  %v668_v37 = vadd.f32 %v573_v22, %v177_v23  ;;  %v707_v3 = vadd.f32 %v573_v22, %v187_v24 }
  0xaf   :  { %v656_v29 = vadd.f32 %v573_v22, %v160_v25  ;;  %v688_v52 = vadd.f32 %v573_v22, %v170_v27 }
  0xb0   :  { %v319_v49 = vmul.f32 %v668_v37, %v668_v37  ;;  %v305_v55 = vadd.f32 %v668_v37, %v666_v36  ;;  %v323_v20 = vmul.f32 %v707_v3, %v707_v3 }
  0xb1   :  { %v210_v33 = vmul.f32 %v656_v29, %v656_v29  ;;  %v196_v41 = vadd.f32 %v195_v32, %v656_v29  ;;  %v214_v2 = vmul.f32 %v688_v52, %v688_v52 }
  0xb2   :  { %v326_v62 = vadd.f32 %v319_v49, %v318_v48 }
  0xb3   :  { %v217_v45 = vadd.f32 %v216_v40, %v210_v33 }
  0xb5   :  { %v180_v34 = vpop.f32.mrf.mxu2  ;;  %v190_v35 = vpop.f32.mrf.mxu3 }
  0xb6   :  { %v162_v38 = vpop.f32.mrf.mxu0  ;;  %v675_v43 = vadd.f32 %v573_v22, %v180_v34  ;;  %v172_v50 = vpop.f32.mrf.mxu1  ;;  %v713_v10 = vadd.f32 %v573_v22, %v190_v35 }
  0xb7   :  { %v673_v42 = vadd.f32 %v573_v22, %v162_v38  ;;  %v697_v59 = vadd.f32 %v573_v22, %v172_v50 }
  0xb8   :  { %v320_v56 = vmul.f32 %v675_v43, %v675_v43  ;;  %v306_v0 = vadd.f32 %v305_v55, %v675_v43  ;;  %v324_v24 = vmul.f32 %v713_v10, %v713_v10 }
  0xb9   :  { %v197_v46 = vadd.f32 %v196_v41, %v673_v42  ;;  %v211_v47 = vmul.f32 %v673_v42, %v673_v42  ;;  %v215_v12 = vmul.f32 %v697_v59, %v697_v59 }
  0xba   :  { %v327_v7 = vadd.f32 %v326_v62, %v320_v56 }
  0xbb   :  { %v198_v53 = vadd.f32 %v197_v46, %v670_v39  ;;  %v218_v54 = vadd.f32 %v217_v45, %v211_v47 }
  0xbd   :  { %v219_v58 = vadd.f32 %v218_v54, %v212_v51  ;;  %v199_v60 = vadd.f32 %v198_v53, %v677_v44  ;;  %v182_v61 = vpop.f32.mrf.mxu2  ;;  %v192_v6 = vpop.f32.mrf.mxu3 }
  0xbe   :  { %v703_v1 = vadd.f32 %v573_v22, %v182_v61  ;;  %v721_v17 = vadd.f32 %v573_v22, %v192_v6 }
  0xbf   :  { %v200_v4 = vadd.f32 %v199_v60, %v688_v52  ;;  %v220_v5 = vadd.f32 %v219_v58, %v213_v57 }
  0xc0   :  { %v307_v8 = vadd.f32 %v306_v0, %v703_v1  ;;  %v321_v9 = vmul.f32 %v703_v1, %v703_v1  ;;  %v325_v22 = vmul.f32 %v721_v17, %v721_v17 }
  0xc1   :  { %v201_v11 = vadd.f32 %v200_v4, %v697_v59  ;;  %v221_v13 = vadd.f32 %v220_v5, %v214_v2 }
  0xc2   :  { %v308_v15 = vadd.f32 %v307_v8, %v700_v63  ;;  %v328_v16 = vadd.f32 %v327_v7, %v321_v9 }
  0xc3   :  { %v202_v18 = vrot.slane %v201_v11, 4  ;;  %v222_v19 = vadd.f32 %v221_v13, %v215_v12 }
  0xc4   :  { %v329_v21 = vadd.f32 %v328_v16, %v322_v14  ;;  %v309_v23 = vadd.f32 %v308_v15, %v707_v3 }
  0xc5   :  { %v203_v25 = vadd.f32 %v202_v18, %v201_v11  ;;  %v223_v27 = vrot.slane %v222_v19, 4 }
  0xc6   :  { %v310_v30 = vadd.f32 %v309_v23, %v713_v10  ;;  %v330_v31 = vadd.f32 %v329_v21, %v323_v20 }
  0xc7   :  { %v204_v32 = vrot.slane %v203_v25, 2  ;;  %v224_v33 = vadd.f32 %v223_v27, %v222_v19 }
  0xc8   :  { %v331_v34 = vadd.f32 %v330_v31, %v324_v24  ;;  %v311_v35 = vadd.f32 %v310_v30, %v721_v17 }
  0xc9   :  { %v205_v38 = vadd.f32 %v204_v32, %v203_v25  ;;  %v225_v40 = vrot.slane %v224_v33, 2 }
  0xca   :  { %v312_v41 = vrot.slane %v311_v35, 4  ;;  %v332_v45 = vadd.f32 %v331_v34, %v325_v22 }
  0xcb   :  { %v206_v46 = vrot.slane %v205_v38, 1  ;;  %v226_v50 = vadd.f32 %v225_v40, %v224_v33 }
  0xcc   :  { %v313_v47 = vadd.f32 %v312_v41, %v311_v35  ;;  %v333_v48 = vrot.slane %v332_v45, 4 }
  0xcd   :  { %v207_v49 = vadd.f32 %v206_v46, %v205_v38  ;;  %v227_v56 = vrot.slane %v226_v50, 1 }
  0xce   :  { %v314_v51 = vrot.slane %v313_v47, 2  ;;  %v334_v53 = vadd.f32 %v333_v48, %v332_v45 }
  0xcf   :  { %235 = vrot.lane.b32.xlu1 %v207_v49, %s578_s0  ;;  %229 = vrot.lane.b32.xlu0 %v207_v49, %s579_s2  ;;  %v228_v61 = vadd.f32 %v227_v56, %v226_v50 }
  0xd0   :  { %v315_v54 = vadd.f32 %v314_v51, %v313_v47  ;;  %v335_v55 = vrot.slane %v334_v53, 2 }
  0xd2   :  { %v316_v57 = vrot.slane %v315_v54, 1  ;;  %v336_v60 = vadd.f32 %v335_v55, %v334_v53 }
  0xd4   :  { %v317_v58 = vadd.f32 %v316_v57, %v315_v54  ;;  %v337_v62 = vrot.slane %v336_v60, 1 }
  0xd6   :  { %345 = vrot.lane.b32.xlu2 %v317_v58, %s578_s0  ;;  %v338_v0 = vadd.f32 %v337_v62, %v336_v60 }
  0xd7   :  { %241 = vrot.lane.b32.xlu1 %v207_v49, %s580_s18  ;;  %238 = vrot.lane.b32.xlu0 %v228_v61, %s578_s0 }
  0xde   :  { %342 = vrot.lane.b32.xlu2 %v338_v0, %s579_s2 }
  0xdf   :  { %232 = vrot.lane.b32.xlu1 %v228_v61, %s579_s2  ;;  %339 = vrot.lane.b32.xlu0 %v317_v58, %s579_s2 }
  0xe6   :  { %348 = vrot.lane.b32.xlu2 %v338_v0, %s578_s0 }
  0xe7   :  { %244 = vrot.lane.b32.xlu1 %v228_v61, %s580_s18  ;;  %351 = vrot.lane.b32.xlu0 %v317_v58, %s580_s18 }
  0xee   :  { %354 = vrot.lane.b32.xlu2 %v338_v0, %s580_s18 }
 0x130   :  { %v346_v2 = vpop.permute.xlu2 %345 }
 0x138   :  { %v343_v6 = vpop.permute.xlu2 %342 }
 0x139   :  { %v344_v19 = vadd.f32 %v343_v6, %v338_v0 }
 0x140   :  { %v349_v9 = vpop.permute.xlu2 %348 }
 0x141   :  { %v236_v4 = vpop.permute.xlu1 %235  ;;  %v230_v5 = vpop.permute.xlu0 %229  ;;  %v350_v21 = vadd.f32 %v349_v9, %v344_v19 }
 0x142   :  { %v231_v11 = vadd.f32 %v230_v5, %v207_v49 }
 0x144   :  { %v237_v14 = vadd.f32 %v236_v4, %v231_v11 }
 0x148   :  { %v355_v20 = vpop.permute.xlu2 %354 }
 0x149   :  { %v242_v7 = vpop.permute.xlu1 %241  ;;  %v239_v8 = vpop.permute.xlu0 %238  ;;  %v356_v31 = vadd.f32 %v355_v20, %v350_v21 }
 0x14a   :  { %v243_v15 = vadd.f32 %v242_v7, %v237_v14 }
 0x14b   :  { %v358_v38 = vmul.f32 0.00390625, %v356_v31 }
 0x14c   :  { %v247_v23 = vmul.f32 0.00390625, %v243_v15 }
 0x14e   :  { %v249_v33 = vmul.f32 %v247_v23, %v247_v23  ;;  %v263_v56 = vperm.slane %v247_v23, 0 }
 0x150   :  { %v264_v62 = vsub.f32 %v654_v28, %v263_v56  ;;  %v265_v0 = vsub.f32 %v652_v26, %v263_v56  ;;  %v266_v6 = vsub.f32 %v656_v29, %v263_v56  ;;  %v267_v7 = vsub.f32 %v673_v42, %v263_v56 }
 0x151   :  { %v233_v12 = vpop.permute.xlu1 %232  ;;  %v340_v13 = vpop.permute.xlu0 %339  ;;  %v269_v9 = vsub.f32 %v677_v44, %v263_v56  ;;  %v270_v11 = vsub.f32 %v688_v52, %v263_v56  ;;  %v271_v26 = vsub.f32 %v697_v59, %v263_v56 }
 0x152   :  { %v234_v16 = vadd.f32 %v233_v12, %v228_v61  ;;  %v341_v18 = vadd.f32 %v340_v13, %v317_v58 }
 0x154   :  { %v240_v24 = vadd.f32 %v239_v8, %v234_v16  ;;  %v347_v25 = vadd.f32 %v346_v2, %v341_v18  ;;  %v268_v8 = vsub.f32 %v670_v39, %v263_v56 }
 0x159   :  { %v245_v27 = vpop.permute.xlu1 %244  ;;  %v352_v30 = vpop.permute.xlu0 %351 }
 0x15a   :  { %v246_v22 = vadd.f32 %v245_v27, %v240_v24  ;;  %v353_v32 = vadd.f32 %v352_v30, %v347_v25 }
 0x15c   :  { %v248_v34 = vmul.f32 0.00390625, %v246_v22  ;;  %v357_v35 = vmul.f32 0.00390625, %v353_v32 }
 0x15e   :  { %v250_v40 = vsub.f32 %v248_v34, %v249_v33  ;;  %v359_v41 = vmul.f32 %v357_v35, %v357_v35  ;;  %v373_v2 = vperm.slane %v357_v35, 0 }
 0x160   :  { %v251_v45 = vmax.f32 %v250_v40, 0.0  ;;  %v360_v46 = vsub.f32 %v358_v38, %v359_v41  ;;  %v374_v29 = vsub.f32 %v666_v36, %v373_v2  ;;  %v375_v42 = vsub.f32 %v668_v37, %v373_v2 }
 0x161   :  { %v376_v44 = vsub.f32 %v675_v43, %v373_v2  ;;  %v377_v52 = vsub.f32 %v703_v1, %v373_v2  ;;  %v378_v15 = vsub.f32 %v700_v63, %v373_v2  ;;  %v379_v63 = vsub.f32 %v707_v3, %v373_v2 }
 0x162   :  { %v252_v47 = vadd.f32 1e-05, %v251_v45  ;;  %v361_v48 = vmax.f32 %v360_v46, 0.0  ;;  %v380_v38 = vsub.f32 %v713_v10, %v373_v2  ;;  %v381_v40 = vsub.f32 %v721_v17, %v373_v2 }
 0x164   :  { %574 = vrsqrt.f32 %v252_v47  ;;  %v362_v49 = vadd.f32 1e-05, %v361_v48  ;;  %vm259_vm1 = vweird.f32 %v252_v47 }
 0x166   :  { %576 = vrsqrt.f32 %v362_v49  ;;  %vm369_vm4 = vweird.f32 %v362_v49 }
 0x16a   :  { %v575_v50 = vpop.eup %574 }
 0x16b   :  { %v254_v51 = vmul.f32 %v575_v50, %v252_v47  ;;  %vm260_vm0 = vweird.f32 %v575_v50 }
 0x16c   :  { %v577_v53 = vpop.eup %576  ;;  %vm261_vm3 = vmor %vm259_vm1, %vm260_vm0 }
 0x16d   :  { %v255_v54 = vmul.f32 %v575_v50, %v254_v51  ;;  %v364_v55 = vmul.f32 %v577_v53, %v362_v49  ;;  %vm370_vm2 = vweird.f32 %v577_v53 }
 0x16e   :  { %vm740_vm5 = vmor %vm369_vm4, %vm370_vm2 }
 0x16f   :  { %v256_v57 = vmul.f32 0.5, %v255_v54  ;;  %v365_v58 = vmul.f32 %v577_v53, %v364_v55 }
 0x171   :  { %v257_v60 = vsub.f32 1.5, %v256_v57  ;;  %v366_v61 = vmul.f32 0.5, %v365_v58 }
 0x173   :  { %v258_v4 = vmul.f32 %v575_v50, %v257_v60  ;;  %v367_v5 = vsub.f32 1.5, %v366_v61 }
 0x175   :  { %v262_v12 = vsel %vm261_vm3, %v575_v50, %v258_v4  ;;  %v368_v28 = vmul.f32 %v577_v53, %v367_v5 }
 0x176   :  { %v272_v13 = vperm.slane %v262_v12, 0 }
 0x177   :  { %v372_v39 = vsel %vm740_vm5, %v577_v53, %v368_v28 }
 0x178   :  { %v273_v16 = vmul.f32 %v272_v13, %v264_v62  ;;  %v274_v59 = vmul.f32 %v272_v13, %v265_v0  ;;  %v275_v18 = vmul.f32 %v272_v13, %v266_v6  ;;  %v276_v19 = vmul.f32 %v272_v13, %v267_v7 }
 0x179   :  { %v277_v20 = vmul.f32 %v272_v13, %v268_v8  ;;  %v278_v21 = vmul.f32 %v272_v13, %v269_v9  ;;  %v279_v23 = vmul.f32 %v272_v13, %v270_v11  ;;  %v280_v24 = vmul.f32 %v272_v13, %v271_v26 }
 0x17a   :  { %v281_v36 = vmax.f32 %v273_v16, 0.0  ;;  %v282_v25 = vmax.f32 %v274_v59, 0.0  ;;  %v283_v37 = vmax.f32 %v275_v18, 0.0  ;;  %v284_v27 = vmax.f32 %v276_v19, 0.0 }
 0x17b   :  { %v285_v30 = vmax.f32 %v277_v20, 0.0  ;;  %v286_v31 = vmax.f32 %v278_v21, 0.0  ;;  %v287_v22 = vmax.f32 %v279_v23, 0.0  ;;  %v288_v43 = vmax.f32 %v280_v24, 0.0 }
 0x17c   :  { %v502_v32 = vpack.c.bf16 %v282_v25, %v281_v36  ;;  %v507_v1 = vpack.c.bf16 %v284_v27, %v283_v37  ;;  %v382_v33 = vperm.slane %v372_v39, 0 }
 0x17d   :  { %v512_v34 = vpack.c.bf16 %v286_v31, %v285_v30  ;;  %v517_v35 = vpack.c.bf16 %v288_v43, %v287_v22 }
 0x17e   :  { %503 = vst [vmem:[%s781_s3] sm:$0xff] %v502_v32   ;;  %v383_v41 = vmul.f32 %v382_v33, %v374_v29  ;;  %v384_v45 = vmul.f32 %v382_v33, %v375_v42  ;;  %v385_v46 = vmul.f32 %v382_v33, %v376_v44  ;;  %v386_v47 = vmul.f32 %v382_v33, %v377_v52 }
 0x17f   :  { %539 = vst [vmem:[%s781_s3 + $0x8] sm:$0xff] %v507_v1   ;;  %v387_v3 = vmul.f32 %v382_v33, %v378_v15  ;;  %v388_v48 = vmul.f32 %v382_v33, %v379_v63  ;;  %v389_v49 = vmul.f32 %v382_v33, %v380_v38  ;;  %v390_v50 = vmul.f32 %v382_v33, %v381_v40 }
 0x180   :  { %540 = vst [vmem:[%s781_s3 + $0x10] sm:$0xff] %v512_v34   ;;  %v391_v10 = vmax.f32 %v383_v41, 0.0  ;;  %v392_v17 = vmax.f32 %v384_v45, 0.0  ;;  %v393_v51 = vmax.f32 %v385_v46, 0.0  ;;  %v394_v53 = vmax.f32 %v386_v47, 0.0 }
 0x181   :  { %541 = vst [vmem:[%s781_s3 + $0x18] sm:$0xff] %v517_v35   ;;  %v395_v54 = vmax.f32 %v387_v3, 0.0  ;;  %v396_v55 = vmax.f32 %v388_v48, 0.0  ;;  %v397_v56 = vmax.f32 %v389_v49, 0.0  ;;  %v398_v57 = vmax.f32 %v390_v50, 0.0 }
 0x182   :  { %v522_v58 = vpack.c.bf16 %v392_v17, %v391_v10  ;;  %v527_v60 = vpack.c.bf16 %v394_v53, %v393_v51 }
 0x183   :  { %v532_v61 = vpack.c.bf16 %v396_v55, %v395_v54  ;;  %v537_v62 = vpack.c.bf16 %v398_v57, %v397_v56 }
 0x184   :  { %542 = vst [vmem:[%s781_s3 + $0x20] sm:$0xff] %v522_v58  }
 0x185   :  { %543 = vst [vmem:[%s781_s3 + $0x28] sm:$0xff] %v527_v60  }
 0x186   :  { %544 = vst [vmem:[%s781_s3 + $0x30] sm:$0xff] %v532_v61  }
 0x187   :  { %545 = vst [vmem:[%s781_s3 + $0x38] sm:$0xff] %v537_v62  }

// kernel: generator_forward.23
= control target key start
LH: loop header
LB: loop body
LE: loop exit
PB: predicated region body
PF: predicated region fallthrough
CT: control target
= control target key end

     0   :  { %vm3185_vm0 = vcmask 19456   ;;  %s7022_s1 = inlined_call_operand.vmem [shape: bf16[896,128], index: 1, kind: input, shape index: {}]   ;;  %s7023_s2 = inlined_call_operand.vmem [shape: f32[1,128], index: 2, kind: input, shape index: {}]   ;;  %s7024_s0 = inlined_call_operand.vmem [shape: bf16[512,896], index: 0, kind: input, shape index: {}]   ;;  %s7025_s3 = inlined_call_operand.vmem [shape: bf16[512,3], index: 3, kind: output, shape index: {}]  }
   0x1   :  { %v4605_v0 = vld [vmem:[%s7022_s1 + $0x38] sm:$0xff]  ;;  %v4604_v3 = vld [vmem:[%s7022_s1 + $0x30] sm:$0xff]  ;;  %v4603_v6 = vld [vmem:[%s7022_s1 + $0x28] sm:$0xff] }
   0x2   :  { %v4834_v1 = vld [vmem:[%s7022_s1 + $0xb8] sm:$0xff]  ;;  %1874 = vmatpush.bf16.msra.mxu0 %v4605_v0  ;;  %4654 = vmatpush.bf16.msra.mxu3 %v4605_v0  ;;  %v4849_v4 = vld [vmem:[%s7022_s1 + $0xb0] sm:$0xff]  ;;  %v4864_v7 = vld [vmem:[%s7022_s1 + $0xa8] sm:$0xff] }
   0x3   :  { %v4839_v2 = vld [vmem:[%s7022_s1 + $0x78] sm:$0xff]  ;;  %2212 = vmatpush.bf16.msra.mxu2 %v4834_v1  ;;  %v4854_v5 = vld [vmem:[%s7022_s1 + $0x70] sm:$0xff]  ;;  %v4869_v8 = vld [vmem:[%s7022_s1 + $0x68] sm:$0xff] }
   0x4   :  { %2043 = vmatpush.bf16.msra.mxu1 %v4839_v2  ;;  %v4602_v9 = vld [vmem:[%s7022_s1 + $0x20] sm:$0xff]  ;;  %v4601_v12 = vld [vmem:[%s7022_s1 + $0x18] sm:$0xff]  ;;  %v4600_v15 = vld [vmem:[%s7022_s1 + $0x10] sm:$0xff] }
   0x5   :  { %v4879_v10 = vld [vmem:[%s7022_s1 + $0xa0] sm:$0xff]  ;;  %v4894_v13 = vld [vmem:[%s7022_s1 + $0x98] sm:$0xff]  ;;  %v4909_v16 = vld [vmem:[%s7022_s1 + $0x90] sm:$0xff] }
   0x6   :  { %1875 = vmatpush.bf16.msra.mxu0 %v4604_v3  ;;  %4655 = vmatpush.bf16.msra.mxu3 %v4604_v3  ;;  %v4884_v11 = vld [vmem:[%s7022_s1 + $0x60] sm:$0xff]  ;;  %v4899_v14 = vld [vmem:[%s7022_s1 + $0x58] sm:$0xff]  ;;  %v4914_v17 = vld [vmem:[%s7022_s1 + $0x50] sm:$0xff] }
   0x7   :  { %2213 = vmatpush.bf16.msra.mxu2 %v4849_v4  ;;  %v4599_v18 = vld [vmem:[%s7022_s1 + $0x8] sm:$0xff]  ;;  %v4598_v21 = vld [vmem:[%s7022_s1] sm:$0xff]  ;;  %v4377_v25 = vld [vmem:[%s7024_s0 + $0x18] sm:$0xf0] }
   0x8   :  { %2044 = vmatpush.bf16.msra.mxu1 %v4854_v5  ;;  %v4924_v19 = vld [vmem:[%s7022_s1 + $0x88] sm:$0xff]  ;;  %v4937_v22 = vld [vmem:[%s7022_s1 + $0x80] sm:$0xff]  ;;  %v4545_v27 = vld [vmem:[%s7024_s0 + $0x558] sm:$0xf0] }
   0x9   :  { %v4929_v20 = vld [vmem:[%s7022_s1 + $0x48] sm:$0xff]  ;;  %v4942_v23 = vld [vmem:[%s7022_s1 + $0x40] sm:$0xff]  ;;  %v4653_v32 = vld [vmem:[%s7022_s1 + $0x1b8] sm:$0xff] }
   0xa   :  { %1876 = vmatpush.bf16.msra.mxu0 %v4603_v6  ;;  %4656 = vmatpush.bf16.msra.mxu3 %v4603_v6  ;;  %v3256_v24 = vld [vmem:[%s7024_s0] sm:$0xf]  ;;  %v3264_v28 = vld [vmem:[%s7024_s0 + $0x8] sm:$0xf]  ;;  %v4378_v29 = vld [vmem:[%s7024_s0 + $0x20] sm:$0xf0] }
   0xb   :  { %2214 = vmatpush.bf16.msra.mxu2 %v4864_v7  ;;  %v3928_v26 = vld [vmem:[%s7024_s0 + $0x540] sm:$0xf]  ;;  %v4374_v30 = vld [vmem:[%s7024_s0 + $0x4] sm:$0xf]  ;;  %v3257_v33 = vor.u32 %v4377_v25, %v3256_v24  ;;  %v3265_v35 = vor.u32 %v4378_v29, %v3264_v28  ;;  %v4637_v37 = vld [vmem:[%s7022_s1 + $0x138] sm:$0xff] }
   0xc   :  { %2045 = vmatpush.bf16.msra.mxu1 %v4869_v8  ;;  %v3258_v31 = vld [vmem:[%s7024_s0 + $0x1c] sm:$0xf0]  ;;  %v3929_v34 = vor.u32 %v4545_v27, %v3928_v26  ;;  %v4645_v38 = vld [vmem:[%s7022_s1 + $0x178] sm:$0xff]  ;;  %v4384_v40 = vld [vmem:[%s7024_s0 + $0x50] sm:$0xf0] }
   0xd   :  { %v3261_v36 = vor.u32 %v4374_v30, %v3258_v31  ;;  %v3284_v39 = vld [vmem:[%s7024_s0 + $0x38] sm:$0xf]  ;;  %v4552_v42 = vld [vmem:[%s7024_s0 + $0x590] sm:$0xf0]  ;;  %v3292_v43 = vld [vmem:[%s7024_s0 + $0x40] sm:$0xf] }
   0xe   :  { %1877 = vmatpush.bf16.msra.mxu0 %v4602_v9  ;;  %4657 = vmatpush.bf16.msra.mxu3 %v4602_v9  ;;  %v3956_v41 = vld [vmem:[%s7024_s0 + $0x578] sm:$0xf]  ;;  %v4385_v44 = vld [vmem:[%s7024_s0 + $0x58] sm:$0xf0]  ;;  %v3285_v47 = vor.u32 %v4384_v40, %v3284_v39  ;;  %v4652_v51 = vld [vmem:[%s7022_s1 + $0x1b0] sm:$0xff] }
   0xf   :  { %2215 = vmatpush.bf16.msra.mxu2 %v4879_v10  ;;  %v4381_v45 = vld [vmem:[%s7024_s0 + $0x3c] sm:$0xf]  ;;  %v3286_v46 = vld [vmem:[%s7024_s0 + $0x54] sm:$0xf0]  ;;  %v3957_v48 = vor.u32 %v4552_v42, %v3956_v41  ;;  %v3293_v49 = vor.u32 %v4385_v44, %v3292_v43  ;;  %v4636_v52 = vld [vmem:[%s7022_s1 + $0x130] sm:$0xff] }
  0x10   :  { %2046 = vmatpush.bf16.msra.mxu1 %v4884_v11  ;;  %v3289_v50 = vor.u32 %v4381_v45, %v3286_v46  ;;  %v4644_v53 = vld [vmem:[%s7022_s1 + $0x170] sm:$0xff]  ;;  %v4391_v55 = vld [vmem:[%s7024_s0 + $0x88] sm:$0xf0]  ;;  %v3320_v58 = vld [vmem:[%s7024_s0 + $0x78] sm:$0xf] }
  0x11   :  { %v3312_v54 = vld [vmem:[%s7024_s0 + $0x70] sm:$0xf]  ;;  %v4559_v57 = vld [vmem:[%s7024_s0 + $0x5c8] sm:$0xf0]  ;;  %v4392_v59 = vld [vmem:[%s7024_s0 + $0x90] sm:$0xf0] }
  0x12   :  { %1878 = vmatpush.bf16.msra.mxu0 %v4601_v12  ;;  %4658 = vmatpush.bf16.msra.mxu3 %v4601_v12  ;;  %v3984_v56 = vld [vmem:[%s7024_s0 + $0x5b0] sm:$0xf]  ;;  %v4388_v60 = vld [vmem:[%s7024_s0 + $0x74] sm:$0xf]  ;;  %v3313_v62 = vor.u32 %v4391_v55, %v3312_v54  ;;  %v3321_v0 = vor.u32 %v4392_v59, %v3320_v58  ;;  %v3340_v3 = vld [vmem:[%s7024_s0 + $0xa8] sm:$0xf] }
  0x13   :  { %2216 = vmatpush.bf16.msra.mxu2 %v4894_v13  ;;  %v3314_v61 = vld [vmem:[%s7024_s0 + $0x8c] sm:$0xf0]  ;;  %v3985_v63 = vor.u32 %v4559_v57, %v3984_v56  ;;  %v4566_v6 = vld [vmem:[%s7024_s0 + $0x600] sm:$0xf0]  ;;  %v3342_v9 = vld [vmem:[%s7024_s0 + $0xc4] sm:$0xf0] }
  0x14   :  { %2047 = vmatpush.bf16.msra.mxu1 %v4899_v14  ;;  %v4651_v27 = vld [vmem:[%s7022_s1 + $0x1a8] sm:$0xff]  ;;  %v3396_v29 = vld [vmem:[%s7024_s0 + $0x118] sm:$0xf]  ;;  %v4412_v30 = vld [vmem:[%s7024_s0 + $0x130] sm:$0xf0] }
  0x15   :  { %v4635_v28 = vld [vmem:[%s7022_s1 + $0x128] sm:$0xff]  ;;  %v4068_v31 = vld [vmem:[%s7024_s0 + $0x658] sm:$0xf]  ;;  %v3424_v41 = vld [vmem:[%s7024_s0 + $0x150] sm:$0xf] }
  0x16   :  { %1879 = vmatpush.bf16.msra.mxu0 %v4600_v15  ;;  %4659 = vmatpush.bf16.msra.mxu3 %v4600_v15  ;;  %v4419_v42 = vld [vmem:[%s7024_s0 + $0x168] sm:$0xf0]  ;;  %v4096_v43 = vld [vmem:[%s7024_s0 + $0x690] sm:$0xf]  ;;  %v3432_v45 = vld [vmem:[%s7024_s0 + $0x158] sm:$0xf] }
  0x17   :  { %2217 = vmatpush.bf16.msra.mxu2 %v4909_v16  ;;  %v4587_v44 = vld [vmem:[%s7024_s0 + $0x6a8] sm:$0xf0]  ;;  %v4420_v46 = vld [vmem:[%s7024_s0 + $0x170] sm:$0xf0]  ;;  %v4426_v54 = vld [vmem:[%s7024_s0 + $0x1a0] sm:$0xf0] }
  0x18   :  { %2048 = vmatpush.bf16.msra.mxu1 %v4914_v17  ;;  %v4124_v55 = vld [vmem:[%s7024_s0 + $0x6c8] sm:$0xf]  ;;  %v4594_v56 = vld [vmem:[%s7024_s0 + $0x6e0] sm:$0xf0]  ;;  %v3460_v57 = vld [vmem:[%s7024_s0 + $0x190] sm:$0xf] }
  0x19   :  { %v4427_v58 = vld [vmem:[%s7024_s0 + $0x1a8] sm:$0xf0] }
  0x1a   :  { %1880 = vmatpush.bf16.msra.mxu0 %v4599_v18  ;;  %4660 = vmatpush.bf16.msra.mxu3 %v4599_v18  ;;  %v4573_v18 = vld [vmem:[%s7024_s0 + $0x638] sm:$0xf0]  ;;  %v4423_v59 = vld [vmem:[%s7024_s0 + $0x18c] sm:$0xf] }
  0x1b   :  { %2218 = vmatpush.bf16.msra.mxu2 %v4924_v19 }
  0x1c   :  { %2049 = vmatpush.bf16.msra.mxu1 %v4929_v20 }
  0x1e   :  { %1881 = vmatpush.bf16.msra.mxu0 %v4598_v21  ;;  %4661 = vmatpush.bf16.msra.mxu3 %v4598_v21  ;;  %v3370_v21 = vld [vmem:[%s7024_s0 + $0xfc] sm:$0xf0] }
  0x1f   :  { %2219 = vmatpush.bf16.msra.mxu2 %v4937_v22 }
  0x20   :  { %2050 = vmatpush.bf16.msra.mxu1 %v4942_v23 }
  0x21   :  { %1882 = vmatmul.bf16.vlgmr.msra.gmra.mxu0 %v3257_v33  ;;  %2002 = vmatmul.bf16.vlgmr.msra.gmra.mxu3 %v3929_v34  ;;  %v3404_v33 = vld [vmem:[%s7024_s0 + $0x120] sm:$0xf]  ;;  %v4413_v34 = vld [vmem:[%s7024_s0 + $0x138] sm:$0xf0] }
  0x22   :  { %4662 = vmatpush.bf16.msrb.mxu3 %v4839_v2  ;;  %2220 = vmatmul.bf16.vlgmr.msra.gmra.mxu2 %v3265_v35  ;;  %v3317_v2 = vor.u32 %v4388_v60, %v3314_v61  ;;  %v4409_v35 = vld [vmem:[%s7024_s0 + $0x11c] sm:$0xf]  ;;  %v3405_v39 = vor.u32 %v4413_v34, %v3404_v33  ;;  %v3454_v60 = vld [vmem:[%s7024_s0 + $0x1a4] sm:$0xf0] }
  0x23   :  { %2888 = vmatpush.bf16.msrb.mxu2 %v4653_v32  ;;  %2051 = vmatmul.bf16.vlgmr.msra.gmra.mxu1 %v3261_v36  ;;  %v4580_v32 = vld [vmem:[%s7024_s0 + $0x670] sm:$0xf0]  ;;  %v3398_v36 = vld [vmem:[%s7024_s0 + $0x134] sm:$0xf0]  ;;  %v4441_v33 = vld [vmem:[%s7024_s0 + $0x218] sm:$0xf0] }
  0x24   :  { %2550 = vmatpush.bf16.msrb.mxu0 %v4637_v37  ;;  %2719 = vmatpush.bf16.msrb.mxu1 %v4645_v38  ;;  %v3397_v37 = vor.u32 %v4412_v30, %v3396_v29  ;;  %v4069_v38 = vor.u32 %v4580_v32, %v4068_v31  ;;  %v3401_v40 = vor.u32 %v4409_v35, %v3398_v36  ;;  %v4440_v29 = vld [vmem:[%s7024_s0 + $0x210] sm:$0xf0]  ;;  %v4549_v30 = vld [vmem:[%s7024_s0 + $0x57c] sm:$0xf]  ;;  %v3958_v31 = vld [vmem:[%s7024_s0 + $0x594] sm:$0xf0] }
  0x25   :  { %v3516_v32 = vld [vmem:[%s7024_s0 + $0x200] sm:$0xf]  ;;  %v4437_v34 = vld [vmem:[%s7024_s0 + $0x1fc] sm:$0xf]  ;;  %v3510_v35 = vld [vmem:[%s7024_s0 + $0x214] sm:$0xf0] }
  0x26   :  { %4663 = vmatpush.bf16.msrb.mxu3 %v4854_v5  ;;  %v4398_v5 = vld [vmem:[%s7024_s0 + $0xc0] sm:$0xf0] }
  0x27   :  { %2889 = vmatpush.bf16.msrb.mxu2 %v4652_v51  ;;  %v3433_v51 = vor.u32 %v4420_v46, %v3432_v45 }
  0x28   :  { %2551 = vmatpush.bf16.msrb.mxu0 %v4636_v52  ;;  %2720 = vmatpush.bf16.msrb.mxu1 %v4644_v53  ;;  %v3452_v53 = vld [vmem:[%s7024_s0 + $0x188] sm:$0xf] }
  0x29   :  { %v3453_v61 = vor.u32 %v4426_v54, %v3452_v53  ;;  %v3536_v54 = vld [vmem:[%s7024_s0 + $0x230] sm:$0xf] }
  0x2a   :  { %4664 = vmatpush.bf16.msrb.mxu3 %v4869_v8  ;;  %v4395_v8 = vld [vmem:[%s7024_s0 + $0xac] sm:$0xf] }
  0x2b   :  { %v3345_v15 = vor.u32 %v4395_v8, %v3342_v9  ;;  %2890 = vmatpush.bf16.msrb.mxu2 %v4651_v27  ;;  %v3488_v8 = vld [vmem:[%s7024_s0 + $0x1c8] sm:$0xf]  ;;  %v4434_v9 = vld [vmem:[%s7024_s0 + $0x1e0] sm:$0xf0] }
  0x2c   :  { %2552 = vmatpush.bf16.msrb.mxu0 %v4635_v28 }
  0x2e   :  { %4665 = vmatpush.bf16.msrb.mxu3 %v4884_v11  ;;  %v3341_v11 = vor.u32 %v4398_v5, %v3340_v3  ;;  %v3480_v3 = vld [vmem:[%s7024_s0 + $0x1c0] sm:$0xf]  ;;  %v4433_v5 = vld [vmem:[%s7024_s0 + $0x1d8] sm:$0xf0] }
  0x31   :  { %1887 = vmatmul.bf16.gmra.mxu0 %v3285_v47  ;;  %2007 = vmatmul.bf16.gmra.mxu3 %v3957_v48  ;;  %v4416_v47 = vld [vmem:[%s7024_s0 + $0x154] sm:$0xf]  ;;  %v3426_v48 = vld [vmem:[%s7024_s0 + $0x16c] sm:$0xf0] }
  0x32   :  { %4666 = vmatpush.bf16.msrb.mxu3 %v4899_v14  ;;  %2225 = vmatmul.bf16.gmra.mxu2 %v3293_v49  ;;  %v3425_v49 = vor.u32 %v4419_v42, %v3424_v41  ;;  %v3429_v52 = vor.u32 %v4416_v47, %v3426_v48  ;;  %v3517_v42 = vor.u32 %v4441_v33, %v3516_v32 }
  0x33   :  { %2056 = vmatmul.bf16.gmra.mxu1 %v3289_v50  ;;  %v4097_v50 = vor.u32 %v4587_v44, %v4096_v43  ;;  %v3513_v43 = vor.u32 %v4437_v34, %v3510_v35 }
  0x36   :  { %4667 = vmatpush.bf16.msrb.mxu3 %v4914_v17  ;;  %v3368_v17 = vld [vmem:[%s7024_s0 + $0xe0] sm:$0xf] }
  0x3a   :  { %4668 = vmatpush.bf16.msrb.mxu3 %v4929_v20  ;;  %v4402_v20 = vld [vmem:[%s7024_s0 + $0xe4] sm:$0xf] }
  0x3b   :  { %v3373_v26 = vor.u32 %v4402_v20, %v3370_v21 }
  0x3e   :  { %4669 = vmatpush.bf16.msrb.mxu3 %v4942_v23 }
  0x41   :  { %1892 = vmatmul.bf16.gmra.mxu0 %v3313_v62  ;;  %2012 = vmatmul.bf16.gmra.mxu3 %v3985_v63  ;;  %v4125_v62 = vor.u32 %v4594_v56, %v4124_v55  ;;  %v3461_v63 = vor.u32 %v4427_v58, %v3460_v57  ;;  %v4447_v55 = vld [vmem:[%s7024_s0 + $0x248] sm:$0xf0]  ;;  %v4556_v56 = vld [vmem:[%s7024_s0 + $0x5b4] sm:$0xf]  ;;  %v3986_v57 = vld [vmem:[%s7024_s0 + $0x5cc] sm:$0xf0] }
  0x42   :  { %4670 = vmatpush.bf16.msra.mxu3 %v4834_v1  ;;  %2230 = vmatmul.bf16.gmra.mxu2 %v3321_v0  ;;  %v4012_v1 = vld [vmem:[%s7024_s0 + $0x5e8] sm:$0xf]  ;;  %v3457_v0 = vor.u32 %v4423_v59, %v3454_v60  ;;  %v3544_v58 = vld [vmem:[%s7024_s0 + $0x238] sm:$0xf]  ;;  %v4448_v59 = vld [vmem:[%s7024_s0 + $0x250] sm:$0xf0] }
  0x43   :  { %2061 = vmatmul.bf16.gmra.mxu1 %v3317_v2  ;;  %v4013_v12 = vor.u32 %v4566_v6, %v4012_v1  ;;  %v4650_v2 = vld [vmem:[%s7022_s1 + $0x1a0] sm:$0xff]  ;;  %v4444_v60 = vld [vmem:[%s7024_s0 + $0x234] sm:$0xf] }
  0x44   :  { %2891 = vmatpush.bf16.msrb.mxu2 %v4650_v2  ;;  %v4634_v1 = vld [vmem:[%s7022_s1 + $0x120] sm:$0xff]  ;;  %v3989_v2 = vor.u32 %v4556_v56, %v3986_v57  ;;  %v3600_v56 = vld [vmem:[%s7024_s0 + $0x2a8] sm:$0xf] }
  0x45   :  { %v4642_v6 = vld [vmem:[%s7022_s1 + $0x160] sm:$0xff]  ;;  %2553 = vmatpush.bf16.msrb.mxu0 %v4634_v1  ;;  %v3545_v1 = vor.u32 %v4448_v59, %v3544_v58 }
  0x46   :  { %4671 = vmatpush.bf16.msra.mxu3 %v4849_v4  ;;  %v3348_v4 = vld [vmem:[%s7024_s0 + $0xb0] sm:$0xf]  ;;  %v4462_v57 = vld [vmem:[%s7024_s0 + $0x2c0] sm:$0xf0]  ;;  %v3594_v59 = vld [vmem:[%s7024_s0 + $0x2bc] sm:$0xf0] }
  0x47   :  { %v4458_v58 = vld [vmem:[%s7024_s0 + $0x2a4] sm:$0xf] }
  0x4a   :  { %4672 = vmatpush.bf16.msra.mxu3 %v4864_v7  ;;  %v4399_v7 = vld [vmem:[%s7024_s0 + $0xc8] sm:$0xf0] }
  0x4b   :  { %v3349_v14 = vor.u32 %v4399_v7, %v3348_v4  ;;  %v4542_v4 = vld [vmem:[%s7024_s0 + $0x544] sm:$0xf]  ;;  %v3930_v7 = vld [vmem:[%s7024_s0 + $0x55c] sm:$0xf0] }
  0x4e   :  { %4673 = vmatpush.bf16.msra.mxu3 %v4879_v10  ;;  %v4405_v10 = vld [vmem:[%s7024_s0 + $0xf8] sm:$0xf0] }
  0x4f   :  { %v3369_v23 = vor.u32 %v4405_v10, %v3368_v17  ;;  %v3933_v17 = vor.u32 %v4542_v4, %v3930_v7 }
  0x51   :  { %1897 = vmatmul.bf16.gmra.mxu0 %v3341_v11  ;;  %2017 = vmatmul.bf16.gmra.mxu3 %v4013_v12  ;;  %v4430_v11 = vld [vmem:[%s7024_s0 + $0x1c4] sm:$0xf]  ;;  %v3482_v12 = vld [vmem:[%s7024_s0 + $0x1dc] sm:$0xf0] }
  0x52   :  { %4674 = vmatpush.bf16.msra.mxu3 %v4894_v13  ;;  %2235 = vmatmul.bf16.gmra.mxu2 %v3349_v14  ;;  %v4040_v13 = vld [vmem:[%s7024_s0 + $0x620] sm:$0xf] }
  0x53   :  { %2066 = vmatmul.bf16.gmra.mxu1 %v3345_v15  ;;  %v4041_v24 = vor.u32 %v4573_v18, %v4040_v13  ;;  %v5219_v14 = vld [vmem:[%s7023_s2] ss:$0 sm:$0xff]  ;;  %v3481_v15 = vor.u32 %v4433_v5, %v3480_v3  ;;  %v3489_v13 = vor.u32 %v4434_v9, %v3488_v8  ;;  %v3485_v18 = vor.u32 %v4430_v11, %v3482_v12 }
  0x56   :  { %4675 = vmatpush.bf16.msra.mxu3 %v4909_v16  ;;  %v3376_v16 = vld [vmem:[%s7024_s0 + $0xe8] sm:$0xf] }
  0x5a   :  { %4676 = vmatpush.bf16.msra.mxu3 %v4924_v19  ;;  %v4406_v19 = vld [vmem:[%s7024_s0 + $0x100] sm:$0xf0] }
  0x5b   :  { %v3377_v25 = vor.u32 %v4406_v19, %v3376_v16 }
  0x5e   :  { %4677 = vmatpush.bf16.msra.mxu3 %v4937_v22  ;;  %v4643_v22 = vld [vmem:[%s7022_s1 + $0x168] sm:$0xff] }
  0x5f   :  { %2721 = vmatpush.bf16.msrb.mxu1 %v4643_v22  ;;  %v3508_v22 = vld [vmem:[%s7024_s0 + $0x1f8] sm:$0xf] }
  0x61   :  { %1902 = vmatmul.bf16.gmra.mxu0 %v3369_v23  ;;  %2022 = vmatmul.bf16.gmra.mxu3 %v4041_v24 }
  0x62   :  { %2240 = vmatmul.bf16.gmra.mxu2 %v3377_v25 }
  0x63   :  { %2071 = vmatmul.bf16.gmra.mxu1 %v3373_v26 }
  0x64   :  { %2722 = vmatpush.bf16.msrb.mxu1 %v4642_v6 }
  0x71   :  { %1907 = vmatmul.bf16.gmra.mxu0 %v3397_v37  ;;  %2027 = vmatmul.bf16.gmra.mxu3 %v4069_v38  ;;  %v3509_v38 = vor.u32 %v4440_v29, %v3508_v22  ;;  %v4451_v22 = vld [vmem:[%s7024_s0 + $0x26c] sm:$0xf]  ;;  %v3566_v29 = vld [vmem:[%s7024_s0 + $0x284] sm:$0xf0] }
  0x72   :  { %2245 = vmatmul.bf16.gmra.mxu2 %v3405_v39  ;;  %v3961_v39 = vor.u32 %v4549_v30, %v3958_v31 }
  0x73   :  { %2076 = vmatmul.bf16.gmra.mxu1 %v3401_v40 }
  0x81   :  { %1912 = vmatmul.bf16.gmra.mxu0 %v3425_v49  ;;  %2032 = vmatmul.bf16.gmra.mxu3 %v4097_v50 }
  0x82   :  { %2250 = vmatmul.bf16.gmra.mxu2 %v3433_v51 }
  0x83   :  { %2081 = vmatmul.bf16.gmra.mxu1 %v3429_v52 }
  0x91   :  { %1917 = vmatmul.bf16.gmra.mxu0 %v3453_v61  ;;  %2037 = vmatmul.bf16.gmra.mxu3 %v4125_v62  ;;  %v3538_v61 = vld [vmem:[%s7024_s0 + $0x24c] sm:$0xf0] }
  0x92   :  { %2255 = vmatmul.bf16.gmra.mxu2 %v3461_v63  ;;  %v3541_v6 = vor.u32 %v4444_v60, %v3538_v61 }
  0x93   :  { %2086 = vmatmul.bf16.gmra.mxu1 %v3457_v0  ;;  %v3537_v0 = vor.u32 %v4447_v55, %v3536_v54  ;;  %v4570_v54 = vld [vmem:[%s7024_s0 + $0x624] sm:$0xf]  ;;  %v4042_v55 = vld [vmem:[%s7024_s0 + $0x63c] sm:$0xf0] }
  0x9e   :  { %v1883_v10 = vpop.f32.mrf.mxu0 }
  0x9f   :  { %v1884_v16 = vadd.f32 %v5219_v14, %v1883_v10 }
  0xa0   :  { %v2052_v19 = vpop.f32.mrf.mxu1 }
  0xa1   :  { %v2053_v20 = vadd.f32 %v2052_v19, %v1884_v16  ;;  %1922 = vmatmul.bf16.gmra.mxu0 %v3481_v15  ;;  %2171 = vmatmul.bf16.vlgmr.msrb.gmra.mxu3 %v3933_v17  ;;  %v4454_v19 = vld [vmem:[%s7024_s0 + $0x280] sm:$0xf0] }
  0xa2   :  { %2260 = vmatmul.bf16.gmra.mxu2 %v3489_v13  ;;  %v4649_v13 = vld [vmem:[%s7022_s1 + $0x198] sm:$0xff] }
  0xa3   :  { %2091 = vmatmul.bf16.gmra.mxu1 %v3485_v18  ;;  %v3564_v18 = vld [vmem:[%s7024_s0 + $0x268] sm:$0xf]  ;;  %2892 = vmatpush.bf16.msrb.mxu2 %v4649_v13 }
  0xa4   :  { %v5222_v21 = vpop.f32.mrf.mxu3  ;;  %v3565_v32 = vor.u32 %v4454_v19, %v3564_v18  ;;  %v3620_v19 = vld [vmem:[%s7024_s0 + $0x2d8] sm:$0xf] }
  0xa5   :  { %v2221_v23 = vpop.f32.mrf.mxu2 }
  0xa6   :  { %v5224_v24 = vadd.f32 %v2221_v23, %v2053_v20  ;;  %v1885_v25 = vpop.f32.mrf.mxu0  ;;  %v4633_v20 = vld [vmem:[%s7022_s1 + $0x118] sm:$0xff] }
  0xa7   :  { %v1886_v26 = vadd.f32 %v5219_v14, %v1885_v25  ;;  %v4641_v23 = vld [vmem:[%s7022_s1 + $0x158] sm:$0xff]  ;;  %v4563_v25 = vld [vmem:[%s7024_s0 + $0x5ec] sm:$0xf]  ;;  %2554 = vmatpush.bf16.msrb.mxu0 %v4633_v20  ;;  %v4468_v20 = vld [vmem:[%s7024_s0 + $0x2f0] sm:$0xf0] }
  0xa8   :  { %v2054_v27 = vpop.f32.mrf.mxu1  ;;  %2723 = vmatpush.bf16.msrb.mxu1 %v4641_v23  ;;  %v4577_v23 = vld [vmem:[%s7024_s0 + $0x65c] sm:$0xf] }
  0xa9   :  { %v2055_v28 = vadd.f32 %v2054_v27, %v1886_v26  ;;  %v4014_v26 = vld [vmem:[%s7024_s0 + $0x604] sm:$0xf0]  ;;  %v3572_v27 = vld [vmem:[%s7024_s0 + $0x270] sm:$0xf] }
  0xaa   :  { %v4017_v33 = vor.u32 %v4563_v25, %v4014_v26  ;;  %v4070_v25 = vld [vmem:[%s7024_s0 + $0x674] sm:$0xf0]  ;;  %v3628_v26 = vld [vmem:[%s7024_s0 + $0x2e0] sm:$0xf] }
  0xac   :  { %v5251_v36 = vpop.f32.mrf.mxu3 }
  0xad   :  { %v2223_v37 = vpop.f32.mrf.mxu2 }
  0xae   :  { %v5253_v40 = vadd.f32 %v2223_v37, %v2055_v28  ;;  %v1888_v41 = vpop.f32.mrf.mxu0  ;;  %v4455_v28 = vld [vmem:[%s7024_s0 + $0x288] sm:$0xf0] }
  0xaf   :  { %v1889_v44 = vadd.f32 %v5219_v14, %v1888_v41  ;;  %v3573_v37 = vor.u32 %v4455_v28, %v3572_v27  ;;  %v4469_v27 = vld [vmem:[%s7024_s0 + $0x2f8] sm:$0xf0] }
  0xb0   :  { %v2057_v45 = vpop.f32.mrf.mxu1  ;;  %v4465_v28 = vld [vmem:[%s7024_s0 + $0x2dc] sm:$0xf] }
  0xb1   :  { %v2058_v46 = vadd.f32 %v2057_v45, %v1889_v44  ;;  %1927 = vmatmul.bf16.gmra.mxu0 %v3509_v38  ;;  %2176 = vmatmul.bf16.gmra.mxu3 %v3961_v39  ;;  %v3569_v38 = vor.u32 %v4451_v22, %v3566_v29  ;;  %v3622_v22 = vld [vmem:[%s7024_s0 + $0x2f4] sm:$0xf0] }
  0xb2   :  { %2265 = vmatmul.bf16.gmra.mxu2 %v3517_v42 }
  0xb3   :  { %2096 = vmatmul.bf16.gmra.mxu1 %v3513_v43 }
  0xb4   :  { %v5256_v47 = vpop.f32.mrf.mxu3 }
  0xb5   :  { %v2226_v48 = vpop.f32.mrf.mxu2 }
  0xb6   :  { %v5258_v49 = vadd.f32 %v2226_v48, %v2058_v46  ;;  %v1890_v50 = vpop.f32.mrf.mxu0 }
  0xb7   :  { %v1891_v51 = vadd.f32 %v5219_v14, %v1890_v50 }
  0xb8   :  { %v2059_v52 = vpop.f32.mrf.mxu1 }
  0xb9   :  { %v2060_v53 = vadd.f32 %v2059_v52, %v1891_v51  ;;  %v3592_v52 = vld [vmem:[%s7024_s0 + $0x2a0] sm:$0xf] }
  0xbc   :  { %v5285_v62 = vpop.f32.mrf.mxu3 }
  0xbd   :  { %v2228_v63 = vpop.f32.mrf.mxu2 }
  0xbe   :  { %v5287_v3 = vadd.f32 %v2228_v63, %v2060_v53  ;;  %v1893_v5 = vpop.f32.mrf.mxu0  ;;  %v4461_v53 = vld [vmem:[%s7024_s0 + $0x2b8] sm:$0xf0] }
  0xbf   :  { %v1894_v4 = vadd.f32 %v5219_v14, %v1893_v5  ;;  %v3593_v63 = vor.u32 %v4461_v53, %v3592_v52 }
  0xc0   :  { %v2062_v7 = vpop.f32.mrf.mxu1 }
  0xc1   :  { %v2063_v8 = vadd.f32 %v2062_v7, %v1894_v4  ;;  %1932 = vmatmul.bf16.gmra.mxu0 %v3537_v0  ;;  %2181 = vmatmul.bf16.gmra.mxu3 %v3989_v2  ;;  %v4045_v0 = vor.u32 %v4570_v54, %v4042_v55  ;;  %v4648_v54 = vld [vmem:[%s7022_s1 + $0x190] sm:$0xff] }
  0xc2   :  { %2270 = vmatmul.bf16.gmra.mxu2 %v3545_v1  ;;  %v3601_v1 = vor.u32 %v4462_v57, %v3600_v56  ;;  %v3648_v55 = vld [vmem:[%s7024_s0 + $0x310] sm:$0xf]  ;;  %v4475_v57 = vld [vmem:[%s7024_s0 + $0x328] sm:$0xf0] }
  0xc3   :  { %2101 = vmatmul.bf16.gmra.mxu1 %v3541_v6  ;;  %v3597_v6 = vor.u32 %v4458_v58, %v3594_v59  ;;  %2893 = vmatpush.bf16.msrb.mxu2 %v4648_v54  ;;  %v4632_v58 = vld [vmem:[%s7022_s1 + $0x110] sm:$0xff] }
  0xc4   :  { %v5290_v9 = vpop.f32.mrf.mxu3  ;;  %v4640_v59 = vld [vmem:[%s7022_s1 + $0x150] sm:$0xff]  ;;  %2555 = vmatpush.bf16.msrb.mxu0 %v4632_v58 }
  0xc5   :  { %v2231_v11 = vpop.f32.mrf.mxu2  ;;  %2724 = vmatpush.bf16.msrb.mxu1 %v4640_v59 }
  0xc6   :  { %v5292_v12 = vadd.f32 %v2231_v11, %v2063_v8  ;;  %v1895_v15 = vpop.f32.mrf.mxu0 }
  0xc7   :  { %v1896_v17 = vadd.f32 %v5219_v14, %v1895_v15 }
  0xc8   :  { %v2064_v10 = vpop.f32.mrf.mxu1 }
  0xc9   :  { %v2065_v16 = vadd.f32 %v2064_v10, %v1896_v17 }
  0xcc   :  { %v5328_v30 = vpop.f32.mrf.mxu3 }
  0xcd   :  { %v2233_v31 = vpop.f32.mrf.mxu2 }
  0xce   :  { %v5330_v34 = vadd.f32 %v2233_v31, %v2065_v16  ;;  %v1898_v35 = vpop.f32.mrf.mxu0 }
  0xcf   :  { %v1899_v39 = vadd.f32 %v5219_v14, %v1898_v35 }
  0xd0   :  { %v2067_v41 = vpop.f32.mrf.mxu1 }
  0xd1   :  { %v2068_v42 = vadd.f32 %v2067_v41, %v1899_v39  ;;  %1937 = vmatmul.bf16.gmra.mxu0 %v3565_v32  ;;  %2186 = vmatmul.bf16.gmra.mxu3 %v4017_v33  ;;  %v3621_v32 = vor.u32 %v4468_v20, %v3620_v19  ;;  %v4073_v33 = vor.u32 %v4577_v23, %v4070_v25  ;;  %v4629_v25 = vld [vmem:[%s7022_s1 + $0xf8] sm:$0xff] }
  0xd2   :  { %2275 = vmatmul.bf16.gmra.mxu2 %v3573_v37  ;;  %v3625_v39 = vor.u32 %v4465_v28, %v3622_v22  ;;  %2381 = vmatpush.bf16.msrb.mxu3 %v4629_v25  ;;  %v4546_v25 = vld [vmem:[%s7024_s0 + $0x560] sm:$0xf0] }
  0xd3   :  { %2106 = vmatmul.bf16.gmra.mxu1 %v3569_v38  ;;  %v3629_v38 = vor.u32 %v4469_v27, %v3628_v26 }
  0xd4   :  { %v5333_v43 = vpop.f32.mrf.mxu3 }
  0xd5   :  { %v2236_v44 = vpop.f32.mrf.mxu2 }
  0xd6   :  { %v5335_v45 = vadd.f32 %v2236_v44, %v2068_v42  ;;  %v1900_v46 = vpop.f32.mrf.mxu0 }
  0xd7   :  { %v1901_v48 = vadd.f32 %v5219_v14, %v1900_v46 }
  0xd8   :  { %v2069_v50 = vpop.f32.mrf.mxu1 }
  0xd9   :  { %v2070_v51 = vadd.f32 %v2069_v50, %v1901_v48 }
  0xdc   :  { %v5362_v60 = vpop.f32.mrf.mxu3 }
  0xdd   :  { %v2238_v61 = vpop.f32.mrf.mxu2 }
  0xde   :  { %v5364_v2 = vadd.f32 %v2238_v61, %v2070_v51  ;;  %v1903_v5 = vpop.f32.mrf.mxu0  ;;  %v4584_v61 = vld [vmem:[%s7024_s0 + $0x694] sm:$0xf] }
  0xdf   :  { %v1904_v4 = vadd.f32 %v5219_v14, %v1903_v5  ;;  %v4476_v5 = vld [vmem:[%s7024_s0 + $0x330] sm:$0xf0] }
  0xe0   :  { %v2072_v7 = vpop.f32.mrf.mxu1 }
  0xe1   :  { %v2073_v8 = vadd.f32 %v2072_v7, %v1904_v4  ;;  %1942 = vmatmul.bf16.gmra.mxu0 %v3593_v63  ;;  %2191 = vmatmul.bf16.gmra.mxu3 %v4045_v0  ;;  %v4098_v63 = vld [vmem:[%s7024_s0 + $0x6ac] sm:$0xf0]  ;;  %v3656_v0 = vld [vmem:[%s7024_s0 + $0x318] sm:$0xf] }
  0xe2   :  { %2280 = vmatmul.bf16.gmra.mxu2 %v3601_v1  ;;  %v4472_v1 = vld [vmem:[%s7024_s0 + $0x314] sm:$0xf] }
  0xe3   :  { %2111 = vmatmul.bf16.gmra.mxu1 %v3597_v6  ;;  %v3650_v6 = vld [vmem:[%s7024_s0 + $0x32c] sm:$0xf0] }
  0xe4   :  { %v5367_v11 = vpop.f32.mrf.mxu3 }
  0xe5   :  { %v2241_v15 = vpop.f32.mrf.mxu2 }
  0xe6   :  { %v5369_v17 = vadd.f32 %v2241_v15, %v2073_v8  ;;  %v1905_v10 = vpop.f32.mrf.mxu0  ;;  %v3649_v8 = vor.u32 %v4475_v57, %v3648_v55  ;;  %v4101_v15 = vor.u32 %v4584_v61, %v4098_v63 }
  0xe7   :  { %v1906_v13 = vadd.f32 %v5219_v14, %v1905_v10 }
  0xe8   :  { %v2074_v18 = vpop.f32.mrf.mxu1 }
  0xe9   :  { %v2075_v16 = vadd.f32 %v2074_v18, %v1906_v13  ;;  %v3657_v18 = vor.u32 %v4476_v5, %v3656_v0  ;;  %v4628_v5 = vld [vmem:[%s7022_s1 + $0xf0] sm:$0xff] }
  0xea   :  { %2382 = vmatpush.bf16.msrb.mxu3 %v4628_v5 }
  0xec   :  { %v5396_v29 = vpop.f32.mrf.mxu3 }
  0xed   :  { %v2243_v31 = vpop.f32.mrf.mxu2 }
  0xee   :  { %v5398_v35 = vadd.f32 %v2243_v31, %v2075_v16  ;;  %v1908_v37 = vpop.f32.mrf.mxu0  ;;  %v3653_v16 = vor.u32 %v4472_v1, %v3650_v6 }
  0xef   :  { %v1909_v41 = vadd.f32 %v5219_v14, %v1908_v37  ;;  %v3676_v37 = vld [vmem:[%s7024_s0 + $0x348] sm:$0xf] }
  0xf0   :  { %v2077_v42 = vpop.f32.mrf.mxu1 }
  0xf1   :  { %v2078_v44 = vadd.f32 %v2077_v42, %v1909_v41  ;;  %1947 = vmatmul.bf16.gmra.mxu0 %v3621_v32  ;;  %2196 = vmatmul.bf16.gmra.mxu3 %v4073_v33  ;;  %v4126_v41 = vld [vmem:[%s7024_s0 + $0x6e4] sm:$0xf0]  ;;  %v3684_v42 = vld [vmem:[%s7024_s0 + $0x350] sm:$0xf] }
  0xf2   :  { %2285 = vmatmul.bf16.gmra.mxu2 %v3629_v38  ;;  %v4482_v38 = vld [vmem:[%s7024_s0 + $0x360] sm:$0xf0] }
  0xf3   :  { %2116 = vmatmul.bf16.gmra.mxu1 %v3625_v39  ;;  %v4591_v39 = vld [vmem:[%s7024_s0 + $0x6cc] sm:$0xf]  ;;  %v3677_v54 = vor.u32 %v4482_v38, %v3676_v37 }
  0xf4   :  { %v5401_v46 = vpop.f32.mrf.mxu3  ;;  %v4129_v55 = vor.u32 %v4591_v39, %v4126_v41 }
  0xf5   :  { %v2246_v48 = vpop.f32.mrf.mxu2 }
  0xf6   :  { %v5403_v50 = vadd.f32 %v2246_v48, %v2078_v44  ;;  %v1910_v51 = vpop.f32.mrf.mxu0  ;;  %v4483_v44 = vld [vmem:[%s7024_s0 + $0x368] sm:$0xf0] }
  0xf7   :  { %v1911_v52 = vadd.f32 %v5219_v14, %v1910_v51  ;;  %v4479_v48 = vld [vmem:[%s7024_s0 + $0x34c] sm:$0xf]  ;;  %v3678_v51 = vld [vmem:[%s7024_s0 + $0x364] sm:$0xf0]  ;;  %v3685_v58 = vor.u32 %v4483_v44, %v3684_v42 }
  0xf8   :  { %v2079_v53 = vpop.f32.mrf.mxu1  ;;  %v3681_v59 = vor.u32 %v4479_v48, %v3678_v51 }
  0xf9   :  { %v2080_v56 = vadd.f32 %v2079_v53, %v1911_v52 }
  0xfc   :  { %v5439_v4 = vpop.f32.mrf.mxu3 }
  0xfd   :  { %v2248_v7 = vpop.f32.mrf.mxu2 }
  0xfe   :  { %v5441_v10 = vadd.f32 %v2248_v7, %v2080_v56  ;;  %v1913_v13 = vpop.f32.mrf.mxu0 }
  0xff   :  { %v1914_v19 = vadd.f32 %v5219_v14, %v1913_v13 }
 0x100   :  { %v2082_v20 = vpop.f32.mrf.mxu1 }
 0x101   :  { %v2083_v23 = vadd.f32 %v2082_v20, %v1914_v19  ;;  %1952 = vmatmul.bf16.gmra.mxu0 %v3649_v8  ;;  %2201 = vmatmul.bf16.gmra.mxu3 %v4101_v15  ;;  %v4489_v19 = vld [vmem:[%s7024_s0 + $0x398] sm:$0xf0]  ;;  %v3712_v20 = vld [vmem:[%s7024_s0 + $0x388] sm:$0xf] }
 0x102   :  { %2290 = vmatmul.bf16.gmra.mxu2 %v3657_v18 }
 0x103   :  { %2121 = vmatmul.bf16.gmra.mxu1 %v3653_v16  ;;  %v3704_v16 = vld [vmem:[%s7024_s0 + $0x380] sm:$0xf] }
 0x104   :  { %v5447_v26 = vpop.f32.mrf.mxu3  ;;  %v3705_v37 = vor.u32 %v4489_v19, %v3704_v16  ;;  %v3740_v16 = vld [vmem:[%s7024_s0 + $0x3c0] sm:$0xf] }
 0x105   :  { %v2251_v27 = vpop.f32.mrf.mxu2  ;;  %v3964_v19 = vld [vmem:[%s7024_s0 + $0x580] sm:$0xf] }
 0x106   :  { %v5449_v28 = vadd.f32 %v2251_v27, %v2083_v23  ;;  %v1915_v22 = vpop.f32.mrf.mxu0  ;;  %v3936_v23 = vld [vmem:[%s7024_s0 + $0x548] sm:$0xf]  ;;  %v4490_v27 = vld [vmem:[%s7024_s0 + $0x3a0] sm:$0xf0] }
 0x107   :  { %v1916_v31 = vadd.f32 %v5219_v14, %v1915_v22  ;;  %v4486_v22 = vld [vmem:[%s7024_s0 + $0x384] sm:$0xf]  ;;  %v3937_v38 = vor.u32 %v4546_v25, %v3936_v23  ;;  %v3713_v42 = vor.u32 %v4490_v27, %v3712_v20  ;;  %v4553_v20 = vld [vmem:[%s7024_s0 + $0x598] sm:$0xf0]  ;;  %v2006_v23 = vadd.f32 %v5219_v14, %v5251_v36 }
 0x108   :  { %v2084_v32 = vpop.f32.mrf.mxu1  ;;  %v4497_v25 = vld [vmem:[%s7024_s0 + $0x3d8] sm:$0xf0]  ;;  %v3965_v36 = vor.u32 %v4553_v20, %v3964_v19  ;;  %v4560_v19 = vld [vmem:[%s7024_s0 + $0x5d0] sm:$0xf0]  ;;  %v2011_v20 = vadd.f32 %v5219_v14, %v5285_v62 }
 0x109   :  { %v2085_v33 = vadd.f32 %v2084_v32, %v1916_v31  ;;  %v3706_v31 = vld [vmem:[%s7024_s0 + $0x39c] sm:$0xf0]  ;;  %v4493_v27 = vld [vmem:[%s7024_s0 + $0x3bc] sm:$0xf] }
 0x10a   :  { %v3709_v44 = vor.u32 %v4486_v22, %v3706_v31  ;;  %v3734_v22 = vld [vmem:[%s7024_s0 + $0x3d4] sm:$0xf0] }
 0x10c   :  { %v5476_v52 = vpop.f32.mrf.mxu3 }
 0x10d   :  { %v2253_v53 = vpop.f32.mrf.mxu2 }
 0x10e   :  { %v5478_v56 = vadd.f32 %v2253_v53, %v2085_v33  ;;  %v1918_v57 = vpop.f32.mrf.mxu0 }
 0x10f   :  { %v1919_v61 = vadd.f32 %v5219_v14, %v1918_v57 }
 0x110   :  { %v2087_v63 = vpop.f32.mrf.mxu1 }
 0x111   :  { %v2088_v0 = vadd.f32 %v2087_v63, %v1919_v61  ;;  %1957 = vmatmul.bf16.gmra.mxu0 %v3677_v54  ;;  %2206 = vmatmul.bf16.gmra.mxu3 %v4129_v55  ;;  %v4627_v54 = vld [vmem:[%s7022_s1 + $0xe8] sm:$0xff]  ;;  %v2004_v55 = vadd.f32 %v5219_v14, %v5222_v21 }
 0x112   :  { %2295 = vmatmul.bf16.gmra.mxu2 %v3685_v58  ;;  %2383 = vmatpush.bf16.msrb.mxu3 %v4627_v54 }
 0x113   :  { %2126 = vmatmul.bf16.gmra.mxu1 %v3681_v59 }
 0x114   :  { %v5484_v1 = vpop.f32.mrf.mxu3 }
 0x115   :  { %v2256_v6 = vpop.f32.mrf.mxu2 }
 0x116   :  { %v5486_v7 = vadd.f32 %v2256_v6, %v2088_v0  ;;  %v1920_v8 = vpop.f32.mrf.mxu0  ;;  %v4647_v6 = vld [vmem:[%s7022_s1 + $0x188] sm:$0xff] }
 0x117   :  { %v1921_v15 = vadd.f32 %v5219_v14, %v1920_v8  ;;  %v3732_v8 = vld [vmem:[%s7024_s0 + $0x3b8] sm:$0xf]  ;;  %2894 = vmatpush.bf16.msrb.mxu2 %v4647_v6 }
 0x118   :  { %v2089_v13 = vpop.f32.mrf.mxu1 }
 0x119   :  { %v2090_v18 = vadd.f32 %v2089_v13, %v1921_v15  ;;  %v4496_v15 = vld [vmem:[%s7024_s0 + $0x3d0] sm:$0xf0]  ;;  %v4631_v13 = vld [vmem:[%s7022_s1 + $0x108] sm:$0xff] }
 0x11a   :  { %2556 = vmatpush.bf16.msrb.mxu0 %v4631_v13  ;;  %v3760_v13 = vld [vmem:[%s7024_s0 + $0x3f0] sm:$0xf] }
 0x11c   :  { %v5513_v32 = vpop.f32.mrf.mxu3 }
 0x11d   :  { %v2258_v33 = vpop.f32.mrf.mxu2 }
 0x11e   :  { %v5515_v39 = vadd.f32 %v2258_v33, %v2090_v18  ;;  %v1923_v41 = vpop.f32.mrf.mxu0  ;;  %v4639_v18 = vld [vmem:[%s7022_s1 + $0x148] sm:$0xff] }
 0x11f   :  { %v1924_v48 = vadd.f32 %v5219_v14, %v1923_v41  ;;  %2725 = vmatpush.bf16.msrb.mxu1 %v4639_v18  ;;  %v3768_v18 = vld [vmem:[%s7024_s0 + $0x3f8] sm:$0xf] }
 0x120   :  { %v2092_v51 = vpop.f32.mrf.mxu1 }
 0x121   :  { %v2093_v53 = vadd.f32 %v2092_v51, %v1924_v48  ;;  %1962 = vmatmul.bf16.gmra.mxu0 %v3705_v37  ;;  %2340 = vmatmul.bf16.vlgmr.msra.gmra.mxu3 %v3937_v38  ;;  %v3733_v38 = vor.u32 %v4496_v15, %v3732_v8  ;;  %v3737_v48 = vor.u32 %v4493_v27, %v3734_v22  ;;  %v3762_v27 = vld [vmem:[%s7024_s0 + $0x40c] sm:$0xf0] }
 0x122   :  { %2300 = vmatmul.bf16.gmra.mxu2 %v3713_v42 }
 0x123   :  { %2131 = vmatmul.bf16.gmra.mxu1 %v3709_v44  ;;  %v3741_v44 = vor.u32 %v4497_v25, %v3740_v16  ;;  %v3992_v16 = vld [vmem:[%s7024_s0 + $0x5b8] sm:$0xf]  ;;  %v4500_v25 = vld [vmem:[%s7024_s0 + $0x3f4] sm:$0xf] }
 0x124   :  { %v2172_v57 = vpop.f32.mrf.mxu3 }
 0x125   :  { %v5523_v58 = vadd.f32 %v2172_v57, %v2004_v55  ;;  %v2261_v59 = vpop.f32.mrf.mxu2  ;;  %v4626_v55 = vld [vmem:[%s7022_s1 + $0xe0] sm:$0xff]  ;;  %v2009_v57 = vadd.f32 %v5219_v14, %v5256_v47  ;;  %v4503_v47 = vld [vmem:[%s7024_s0 + $0x408] sm:$0xf0] }
 0x126   :  { %v5525_v61 = vadd.f32 %v2261_v59, %v2093_v53  ;;  %v1925_v63 = vpop.f32.mrf.mxu0  ;;  %2384 = vmatpush.bf16.msrb.mxu3 %v4626_v55  ;;  %v4625_v55 = vld [vmem:[%s7022_s1 + $0xd8] sm:$0xff] }
 0x127   :  { %v1926_v0 = vadd.f32 %v5219_v14, %v1925_v63 }
 0x128   :  { %v2094_v5 = vpop.f32.mrf.mxu1 }
 0x129   :  { %v2095_v21 = vadd.f32 %v2094_v5, %v1926_v0 }
 0x12a   :  { %2385 = vmatpush.bf16.msrb.mxu3 %v4625_v55 }
 0x12c   :  { %v2174_v31 = vpop.f32.mrf.mxu3 }
 0x12d   :  { %v5563_v33 = vadd.f32 %v2174_v31, %v2006_v23  ;;  %v2263_v37 = vpop.f32.mrf.mxu2  ;;  %v4504_v23 = vld [vmem:[%s7024_s0 + $0x410] sm:$0xf0] }
 0x12e   :  { %v5565_v41 = vadd.f32 %v2263_v37, %v2095_v21  ;;  %v1928_v42 = vpop.f32.mrf.mxu0 }
 0x12f   :  { %v1929_v51 = vadd.f32 %v5219_v14, %v1928_v42 }
 0x130   :  { %v2097_v53 = vpop.f32.mrf.mxu1 }
 0x131   :  { %v2098_v54 = vadd.f32 %v2097_v53, %v1929_v51  ;;  %1967 = vmatmul.bf16.gmra.mxu0 %v3733_v38  ;;  %2345 = vmatmul.bf16.gmra.mxu3 %v3965_v36  ;;  %v3761_v38 = vor.u32 %v4503_v47, %v3760_v13  ;;  %v3993_v36 = vor.u32 %v4560_v19, %v3992_v16  ;;  %v3796_v16 = vld [vmem:[%s7024_s0 + $0x430] sm:$0xf] }
 0x132   :  { %2305 = vmatmul.bf16.gmra.mxu2 %v3741_v44  ;;  %v3769_v44 = vor.u32 %v4504_v23, %v3768_v18  ;;  %v3788_v18 = vld [vmem:[%s7024_s0 + $0x428] sm:$0xf]  ;;  %v4020_v19 = vld [vmem:[%s7024_s0 + $0x5f0] sm:$0xf]  ;;  %v2016_v23 = vadd.f32 %v5219_v14, %v5328_v30 }
 0x133   :  { %2136 = vmatmul.bf16.gmra.mxu1 %v3737_v48  ;;  %v3765_v48 = vor.u32 %v4500_v25, %v3762_v27  ;;  %v4511_v25 = vld [vmem:[%s7024_s0 + $0x448] sm:$0xf0] }
 0x134   :  { %v2177_v59 = vpop.f32.mrf.mxu3  ;;  %v4507_v27 = vld [vmem:[%s7024_s0 + $0x42c] sm:$0xf] }
 0x135   :  { %v5573_v63 = vadd.f32 %v2177_v59, %v2009_v57  ;;  %v2266_v0 = vpop.f32.mrf.mxu2  ;;  %v2014_v57 = vadd.f32 %v5219_v14, %v5290_v9  ;;  %v4510_v9 = vld [vmem:[%s7024_s0 + $0x440] sm:$0xf0] }
 0x136   :  { %v5575_v5 = vadd.f32 %v2266_v0, %v2098_v54  ;;  %v1930_v6 = vpop.f32.mrf.mxu0 }
 0x137   :  { %v1931_v8 = vadd.f32 %v5219_v14, %v1930_v6 }
 0x138   :  { %v2099_v21 = vpop.f32.mrf.mxu1 }
 0x139   :  { %v2100_v15 = vadd.f32 %v2099_v21, %v1931_v8 }
 0x13c   :  { %v2179_v22 = vpop.f32.mrf.mxu3 }
 0x13d   :  { %v5604_v31 = vadd.f32 %v2179_v22, %v2011_v20  ;;  %v2268_v37 = vpop.f32.mrf.mxu2  ;;  %v4567_v20 = vld [vmem:[%s7024_s0 + $0x608] sm:$0xf0]  ;;  %v3790_v22 = vld [vmem:[%s7024_s0 + $0x444] sm:$0xf0] }
 0x13e   :  { %v5606_v42 = vadd.f32 %v2268_v37, %v2100_v15  ;;  %v1933_v62 = vpop.f32.mrf.mxu0 }
 0x13f   :  { %v1934_v51 = vadd.f32 %v5219_v14, %v1933_v62  ;;  %v3789_v62 = vor.u32 %v4510_v9, %v3788_v18 }
 0x140   :  { %v2102_v53 = vpop.f32.mrf.mxu1 }
 0x141   :  { %v2103_v54 = vadd.f32 %v2102_v53, %v1934_v51  ;;  %1972 = vmatmul.bf16.gmra.mxu0 %v3761_v38  ;;  %2350 = vmatmul.bf16.gmra.mxu3 %v3993_v36  ;;  %v3797_v51 = vor.u32 %v4511_v25, %v3796_v16  ;;  %v3793_v53 = vor.u32 %v4507_v27, %v3790_v22  ;;  %v4630_v25 = vld [vmem:[%s7022_s1 + $0x100] sm:$0xff]  ;;  %v3824_v22 = vld [vmem:[%s7024_s0 + $0x468] sm:$0xf] }
 0x142   :  { %2310 = vmatmul.bf16.gmra.mxu2 %v3769_v44  ;;  %v4021_v44 = vor.u32 %v4567_v20, %v4020_v19  ;;  %v4646_v19 = vld [vmem:[%s7022_s1 + $0x180] sm:$0xff]  ;;  %2557 = vmatpush.bf16.msrb.mxu0 %v4630_v25 }
 0x143   :  { %2141 = vmatmul.bf16.gmra.mxu1 %v3765_v48  ;;  %v3816_v20 = vld [vmem:[%s7024_s0 + $0x460] sm:$0xf]  ;;  %2895 = vmatpush.bf16.msrb.mxu2 %v4646_v19  ;;  %v4623_v19 = vld [vmem:[%s7022_s1 + $0xc8] sm:$0xff] }
 0x144   :  { %v2182_v59 = vpop.f32.mrf.mxu3  ;;  %v4638_v27 = vld [vmem:[%s7022_s1 + $0x140] sm:$0xff] }
 0x145   :  { %v5614_v0 = vadd.f32 %v2182_v59, %v2014_v57  ;;  %v2271_v6 = vpop.f32.mrf.mxu2  ;;  %v4624_v59 = vld [vmem:[%s7022_s1 + $0xd0] sm:$0xff]  ;;  %2726 = vmatpush.bf16.msrb.mxu1 %v4638_v27 }
 0x146   :  { %v5616_v8 = vadd.f32 %v2271_v6, %v2103_v54  ;;  %v1935_v21 = vpop.f32.mrf.mxu0  ;;  %v2019_v6 = vadd.f32 %v5219_v14, %v5333_v43  ;;  %2386 = vmatpush.bf16.msrb.mxu3 %v4624_v59 }
 0x147   :  { %v1936_v15 = vadd.f32 %v5219_v14, %v1935_v21 }
 0x148   :  { %v2104_v13 = vpop.f32.mrf.mxu1 }
 0x149   :  { %v2105_v47 = vadd.f32 %v2104_v13, %v1936_v15 }
 0x14a   :  { %2387 = vmatpush.bf16.msrb.mxu3 %v4623_v19 }
 0x14c   :  { %v2184_v37 = vpop.f32.mrf.mxu3 }
 0x14d   :  { %v5645_v38 = vadd.f32 %v2184_v37, %v2016_v23  ;;  %v2273_v36 = vpop.f32.mrf.mxu2  ;;  %v4517_v23 = vld [vmem:[%s7024_s0 + $0x478] sm:$0xf0]  ;;  %v4048_v37 = vld [vmem:[%s7024_s0 + $0x628] sm:$0xf] }
 0x14e   :  { %v5647_v48 = vadd.f32 %v2273_v36, %v2105_v47  ;;  %v1938_v30 = vpop.f32.mrf.mxu0  ;;  %v4574_v36 = vld [vmem:[%s7024_s0 + $0x640] sm:$0xf0] }
 0x14f   :  { %v1939_v54 = vadd.f32 %v5219_v14, %v1938_v30  ;;  %v4514_v30 = vld [vmem:[%s7024_s0 + $0x464] sm:$0xf] }
 0x150   :  { %v2107_v55 = vpop.f32.mrf.mxu1 }
 0x151   :  { %v2108_v57 = vadd.f32 %v2107_v55, %v1939_v54  ;;  %1977 = vmatmul.bf16.gmra.mxu0 %v3789_v62  ;;  %2355 = vmatmul.bf16.gmra.mxu3 %v4021_v44  ;;  %v2021_v62 = vadd.f32 %v5219_v14, %v5362_v60  ;;  %v4518_v44 = vld [vmem:[%s7024_s0 + $0x480] sm:$0xf0]  ;;  %v4049_v60 = vor.u32 %v4574_v36, %v4048_v37 }
 0x152   :  { %2315 = vmatmul.bf16.gmra.mxu2 %v3797_v51  ;;  %v3818_v51 = vld [vmem:[%s7024_s0 + $0x47c] sm:$0xf0] }
 0x153   :  { %2146 = vmatmul.bf16.gmra.mxu1 %v3793_v53 }
 0x154   :  { %v2187_v21 = vpop.f32.mrf.mxu3 }
 0x155   :  { %v5655_v15 = vadd.f32 %v2187_v21, %v2019_v6  ;;  %v2276_v13 = vpop.f32.mrf.mxu2  ;;  %v3825_v21 = vor.u32 %v4518_v44, %v3824_v22  ;;  %v3844_v44 = vld [vmem:[%s7024_s0 + $0x498] sm:$0xf] }
 0x156   :  { %v5657_v47 = vadd.f32 %v2276_v13, %v2108_v57  ;;  %v1940_v18 = vpop.f32.mrf.mxu0  ;;  %v3817_v57 = vor.u32 %v4517_v23, %v3816_v20  ;;  %v3821_v13 = vor.u32 %v4514_v30, %v3818_v51  ;;  %v2024_v20 = vadd.f32 %v5219_v14, %v5367_v11  ;;  %v4524_v11 = vld [vmem:[%s7024_s0 + $0x4b0] sm:$0xf0]  ;;  %v3852_v30 = vld [vmem:[%s7024_s0 + $0x4a0] sm:$0xf] }
 0x157   :  { %v1941_v9 = vadd.f32 %v5219_v14, %v1940_v18  ;;  %v4076_v51 = vld [vmem:[%s7024_s0 + $0x660] sm:$0xf] }
 0x158   :  { %v2109_v16 = vpop.f32.mrf.mxu1 }
 0x159   :  { %v2110_v43 = vadd.f32 %v2109_v16, %v1941_v9 }
 0x15c   :  { %v2189_v53 = vpop.f32.mrf.mxu3 }
 0x15d   :  { %v5695_v54 = vadd.f32 %v2189_v53, %v2021_v62  ;;  %v2278_v55 = vpop.f32.mrf.mxu2  ;;  %v4581_v53 = vld [vmem:[%s7024_s0 + $0x678] sm:$0xf0] }
 0x15e   :  { %v5697_v59 = vadd.f32 %v2278_v55, %v2110_v43  ;;  %v1943_v6 = vpop.f32.mrf.mxu0  ;;  %v2026_v55 = vadd.f32 %v5219_v14, %v5396_v29 }
 0x15f   :  { %v1944_v18 = vadd.f32 %v5219_v14, %v1943_v6  ;;  %v3846_v6 = vld [vmem:[%s7024_s0 + $0x4b4] sm:$0xf0] }
 0x160   :  { %v2112_v9 = vpop.f32.mrf.mxu1 }
 0x161   :  { %v2113_v16 = vadd.f32 %v2112_v9, %v1944_v18  ;;  %1982 = vmatmul.bf16.gmra.mxu0 %v3817_v57  ;;  %2360 = vmatmul.bf16.gmra.mxu3 %v4049_v60  ;;  %v4525_v57 = vld [vmem:[%s7024_s0 + $0x4b8] sm:$0xf0]  ;;  %v3845_v9 = vor.u32 %v4524_v11, %v3844_v44  ;;  %v2029_v44 = vadd.f32 %v5219_v14, %v5401_v46  ;;  %v4531_v46 = vld [vmem:[%s7024_s0 + $0x4e8] sm:$0xf0] }
 0x162   :  { %2320 = vmatmul.bf16.gmra.mxu2 %v3825_v21  ;;  %v4521_v60 = vld [vmem:[%s7024_s0 + $0x49c] sm:$0xf] }
 0x163   :  { %2151 = vmatmul.bf16.gmra.mxu1 %v3821_v13 }
 0x164   :  { %v2192_v43 = vpop.f32.mrf.mxu3 }
 0x165   :  { %v5705_v23 = vadd.f32 %v2192_v43, %v2024_v20  ;;  %v2281_v25 = vpop.f32.mrf.mxu2  ;;  %v3853_v20 = vor.u32 %v4525_v57, %v3852_v30  ;;  %v3849_v43 = vor.u32 %v4521_v60, %v3846_v6  ;;  %v3872_v6 = vld [vmem:[%s7024_s0 + $0x4d0] sm:$0xf] }
 0x166   :  { %v5707_v27 = vadd.f32 %v2281_v25, %v2113_v16  ;;  %v1945_v22 = vpop.f32.mrf.mxu0  ;;  %v4077_v16 = vor.u32 %v4581_v53, %v4076_v51 }
 0x167   :  { %v1946_v37 = vadd.f32 %v5219_v14, %v1945_v22 }
 0x168   :  { %7026 = vst [vmem:[#allocation2_spill] sm:$0xff] %v5707_v27  ;;  %v2114_v36 = vpop.f32.mrf.mxu1 }
 0x169   :  { %v2115_v62 = vadd.f32 %v2114_v36, %v1946_v37  ;;  %v4622_v36 = vld [vmem:[%s7022_s1 + $0xc0] sm:$0xff] }
 0x16a   :  { %2388 = vmatpush.bf16.msrb.mxu3 %v4622_v36  ;;  %v3873_v36 = vor.u32 %v4531_v46, %v3872_v6 }
 0x16c   :  { %v2194_v21 = vpop.f32.mrf.mxu3 }
 0x16d   :  { %v5736_v13 = vadd.f32 %v2194_v21, %v2026_v55  ;;  %v2283_v18 = vpop.f32.mrf.mxu2  ;;  %v3880_v21 = vld [vmem:[%s7024_s0 + $0x4d8] sm:$0xf] }
 0x16e   :  { %v5738_v19 = vadd.f32 %v2283_v18, %v2115_v62  ;;  %v1948_v29 = vpop.f32.mrf.mxu0  ;;  %v4104_v18 = vld [vmem:[%s7024_s0 + $0x698] sm:$0xf] }
 0x16f   :  { %v1949_v25 = vadd.f32 %v5219_v14, %v1948_v29  ;;  %v4532_v29 = vld [vmem:[%s7024_s0 + $0x4f0] sm:$0xf0] }
 0x170   :  { %7027 = vst [vmem:[#allocation3_spill] sm:$0xff] %v5738_v19  ;;  %v2117_v22 = vpop.f32.mrf.mxu1 }
 0x171   :  { %v2118_v37 = vadd.f32 %v2117_v22, %v1949_v25  ;;  %1987 = vmatmul.bf16.gmra.mxu0 %v3845_v9  ;;  %2365 = vmatmul.bf16.gmra.mxu3 %v4077_v16  ;;  %v4588_v9 = vld [vmem:[%s7024_s0 + $0x6b0] sm:$0xf0]  ;;  %v2031_v16 = vadd.f32 %v5219_v14, %v5439_v4 }
 0x172   :  { %2325 = vmatmul.bf16.gmra.mxu2 %v3853_v20  ;;  %v4528_v20 = vld [vmem:[%s7024_s0 + $0x4d4] sm:$0xf] }
 0x173   :  { %2156 = vmatmul.bf16.gmra.mxu1 %v3849_v43  ;;  %v3874_v43 = vld [vmem:[%s7024_s0 + $0x4ec] sm:$0xf0] }
 0x174   :  { %v2197_v62 = vpop.f32.mrf.mxu3 }
 0x175   :  { %v5746_v11 = vadd.f32 %v2197_v62, %v2029_v44  ;;  %v2286_v30 = vpop.f32.mrf.mxu2  ;;  %v4105_v44 = vor.u32 %v4588_v9, %v4104_v18 }
 0x176   :  { %v5748_v51 = vadd.f32 %v2286_v30, %v2118_v37  ;;  %v1950_v53 = vpop.f32.mrf.mxu0  ;;  %v3881_v30 = vor.u32 %v4532_v29, %v3880_v21  ;;  %v3900_v29 = vld [vmem:[%s7024_s0 + $0x508] sm:$0xf] }
 0x177   :  { %v1951_v55 = vadd.f32 %v5219_v14, %v1950_v53  ;;  %v3877_v53 = vor.u32 %v4528_v20, %v3874_v43  ;;  %v4538_v20 = vld [vmem:[%s7024_s0 + $0x520] sm:$0xf0]  ;;  %v4595_v43 = vld [vmem:[%s7024_s0 + $0x6e8] sm:$0xf0] }
 0x178   :  { %7028 = vst [vmem:[#allocation4_spill] sm:$0xff] %v5748_v51  ;;  %v2119_v57 = vpop.f32.mrf.mxu1 }
 0x179   :  { %v2120_v60 = vadd.f32 %v2119_v57, %v1951_v55 }
 0x17c   :  { %v2199_v25 = vpop.f32.mrf.mxu3 }
 0x17d   :  { %v5777_v22 = vadd.f32 %v2199_v25, %v2031_v16  ;;  %v2288_v37 = vpop.f32.mrf.mxu2  ;;  %v2034_v16 = vadd.f32 %v5219_v14, %v5447_v26  ;;  %v3908_v26 = vld [vmem:[%s7024_s0 + $0x510] sm:$0xf] }
 0x17e   :  { %v5779_v62 = vadd.f32 %v2288_v37, %v2120_v60  ;;  %v1953_v4 = vpop.f32.mrf.mxu0  ;;  %v2036_v37 = vadd.f32 %v5219_v14, %v5476_v52 }
 0x17f   :  { %v1954_v55 = vadd.f32 %v5219_v14, %v1953_v4  ;;  %v3902_v4 = vld [vmem:[%s7024_s0 + $0x524] sm:$0xf0] }
 0x180   :  { %7029 = vst [vmem:[#allocation5_spill] sm:$0xff] %v5779_v62  ;;  %v2122_v57 = vpop.f32.mrf.mxu1 }
 0x181   :  { %v2123_v51 = vadd.f32 %v2122_v57, %v1954_v55  ;;  %1992 = vmatmul.bf16.gmra.mxu0 %v3873_v36  ;;  %2370 = vmatmul.bf16.gmra.mxu3 %v4105_v44  ;;  %v4539_v36 = vld [vmem:[%s7024_s0 + $0x528] sm:$0xf0]  ;;  %v3901_v57 = vor.u32 %v4538_v20, %v3900_v29 }
 0x182   :  { %2330 = vmatmul.bf16.gmra.mxu2 %v3881_v30  ;;  %v4535_v44 = vld [vmem:[%s7024_s0 + $0x50c] sm:$0xf]  ;;  %v3909_v52 = vor.u32 %v4539_v36, %v3908_v26 }
 0x183   :  { %2161 = vmatmul.bf16.gmra.mxu1 %v3877_v53 }
 0x184   :  { %v2202_v25 = vpop.f32.mrf.mxu3 }
 0x185   :  { %v5784_v19 = vadd.f32 %v2202_v25, %v2034_v16  ;;  %v2291_v6 = vpop.f32.mrf.mxu2 }
 0x186   :  { %v5786_v60 = vadd.f32 %v2291_v6, %v2123_v51  ;;  %v1955_v46 = vpop.f32.mrf.mxu0  ;;  %v4132_v51 = vld [vmem:[%s7024_s0 + $0x6d0] sm:$0xf]  ;;  %v3905_v6 = vor.u32 %v4535_v44, %v3902_v4  ;;  %v4375_v4 = vld [vmem:[%s7024_s0 + $0xc] sm:$0xf] }
 0x187   :  { %v1956_v21 = vadd.f32 %v5219_v14, %v1955_v46  ;;  %v4133_v16 = vor.u32 %v4595_v43, %v4132_v51  ;;  %v5822_v46 = vld [vmem:[%s7023_s2] ss:$0 sm:$0xff] }
 0x188   :  { %7030 = vst [vmem:[#allocation6_spill] sm:$0xff] %v5786_v60  ;;  %v2124_v18 = vpop.f32.mrf.mxu1 }
 0x189   :  { %v2125_v9 = vadd.f32 %v2124_v18, %v1956_v21 }
 0x18c   :  { %v2204_v30 = vpop.f32.mrf.mxu3 }
 0x18d   :  { %v5815_v53 = vadd.f32 %v2204_v30, %v2036_v37  ;;  %v2293_v55 = vpop.f32.mrf.mxu2  ;;  %v3266_v30 = vld [vmem:[%s7024_s0 + $0x24] sm:$0xf0] }
 0x18e   :  { %v5817_v25 = vadd.f32 %v2293_v55, %v2125_v9  ;;  %v1958_v14 = vpop.f32.mrf.mxu0  ;;  %v2039_v9 = vadd.f32 %v5822_v46, %v5484_v1  ;;  %v3272_v1 = vld [vmem:[%s7024_s0 + $0x10] sm:$0xf]  ;;  %v3280_v55 = vld [vmem:[%s7024_s0 + $0x18] sm:$0xf] }
 0x18f   :  { %v1959_v21 = vadd.f32 %v5822_v46, %v1958_v14  ;;  %v4376_v14 = vld [vmem:[%s7024_s0 + $0x14] sm:$0xf] }
 0x190   :  { %7031 = vst [vmem:[#allocation7_spill] sm:$0xff] %v5817_v25  ;;  %v2127_v18 = vpop.f32.mrf.mxu1 }
 0x191   :  { %v2128_v60 = vadd.f32 %v2127_v18, %v1959_v21  ;;  %1997 = vmatmul.bf16.gmra.mxu0 %v3901_v57  ;;  %2375 = vmatmul.bf16.gmra.mxu3 %v4133_v16  ;;  %v2041_v57 = vadd.f32 %v5822_v46, %v5513_v32  ;;  %v4380_v16 = vld [vmem:[%s7024_s0 + $0x30] sm:$0xf0] }
 0x192   :  { %2335 = vmatmul.bf16.gmra.mxu2 %v3909_v52  ;;  %v3274_v52 = vld [vmem:[%s7024_s0 + $0x2c] sm:$0xf0] }
 0x193   :  { %2166 = vmatmul.bf16.gmra.mxu1 %v3905_v6 }
 0x194   :  { %v2207_v29 = vpop.f32.mrf.mxu3 }
 0x195   :  { %v5827_v20 = vadd.f32 %v2207_v29, %v2039_v9  ;;  %v2296_v26 = vpop.f32.mrf.mxu2  ;;  %v3269_v9 = vor.u32 %v4375_v4, %v3266_v30 }
 0x196   :  { %v5829_v51 = vadd.f32 %v2296_v26, %v2128_v60  ;;  %v1960_v43 = vpop.f32.mrf.mxu0  ;;  %v4379_v60 = vld [vmem:[%s7024_s0 + $0x28] sm:$0xf0] }
 0x197   :  { %v1961_v37 = vadd.f32 %v5822_v46, %v1960_v43  ;;  %v3273_v29 = vor.u32 %v4379_v60, %v3272_v1  ;;  %v3281_v43 = vor.u32 %v4380_v16, %v3280_v55  ;;  %v3294_v55 = vld [vmem:[%s7024_s0 + $0x5c] sm:$0xf0]  ;;  %v4383_v16 = vld [vmem:[%s7024_s0 + $0x4c] sm:$0xf] }
 0x198   :  { %7032 = vst [vmem:[#allocation8_spill] sm:$0xff] %v5829_v51  ;;  %v2129_v36 = vpop.f32.mrf.mxu1 }
 0x199   :  { %v2130_v44 = vadd.f32 %v2129_v36, %v1961_v37  ;;  %v3277_v37 = vor.u32 %v4376_v14, %v3274_v52  ;;  %v3302_v14 = vld [vmem:[%s7024_s0 + $0x64] sm:$0xf0] }
 0x19c   :  { %v2209_v6 = vpop.f32.mrf.mxu3 }
 0x19d   :  { %v5858_v21 = vadd.f32 %v2209_v6, %v2041_v57  ;;  %v2298_v18 = vpop.f32.mrf.mxu2 }
 0x19e   :  { %v5860_v26 = vadd.f32 %v2298_v18, %v2130_v44  ;;  %v1963_v32 = vpop.f32.mrf.mxu0 }
 0x19f   :  { %v1964_v36 = vadd.f32 %v5822_v46, %v1963_v32 }
 0x1a0   :  { %v2132_v51 = vpop.f32.mrf.mxu1 }
 0x1a1   :  { %v2133_v25 = vadd.f32 %v2132_v51, %v1964_v36  ;;  %2389 = vmatmul.bf16.vlgmr.msrb.gmra.mxu3 %v3269_v9  ;;  %2558 = vmatmul.bf16.vlgmr.msrb.gmra.mxu0 %v3273_v29  ;;  %v4382_v51 = vld [vmem:[%s7024_s0 + $0x44] sm:$0xf]  ;;  %v3305_v36 = vor.u32 %v4383_v16, %v3302_v14 }
 0x1a2   :  { %2896 = vmatmul.bf16.vlgmr.msrb.gmra.mxu2 %v3281_v43  ;;  %v3297_v9 = vor.u32 %v4382_v51, %v3294_v55  ;;  %v4394_v16 = vld [vmem:[%s7024_s0 + $0xa0] sm:$0xf0] }
 0x1a3   :  { %2727 = vmatmul.bf16.vlgmr.msrb.gmra.mxu1 %v3277_v37  ;;  %v4390_v14 = vld [vmem:[%s7024_s0 + $0x84] sm:$0xf] }
 0x1a4   :  { %v2341_v62 = vpop.f32.mrf.mxu3 }
 0x1a5   :  { %v2301_v27 = vpop.f32.mrf.mxu2  ;;  %v5864_v57 = vadd.f32 %v2341_v62, %v5523_v58  ;;  %v3300_v58 = vld [vmem:[%s7024_s0 + $0x48] sm:$0xf]  ;;  %v3308_v62 = vld [vmem:[%s7024_s0 + $0x50] sm:$0xf] }
 0x1a6   :  { %v5866_v4 = vadd.f32 %v2301_v27, %v2133_v25  ;;  %v1965_v44 = vpop.f32.mrf.mxu0  ;;  %v4386_v27 = vld [vmem:[%s7024_s0 + $0x60] sm:$0xf0]  ;;  %v4387_v25 = vld [vmem:[%s7024_s0 + $0x68] sm:$0xf0] }
 0x1a7   :  { %7033 = vst [vmem:[#allocation9_spill] sm:$0xff] %v5864_v57  ;;  %v1966_v30 = vadd.f32 %v5822_v46, %v1965_v44  ;;  %v3301_v29 = vor.u32 %v4386_v27, %v3300_v58  ;;  %v3309_v37 = vor.u32 %v4387_v25, %v3308_v62  ;;  %v4389_v62 = vld [vmem:[%s7024_s0 + $0x7c] sm:$0xf]  ;;  %v3322_v25 = vld [vmem:[%s7024_s0 + $0x94] sm:$0xf0] }
 0x1a8   :  { %7034 = vst [vmem:[#allocation10_spill] sm:$0xff] %v5866_v4  ;;  %v2134_v1 = vpop.f32.mrf.mxu1 }
 0x1a9   :  { %v2135_v60 = vadd.f32 %v2134_v1, %v1966_v30 }
 0x1ac   :  { %v2343_v52 = vpop.f32.mrf.mxu3 }
 0x1ad   :  { %v2303_v6 = vpop.f32.mrf.mxu2  ;;  %v5894_v18 = vadd.f32 %v2343_v52, %v5563_v33  ;;  %v3330_v52 = vld [vmem:[%s7024_s0 + $0x9c] sm:$0xf0] }
 0x1ae   :  { %v5896_v32 = vadd.f32 %v2303_v6, %v2135_v60  ;;  %v1968_v43 = vpop.f32.mrf.mxu0 }
 0x1af   :  { %7035 = vst [vmem:[#allocation11_spill] sm:$0xff] %v5894_v18  ;;  %v1969_v44 = vadd.f32 %v5822_v46, %v1968_v43  ;;  %v3325_v43 = vor.u32 %v4389_v62, %v3322_v25 }
 0x1b0   :  { %v2137_v30 = vpop.f32.mrf.mxu1 }
 0x1b1   :  { %v2138_v1 = vadd.f32 %v2137_v30, %v1969_v44  ;;  %2394 = vmatmul.bf16.gmra.mxu3 %v3297_v9  ;;  %2563 = vmatmul.bf16.gmra.mxu0 %v3301_v29 }
 0x1b2   :  { %2901 = vmatmul.bf16.gmra.mxu2 %v3309_v37 }
 0x1b3   :  { %2732 = vmatmul.bf16.gmra.mxu1 %v3305_v36 }
 0x1b4   :  { %v2346_v57 = vpop.f32.mrf.mxu3 }
 0x1b5   :  { %v2306_v4 = vpop.f32.mrf.mxu2  ;;  %v5900_v33 = vadd.f32 %v2346_v57, %v5573_v63  ;;  %v3328_v63 = vld [vmem:[%s7024_s0 + $0x80] sm:$0xf]  ;;  %v4393_v57 = vld [vmem:[%s7024_s0 + $0x98] sm:$0xf0] }
 0x1b6   :  { %v5902_v51 = vadd.f32 %v2306_v4, %v2138_v1  ;;  %v1970_v60 = vpop.f32.mrf.mxu0  ;;  %v3336_v4 = vld [vmem:[%s7024_s0 + $0x88] sm:$0xf]  ;;  %v3329_v37 = vor.u32 %v4393_v57, %v3328_v63  ;;  %v3333_v1 = vor.u32 %v4390_v14, %v3330_v52  ;;  %v4401_v14 = vld [vmem:[%s7024_s0 + $0xd8] sm:$0xf0] }
 0x1b7   :  { %7036 = vst [vmem:[#allocation12_spill] sm:$0xff] %v5900_v33  ;;  %v1971_v55 = vadd.f32 %v5822_v46, %v1970_v60  ;;  %v3337_v30 = vor.u32 %v4394_v16, %v3336_v4  ;;  %v4396_v4 = vld [vmem:[%s7024_s0 + $0xb4] sm:$0xf]  ;;  %v3350_v16 = vld [vmem:[%s7024_s0 + $0xcc] sm:$0xf0] }
 0x1b8   :  { %v2139_v58 = vpop.f32.mrf.mxu1  ;;  %v4397_v52 = vld [vmem:[%s7024_s0 + $0xbc] sm:$0xf] }
 0x1b9   :  { %v2140_v27 = vadd.f32 %v2139_v58, %v1971_v55 }
 0x1bc   :  { %v2348_v6 = vpop.f32.mrf.mxu3 }
 0x1bd   :  { %v2308_v9 = vpop.f32.mrf.mxu2  ;;  %v5930_v29 = vadd.f32 %v2348_v6, %v5604_v31  ;;  %v3358_v6 = vld [vmem:[%s7024_s0 + $0xd4] sm:$0xf0] }
 0x1be   :  { %v5932_v36 = vadd.f32 %v2308_v9, %v2140_v27  ;;  %v1973_v44 = vpop.f32.mrf.mxu0 }
 0x1bf   :  { %7037 = vst [vmem:[#allocation13_spill] sm:$0xff] %v5930_v29  ;;  %v1974_v60 = vadd.f32 %v5822_v46, %v1973_v44  ;;  %v3353_v44 = vor.u32 %v4396_v4, %v3350_v16 }
 0x1c0   :  { %v2142_v55 = vpop.f32.mrf.mxu1 }
 0x1c1   :  { %v2143_v58 = vadd.f32 %v2142_v55, %v1974_v60  ;;  %2399 = vmatmul.bf16.gmra.mxu3 %v3325_v43  ;;  %2568 = vmatmul.bf16.gmra.mxu0 %v3329_v37 }
 0x1c2   :  { %2906 = vmatmul.bf16.gmra.mxu2 %v3337_v30 }
 0x1c3   :  { %2737 = vmatmul.bf16.gmra.mxu1 %v3333_v1 }
 0x1c4   :  { %v2351_v33 = vpop.f32.mrf.mxu3 }
 0x1c5   :  { %v2311_v18 = vpop.f32.mrf.mxu2  ;;  %v5936_v31 = vadd.f32 %v2351_v33, %v5614_v0  ;;  %v3356_v0 = vld [vmem:[%s7024_s0 + $0xb8] sm:$0xf]  ;;  %v3364_v33 = vld [vmem:[%s7024_s0 + $0xc0] sm:$0xf] }
 0x1c6   :  { %v5938_v62 = vadd.f32 %v2311_v18, %v2143_v58  ;;  %v1975_v27 = vpop.f32.mrf.mxu0  ;;  %v4400_v18 = vld [vmem:[%s7024_s0 + $0xd0] sm:$0xf0]  ;;  %v3365_v55 = vor.u32 %v4401_v14, %v3364_v33  ;;  %v3361_v58 = vor.u32 %v4397_v52, %v3358_v6  ;;  %v4403_v33 = vld [vmem:[%s7024_s0 + $0xec] sm:$0xf]  ;;  %v3378_v14 = vld [vmem:[%s7024_s0 + $0x104] sm:$0xf0] }
 0x1c7   :  { %7038 = vst [vmem:[#allocation14_spill] sm:$0xff] %v5936_v31  ;;  %v1976_v25 = vadd.f32 %v5822_v46, %v1975_v27  ;;  %v3357_v30 = vor.u32 %v4400_v18, %v3356_v0  ;;  %v4408_v52 = vld [vmem:[%s7024_s0 + $0x110] sm:$0xf0] }
 0x1c8   :  { %v2144_v63 = vpop.f32.mrf.mxu1  ;;  %v4404_v6 = vld [vmem:[%s7024_s0 + $0xf4] sm:$0xf] }
 0x1c9   :  { %v2145_v57 = vadd.f32 %v2144_v63, %v1976_v25 }
 0x1cc   :  { %v2353_v9 = vpop.f32.mrf.mxu3 }
 0x1cd   :  { %v2313_v43 = vpop.f32.mrf.mxu2  ;;  %v5966_v37 = vadd.f32 %v2353_v9, %v5645_v38  ;;  %v3386_v9 = vld [vmem:[%s7024_s0 + $0x10c] sm:$0xf0] }
 0x1ce   :  { %v5968_v1 = vadd.f32 %v2313_v43, %v2145_v57  ;;  %v1978_v60 = vpop.f32.mrf.mxu0 }
 0x1cf   :  { %7039 = vst [vmem:[#allocation15_spill] sm:$0xff] %v5966_v37  ;;  %v1979_v27 = vadd.f32 %v5822_v46, %v1978_v60  ;;  %v3381_v60 = vor.u32 %v4403_v33, %v3378_v14 }
 0x1d0   :  { %v2147_v25 = vpop.f32.mrf.mxu1 }
 0x1d1   :  { %v2148_v63 = vadd.f32 %v2147_v25, %v1979_v27  ;;  %2404 = vmatmul.bf16.gmra.mxu3 %v3353_v44  ;;  %2573 = vmatmul.bf16.gmra.mxu0 %v3357_v30 }
 0x1d2   :  { %2911 = vmatmul.bf16.gmra.mxu2 %v3365_v55 }
 0x1d3   :  { %2742 = vmatmul.bf16.gmra.mxu1 %v3361_v58 }
 0x1d4   :  { %v2356_v31 = vpop.f32.mrf.mxu3 }
 0x1d5   :  { %v2316_v29 = vpop.f32.mrf.mxu2  ;;  %v5972_v38 = vadd.f32 %v2356_v31, %v5655_v15  ;;  %v3384_v15 = vld [vmem:[%s7024_s0 + $0xf0] sm:$0xf]  ;;  %v3392_v31 = vld [vmem:[%s7024_s0 + $0xf8] sm:$0xf] }
 0x1d6   :  { %v5974_v4 = vadd.f32 %v2316_v29, %v2148_v63  ;;  %v1980_v57 = vpop.f32.mrf.mxu0  ;;  %v4407_v29 = vld [vmem:[%s7024_s0 + $0x108] sm:$0xf0]  ;;  %v3393_v25 = vor.u32 %v4408_v52, %v3392_v31  ;;  %v3389_v63 = vor.u32 %v4404_v6, %v3386_v9  ;;  %v4410_v31 = vld [vmem:[%s7024_s0 + $0x124] sm:$0xf]  ;;  %v3406_v52 = vld [vmem:[%s7024_s0 + $0x13c] sm:$0xf0] }
 0x1d7   :  { %7040 = vst [vmem:[#allocation16_spill] sm:$0xff] %v5972_v38  ;;  %v1981_v16 = vadd.f32 %v5822_v46, %v1980_v57  ;;  %v3385_v55 = vor.u32 %v4407_v29, %v3384_v15  ;;  %v4415_v6 = vld [vmem:[%s7024_s0 + $0x148] sm:$0xf0] }
 0x1d8   :  { %v2149_v0 = vpop.f32.mrf.mxu1  ;;  %v4411_v9 = vld [vmem:[%s7024_s0 + $0x12c] sm:$0xf] }
 0x1d9   :  { %v2150_v18 = vadd.f32 %v2149_v0, %v1981_v16 }
 0x1dc   :  { %v2358_v43 = vpop.f32.mrf.mxu3 }
 0x1dd   :  { %v2318_v44 = vpop.f32.mrf.mxu2  ;;  %v6002_v30 = vadd.f32 %v2358_v43, %v5695_v54  ;;  %v3414_v43 = vld [vmem:[%s7024_s0 + $0x144] sm:$0xf0] }
 0x1de   :  { %v6004_v58 = vadd.f32 %v2318_v44, %v2150_v18  ;;  %v1983_v27 = vpop.f32.mrf.mxu0 }
 0x1df   :  { %7041 = vst [vmem:[#allocation17_spill] sm:$0xff] %v6002_v30  ;;  %v1984_v57 = vadd.f32 %v5822_v46, %v1983_v27  ;;  %v3409_v27 = vor.u32 %v4410_v31, %v3406_v52 }
 0x1e0   :  { %v2152_v16 = vpop.f32.mrf.mxu1 }
 0x1e1   :  { %v2153_v0 = vadd.f32 %v2152_v16, %v1984_v57  ;;  %2409 = vmatmul.bf16.gmra.mxu3 %v3381_v60  ;;  %2578 = vmatmul.bf16.gmra.mxu0 %v3385_v55 }
 0x1e2   :  { %2916 = vmatmul.bf16.gmra.mxu2 %v3393_v25 }
 0x1e3   :  { %2747 = vmatmul.bf16.gmra.mxu1 %v3389_v63 }
 0x1e4   :  { %v2361_v38 = vpop.f32.mrf.mxu3 }
 0x1e5   :  { %v2321_v37 = vpop.f32.mrf.mxu2  ;;  %v6008_v54 = vadd.f32 %v2361_v38, %v5705_v23  ;;  %v3412_v23 = vld [vmem:[%s7024_s0 + $0x128] sm:$0xf]  ;;  %v3420_v38 = vld [vmem:[%s7024_s0 + $0x130] sm:$0xf] }
 0x1e6   :  { %v6010_v33 = vadd.f32 %v2321_v37, %v2153_v0  ;;  %v1985_v18 = vpop.f32.mrf.mxu0  ;;  %v4414_v37 = vld [vmem:[%s7024_s0 + $0x140] sm:$0xf0]  ;;  %v3421_v16 = vor.u32 %v4415_v6, %v3420_v38  ;;  %v3417_v0 = vor.u32 %v4411_v9, %v3414_v43  ;;  %v4417_v38 = vld [vmem:[%s7024_s0 + $0x15c] sm:$0xf]  ;;  %v3434_v6 = vld [vmem:[%s7024_s0 + $0x174] sm:$0xf0] }
 0x1e7   :  { %7042 = vst [vmem:[#allocation18_spill] sm:$0xff] %v6008_v54  ;;  %v1986_v14 = vadd.f32 %v5822_v46, %v1985_v18  ;;  %v3413_v25 = vor.u32 %v4414_v37, %v3412_v23  ;;  %v4422_v9 = vld [vmem:[%s7024_s0 + $0x180] sm:$0xf0] }
 0x1e8   :  { %v2154_v15 = vpop.f32.mrf.mxu1  ;;  %v4418_v43 = vld [vmem:[%s7024_s0 + $0x164] sm:$0xf] }
 0x1e9   :  { %v2155_v29 = vadd.f32 %v2154_v15, %v1986_v14 }
 0x1ec   :  { %v2363_v44 = vpop.f32.mrf.mxu3 }
 0x1ed   :  { %v2323_v60 = vpop.f32.mrf.mxu2  ;;  %v6038_v55 = vadd.f32 %v2363_v44, %v5736_v13  ;;  %v3442_v44 = vld [vmem:[%s7024_s0 + $0x17c] sm:$0xf0] }
 0x1ee   :  { %v6040_v63 = vadd.f32 %v2323_v60, %v2155_v29  ;;  %v1988_v57 = vpop.f32.mrf.mxu0 }
 0x1ef   :  { %7043 = vst [vmem:[#allocation19_spill] sm:$0xff] %v6038_v55  ;;  %v1989_v18 = vadd.f32 %v5822_v46, %v1988_v57  ;;  %v3437_v57 = vor.u32 %v4417_v38, %v3434_v6 }
 0x1f0   :  { %v2157_v14 = vpop.f32.mrf.mxu1 }
 0x1f1   :  { %v2158_v15 = vadd.f32 %v2157_v14, %v1989_v18  ;;  %2414 = vmatmul.bf16.gmra.mxu3 %v3409_v27  ;;  %2583 = vmatmul.bf16.gmra.mxu0 %v3413_v25 }
 0x1f2   :  { %2921 = vmatmul.bf16.gmra.mxu2 %v3421_v16 }
 0x1f3   :  { %2752 = vmatmul.bf16.gmra.mxu1 %v3417_v0 }
 0x1f4   :  { %v2366_v54 = vpop.f32.mrf.mxu3 }
 0x1f5   :  { %v2326_v30 = vpop.f32.mrf.mxu2  ;;  %v6044_v13 = vadd.f32 %v2366_v54, %v5746_v11  ;;  %v3440_v11 = vld [vmem:[%s7024_s0 + $0x160] sm:$0xf]  ;;  %v3448_v54 = vld [vmem:[%s7024_s0 + $0x168] sm:$0xf] }
 0x1f6   :  { %v6046_v31 = vadd.f32 %v2326_v30, %v2158_v15  ;;  %v1990_v29 = vpop.f32.mrf.mxu0  ;;  %v4421_v30 = vld [vmem:[%s7024_s0 + $0x178] sm:$0xf0]  ;;  %v3449_v14 = vor.u32 %v4422_v9, %v3448_v54  ;;  %v3445_v15 = vor.u32 %v4418_v43, %v3442_v44  ;;  %v4424_v54 = vld [vmem:[%s7024_s0 + $0x194] sm:$0xf]  ;;  %v3462_v9 = vld [vmem:[%s7024_s0 + $0x1ac] sm:$0xf0] }
 0x1f7   :  { %7044 = vst [vmem:[#allocation20_spill] sm:$0xff] %v6044_v13  ;;  %v1991_v52 = vadd.f32 %v5822_v46, %v1990_v29  ;;  %v3441_v16 = vor.u32 %v4421_v30, %v3440_v11  ;;  %v4429_v43 = vld [vmem:[%s7024_s0 + $0x1b8] sm:$0xf0] }
 0x1f8   :  { %v2159_v23 = vpop.f32.mrf.mxu1  ;;  %v4425_v44 = vld [vmem:[%s7024_s0 + $0x19c] sm:$0xf] }
 0x1f9   :  { %v2160_v37 = vadd.f32 %v2159_v23, %v1991_v52 }
 0x1fc   :  { %v2368_v60 = vpop.f32.mrf.mxu3 }
 0x1fd   :  { %v2328_v27 = vpop.f32.mrf.mxu2  ;;  %v6074_v25 = vadd.f32 %v2368_v60, %v5777_v22  ;;  %v3470_v60 = vld [vmem:[%s7024_s0 + $0x1b4] sm:$0xf0] }
 0x1fe   :  { %v6076_v0 = vadd.f32 %v2328_v27, %v2160_v37  ;;  %v1993_v18 = vpop.f32.mrf.mxu0 }
 0x1ff   :  { %7045 = vst [vmem:[#allocation21_spill] sm:$0xff] %v6074_v25  ;;  %v1994_v29 = vadd.f32 %v5822_v46, %v1993_v18  ;;  %v3465_v18 = vor.u32 %v4424_v54, %v3462_v9 }
 0x200   :  { %v2162_v52 = vpop.f32.mrf.mxu1 }
 0x201   :  { %v2163_v23 = vadd.f32 %v2162_v52, %v1994_v29  ;;  %2419 = vmatmul.bf16.gmra.mxu3 %v3437_v57  ;;  %2588 = vmatmul.bf16.gmra.mxu0 %v3441_v16 }
 0x202   :  { %2926 = vmatmul.bf16.gmra.mxu2 %v3449_v14 }
 0x203   :  { %2757 = vmatmul.bf16.gmra.mxu1 %v3445_v15 }
 0x204   :  { %v2371_v13 = vpop.f32.mrf.mxu3 }
 0x205   :  { %v2331_v55 = vpop.f32.mrf.mxu2  ;;  %v6080_v22 = vadd.f32 %v2371_v13, %v5784_v19  ;;  %v3468_v19 = vld [vmem:[%s7024_s0 + $0x198] sm:$0xf]  ;;  %v3476_v13 = vld [vmem:[%s7024_s0 + $0x1a0] sm:$0xf] }
 0x206   :  { %v6082_v38 = vadd.f32 %v2331_v55, %v2163_v23  ;;  %v1995_v37 = vpop.f32.mrf.mxu0  ;;  %v4428_v55 = vld [vmem:[%s7024_s0 + $0x1b0] sm:$0xf0]  ;;  %v3477_v52 = vor.u32 %v4429_v43, %v3476_v13  ;;  %v3473_v23 = vor.u32 %v4425_v44, %v3470_v60  ;;  %v4431_v13 = vld [vmem:[%s7024_s0 + $0x1cc] sm:$0xf]  ;;  %v3490_v43 = vld [vmem:[%s7024_s0 + $0x1e4] sm:$0xf0] }
 0x207   :  { %7046 = vst [vmem:[#allocation22_spill] sm:$0xff] %v6080_v22  ;;  %v1996_v6 = vadd.f32 %v5822_v46, %v1995_v37  ;;  %v3469_v14 = vor.u32 %v4428_v55, %v3468_v19  ;;  %v4432_v44 = vld [vmem:[%s7024_s0 + $0x1d4] sm:$0xf]  ;;  %v3498_v60 = vld [vmem:[%s7024_s0 + $0x1ec] sm:$0xf0] }
 0x208   :  { %v2164_v11 = vpop.f32.mrf.mxu1 }
 0x209   :  { %v2165_v30 = vadd.f32 %v2164_v11, %v1996_v6 }
 0x20c   :  { %v2373_v27 = vpop.f32.mrf.mxu3 }
 0x20d   :  { %v2333_v57 = vpop.f32.mrf.mxu2  ;;  %v6110_v16 = vadd.f32 %v2373_v27, %v5815_v53 }
 0x20e   :  { %v6112_v15 = vadd.f32 %v2333_v57, %v2165_v30  ;;  %v1998_v29 = vpop.f32.mrf.mxu0 }
 0x20f   :  { %7047 = vst [vmem:[#allocation23_spill] sm:$0xff] %v6110_v16  ;;  %v1999_v37 = vadd.f32 %v5822_v46, %v1998_v29 }
 0x210   :  { %v2167_v6 = vpop.f32.mrf.mxu1 }
 0x211   :  { %v2168_v11 = vadd.f32 %v2167_v6, %v1999_v37  ;;  %2424 = vmatmul.bf16.gmra.mxu3 %v3465_v18  ;;  %2593 = vmatmul.bf16.gmra.mxu0 %v3469_v14  ;;  %v3493_v14 = vor.u32 %v4431_v13, %v3490_v43  ;;  %v3501_v6 = vor.u32 %v4432_v44, %v3498_v60  ;;  %v3518_v13 = vld [vmem:[%s7024_s0 + $0x21c] sm:$0xf0]  ;;  %v3524_v43 = vld [vmem:[%s7024_s0 + $0x208] sm:$0xf] }
 0x212   :  { %2931 = vmatmul.bf16.gmra.mxu2 %v3477_v52 }
 0x213   :  { %2762 = vmatmul.bf16.gmra.mxu1 %v3473_v23 }
 0x214   :  { %v2376_v22 = vpop.f32.mrf.mxu3 }
 0x215   :  { %v2336_v25 = vpop.f32.mrf.mxu2  ;;  %v6116_v53 = vadd.f32 %v2376_v22, %v5827_v20  ;;  %v3496_v20 = vld [vmem:[%s7024_s0 + $0x1d0] sm:$0xf]  ;;  %v4436_v22 = vld [vmem:[%s7024_s0 + $0x1f0] sm:$0xf0] }
 0x216   :  { %v6118_v54 = vadd.f32 %v2336_v25, %v2168_v11  ;;  %v2000_v30 = vpop.f32.mrf.mxu0  ;;  %v4435_v25 = vld [vmem:[%s7024_s0 + $0x1e8] sm:$0xf0] }
 0x217   :  { %7048 = vst [vmem:[#allocation24_spill] sm:$0xff] %v6116_v53  ;;  %v2001_v9 = vadd.f32 %v5822_v46, %v2000_v30  ;;  %v3504_v46 = vld [vmem:[%s7024_s0 + $0x1d8] sm:$0xf]  ;;  %v3497_v29 = vor.u32 %v4435_v25, %v3496_v20  ;;  %v4443_v25 = vld [vmem:[%s7024_s0 + $0x228] sm:$0xf0] }
 0x218   :  { %v2169_v19 = vpop.f32.mrf.mxu1  ;;  %v3505_v37 = vor.u32 %v4436_v22, %v3504_v46  ;;  %v4439_v46 = vld [vmem:[%s7024_s0 + $0x20c] sm:$0xf]  ;;  %v3526_v22 = vld [vmem:[%s7024_s0 + $0x224] sm:$0xf0] }
 0x219   :  { %v2170_v55 = vadd.f32 %v2169_v19, %v2001_v9 }
 0x21c   :  { %v2378_v27 = vpop.f32.mrf.mxu3 }
 0x21d   :  { %v2338_v57 = vpop.f32.mrf.mxu2  ;;  %v6146_v18 = vadd.f32 %v2378_v27, %v5858_v21 }
 0x21e   :  { %v6148_v52 = vadd.f32 %v2338_v57, %v2170_v55  ;;  %v2559_v23 = vpop.f32.mrf.mxu0  ;;  %v4438_v55 = vld [vmem:[%s7024_s0 + $0x204] sm:$0xf] }
 0x21f   :  { %7049 = vst [vmem:[#allocation25_spill] sm:$0xff] %v6146_v18 }
 0x220   :  { %v2728_v11 = vpop.f32.mrf.mxu1 }
 0x221   :  { %2429 = vmatmul.bf16.gmra.mxu3 %v3493_v14  ;;  %2598 = vmatmul.bf16.gmra.mxu0 %v3497_v29  ;;  %v3521_v14 = vor.u32 %v4438_v55, %v3518_v13 }
 0x222   :  { %2936 = vmatmul.bf16.gmra.mxu2 %v3505_v37 }
 0x223   :  { %2767 = vmatmul.bf16.gmra.mxu1 %v3501_v6  ;;  %v3529_v6 = vor.u32 %v4439_v46, %v3526_v22 }
 0x224   :  { %v2390_v30 = vpop.f32.mrf.mxu3 }
 0x225   :  { %v2391_v9 = vadd.f32 %v2390_v30, %v5224_v24  ;;  %v2897_v19 = vpop.f32.mrf.mxu2  ;;  %v4442_v24 = vld [vmem:[%s7024_s0 + $0x220] sm:$0xf0] }
 0x226   :  { %v2561_v53 = vpop.f32.mrf.mxu0  ;;  %v3525_v29 = vor.u32 %v4442_v24, %v3524_v43  ;;  %v4445_v24 = vld [vmem:[%s7024_s0 + $0x23c] sm:$0xf] }
 0x227   :  { %v2560_v16 = vadd.f32 %v2559_v23, %v2391_v9 }
 0x228   :  { %v2730_v21 = vpop.f32.mrf.mxu1 }
 0x229   :  { %v2729_v27 = vadd.f32 %v2728_v11, %v2560_v16  ;;  %v3532_v16 = vld [vmem:[%s7024_s0 + $0x210] sm:$0xf] }
 0x22a   :  { %v3533_v37 = vor.u32 %v4443_v25, %v3532_v16  ;;  %v3546_v16 = vld [vmem:[%s7024_s0 + $0x254] sm:$0xf0]  ;;  %v3560_v25 = vld [vmem:[%s7024_s0 + $0x248] sm:$0xf] }
 0x22b   :  { %v2898_v20 = vadd.f32 %v2897_v19, %v2729_v27 }
 0x22c   :  { %v2392_v44 = vpop.f32.mrf.mxu3 }
 0x22d   :  { %4679 = vtanh.f32 %v2898_v20  ;;  %v2393_v60 = vadd.f32 %v2392_v44, %v5253_v40  ;;  %v2899_v57 = vpop.f32.mrf.mxu2  ;;  %v4450_v44 = vld [vmem:[%s7024_s0 + $0x260] sm:$0xf0] }
 0x22e   :  { %v2564_v23 = vpop.f32.mrf.mxu0 }
 0x22f   :  { %v2562_v11 = vadd.f32 %v2561_v53, %v2393_v60  ;;  %v4446_v60 = vld [vmem:[%s7024_s0 + $0x244] sm:$0xf] }
 0x230   :  { %v2733_v30 = vpop.f32.mrf.mxu1 }
 0x231   :  { %v2731_v9 = vadd.f32 %v2730_v21, %v2562_v11  ;;  %2434 = vmatmul.bf16.gmra.mxu3 %v3521_v14  ;;  %2603 = vmatmul.bf16.gmra.mxu0 %v3525_v29 }
 0x232   :  { %2941 = vmatmul.bf16.gmra.mxu2 %v3533_v37 }
 0x233   :  { %2772 = vmatmul.bf16.gmra.mxu1 %v3529_v6  ;;  %v4680_v19 = vpop.eup %4679  ;;  %v2900_v27 = vadd.f32 %v2899_v57, %v2731_v9  ;;  %v3554_v57 = vld [vmem:[%s7024_s0 + $0x25c] sm:$0xf0]  ;;  %v3549_v6 = vor.u32 %v4445_v24, %v3546_v16  ;;  %v3561_v9 = vor.u32 %v4450_v44, %v3560_v25  ;;  %v4452_v25 = vld [vmem:[%s7024_s0 + $0x274] sm:$0xf] }
 0x234   :  { %v3121_v18 = vpack.c.bf16 %v4680_v19, %v4680_v19  ;;  %v2395_v20 = vpop.f32.mrf.mxu3  ;;  %v3557_v19 = vor.u32 %v4446_v60, %v3554_v57  ;;  %v3588_v44 = vld [vmem:[%s7024_s0 + $0x280] sm:$0xf] }
 0x235   :  { %4681 = vtanh.f32 %v2900_v27  ;;  %v2396_v40 = vadd.f32 %v2395_v20, %v5258_v49  ;;  %v2902_v55 = vpop.f32.mrf.mxu2  ;;  %v3552_v49 = vld [vmem:[%s7024_s0 + $0x240] sm:$0xf] }
 0x236   :  { %3186 = vst.msk [vmem:[%s7025_s3] sm:$0xf] %vm3185_vm0, %v3121_v18  ;;  %v2566_v53 = vpop.f32.mrf.mxu0  ;;  %v4449_v18 = vld [vmem:[%s7024_s0 + $0x258] sm:$0xf0] }
 0x237   :  { %v2565_v21 = vadd.f32 %v2564_v23, %v2396_v40  ;;  %v3553_v11 = vor.u32 %v4449_v18, %v3552_v49 }
 0x238   :  { %v2735_v13 = vpop.f32.mrf.mxu1 }
 0x239   :  { %v2734_v43 = vadd.f32 %v2733_v30, %v2565_v21 }
 0x23b   :  { %v4682_v46 = vpop.eup %4681  ;;  %v2903_v22 = vadd.f32 %v2902_v55, %v2734_v43 }
 0x23c   :  { %v3122_v14 = vpack.c.bf16 %v4682_v46, %v4682_v46  ;;  %v2397_v29 = vpop.f32.mrf.mxu3  ;;  %v3574_v46 = vld [vmem:[%s7024_s0 + $0x28c] sm:$0xf0] }
 0x23d   :  { %4683 = vtanh.f32 %v2903_v22  ;;  %v2398_v23 = vadd.f32 %v2397_v29, %v5287_v3  ;;  %v2904_v37 = vpop.f32.mrf.mxu2  ;;  %v4456_v22 = vld [vmem:[%s7024_s0 + $0x290] sm:$0xf0]  ;;  %v4453_v29 = vld [vmem:[%s7024_s0 + $0x27c] sm:$0xf] }
 0x23e   :  { %3187 = vst.msk [vmem:[%s7025_s3 + $0x4] sm:$0xf] %vm3185_vm0, %v3122_v14  ;;  %v2569_v30 = vpop.f32.mrf.mxu0  ;;  %v4457_v14 = vld [vmem:[%s7024_s0 + $0x298] sm:$0xf0] }
 0x23f   :  { %v2567_v27 = vadd.f32 %v2566_v53, %v2398_v23  ;;  %v3582_v23 = vld [vmem:[%s7024_s0 + $0x294] sm:$0xf0] }
 0x240   :  { %v2738_v20 = vpop.f32.mrf.mxu1 }
 0x241   :  { %v2736_v40 = vadd.f32 %v2735_v13, %v2567_v27  ;;  %2439 = vmatmul.bf16.gmra.mxu3 %v3549_v6  ;;  %2608 = vmatmul.bf16.gmra.mxu0 %v3553_v11 }
 0x242   :  { %2946 = vmatmul.bf16.gmra.mxu2 %v3561_v9  ;;  %v3577_v9 = vor.u32 %v4452_v25, %v3574_v46 }
 0x243   :  { %2777 = vmatmul.bf16.gmra.mxu1 %v3557_v19  ;;  %v4684_v55 = vpop.eup %4683  ;;  %v2905_v3 = vadd.f32 %v2904_v37, %v2736_v40  ;;  %v3585_v40 = vor.u32 %v4453_v29, %v3582_v23  ;;  %v4464_v29 = vld [vmem:[%s7024_s0 + $0x2d0] sm:$0xf0] }
 0x244   :  { %v3123_v21 = vpack.c.bf16 %v4684_v55, %v4684_v55  ;;  %v2400_v43 = vpop.f32.mrf.mxu3  ;;  %v4460_v23 = vld [vmem:[%s7024_s0 + $0x2b4] sm:$0xf] }
 0x245   :  { %4685 = vtanh.f32 %v2905_v3  ;;  %v2401_v24 = vadd.f32 %v2400_v43, %v5292_v12  ;;  %v2907_v16 = vpop.f32.mrf.mxu2  ;;  %v3580_v12 = vld [vmem:[%s7024_s0 + $0x278] sm:$0xf] }
 0x246   :  { %3188 = vst.msk [vmem:[%s7025_s3 + $0x8] sm:$0xf] %vm3185_vm0, %v3123_v21  ;;  %v2571_v53 = vpop.f32.mrf.mxu0  ;;  %v3581_v19 = vor.u32 %v4456_v22, %v3580_v12  ;;  %v4459_v12 = vld [vmem:[%s7024_s0 + $0x2ac] sm:$0xf]  ;;  %v3602_v22 = vld [vmem:[%s7024_s0 + $0x2c4] sm:$0xf0] }
 0x247   :  { %v2570_v49 = vadd.f32 %v2569_v30, %v2401_v24 }
 0x248   :  { %v2740_v13 = vpop.f32.mrf.mxu1 }
 0x249   :  { %v2739_v18 = vadd.f32 %v2738_v20, %v2570_v49  ;;  %v3589_v20 = vor.u32 %v4457_v14, %v3588_v44  ;;  %v4463_v44 = vld [vmem:[%s7024_s0 + $0x2c8] sm:$0xf0] }
 0x24b   :  { %v4686_v60 = vpop.eup %4685  ;;  %v2908_v57 = vadd.f32 %v2907_v16, %v2739_v18 }
 0x24c   :  { %v3124_v37 = vpack.c.bf16 %v4686_v60, %v4686_v60  ;;  %v2402_v6 = vpop.f32.mrf.mxu3  ;;  %v3616_v60 = vld [vmem:[%s7024_s0 + $0x2b8] sm:$0xf] }
 0x24d   :  { %4687 = vtanh.f32 %v2908_v57  ;;  %v2403_v11 = vadd.f32 %v2402_v6, %v5330_v34  ;;  %v2909_v30 = vpop.f32.mrf.mxu2 }
 0x24e   :  { %3189 = vst.msk [vmem:[%s7025_s3 + $0xc] sm:$0xf] %vm3185_vm0, %v3124_v37  ;;  %v2574_v27 = vpop.f32.mrf.mxu0  ;;  %v3610_v37 = vld [vmem:[%s7024_s0 + $0x2cc] sm:$0xf0] }
 0x24f   :  { %v2572_v55 = vadd.f32 %v2571_v53, %v2403_v11 }
 0x250   :  { %v2743_v3 = vpop.f32.mrf.mxu1 }
 0x251   :  { %v2741_v21 = vadd.f32 %v2740_v13, %v2572_v55  ;;  %2444 = vmatmul.bf16.gmra.mxu3 %v3577_v9  ;;  %2613 = vmatmul.bf16.gmra.mxu0 %v3581_v19  ;;  %v3605_v19 = vor.u32 %v4459_v12, %v3602_v22  ;;  %v3613_v55 = vor.u32 %v4460_v23, %v3610_v37  ;;  %v4466_v12 = vld [vmem:[%s7024_s0 + $0x2e4] sm:$0xf]  ;;  %v3630_v22 = vld [vmem:[%s7024_s0 + $0x2fc] sm:$0xf0]  ;;  %v3638_v23 = vld [vmem:[%s7024_s0 + $0x304] sm:$0xf0] }
 0x252   :  { %2951 = vmatmul.bf16.gmra.mxu2 %v3589_v20 }
 0x253   :  { %2782 = vmatmul.bf16.gmra.mxu1 %v3585_v40  ;;  %v4688_v43 = vpop.eup %4687  ;;  %v2910_v34 = vadd.f32 %v2909_v30, %v2741_v21  ;;  %v3617_v40 = vor.u32 %v4464_v29, %v3616_v60  ;;  %v4467_v29 = vld [vmem:[%s7024_s0 + $0x2ec] sm:$0xf] }
 0x254   :  { %v3125_v24 = vpack.c.bf16 %v4688_v43, %v4688_v43  ;;  %v2405_v16 = vpop.f32.mrf.mxu3 }
 0x255   :  { %4689 = vtanh.f32 %v2910_v34  ;;  %v2406_v49 = vadd.f32 %v2405_v16, %v5335_v45  ;;  %v2912_v18 = vpop.f32.mrf.mxu2  ;;  %v3608_v45 = vld [vmem:[%s7024_s0 + $0x2b0] sm:$0xf] }
 0x256   :  { %3190 = vst.msk [vmem:[%s7025_s3 + $0x10] sm:$0xf] %vm3185_vm0, %v3125_v24  ;;  %v2576_v53 = vpop.f32.mrf.mxu0 }
 0x257   :  { %v2575_v25 = vadd.f32 %v2574_v27, %v2406_v49  ;;  %v3609_v27 = vor.u32 %v4463_v44, %v3608_v45  ;;  %v4470_v45 = vld [vmem:[%s7024_s0 + $0x300] sm:$0xf0]  ;;  %v3644_v44 = vld [vmem:[%s7024_s0 + $0x2f0] sm:$0xf] }
 0x258   :  { %v2745_v13 = vpop.f32.mrf.mxu1 }
 0x259   :  { %v2744_v46 = vadd.f32 %v2743_v3, %v2575_v25 }
 0x25b   :  { %v4690_v57 = vpop.eup %4689  ;;  %v2913_v14 = vadd.f32 %v2912_v18, %v2744_v46 }
 0x25c   :  { %v3126_v6 = vpack.c.bf16 %v4690_v57, %v4690_v57  ;;  %v2407_v11 = vpop.f32.mrf.mxu3 }
 0x25d   :  { %4691 = vtanh.f32 %v2913_v14  ;;  %v2408_v30 = vadd.f32 %v2407_v11, %v5364_v2  ;;  %v2914_v9 = vpop.f32.mrf.mxu2  ;;  %v4471_v14 = vld [vmem:[%s7024_s0 + $0x308] sm:$0xf0] }
 0x25e   :  { %3191 = vst.msk [vmem:[%s7025_s3 + $0x14] sm:$0xf] %vm3185_vm0, %v3126_v6  ;;  %v2579_v20 = vpop.f32.mrf.mxu0 }
 0x25f   :  { %v2577_v3 = vadd.f32 %v2576_v53, %v2408_v30 }
 0x260   :  { %v2748_v21 = vpop.f32.mrf.mxu1 }
 0x261   :  { %v2746_v43 = vadd.f32 %v2745_v13, %v2577_v3  ;;  %2449 = vmatmul.bf16.gmra.mxu3 %v3605_v19  ;;  %2618 = vmatmul.bf16.gmra.mxu0 %v3609_v27 }
 0x262   :  { %2956 = vmatmul.bf16.gmra.mxu2 %v3617_v40  ;;  %v3641_v40 = vor.u32 %v4467_v29, %v3638_v23 }
 0x263   :  { %2787 = vmatmul.bf16.gmra.mxu1 %v3613_v55  ;;  %v4692_v34 = vpop.eup %4691  ;;  %v2915_v2 = vadd.f32 %v2914_v9, %v2746_v43  ;;  %v3633_v9 = vor.u32 %v4466_v12, %v3630_v22  ;;  %v4477_v12 = vld [vmem:[%s7024_s0 + $0x338] sm:$0xf0]  ;;  %v3672_v22 = vld [vmem:[%s7024_s0 + $0x328] sm:$0xf] }
 0x264   :  { %v3127_v24 = vpack.c.bf16 %v4692_v34, %v4692_v34  ;;  %v2410_v16 = vpop.f32.mrf.mxu3 }
 0x265   :  { %4693 = vtanh.f32 %v2915_v2  ;;  %v2411_v49 = vadd.f32 %v2410_v16, %v5369_v17  ;;  %v2917_v18 = vpop.f32.mrf.mxu2  ;;  %v3636_v17 = vld [vmem:[%s7024_s0 + $0x2e8] sm:$0xf] }
 0x266   :  { %3192 = vst.msk [vmem:[%s7025_s3 + $0x18] sm:$0xf] %vm3185_vm0, %v3127_v24  ;;  %v2581_v53 = vpop.f32.mrf.mxu0  ;;  %v3637_v19 = vor.u32 %v4470_v45, %v3636_v17 }
 0x267   :  { %v2580_v25 = vadd.f32 %v2579_v20, %v2411_v49  ;;  %v3645_v20 = vor.u32 %v4471_v14, %v3644_v44  ;;  %v4478_v44 = vld [vmem:[%s7024_s0 + $0x340] sm:$0xf0] }
 0x268   :  { %v2750_v13 = vpop.f32.mrf.mxu1 }
 0x269   :  { %v2749_v46 = vadd.f32 %v2748_v21, %v2580_v25 }
 0x26b   :  { %v4694_v60 = vpop.eup %4693  ;;  %v2918_v57 = vadd.f32 %v2917_v18, %v2749_v46  ;;  %v3658_v46 = vld [vmem:[%s7024_s0 + $0x334] sm:$0xf0] }
 0x26c   :  { %v3128_v37 = vpack.c.bf16 %v4694_v60, %v4694_v60  ;;  %v2412_v6 = vpop.f32.mrf.mxu3  ;;  %v4474_v60 = vld [vmem:[%s7024_s0 + $0x324] sm:$0xf] }
 0x26d   :  { %4695 = vtanh.f32 %v2918_v57  ;;  %v2413_v11 = vadd.f32 %v2412_v6, %v5398_v35  ;;  %v2919_v30 = vpop.f32.mrf.mxu2  ;;  %v3666_v57 = vld [vmem:[%s7024_s0 + $0x33c] sm:$0xf0] }
 0x26e   :  { %3193 = vst.msk [vmem:[%s7025_s3 + $0x1c] sm:$0xf] %vm3185_vm0, %v3128_v37  ;;  %v2584_v27 = vpop.f32.mrf.mxu0 }
 0x26f   :  { %v2582_v55 = vadd.f32 %v2581_v53, %v2413_v11 }
 0x270   :  { %v2753_v3 = vpop.f32.mrf.mxu1 }
 0x271   :  { %v2751_v21 = vadd.f32 %v2750_v13, %v2582_v55  ;;  %2454 = vmatmul.bf16.gmra.mxu3 %v3633_v9  ;;  %2623 = vmatmul.bf16.gmra.mxu0 %v3637_v19  ;;  %v4473_v13 = vld [vmem:[%s7024_s0 + $0x31c] sm:$0xf]  ;;  %v3673_v9 = vor.u32 %v4478_v44, %v3672_v22  ;;  %v3669_v19 = vor.u32 %v4474_v60, %v3666_v57  ;;  %v3694_v22 = vld [vmem:[%s7024_s0 + $0x374] sm:$0xf0] }
 0x272   :  { %2961 = vmatmul.bf16.gmra.mxu2 %v3645_v20  ;;  %v3661_v6 = vor.u32 %v4473_v13, %v3658_v46 }
 0x273   :  { %2792 = vmatmul.bf16.gmra.mxu1 %v3641_v40  ;;  %v4696_v43 = vpop.eup %4695  ;;  %v2920_v35 = vadd.f32 %v2919_v30, %v2751_v21 }
 0x274   :  { %v3129_v34 = vpack.c.bf16 %v4696_v43, %v4696_v43  ;;  %v2415_v2 = vpop.f32.mrf.mxu3 }
 0x275   :  { %4697 = vtanh.f32 %v2920_v35  ;;  %v2416_v24 = vadd.f32 %v2415_v2, %v5403_v50  ;;  %v2922_v16 = vpop.f32.mrf.mxu2  ;;  %v3664_v50 = vld [vmem:[%s7024_s0 + $0x320] sm:$0xf] }
 0x276   :  { %3194 = vst.msk [vmem:[%s7025_s3 + $0x20] sm:$0xf] %vm3185_vm0, %v3129_v34  ;;  %v2586_v49 = vpop.f32.mrf.mxu0  ;;  %v3665_v11 = vor.u32 %v4477_v12, %v3664_v50  ;;  %v4485_v50 = vld [vmem:[%s7024_s0 + $0x378] sm:$0xf0] }
 0x277   :  { %v2585_v18 = vadd.f32 %v2584_v27, %v2416_v24  ;;  %v4481_v12 = vld [vmem:[%s7024_s0 + $0x35c] sm:$0xf] }
 0x278   :  { %v2755_v53 = vpop.f32.mrf.mxu1 }
 0x279   :  { %v2754_v25 = vadd.f32 %v2753_v3, %v2585_v18  ;;  %v3686_v18 = vld [vmem:[%s7024_s0 + $0x36c] sm:$0xf0] }
 0x27b   :  { %v4698_v17 = vpop.eup %4697  ;;  %v2923_v45 = vadd.f32 %v2922_v16, %v2754_v25  ;;  %v3700_v25 = vld [vmem:[%s7024_s0 + $0x360] sm:$0xf] }
 0x27c   :  { %v3130_v14 = vpack.c.bf16 %v4698_v17, %v4698_v17  ;;  %v2417_v29 = vpop.f32.mrf.mxu3 }
 0x27d   :  { %4699 = vtanh.f32 %v2923_v45  ;;  %v2418_v23 = vadd.f32 %v2417_v29, %v5441_v10  ;;  %v2924_v37 = vpop.f32.mrf.mxu2 }
 0x27e   :  { %3195 = vst.msk [vmem:[%s7025_s3 + $0x24] sm:$0xf] %vm3185_vm0, %v3130_v14  ;;  %v2589_v30 = vpop.f32.mrf.mxu0 }
 0x27f   :  { %v2587_v27 = vadd.f32 %v2586_v49, %v2418_v23  ;;  %v4480_v49 = vld [vmem:[%s7024_s0 + $0x354] sm:$0xf]  ;;  %v3701_v23 = vor.u32 %v4485_v50, %v3700_v25 }
 0x280   :  { %v2758_v20 = vpop.f32.mrf.mxu1  ;;  %v3689_v57 = vor.u32 %v4480_v49, %v3686_v18  ;;  %v4492_v49 = vld [vmem:[%s7024_s0 + $0x3b0] sm:$0xf0] }
 0x281   :  { %v2756_v40 = vadd.f32 %v2755_v53, %v2587_v27  ;;  %2459 = vmatmul.bf16.gmra.mxu3 %v3661_v6  ;;  %2628 = vmatmul.bf16.gmra.mxu0 %v3665_v11  ;;  %v4484_v53 = vld [vmem:[%s7024_s0 + $0x370] sm:$0xf0] }
 0x282   :  { %2966 = vmatmul.bf16.gmra.mxu2 %v3673_v9  ;;  %v4488_v18 = vld [vmem:[%s7024_s0 + $0x394] sm:$0xf] }
 0x283   :  { %2797 = vmatmul.bf16.gmra.mxu1 %v3669_v19  ;;  %v4700_v55 = vpop.eup %4699  ;;  %v2925_v10 = vadd.f32 %v2924_v37, %v2756_v40  ;;  %v3697_v37 = vor.u32 %v4481_v12, %v3694_v22 }
 0x284   :  { %v3131_v3 = vpack.c.bf16 %v4700_v55, %v4700_v55  ;;  %v2420_v21 = vpop.f32.mrf.mxu3 }
 0x285   :  { %4701 = vtanh.f32 %v2925_v10  ;;  %v2421_v43 = vadd.f32 %v2420_v21, %v5449_v28  ;;  %v2927_v35 = vpop.f32.mrf.mxu2  ;;  %v3692_v28 = vld [vmem:[%s7024_s0 + $0x358] sm:$0xf] }
 0x286   :  { %3196 = vst.msk [vmem:[%s7025_s3 + $0x28] sm:$0xf] %vm3185_vm0, %v3131_v3  ;;  %v2591_v34 = vpop.f32.mrf.mxu0  ;;  %v3693_v14 = vor.u32 %v4484_v53, %v3692_v28  ;;  %v3722_v28 = vld [vmem:[%s7024_s0 + $0x3ac] sm:$0xf0] }
 0x287   :  { %v2590_v2 = vadd.f32 %v2589_v30, %v2421_v43  ;;  %v4487_v43 = vld [vmem:[%s7024_s0 + $0x38c] sm:$0xf] }
 0x288   :  { %v2760_v24 = vpop.f32.mrf.mxu1 }
 0x289   :  { %v2759_v16 = vadd.f32 %v2758_v20, %v2590_v2  ;;  %v3728_v2 = vld [vmem:[%s7024_s0 + $0x398] sm:$0xf] }
 0x28b   :  { %v4702_v13 = vpop.eup %4701  ;;  %v2928_v46 = vadd.f32 %v2927_v35, %v2759_v16  ;;  %v3714_v35 = vld [vmem:[%s7024_s0 + $0x3a4] sm:$0xf0] }
 0x28c   :  { %v3132_v17 = vpack.c.bf16 %v4702_v13, %v4702_v13  ;;  %v2422_v45 = vpop.f32.mrf.mxu3  ;;  %v3717_v50 = vor.u32 %v4487_v43, %v3714_v35  ;;  %v3750_v43 = vld [vmem:[%s7024_s0 + $0x3e4] sm:$0xf0] }
 0x28d   :  { %4703 = vtanh.f32 %v2928_v46  ;;  %v2423_v44 = vadd.f32 %v2422_v45, %v5478_v56  ;;  %v2929_v60 = vpop.f32.mrf.mxu2  ;;  %v3725_v45 = vor.u32 %v4488_v18, %v3722_v28 }
 0x28e   :  { %3197 = vst.msk [vmem:[%s7025_s3 + $0x2c] sm:$0xf] %vm3185_vm0, %v3132_v17  ;;  %v2594_v29 = vpop.f32.mrf.mxu0  ;;  %v3729_v17 = vor.u32 %v4492_v49, %v3728_v2 }
 0x28f   :  { %v2592_v6 = vadd.f32 %v2591_v34, %v2423_v44  ;;  %v4491_v34 = vld [vmem:[%s7024_s0 + $0x3a8] sm:$0xf0] }
 0x290   :  { %v2763_v11 = vpop.f32.mrf.mxu1 }
 0x291   :  { %v2761_v30 = vadd.f32 %v2760_v24, %v2592_v6  ;;  %2464 = vmatmul.bf16.gmra.mxu3 %v3689_v57  ;;  %2633 = vmatmul.bf16.gmra.mxu0 %v3693_v14 }
 0x292   :  { %2971 = vmatmul.bf16.gmra.mxu2 %v3701_v23 }
 0x293   :  { %2802 = vmatmul.bf16.gmra.mxu1 %v3697_v37  ;;  %v4704_v9 = vpop.eup %4703  ;;  %v2930_v56 = vadd.f32 %v2929_v60, %v2761_v30 }
 0x294   :  { %v3133_v19 = vpack.c.bf16 %v4704_v9, %v4704_v9  ;;  %v2425_v27 = vpop.f32.mrf.mxu3 }
 0x295   :  { %4705 = vtanh.f32 %v2930_v56  ;;  %v2426_v20 = vadd.f32 %v2425_v27, %v5486_v7  ;;  %v2932_v40 = vpop.f32.mrf.mxu2  ;;  %v3720_v7 = vld [vmem:[%s7024_s0 + $0x390] sm:$0xf]  ;;  %v3742_v27 = vld [vmem:[%s7024_s0 + $0x3dc] sm:$0xf0] }
 0x296   :  { %3198 = vst.msk [vmem:[%s7025_s3 + $0x30] sm:$0xf] %vm3185_vm0, %v3133_v19  ;;  %v2596_v55 = vpop.f32.mrf.mxu0  ;;  %v3721_v12 = vor.u32 %v4491_v34, %v3720_v7  ;;  %v4494_v19 = vld [vmem:[%s7024_s0 + $0x3c4] sm:$0xf] }
 0x297   :  { %v2595_v10 = vadd.f32 %v2594_v29, %v2426_v20  ;;  %v4498_v20 = vld [vmem:[%s7024_s0 + $0x3e0] sm:$0xf0] }
 0x298   :  { %v2765_v3 = vpop.f32.mrf.mxu1 }
 0x299   :  { %v2764_v21 = vadd.f32 %v2763_v11, %v2595_v10 }
 0x29b   :  { %v4706_v24 = vpop.eup %4705  ;;  %v2933_v16 = vadd.f32 %v2932_v40, %v2764_v21  ;;  %v3756_v40 = vld [vmem:[%s7024_s0 + $0x3d0] sm:$0xf]  ;;  %v4495_v21 = vld [vmem:[%s7024_s0 + $0x3cc] sm:$0xf] }
 0x29c   :  { %v3134_v53 = vpack.c.bf16 %v4706_v24, %v4706_v24  ;;  %v2427_v25 = vpop.f32.mrf.mxu3  ;;  %v3745_v24 = vor.u32 %v4494_v19, %v3742_v27  ;;  %v3753_v28 = vor.u32 %v4495_v21, %v3750_v43 }
 0x29d   :  { %4707 = vtanh.f32 %v2933_v16  ;;  %v2428_v13 = vadd.f32 %v2427_v25, %v5515_v39  ;;  %v2934_v46 = vpop.f32.mrf.mxu2 }
 0x29e   :  { %3199 = vst.msk [vmem:[%s7025_s3 + $0x34] sm:$0xf] %vm3185_vm0, %v3134_v53  ;;  %v2599_v22 = vpop.f32.mrf.mxu0 }
 0x29f   :  { %v2597_v44 = vadd.f32 %v2596_v55, %v2428_v13 }
 0x2a0   :  { %v2768_v60 = vpop.f32.mrf.mxu1 }
 0x2a1   :  { %v2766_v57 = vadd.f32 %v2765_v3, %v2597_v44  ;;  %2469 = vmatmul.bf16.gmra.mxu3 %v3717_v50  ;;  %2638 = vmatmul.bf16.gmra.mxu0 %v3721_v12  ;;  %v4499_v3 = vld [vmem:[%s7024_s0 + $0x3e8] sm:$0xf0] }
 0x2a2   :  { %2976 = vmatmul.bf16.gmra.mxu2 %v3729_v17  ;;  %v3757_v18 = vor.u32 %v4499_v3, %v3756_v40 }
 0x2a3   :  { %2807 = vmatmul.bf16.gmra.mxu1 %v3725_v45  ;;  %v4708_v14 = vpop.eup %4707  ;;  %v2935_v39 = vadd.f32 %v2934_v46, %v2766_v57 }
 0x2a4   :  { %v3135_v29 = vpack.c.bf16 %v4708_v14, %v4708_v14  ;;  %v2430_v23 = vpop.f32.mrf.mxu3  ;;  %v4501_v14 = vld [vmem:[%s7024_s0 + $0x3fc] sm:$0xf] }
 0x2a5   :  { %4709 = vtanh.f32 %v2935_v39  ;;  %v2431_v37 = vadd.f32 %v2430_v23, %v5525_v61  ;;  %v2937_v6 = vpop.f32.mrf.mxu2  ;;  %v3748_v61 = vld [vmem:[%s7024_s0 + $0x3c8] sm:$0xf]  ;;  %v3770_v39 = vld [vmem:[%s7024_s0 + $0x414] sm:$0xf0] }
 0x2a6   :  { %3200 = vst.msk [vmem:[%s7025_s3 + $0x38] sm:$0xf] %vm3185_vm0, %v3135_v29  ;;  %v2601_v11 = vpop.f32.mrf.mxu0  ;;  %v3749_v16 = vor.u32 %v4498_v20, %v3748_v61  ;;  %v4505_v29 = vld [vmem:[%s7024_s0 + $0x418] sm:$0xf0]  ;;  %v3784_v23 = vld [vmem:[%s7024_s0 + $0x408] sm:$0xf]  ;;  %v3773_v20 = vor.u32 %v4501_v14, %v3770_v39 }
 0x2a7   :  { %v2600_v30 = vadd.f32 %v2599_v22, %v2431_v37 }
 0x2a8   :  { %v2770_v9 = vpop.f32.mrf.mxu1 }
 0x2a9   :  { %v2769_v56 = vadd.f32 %v2768_v60, %v2600_v30  ;;  %v4502_v30 = vld [vmem:[%s7024_s0 + $0x404] sm:$0xf] }
 0x2ab   :  { %v4710_v55 = vpop.eup %4709  ;;  %v2938_v10 = vadd.f32 %v2937_v6, %v2769_v56 }
 0x2ac   :  { %v3136_v35 = vpack.c.bf16 %v4710_v55, %v4710_v55  ;;  %v2432_v7 = vpop.f32.mrf.mxu3 }
 0x2ad   :  { %4711 = vtanh.f32 %v2938_v10  ;;  %v2433_v34 = vadd.f32 %v2432_v7, %v5565_v41  ;;  %v2939_v2 = vpop.f32.mrf.mxu2 }
 0x2ae   :  { %3201 = vst.msk [vmem:[%s7025_s3 + $0x3c] sm:$0xf] %vm3185_vm0, %v3136_v35  ;;  %v2604_v49 = vpop.f32.mrf.mxu0 }
 0x2af   :  { %v2602_v53 = vadd.f32 %v2601_v11, %v2433_v34  ;;  %v4506_v11 = vld [vmem:[%s7024_s0 + $0x420] sm:$0xf0] }
 0x2b0   :  { %v2773_v25 = vpop.f32.mrf.mxu1  ;;  %v3785_v10 = vor.u32 %v4506_v11, %v3784_v23 }
 0x2b1   :  { %v2771_v13 = vadd.f32 %v2770_v9, %v2602_v53  ;;  %2474 = vmatmul.bf16.gmra.mxu3 %v3745_v24  ;;  %2643 = vmatmul.bf16.gmra.mxu0 %v3749_v16  ;;  %v3778_v9 = vld [vmem:[%s7024_s0 + $0x41c] sm:$0xf0] }
 0x2b2   :  { %2981 = vmatmul.bf16.gmra.mxu2 %v3757_v18  ;;  %v3781_v3 = vor.u32 %v4502_v30, %v3778_v9 }
 0x2b3   :  { %2812 = vmatmul.bf16.gmra.mxu1 %v3753_v28  ;;  %v4712_v46 = vpop.eup %4711  ;;  %v2940_v41 = vadd.f32 %v2939_v2, %v2771_v13  ;;  %v3798_v13 = vld [vmem:[%s7024_s0 + $0x44c] sm:$0xf0] }
 0x2b4   :  { %v3137_v50 = vpack.c.bf16 %v4712_v46, %v4712_v46  ;;  %v2435_v12 = vpop.f32.mrf.mxu3  ;;  %v4512_v46 = vld [vmem:[%s7024_s0 + $0x450] sm:$0xf0] }
 0x2b5   :  { %4713 = vtanh.f32 %v2940_v41  ;;  %v2436_v22 = vadd.f32 %v2435_v12, %v5575_v5  ;;  %v2942_v17 = vpop.f32.mrf.mxu2  ;;  %v3776_v5 = vld [vmem:[%s7024_s0 + $0x400] sm:$0xf] }
 0x2b6   :  { %3202 = vst.msk [vmem:[%s7025_s3 + $0x40] sm:$0xf] %vm3185_vm0, %v3137_v50  ;;  %v2606_v45 = vpop.f32.mrf.mxu0  ;;  %v3777_v40 = vor.u32 %v4505_v29, %v3776_v5  ;;  %v3812_v41 = vld [vmem:[%s7024_s0 + $0x440] sm:$0xf] }
 0x2b7   :  { %v2605_v44 = vadd.f32 %v2604_v49, %v2436_v22  ;;  %v4513_v22 = vld [vmem:[%s7024_s0 + $0x458] sm:$0xf0] }
 0x2b8   :  { %v2775_v60 = vpop.f32.mrf.mxu1  ;;  %v3813_v23 = vor.u32 %v4513_v22, %v3812_v41 }
 0x2b9   :  { %v2774_v57 = vadd.f32 %v2773_v25, %v2605_v44  ;;  %v4508_v25 = vld [vmem:[%s7024_s0 + $0x434] sm:$0xf] }
 0x2ba   :  { %v3801_v39 = vor.u32 %v4508_v25, %v3798_v13 }
 0x2bb   :  { %v4714_v37 = vpop.eup %4713  ;;  %v2943_v6 = vadd.f32 %v2942_v17, %v2774_v57  ;;  %v4509_v17 = vld [vmem:[%s7024_s0 + $0x43c] sm:$0xf] }
 0x2bc   :  { %v3138_v56 = vpack.c.bf16 %v4714_v37, %v4714_v37  ;;  %v2437_v19 = vpop.f32.mrf.mxu3 }
 0x2bd   :  { %4715 = vtanh.f32 %v2943_v6  ;;  %v2438_v27 = vadd.f32 %v2437_v19, %v5606_v42  ;;  %v2944_v61 = vpop.f32.mrf.mxu2 }
 0x2be   :  { %3203 = vst.msk [vmem:[%s7025_s3 + $0x44] sm:$0xf] %vm3185_vm0, %v3138_v56  ;;  %v2609_v55 = vpop.f32.mrf.mxu0 }
 0x2bf   :  { %v2607_v21 = vadd.f32 %v2606_v45, %v2438_v27  ;;  %v3806_v45 = vld [vmem:[%s7024_s0 + $0x454] sm:$0xf0] }
 0x2c0   :  { %v2778_v43 = vpop.f32.mrf.mxu1  ;;  %v3809_v37 = vor.u32 %v4509_v17, %v3806_v45 }
 0x2c1   :  { %v2776_v35 = vadd.f32 %v2775_v60, %v2607_v21  ;;  %2479 = vmatmul.bf16.gmra.mxu3 %v3773_v20  ;;  %2648 = vmatmul.bf16.gmra.mxu0 %v3777_v40  ;;  %v3826_v21 = vld [vmem:[%s7024_s0 + $0x484] sm:$0xf0] }
 0x2c2   :  { %2986 = vmatmul.bf16.gmra.mxu2 %v3785_v10 }
 0x2c3   :  { %2817 = vmatmul.bf16.gmra.mxu1 %v3781_v3  ;;  %v4716_v7 = vpop.eup %4715  ;;  %v2945_v42 = vadd.f32 %v2944_v61, %v2776_v35  ;;  %v4515_v3 = vld [vmem:[%s7024_s0 + $0x46c] sm:$0xf]  ;;  %v3840_v35 = vld [vmem:[%s7024_s0 + $0x478] sm:$0xf] }
 0x2c4   :  { %v3139_v34 = vpack.c.bf16 %v4716_v7, %v4716_v7  ;;  %v2440_v2 = vpop.f32.mrf.mxu3 }
 0x2c5   :  { %4717 = vtanh.f32 %v2945_v42  ;;  %v2441_v24 = vadd.f32 %v2440_v2, %v5616_v8  ;;  %v2947_v16 = vpop.f32.mrf.mxu2  ;;  %v3804_v8 = vld [vmem:[%s7024_s0 + $0x438] sm:$0xf]  ;;  %v4516_v2 = vld [vmem:[%s7024_s0 + $0x474] sm:$0xf] }
 0x2c6   :  { %3204 = vst.msk [vmem:[%s7025_s3 + $0x48] sm:$0xf] %vm3185_vm0, %v3139_v34  ;;  %v2611_v49 = vpop.f32.mrf.mxu0  ;;  %v3805_v5 = vor.u32 %v4512_v46, %v3804_v8  ;;  %v4520_v34 = vld [vmem:[%s7024_s0 + $0x490] sm:$0xf0] }
 0x2c7   :  { %v2610_v18 = vadd.f32 %v2609_v55, %v2441_v24  ;;  %v3834_v24 = vld [vmem:[%s7024_s0 + $0x48c] sm:$0xf0]  ;;  %v3841_v8 = vor.u32 %v4520_v34, %v3840_v35 }
 0x2c8   :  { %v2780_v28 = vpop.f32.mrf.mxu1  ;;  %v3837_v46 = vor.u32 %v4516_v2, %v3834_v24 }
 0x2c9   :  { %v2779_v53 = vadd.f32 %v2778_v43, %v2610_v18  ;;  %v4519_v43 = vld [vmem:[%s7024_s0 + $0x488] sm:$0xf0] }
 0x2cb   :  { %v4718_v50 = vpop.eup %4717  ;;  %v2948_v12 = vadd.f32 %v2947_v16, %v2779_v53  ;;  %v3829_v53 = vor.u32 %v4515_v3, %v3826_v21 }
 0x2cc   :  { %v3140_v44 = vpack.c.bf16 %v4718_v50, %v4718_v50  ;;  %v2442_v60 = vpop.f32.mrf.mxu3 }
 0x2cd   :  { %4719 = vtanh.f32 %v2948_v12  ;;  %v2443_v57 = vadd.f32 %v2442_v60, %v5647_v48  ;;  %v2949_v14 = vpop.f32.mrf.mxu2 }
 0x2ce   :  { %3205 = vst.msk [vmem:[%s7025_s3 + $0x4c] sm:$0xf] %vm3185_vm0, %v3140_v44  ;;  %v2614_v29 = vpop.f32.mrf.mxu0  ;;  %v7050_v44 = vld [vmem:[#allocation2_spill] sm:$0xff] }
 0x2cf   :  { %v2612_v6 = vadd.f32 %v2611_v49, %v2443_v57 }
 0x2d0   :  { %v2783_v11 = vpop.f32.mrf.mxu1 }
 0x2d1   :  { %v2781_v30 = vadd.f32 %v2780_v28, %v2612_v6  ;;  %2484 = vmatmul.bf16.gmra.mxu3 %v3801_v39  ;;  %2653 = vmatmul.bf16.gmra.mxu0 %v3805_v5  ;;  %v3860_v6 = vld [vmem:[%s7024_s0 + $0x4a8] sm:$0xf] }
 0x2d2   :  { %2991 = vmatmul.bf16.gmra.mxu2 %v3813_v23  ;;  %v4522_v23 = vld [vmem:[%s7024_s0 + $0x4a4] sm:$0xf] }
 0x2d3   :  { %2822 = vmatmul.bf16.gmra.mxu1 %v3809_v37  ;;  %v4720_v9 = vpop.eup %4719  ;;  %v2950_v48 = vadd.f32 %v2949_v14, %v2781_v30  ;;  %v3854_v37 = vld [vmem:[%s7024_s0 + $0x4bc] sm:$0xf0]  ;;  %v3868_v30 = vld [vmem:[%s7024_s0 + $0x4b0] sm:$0xf] }
 0x2d4   :  { %v3141_v56 = vpack.c.bf16 %v4720_v9, %v4720_v9  ;;  %v2445_v19 = vpop.f32.mrf.mxu3  ;;  %v3857_v3 = vor.u32 %v4522_v23, %v3854_v37 }
 0x2d5   :  { %4721 = vtanh.f32 %v2950_v48  ;;  %v2446_v27 = vadd.f32 %v2445_v19, %v5657_v47  ;;  %v2952_v61 = vpop.f32.mrf.mxu2  ;;  %v3832_v47 = vld [vmem:[%s7024_s0 + $0x470] sm:$0xf]  ;;  %v4523_v19 = vld [vmem:[%s7024_s0 + $0x4ac] sm:$0xf] }
 0x2d6   :  { %3206 = vst.msk [vmem:[%s7025_s3 + $0x50] sm:$0xf] %vm3185_vm0, %v3141_v56  ;;  %v2616_v20 = vpop.f32.mrf.mxu0  ;;  %v3833_v25 = vor.u32 %v4519_v43, %v3832_v47  ;;  %v4527_v56 = vld [vmem:[%s7024_s0 + $0x4c8] sm:$0xf0] }
 0x2d7   :  { %v2615_v40 = vadd.f32 %v2614_v29, %v2446_v27  ;;  %v3862_v27 = vld [vmem:[%s7024_s0 + $0x4c4] sm:$0xf0]  ;;  %v3869_v43 = vor.u32 %v4527_v56, %v3868_v30 }
 0x2d8   :  { %v2785_v55 = vpop.f32.mrf.mxu1  ;;  %v3865_v35 = vor.u32 %v4523_v19, %v3862_v27 }
 0x2d9   :  { %v2784_v10 = vadd.f32 %v2783_v11, %v2615_v40  ;;  %v4526_v11 = vld [vmem:[%s7024_s0 + $0x4c0] sm:$0xf0]  ;;  %v7051_v40 = vld [vmem:[#allocation3_spill] sm:$0xff] }
 0x2da   :  { %v3861_v21 = vor.u32 %v4526_v11, %v3860_v6 }
 0x2db   :  { %v4722_v7 = vpop.eup %4721  ;;  %v2953_v42 = vadd.f32 %v2952_v61, %v2784_v10 }
 0x2dc   :  { %v3142_v16 = vpack.c.bf16 %v4722_v7, %v4722_v7  ;;  %v2447_v49 = vpop.f32.mrf.mxu3 }
 0x2dd   :  { %4723 = vtanh.f32 %v2953_v42  ;;  %v2448_v18 = vadd.f32 %v2447_v49, %v5697_v59  ;;  %v2954_v28 = vpop.f32.mrf.mxu2 }
 0x2de   :  { %3207 = vst.msk [vmem:[%s7025_s3 + $0x54] sm:$0xf] %vm3185_vm0, %v3142_v16  ;;  %v2619_v13 = vpop.f32.mrf.mxu0 }
 0x2df   :  { %v2617_v41 = vadd.f32 %v2616_v20, %v2448_v18  ;;  %v7052_v18 = vld [vmem:[#allocation4_spill] sm:$0xff] }
 0x2e0   :  { %v2788_v50 = vpop.f32.mrf.mxu1 }
 0x2e1   :  { %v2786_v12 = vadd.f32 %v2785_v55, %v2617_v41  ;;  %2489 = vmatmul.bf16.gmra.mxu3 %v3829_v53  ;;  %2658 = vmatmul.bf16.gmra.mxu0 %v3833_v25  ;;  %v4529_v41 = vld [vmem:[%s7024_s0 + $0x4dc] sm:$0xf] }
 0x2e2   :  { %2996 = vmatmul.bf16.gmra.mxu2 %v3841_v8 }
 0x2e3   :  { %2827 = vmatmul.bf16.gmra.mxu1 %v3837_v46  ;;  %v4724_v22 = vpop.eup %4723  ;;  %v2955_v59 = vadd.f32 %v2954_v28, %v2786_v12  ;;  %v3888_v12 = vld [vmem:[%s7024_s0 + $0x4e0] sm:$0xf] }
 0x2e4   :  { %v3143_v17 = vpack.c.bf16 %v4724_v22, %v4724_v22  ;;  %v2450_v45 = vpop.f32.mrf.mxu3  ;;  %v4533_v22 = vld [vmem:[%s7024_s0 + $0x4f8] sm:$0xf0] }
 0x2e5   :  { %4725 = vtanh.f32 %v2955_v59  ;;  %v2451_v60 = vadd.f32 %v2450_v45, %v7050_v44  ;;  %v2957_v57 = vpop.f32.mrf.mxu2  ;;  %v3896_v59 = vld [vmem:[%s7024_s0 + $0x4e8] sm:$0xf]  ;;  %v4534_v44 = vld [vmem:[%s7024_s0 + $0x500] sm:$0xf0]  ;;  %v3889_v6 = vor.u32 %v4533_v22, %v3888_v12 }
 0x2e6   :  { %3208 = vst.msk [vmem:[%s7025_s3 + $0x58] sm:$0xf] %vm3185_vm0, %v3143_v17  ;;  %v2621_v14 = vpop.f32.mrf.mxu0  ;;  %v3897_v30 = vor.u32 %v4534_v44, %v3896_v59 }
 0x2e7   :  { %v2620_v39 = vadd.f32 %v2619_v13, %v2451_v60  ;;  %v4530_v60 = vld [vmem:[%s7024_s0 + $0x4e4] sm:$0xf] }
 0x2e8   :  { %v2790_v5 = vpop.f32.mrf.mxu1 }
 0x2e9   :  { %v2789_v29 = vadd.f32 %v2788_v50, %v2620_v39  ;;  %v3882_v50 = vld [vmem:[%s7024_s0 + $0x4f4] sm:$0xf0] }
 0x2ea   :  { %v3885_v37 = vor.u32 %v4529_v41, %v3882_v50 }
 0x2eb   :  { %v4726_v9 = vpop.eup %4725  ;;  %v2958_v48 = vadd.f32 %v2957_v57, %v2789_v29  ;;  %v3890_v57 = vld [vmem:[%s7024_s0 + $0x4fc] sm:$0xf0] }
 0x2ec   :  { %v3144_v61 = vpack.c.bf16 %v4726_v9, %v4726_v9  ;;  %v2452_v20 = vpop.f32.mrf.mxu3  ;;  %v3893_v9 = vor.u32 %v4530_v60, %v3890_v57 }
 0x2ed   :  { %4727 = vtanh.f32 %v2958_v48  ;;  %v2453_v55 = vadd.f32 %v2452_v20, %v7051_v40  ;;  %v2959_v10 = vpop.f32.mrf.mxu2 }
 0x2ee   :  { %3209 = vst.msk [vmem:[%s7025_s3 + $0x5c] sm:$0xf] %vm3185_vm0, %v3144_v61  ;;  %v2624_v47 = vpop.f32.mrf.mxu0 }
 0x2ef   :  { %v2622_v7 = vadd.f32 %v2621_v14, %v2453_v55  ;;  %v7054_v55 = vld [vmem:[#allocation6_spill] sm:$0xff] }
 0x2f0   :  { %v2793_v42 = vpop.f32.mrf.mxu1 }
 0x2f1   :  { %v2791_v34 = vadd.f32 %v2790_v5, %v2622_v7  ;;  %2494 = vmatmul.bf16.gmra.mxu3 %v3857_v3  ;;  %2663 = vmatmul.bf16.gmra.mxu0 %v3861_v21  ;;  %v7053_v5 = vld [vmem:[#allocation5_spill] sm:$0xff]  ;;  %v4536_v7 = vld [vmem:[%s7024_s0 + $0x514] sm:$0xf] }
 0x2f2   :  { %3001 = vmatmul.bf16.gmra.mxu2 %v3869_v43 }
 0x2f3   :  { %2832 = vmatmul.bf16.gmra.mxu1 %v3865_v35  ;;  %v4728_v2 = vpop.eup %4727  ;;  %v2960_v24 = vadd.f32 %v2959_v10, %v2791_v34  ;;  %v3916_v34 = vld [vmem:[%s7024_s0 + $0x518] sm:$0xf] }
 0x2f4   :  { %v3145_v16 = vpack.c.bf16 %v4728_v2, %v4728_v2  ;;  %v2455_v49 = vpop.f32.mrf.mxu3  ;;  %v4540_v2 = vld [vmem:[%s7024_s0 + $0x530] sm:$0xf0] }
 0x2f5   :  { %4729 = vtanh.f32 %v2960_v24  ;;  %v2456_v28 = vadd.f32 %v2455_v49, %v7052_v18  ;;  %v2962_v53 = vpop.f32.mrf.mxu2  ;;  %v3924_v24 = vld [vmem:[%s7024_s0 + $0x520] sm:$0xf]  ;;  %v4541_v18 = vld [vmem:[%s7024_s0 + $0x538] sm:$0xf0]  ;;  %v3917_v12 = vor.u32 %v4540_v2, %v3916_v34 }
 0x2f6   :  { %3210 = vst.msk [vmem:[%s7025_s3 + $0x60] sm:$0xf] %vm3185_vm0, %v3145_v16  ;;  %v2626_v25 = vpop.f32.mrf.mxu0  ;;  %v3925_v59 = vor.u32 %v4541_v18, %v3924_v24 }
 0x2f7   :  { %v2625_v13 = vadd.f32 %v2624_v47, %v2456_v28  ;;  %v4537_v28 = vld [vmem:[%s7024_s0 + $0x51c] sm:$0xf] }
 0x2f8   :  { %v2795_v8 = vpop.f32.mrf.mxu1 }
 0x2f9   :  { %v2794_v46 = vadd.f32 %v2793_v42, %v2625_v13  ;;  %v3910_v42 = vld [vmem:[%s7024_s0 + $0x52c] sm:$0xf0] }
 0x2fa   :  { %v3913_v50 = vor.u32 %v4536_v7, %v3910_v42 }
 0x2fb   :  { %v4730_v17 = vpop.eup %4729  ;;  %v2963_v45 = vadd.f32 %v2962_v53, %v2794_v46  ;;  %v3918_v53 = vld [vmem:[%s7024_s0 + $0x534] sm:$0xf0] }
 0x2fc   :  { %v3146_v14 = vpack.c.bf16 %v4730_v17, %v4730_v17  ;;  %v2457_v39 = vpop.f32.mrf.mxu3  ;;  %v3921_v17 = vor.u32 %v4537_v28, %v3918_v53 }
 0x2fd   :  { %4731 = vtanh.f32 %v2963_v45  ;;  %v2458_v29 = vadd.f32 %v2457_v39, %v7053_v5  ;;  %v2964_v23 = vpop.f32.mrf.mxu2 }
 0x2fe   :  { %3211 = vst.msk [vmem:[%s7025_s3 + $0x64] sm:$0xf] %vm3185_vm0, %v3146_v14  ;;  %v2629_v11 = vpop.f32.mrf.mxu0 }
 0x2ff   :  { %v2627_v48 = vadd.f32 %v2626_v25, %v2458_v29  ;;  %v7056_v29 = vld [vmem:[#allocation8_spill] sm:$0xff] }
 0x300   :  { %v2798_v56 = vpop.f32.mrf.mxu1 }
 0x301   :  { %v2796_v19 = vadd.f32 %v2795_v8, %v2627_v48  ;;  %2499 = vmatmul.bf16.gmra.mxu3 %v3885_v37  ;;  %2668 = vmatmul.bf16.gmra.mxu0 %v3889_v6  ;;  %v7055_v8 = vld [vmem:[#allocation7_spill] sm:$0xff] }
 0x302   :  { %3006 = vmatmul.bf16.gmra.mxu2 %v3897_v30  ;;  %v4543_v48 = vld [vmem:[%s7024_s0 + $0x54c] sm:$0xf] }
 0x303   :  { %2837 = vmatmul.bf16.gmra.mxu1 %v3893_v9  ;;  %v4732_v27 = vpop.eup %4731  ;;  %v2965_v61 = vadd.f32 %v2964_v23, %v2796_v19  ;;  %v3944_v19 = vld [vmem:[%s7024_s0 + $0x550] sm:$0xf] }
 0x304   :  { %v3147_v20 = vpack.c.bf16 %v4732_v27, %v4732_v27  ;;  %v2460_v40 = vpop.f32.mrf.mxu3  ;;  %v4547_v27 = vld [vmem:[%s7024_s0 + $0x568] sm:$0xf0] }
 0x305   :  { %4733 = vtanh.f32 %v2965_v61  ;;  %v2461_v10 = vadd.f32 %v2460_v40, %v7054_v55  ;;  %v2967_v3 = vpop.f32.mrf.mxu2  ;;  %v3952_v61 = vld [vmem:[%s7024_s0 + $0x558] sm:$0xf]  ;;  %v4548_v55 = vld [vmem:[%s7024_s0 + $0x570] sm:$0xf0]  ;;  %v3945_v42 = vor.u32 %v4547_v27, %v3944_v19 }
 0x306   :  { %3212 = vst.msk [vmem:[%s7025_s3 + $0x68] sm:$0xf] %vm3185_vm0, %v3147_v20  ;;  %v2631_v21 = vpop.f32.mrf.mxu0  ;;  %v3953_v2 = vor.u32 %v4548_v55, %v3952_v61 }
 0x307   :  { %v2630_v47 = vadd.f32 %v2629_v11, %v2461_v10  ;;  %v4544_v10 = vld [vmem:[%s7024_s0 + $0x554] sm:$0xf] }
 0x308   :  { %v2800_v43 = vpop.f32.mrf.mxu1 }
 0x309   :  { %v2799_v35 = vadd.f32 %v2798_v56, %v2630_v47  ;;  %v3938_v56 = vld [vmem:[%s7024_s0 + $0x564] sm:$0xf0] }
 0x30a   :  { %v3941_v7 = vor.u32 %v4543_v48, %v3938_v56 }
 0x30b   :  { %v4734_v16 = vpop.eup %4733  ;;  %v2968_v49 = vadd.f32 %v2967_v3, %v2799_v35  ;;  %v3946_v3 = vld [vmem:[%s7024_s0 + $0x56c] sm:$0xf0] }
 0x30c   :  { %v3148_v25 = vpack.c.bf16 %v4734_v16, %v4734_v16  ;;  %v2462_v13 = vpop.f32.mrf.mxu3  ;;  %v3949_v24 = vor.u32 %v4544_v10, %v3946_v3 }
 0x30d   :  { %4735 = vtanh.f32 %v2968_v49  ;;  %v2463_v46 = vadd.f32 %v2462_v13, %v7055_v8  ;;  %v2969_v41 = vpop.f32.mrf.mxu2  ;;  %v7057_v13 = vld [vmem:[#allocation10_spill] sm:$0xff] }
 0x30e   :  { %3213 = vst.msk [vmem:[%s7025_s3 + $0x6c] sm:$0xf] %vm3185_vm0, %v3148_v25  ;;  %v2634_v22 = vpop.f32.mrf.mxu0 }
 0x30f   :  { %v2632_v45 = vadd.f32 %v2631_v21, %v2463_v46 }
 0x310   :  { %v2803_v44 = vpop.f32.mrf.mxu1 }
 0x311   :  { %v2801_v60 = vadd.f32 %v2800_v43, %v2632_v45  ;;  %2504 = vmatmul.bf16.gmra.mxu3 %v3913_v50  ;;  %2673 = vmatmul.bf16.gmra.mxu0 %v3917_v12  ;;  %v3972_v45 = vld [vmem:[%s7024_s0 + $0x588] sm:$0xf] }
 0x312   :  { %3011 = vmatmul.bf16.gmra.mxu2 %v3925_v59  ;;  %v4550_v59 = vld [vmem:[%s7024_s0 + $0x584] sm:$0xf] }
 0x313   :  { %2842 = vmatmul.bf16.gmra.mxu1 %v3921_v17  ;;  %v4736_v57 = vpop.eup %4735  ;;  %v2970_v14 = vadd.f32 %v2969_v41, %v2801_v60  ;;  %v3966_v17 = vld [vmem:[%s7024_s0 + $0x59c] sm:$0xf0]  ;;  %v3980_v60 = vld [vmem:[%s7024_s0 + $0x590] sm:$0xf] }
 0x314   :  { %v3149_v39 = vpack.c.bf16 %v4736_v57, %v4736_v57  ;;  %v2465_v5 = vpop.f32.mrf.mxu3 }
 0x315   :  { %4737 = vtanh.f32 %v2970_v14  ;;  %v2466_v23 = vadd.f32 %v2465_v5, %v7056_v29  ;;  %v2972_v37 = vpop.f32.mrf.mxu2  ;;  %v4551_v5 = vld [vmem:[%s7024_s0 + $0x58c] sm:$0xf]  ;;  %v3974_v29 = vld [vmem:[%s7024_s0 + $0x5a4] sm:$0xf0] }
 0x316   :  { %3214 = vst.msk [vmem:[%s7025_s3 + $0x70] sm:$0xf] %vm3185_vm0, %v3149_v39  ;;  %v2636_v6 = vpop.f32.mrf.mxu0  ;;  %v4555_v39 = vld [vmem:[%s7024_s0 + $0x5a8] sm:$0xf0]  ;;  %v3977_v19 = vor.u32 %v4551_v5, %v3974_v29 }
 0x317   :  { %v2635_v11 = vadd.f32 %v2634_v22, %v2466_v23  ;;  %v3981_v56 = vor.u32 %v4555_v39, %v3980_v60 }
 0x318   :  { %v2805_v30 = vpop.f32.mrf.mxu1 }
 0x319   :  { %v2804_v9 = vadd.f32 %v2803_v44, %v2635_v11  ;;  %v4554_v44 = vld [vmem:[%s7024_s0 + $0x5a0] sm:$0xf0] }
 0x31b   :  { %v4738_v20 = vpop.eup %4737  ;;  %v2973_v40 = vadd.f32 %v2972_v37, %v2804_v9  ;;  %v3973_v9 = vor.u32 %v4554_v44, %v3972_v45 }
 0x31c   :  { %v3150_v21 = vpack.c.bf16 %v4738_v20, %v4738_v20  ;;  %v2467_v47 = vpop.f32.mrf.mxu3 }
 0x31d   :  { %4739 = vtanh.f32 %v2973_v40  ;;  %v2468_v43 = vadd.f32 %v2467_v47, %v5860_v26  ;;  %v2974_v35 = vpop.f32.mrf.mxu2 }
 0x31e   :  { %3215 = vst.msk [vmem:[%s7025_s3 + $0x74] sm:$0xf] %vm3185_vm0, %v3150_v21  ;;  %v2639_v34 = vpop.f32.mrf.mxu0 }
 0x31f   :  { %v2637_v16 = vadd.f32 %v2636_v6, %v2468_v43 }
 0x320   :  { %v2808_v49 = vpop.f32.mrf.mxu1 }
 0x321   :  { %v2806_v18 = vadd.f32 %v2805_v30, %v2637_v16  ;;  %2509 = vmatmul.bf16.gmra.mxu3 %v3941_v7  ;;  %2678 = vmatmul.bf16.gmra.mxu0 %v3945_v42  ;;  %v3969_v30 = vor.u32 %v4550_v59, %v3966_v17  ;;  %v4557_v42 = vld [vmem:[%s7024_s0 + $0x5bc] sm:$0xf] }
 0x322   :  { %3016 = vmatmul.bf16.gmra.mxu2 %v3953_v2  ;;  %v4561_v2 = vld [vmem:[%s7024_s0 + $0x5d8] sm:$0xf0] }
 0x323   :  { %2847 = vmatmul.bf16.gmra.mxu1 %v3949_v24  ;;  %v4740_v28 = vpop.eup %4739  ;;  %v2975_v26 = vadd.f32 %v2974_v35, %v2806_v18  ;;  %v4008_v24 = vld [vmem:[%s7024_s0 + $0x5c8] sm:$0xf]  ;;  %v4562_v18 = vld [vmem:[%s7024_s0 + $0x5e0] sm:$0xf0] }
 0x324   :  { %v3151_v53 = vpack.c.bf16 %v4740_v28, %v4740_v28  ;;  %v2470_v25 = vpop.f32.mrf.mxu3  ;;  %v4558_v28 = vld [vmem:[%s7024_s0 + $0x5c4] sm:$0xf] }
 0x325   :  { %4741 = vtanh.f32 %v2975_v26  ;;  %v2471_v8 = vadd.f32 %v2470_v25, %v7057_v13  ;;  %v2977_v46 = vpop.f32.mrf.mxu2  ;;  %v4002_v26 = vld [vmem:[%s7024_s0 + $0x5dc] sm:$0xf0] }
 0x326   :  { %3216 = vst.msk [vmem:[%s7025_s3 + $0x78] sm:$0xf] %vm3185_vm0, %v3151_v53  ;;  %v2641_v41 = vpop.f32.mrf.mxu0 }
 0x327   :  { %v2640_v50 = vadd.f32 %v2639_v34, %v2471_v8  ;;  %v3994_v34 = vld [vmem:[%s7024_s0 + $0x5d4] sm:$0xf0] }
 0x328   :  { %v2810_v12 = vpop.f32.mrf.mxu1 }
 0x329   :  { %v2809_v22 = vadd.f32 %v2808_v49, %v2640_v50 }
 0x32b   :  { %v4742_v57 = vpop.eup %4741  ;;  %v2978_v14 = vadd.f32 %v2977_v46, %v2809_v22  ;;  %v3997_v46 = vor.u32 %v4557_v42, %v3994_v34  ;;  %v4005_v22 = vor.u32 %v4558_v28, %v4002_v26 }
 0x32c   :  { %v3152_v23 = vpack.c.bf16 %v4742_v57, %v4742_v57  ;;  %v2472_v37 = vpop.f32.mrf.mxu3 }
 0x32d   :  { %4743 = vtanh.f32 %v2978_v14  ;;  %v2473_v6 = vadd.f32 %v2472_v37, %v5896_v32  ;;  %v2979_v11 = vpop.f32.mrf.mxu2 }
 0x32e   :  { %3217 = vst.msk [vmem:[%s7025_s3 + $0x7c] sm:$0xf] %vm3185_vm0, %v3152_v23  ;;  %v2644_v48 = vpop.f32.mrf.mxu0 }
 0x32f   :  { %v2642_v27 = vadd.f32 %v2641_v41, %v2473_v6  ;;  %v4564_v6 = vld [vmem:[%s7024_s0 + $0x5f4] sm:$0xf] }
 0x330   :  { %v2813_v61 = vpop.f32.mrf.mxu1 }
 0x331   :  { %v2811_v20 = vadd.f32 %v2810_v12, %v2642_v27  ;;  %2514 = vmatmul.bf16.gmra.mxu3 %v3969_v30  ;;  %2683 = vmatmul.bf16.gmra.mxu0 %v3973_v9  ;;  %v4009_v12 = vor.u32 %v4562_v18, %v4008_v24  ;;  %v4568_v30 = vld [vmem:[%s7024_s0 + $0x610] sm:$0xf0]  ;;  %v4036_v9 = vld [vmem:[%s7024_s0 + $0x600] sm:$0xf]  ;;  %v4565_v27 = vld [vmem:[%s7024_s0 + $0x5fc] sm:$0xf] }
 0x332   :  { %3021 = vmatmul.bf16.gmra.mxu2 %v3981_v56 }
 0x333   :  { %2852 = vmatmul.bf16.gmra.mxu1 %v3977_v19  ;;  %v4744_v40 = vpop.eup %4743  ;;  %v2980_v32 = vadd.f32 %v2979_v11, %v2811_v20  ;;  %v4022_v11 = vld [vmem:[%s7024_s0 + $0x60c] sm:$0xf0]  ;;  %v4569_v19 = vld [vmem:[%s7024_s0 + $0x618] sm:$0xf0] }
 0x334   :  { %v3153_v55 = vpack.c.bf16 %v4744_v40, %v4744_v40  ;;  %v2475_v10 = vpop.f32.mrf.mxu3 }
 0x335   :  { %4745 = vtanh.f32 %v2980_v32  ;;  %v2476_v3 = vadd.f32 %v2475_v10, %v5902_v51  ;;  %v2982_v21 = vpop.f32.mrf.mxu2  ;;  %v4000_v51 = vld [vmem:[%s7024_s0 + $0x5c0] sm:$0xf]  ;;  %v4025_v10 = vor.u32 %v4564_v6, %v4022_v11 }
 0x336   :  { %3218 = vst.msk [vmem:[%s7025_s3 + $0x80] sm:$0xf] %vm3185_vm0, %v3153_v55  ;;  %v2646_v47 = vpop.f32.mrf.mxu0  ;;  %v4001_v41 = vor.u32 %v4561_v2, %v4000_v51 }
 0x337   :  { %v2645_v43 = vadd.f32 %v2644_v48, %v2476_v3 }
 0x338   :  { %v2815_v35 = vpop.f32.mrf.mxu1 }
 0x339   :  { %v2814_v7 = vadd.f32 %v2813_v61, %v2645_v43  ;;  %v4030_v61 = vld [vmem:[%s7024_s0 + $0x614] sm:$0xf0] }
 0x33a   :  { %v4033_v43 = vor.u32 %v4565_v27, %v4030_v61  ;;  %v4578_v27 = vld [vmem:[%s7024_s0 + $0x664] sm:$0xf]  ;;  %v4078_v61 = vld [vmem:[%s7024_s0 + $0x67c] sm:$0xf0] }
 0x33b   :  { %v4746_v16 = vpop.eup %4745  ;;  %v2983_v49 = vadd.f32 %v2982_v21, %v2814_v7 }
 0x33c   :  { %v3154_v53 = vpack.c.bf16 %v4746_v16, %v4746_v16  ;;  %v2477_v25 = vpop.f32.mrf.mxu3 }
 0x33d   :  { %4747 = vtanh.f32 %v2983_v49  ;;  %v2478_v13 = vadd.f32 %v2477_v25, %v5932_v36  ;;  %v2984_v8 = vpop.f32.mrf.mxu2  ;;  %v4050_v25 = vld [vmem:[%s7024_s0 + $0x644] sm:$0xf0] }
 0x33e   :  { %3219 = vst.msk [vmem:[%s7025_s3 + $0x84] sm:$0xf] %vm3185_vm0, %v3154_v53  ;;  %v2649_v50 = vpop.f32.mrf.mxu0  ;;  %v4571_v53 = vld [vmem:[%s7024_s0 + $0x62c] sm:$0xf] }
 0x33f   :  { %v2647_v59 = vadd.f32 %v2646_v47, %v2478_v13  ;;  %v4037_v47 = vor.u32 %v4569_v19, %v4036_v9  ;;  %v4575_v13 = vld [vmem:[%s7024_s0 + $0x648] sm:$0xf0] }
 0x340   :  { %v2818_v17 = vpop.f32.mrf.mxu1 }
 0x341   :  { %v2816_v45 = vadd.f32 %v2815_v35, %v2647_v59  ;;  %2519 = vmatmul.bf16.gmra.mxu3 %v3997_v46  ;;  %2688 = vmatmul.bf16.gmra.mxu0 %v4001_v41 }
 0x342   :  { %3026 = vmatmul.bf16.gmra.mxu2 %v4009_v12  ;;  %v4572_v12 = vld [vmem:[%s7024_s0 + $0x634] sm:$0xf] }
 0x343   :  { %2857 = vmatmul.bf16.gmra.mxu1 %v4005_v22  ;;  %v4748_v44 = vpop.eup %4747  ;;  %v2985_v36 = vadd.f32 %v2984_v8, %v2816_v45  ;;  %v4064_v8 = vld [vmem:[%s7024_s0 + $0x638] sm:$0xf]  ;;  %v4058_v22 = vld [vmem:[%s7024_s0 + $0x64c] sm:$0xf0] }
 0x344   :  { %v3155_v60 = vpack.c.bf16 %v4748_v44, %v4748_v44  ;;  %v2480_v57 = vpop.f32.mrf.mxu3 }
 0x345   :  { %4749 = vtanh.f32 %v2985_v36  ;;  %v2481_v14 = vadd.f32 %v2480_v57, %v5938_v62  ;;  %v2987_v39 = vpop.f32.mrf.mxu2  ;;  %v4028_v62 = vld [vmem:[%s7024_s0 + $0x5f8] sm:$0xf]  ;;  %v4053_v36 = vor.u32 %v4571_v53, %v4050_v25 }
 0x346   :  { %3220 = vst.msk [vmem:[%s7025_s3 + $0x88] sm:$0xf] %vm3185_vm0, %v3155_v60  ;;  %v2651_v5 = vpop.f32.mrf.mxu0  ;;  %v4029_v3 = vor.u32 %v4568_v30, %v4028_v62 }
 0x347   :  { %v2650_v29 = vadd.f32 %v2649_v50, %v2481_v14  ;;  %v4576_v50 = vld [vmem:[%s7024_s0 + $0x650] sm:$0xf0] }
 0x348   :  { %v2820_v23 = vpop.f32.mrf.mxu1  ;;  %v4065_v14 = vor.u32 %v4576_v50, %v4064_v8  ;;  %v4106_v50 = vld [vmem:[%s7024_s0 + $0x6b4] sm:$0xf0] }
 0x349   :  { %v2819_v37 = vadd.f32 %v2818_v17, %v2650_v29 }
 0x34b   :  { %v4750_v48 = vpop.eup %4749  ;;  %v2988_v56 = vadd.f32 %v2987_v39, %v2819_v37  ;;  %v4061_v39 = vor.u32 %v4572_v12, %v4058_v22  ;;  %v4589_v12 = vld [vmem:[%s7024_s0 + $0x6b8] sm:$0xf0]  ;;  %v4120_v22 = vld [vmem:[%s7024_s0 + $0x6a8] sm:$0xf] }
 0x34c   :  { %v3156_v20 = vpack.c.bf16 %v4750_v48, %v4750_v48  ;;  %v2482_v40 = vpop.f32.mrf.mxu3 }
 0x34d   :  { %4751 = vtanh.f32 %v2988_v56  ;;  %v2483_v32 = vadd.f32 %v2482_v40, %v5968_v1  ;;  %v2989_v55 = vpop.f32.mrf.mxu2  ;;  %v4092_v40 = vld [vmem:[%s7024_s0 + $0x670] sm:$0xf] }
 0x34e   :  { %3221 = vst.msk [vmem:[%s7025_s3 + $0x8c] sm:$0xf] %vm3185_vm0, %v3156_v20  ;;  %v2654_v21 = vpop.f32.mrf.mxu0  ;;  %v4582_v20 = vld [vmem:[%s7024_s0 + $0x680] sm:$0xf0] }
 0x34f   :  { %v2652_v35 = vadd.f32 %v2651_v5, %v2483_v32 }
 0x350   :  { %v2823_v7 = vpop.f32.mrf.mxu1 }
 0x351   :  { %v2821_v42 = vadd.f32 %v2820_v23, %v2652_v35  ;;  %2524 = vmatmul.bf16.gmra.mxu3 %v4025_v10  ;;  %2693 = vmatmul.bf16.gmra.mxu0 %v4029_v3  ;;  %v4583_v10 = vld [vmem:[%s7024_s0 + $0x688] sm:$0xf0] }
 0x352   :  { %3031 = vmatmul.bf16.gmra.mxu2 %v4037_v47  ;;  %v4579_v3 = vld [vmem:[%s7024_s0 + $0x66c] sm:$0xf] }
 0x353   :  { %2862 = vmatmul.bf16.gmra.mxu1 %v4033_v43  ;;  %v4752_v34 = vpop.eup %4751  ;;  %v2990_v1 = vadd.f32 %v2989_v55, %v2821_v42  ;;  %v4081_v42 = vor.u32 %v4578_v27, %v4078_v61 }
 0x354   :  { %v3157_v51 = vpack.c.bf16 %v4752_v34, %v4752_v34  ;;  %v2485_v2 = vpop.f32.mrf.mxu3 }
 0x355   :  { %4753 = vtanh.f32 %v2990_v1  ;;  %v2486_v24 = vadd.f32 %v2485_v2, %v5974_v4  ;;  %v2992_v16 = vpop.f32.mrf.mxu2  ;;  %v4056_v4 = vld [vmem:[%s7024_s0 + $0x630] sm:$0xf] }
 0x356   :  { %3222 = vst.msk [vmem:[%s7025_s3 + $0x90] sm:$0xf] %vm3185_vm0, %v3157_v51  ;;  %v2656_v49 = vpop.f32.mrf.mxu0  ;;  %v4057_v60 = vor.u32 %v4575_v13, %v4056_v4  ;;  %v4093_v51 = vor.u32 %v4583_v10, %v4092_v40  ;;  %v4592_v40 = vld [vmem:[%s7024_s0 + $0x6d4] sm:$0xf]  ;;  %v4148_v10 = vld [vmem:[%s7024_s0 + $0x6e0] sm:$0xf] }
 0x357   :  { %v2655_v18 = vadd.f32 %v2654_v21, %v2486_v24  ;;  %v4086_v21 = vld [vmem:[%s7024_s0 + $0x684] sm:$0xf0] }
 0x358   :  { %v2825_v28 = vpop.f32.mrf.mxu1  ;;  %v4089_v2 = vor.u32 %v4579_v3, %v4086_v21 }
 0x359   :  { %v2824_v26 = vadd.f32 %v2823_v7, %v2655_v18 }
 0x35b   :  { %v4754_v46 = vpop.eup %4753  ;;  %v2993_v41 = vadd.f32 %v2992_v16, %v2824_v26 }
 0x35c   :  { %v3158_v59 = vpack.c.bf16 %v4754_v46, %v4754_v46  ;;  %v2487_v17 = vpop.f32.mrf.mxu3 }
 0x35d   :  { %4755 = vtanh.f32 %v2993_v41  ;;  %v2488_v45 = vadd.f32 %v2487_v17, %v6004_v58  ;;  %v2994_v44 = vpop.f32.mrf.mxu2  ;;  %v4585_v41 = vld [vmem:[%s7024_s0 + $0x69c] sm:$0xf] }
 0x35e   :  { %3223 = vst.msk [vmem:[%s7025_s3 + $0x94] sm:$0xf] %vm3185_vm0, %v3158_v59  ;;  %v2659_v57 = vpop.f32.mrf.mxu0 }
 0x35f   :  { %v2657_v5 = vadd.f32 %v2656_v49, %v2488_v45  ;;  %v4590_v45 = vld [vmem:[%s7024_s0 + $0x6c0] sm:$0xf0] }
 0x360   :  { %v2828_v29 = vpop.f32.mrf.mxu1 }
 0x361   :  { %v2826_v23 = vadd.f32 %v2825_v28, %v2657_v5  ;;  %2529 = vmatmul.bf16.gmra.mxu3 %v4053_v36  ;;  %2698 = vmatmul.bf16.gmra.mxu0 %v4057_v60  ;;  %v4114_v36 = vld [vmem:[%s7024_s0 + $0x6bc] sm:$0xf0]  ;;  %v4109_v5 = vor.u32 %v4585_v41, %v4106_v50 }
 0x362   :  { %3036 = vmatmul.bf16.gmra.mxu2 %v4065_v14 }
 0x363   :  { %2867 = vmatmul.bf16.gmra.mxu1 %v4061_v39  ;;  %v4756_v37 = vpop.eup %4755  ;;  %v2995_v58 = vadd.f32 %v2994_v44, %v2826_v23  ;;  %v4586_v44 = vld [vmem:[%s7024_s0 + $0x6a4] sm:$0xf] }
 0x364   :  { %v3159_v6 = vpack.c.bf16 %v4756_v37, %v4756_v37  ;;  %v2490_v11 = vpop.f32.mrf.mxu3  ;;  %v4121_v37 = vor.u32 %v4590_v45, %v4120_v22 }
 0x365   :  { %4757 = vtanh.f32 %v2995_v58  ;;  %v2491_v62 = vadd.f32 %v2490_v11, %v6010_v33  ;;  %v2997_v30 = vpop.f32.mrf.mxu2  ;;  %v4084_v33 = vld [vmem:[%s7024_s0 + $0x668] sm:$0xf]  ;;  %v4117_v58 = vor.u32 %v4586_v44, %v4114_v36 }
 0x366   :  { %3224 = vst.msk [vmem:[%s7025_s3 + $0x98] sm:$0xf] %vm3185_vm0, %v3159_v6  ;;  %v2661_v9 = vpop.f32.mrf.mxu0  ;;  %v4085_v34 = vor.u32 %v4582_v20, %v4084_v33 }
 0x367   :  { %v2660_v48 = vadd.f32 %v2659_v57, %v2491_v62 }
 0x368   :  { %v2830_v56 = vpop.f32.mrf.mxu1 }
 0x369   :  { %v2829_v19 = vadd.f32 %v2828_v29, %v2660_v48 }
 0x36b   :  { %v4758_v32 = vpop.eup %4757  ;;  %v2998_v55 = vadd.f32 %v2997_v30, %v2829_v19 }
 0x36c   :  { %v3160_v47 = vpack.c.bf16 %v4758_v32, %v4758_v32  ;;  %v2492_v43 = vpop.f32.mrf.mxu3  ;;  %v4134_v32 = vld [vmem:[%s7024_s0 + $0x6ec] sm:$0xf0] }
 0x36d   :  { %4759 = vtanh.f32 %v2998_v55  ;;  %v2493_v35 = vadd.f32 %v2492_v43, %v6040_v63  ;;  %v2999_v7 = vpop.f32.mrf.mxu2  ;;  %v4596_v55 = vld [vmem:[%s7024_s0 + $0x6f0] sm:$0xf0]  ;;  %v4593_v43 = vld [vmem:[%s7024_s0 + $0x6dc] sm:$0xf] }
 0x36e   :  { %3225 = vst.msk [vmem:[%s7025_s3 + $0x9c] sm:$0xf] %vm3185_vm0, %v3160_v47  ;;  %v2664_v1 = vpop.f32.mrf.mxu0  ;;  %v4597_v47 = vld [vmem:[%s7024_s0 + $0x6f8] sm:$0xf0] }
 0x36f   :  { %v2662_v24 = vadd.f32 %v2661_v9, %v2493_v35  ;;  %v4142_v35 = vld [vmem:[%s7024_s0 + $0x6f4] sm:$0xf0] }
 0x370   :  { %v2833_v16 = vpop.f32.mrf.mxu1 }
 0x371   :  { %v2831_v49 = vadd.f32 %v2830_v56, %v2662_v24  ;;  %2534 = vmatmul.bf16.gmra.mxu3 %v4081_v42  ;;  %2703 = vmatmul.bf16.gmra.mxu0 %v4085_v34 }
 0x372   :  { %3041 = vmatmul.bf16.gmra.mxu2 %v4093_v51  ;;  %v4137_v51 = vor.u32 %v4592_v40, %v4134_v32 }
 0x373   :  { %2872 = vmatmul.bf16.gmra.mxu1 %v4089_v2  ;;  %v4760_v18 = vpop.eup %4759  ;;  %v3000_v63 = vadd.f32 %v2999_v7, %v2831_v49  ;;  %v4145_v49 = vor.u32 %v4593_v43, %v4142_v35 }
 0x374   :  { %v3161_v28 = vpack.c.bf16 %v4760_v18, %v4760_v18  ;;  %v2495_v26 = vpop.f32.mrf.mxu3 }
 0x375   :  { %4761 = vtanh.f32 %v3000_v63  ;;  %v2496_v53 = vadd.f32 %v2495_v26, %v6046_v31  ;;  %v3002_v25 = vpop.f32.mrf.mxu2  ;;  %v4112_v31 = vld [vmem:[%s7024_s0 + $0x6a0] sm:$0xf] }
 0x376   :  { %3226 = vst.msk [vmem:[%s7025_s3 + $0xa0] sm:$0xf] %vm3185_vm0, %v3161_v28  ;;  %v2666_v4 = vpop.f32.mrf.mxu0  ;;  %v4113_v29 = vor.u32 %v4589_v12, %v4112_v31 }
 0x377   :  { %v2665_v13 = vadd.f32 %v2664_v1, %v2496_v53 }
 0x378   :  { %v2835_v8 = vpop.f32.mrf.mxu1 }
 0x379   :  { %v2834_v46 = vadd.f32 %v2833_v16, %v2665_v13  ;;  %v4149_v16 = vor.u32 %v4597_v47, %v4148_v10  ;;  %v7060_v10 = vld [vmem:[#allocation12_spill] sm:$0xff] }
 0x37b   :  { %v4762_v59 = vpop.eup %4761  ;;  %v3003_v17 = vadd.f32 %v3002_v25, %v2834_v46 }
 0x37c   :  { %v3162_v60 = vpack.c.bf16 %v4762_v59, %v4762_v59  ;;  %v2497_v57 = vpop.f32.mrf.mxu3 }
 0x37d   :  { %4763 = vtanh.f32 %v3003_v17  ;;  %v2498_v14 = vadd.f32 %v2497_v57, %v6076_v0  ;;  %v3004_v39 = vpop.f32.mrf.mxu2 }
 0x37e   :  { %3227 = vst.msk [vmem:[%s7025_s3 + $0xa4] sm:$0xf] %vm3185_vm0, %v3162_v60  ;;  %v2669_v23 = vpop.f32.mrf.mxu0 }
 0x37f   :  { %v2667_v6 = vadd.f32 %v2666_v4, %v2498_v14 }
 0x380   :  { %v2838_v11 = vpop.f32.mrf.mxu1 }
 0x381   :  { %v2836_v62 = vadd.f32 %v2835_v8, %v2667_v6  ;;  %2539 = vmatmul.bf16.gmra.mxu3 %v4109_v5  ;;  %2708 = vmatmul.bf16.gmra.mxu0 %v4113_v29  ;;  %v7058_v29 = vld [vmem:[#allocation9_spill] sm:$0xff] }
 0x382   :  { %3046 = vmatmul.bf16.gmra.mxu2 %v4121_v37 }
 0x383   :  { %2877 = vmatmul.bf16.gmra.mxu1 %v4117_v58  ;;  %v4764_v30 = vpop.eup %4763  ;;  %v3005_v0 = vadd.f32 %v3004_v39, %v2836_v62 }
 0x384   :  { %v3163_v9 = vpack.c.bf16 %v4764_v30, %v4764_v30  ;;  %v2500_v48 = vpop.f32.mrf.mxu3 }
 0x385   :  { %4765 = vtanh.f32 %v3005_v0  ;;  %v2501_v56 = vadd.f32 %v2500_v48, %v6082_v38  ;;  %v3007_v19 = vpop.f32.mrf.mxu2  ;;  %v4140_v38 = vld [vmem:[%s7024_s0 + $0x6d8] sm:$0xf]  ;;  %v7059_v48 = vld [vmem:[#allocation11_spill] sm:$0xff] }
 0x386   :  { %3228 = vst.msk [vmem:[%s7025_s3 + $0xa8] sm:$0xf] %vm3185_vm0, %v3163_v9  ;;  %v2671_v27 = vpop.f32.mrf.mxu0  ;;  %v4141_v2 = vor.u32 %v4596_v55, %v4140_v38 }
 0x387   :  { %v2670_v61 = vadd.f32 %v2669_v23, %v2501_v56 }
 0x388   :  { %v2840_v33 = vpop.f32.mrf.mxu1 }
 0x389   :  { %v2839_v20 = vadd.f32 %v2838_v11, %v2670_v61 }
 0x38b   :  { %v4766_v3 = vpop.eup %4765  ;;  %v3008_v21 = vadd.f32 %v3007_v19, %v2839_v20 }
 0x38c   :  { %v3164_v7 = vpack.c.bf16 %v4766_v3, %v4766_v3  ;;  %v2502_v42 = vpop.f32.mrf.mxu3 }
 0x38d   :  { %4767 = vtanh.f32 %v3008_v21  ;;  %v2503_v34 = vadd.f32 %v2502_v42, %v6112_v15  ;;  %v3009_v1 = vpop.f32.mrf.mxu2 }
 0x38e   :  { %3229 = vst.msk [vmem:[%s7025_s3 + $0xac] sm:$0xf] %vm3185_vm0, %v3164_v7  ;;  %v2674_v24 = vpop.f32.mrf.mxu0 }
 0x38f   :  { %v2672_v18 = vadd.f32 %v2671_v27, %v2503_v34 }
 0x390   :  { %v2843_v63 = vpop.f32.mrf.mxu1 }
 0x391   :  { %v2841_v28 = vadd.f32 %v2840_v33, %v2672_v18  ;;  %2544 = vmatmul.bf16.gmra.mxu3 %v4137_v51  ;;  %2713 = vmatmul.bf16.gmra.mxu0 %v4141_v2  ;;  %v7061_v2 = vld [vmem:[#allocation13_spill] sm:$0xff] }
 0x392   :  { %3051 = vmatmul.bf16.gmra.mxu2 %v4149_v16 }
 0x393   :  { %2882 = vmatmul.bf16.gmra.mxu1 %v4145_v49  ;;  %v4768_v26 = vpop.eup %4767  ;;  %v3010_v15 = vadd.f32 %v3009_v1, %v2841_v28 }
 0x394   :  { %v3165_v53 = vpack.c.bf16 %v4768_v26, %v4768_v26  ;;  %v2505_v25 = vpop.f32.mrf.mxu3 }
 0x395   :  { %4769 = vtanh.f32 %v3010_v15  ;;  %v2506_v4 = vadd.f32 %v2505_v25, %v6118_v54  ;;  %v3012_v13 = vpop.f32.mrf.mxu2 }
 0x396   :  { %3230 = vst.msk [vmem:[%s7025_s3 + $0xb0] sm:$0xf] %vm3185_vm0, %v3165_v53  ;;  %v2676_v8 = vpop.f32.mrf.mxu0 }
 0x397   :  { %v2675_v46 = vadd.f32 %v2674_v24, %v2506_v4  ;;  %v7062_v4 = vld [vmem:[#allocation14_spill] sm:$0xff] }
 0x398   :  { %v2845_v41 = vpop.f32.mrf.mxu1 }
 0x399   :  { %v2844_v50 = vadd.f32 %v2843_v63, %v2675_v46 }
 0x39b   :  { %v4770_v31 = vpop.eup %4769  ;;  %v3013_v12 = vadd.f32 %v3012_v13, %v2844_v50 }
 0x39c   :  { %v3166_v22 = vpack.c.bf16 %v4770_v31, %v4770_v31  ;;  %v2507_v59 = vpop.f32.mrf.mxu3 }
 0x39d   :  { %4771 = vtanh.f32 %v3013_v12  ;;  %v2508_v17 = vadd.f32 %v2507_v59, %v6148_v52  ;;  %v3014_v45 = vpop.f32.mrf.mxu2 }
 0x39e   :  { %3231 = vst.msk [vmem:[%s7025_s3 + $0xb4] sm:$0xf] %vm3185_vm0, %v3166_v22  ;;  %v2679_v54 = vpop.f32.mrf.mxu0 }
 0x39f   :  { %v2677_v44 = vadd.f32 %v2676_v8, %v2508_v17 }
 0x3a0   :  { %v2848_v36 = vpop.f32.mrf.mxu1 }
 0x3a1   :  { %v2846_v60 = vadd.f32 %v2845_v41, %v2677_v44 }
 0x3a3   :  { %v4772_v57 = vpop.eup %4771  ;;  %v3015_v14 = vadd.f32 %v3014_v45, %v2846_v60  ;;  %v7063_v45 = vld [vmem:[#allocation15_spill] sm:$0xff] }
 0x3a4   :  { %v3167_v39 = vpack.c.bf16 %v4772_v57, %v4772_v57  ;;  %v2510_v5 = vpop.f32.mrf.mxu3 }
 0x3a5   :  { %4773 = vtanh.f32 %v3015_v14  ;;  %v2511_v23 = vadd.f32 %v2510_v5, %v7058_v29  ;;  %v3017_v37 = vpop.f32.mrf.mxu2 }
 0x3a6   :  { %3232 = vst.msk [vmem:[%s7025_s3 + $0xb8] sm:$0xf] %vm3185_vm0, %v3167_v39  ;;  %v2681_v52 = vpop.f32.mrf.mxu0 }
 0x3a7   :  { %v2680_v58 = vadd.f32 %v2679_v54, %v2511_v23 }
 0x3a8   :  { %v2850_v6 = vpop.f32.mrf.mxu1 }
 0x3a9   :  { %v2849_v11 = vadd.f32 %v2848_v36, %v2680_v58 }
 0x3ab   :  { %v4774_v62 = vpop.eup %4773  ;;  %v3018_v30 = vadd.f32 %v3017_v37, %v2849_v11  ;;  %v7064_v37 = vld [vmem:[#allocation16_spill] sm:$0xff] }
 0x3ac   :  { %v3168_v0 = vpack.c.bf16 %v4774_v62, %v4774_v62  ;;  %v2512_v9 = vpop.f32.mrf.mxu3 }
 0x3ad   :  { %4775 = vtanh.f32 %v3018_v30  ;;  %v2513_v56 = vadd.f32 %v2512_v9, %v7059_v48  ;;  %v3019_v19 = vpop.f32.mrf.mxu2 }
 0x3ae   :  { %3233 = vst.msk [vmem:[%s7025_s3 + $0xbc] sm:$0xf] %vm3185_vm0, %v3168_v0  ;;  %v2684_v27 = vpop.f32.mrf.mxu0 }
 0x3af   :  { %v2682_v61 = vadd.f32 %v2681_v52, %v2513_v56 }
 0x3b0   :  { %v2853_v33 = vpop.f32.mrf.mxu1 }
 0x3b1   :  { %v2851_v20 = vadd.f32 %v2850_v6, %v2682_v61 }
 0x3b3   :  { %v4776_v40 = vpop.eup %4775  ;;  %v3020_v32 = vadd.f32 %v3019_v19, %v2851_v20  ;;  %v7065_v19 = vld [vmem:[#allocation17_spill] sm:$0xff] }
 0x3b4   :  { %v3169_v38 = vpack.c.bf16 %v4776_v40, %v4776_v40  ;;  %v2515_v55 = vpop.f32.mrf.mxu3 }
 0x3b5   :  { %4777 = vtanh.f32 %v3020_v32  ;;  %v2516_v3 = vadd.f32 %v2515_v55, %v7060_v10  ;;  %v3022_v21 = vpop.f32.mrf.mxu2 }
 0x3b6   :  { %3234 = vst.msk [vmem:[%s7025_s3 + $0xc0] sm:$0xf] %vm3185_vm0, %v3169_v38  ;;  %v2686_v47 = vpop.f32.mrf.mxu0 }
 0x3b7   :  { %v2685_v43 = vadd.f32 %v2684_v27, %v2516_v3 }
 0x3b8   :  { %v2855_v35 = vpop.f32.mrf.mxu1 }
 0x3b9   :  { %v2854_v7 = vadd.f32 %v2853_v33, %v2685_v43 }
 0x3bb   :  { %v4778_v42 = vpop.eup %4777  ;;  %v3023_v34 = vadd.f32 %v3022_v21, %v2854_v7  ;;  %v7066_v21 = vld [vmem:[#allocation18_spill] sm:$0xff] }
 0x3bc   :  { %v3170_v1 = vpack.c.bf16 %v4778_v42, %v4778_v42  ;;  %v2517_v51 = vpop.f32.mrf.mxu3 }
 0x3bd   :  { %4779 = vtanh.f32 %v3023_v34  ;;  %v2518_v24 = vadd.f32 %v2517_v51, %v7061_v2  ;;  %v3024_v16 = vpop.f32.mrf.mxu2 }
 0x3be   :  { %3235 = vst.msk [vmem:[%s7025_s3 + $0xc4] sm:$0xf] %vm3185_vm0, %v3170_v1  ;;  %v2689_v49 = vpop.f32.mrf.mxu0 }
 0x3bf   :  { %v2687_v18 = vadd.f32 %v2686_v47, %v2518_v24 }
 0x3c0   :  { %v2858_v63 = vpop.f32.mrf.mxu1 }
 0x3c1   :  { %v2856_v28 = vadd.f32 %v2855_v35, %v2687_v18 }
 0x3c3   :  { %v4780_v26 = vpop.eup %4779  ;;  %v3025_v15 = vadd.f32 %v3024_v16, %v2856_v28  ;;  %v7067_v16 = vld [vmem:[#allocation19_spill] sm:$0xff] }
 0x3c4   :  { %v3171_v53 = vpack.c.bf16 %v4780_v26, %v4780_v26  ;;  %v2520_v25 = vpop.f32.mrf.mxu3 }
 0x3c5   :  { %4781 = vtanh.f32 %v3025_v15  ;;  %v2521_v13 = vadd.f32 %v2520_v25, %v7062_v4  ;;  %v3027_v8 = vpop.f32.mrf.mxu2 }
 0x3c6   :  { %3236 = vst.msk [vmem:[%s7025_s3 + $0xc8] sm:$0xf] %vm3185_vm0, %v3171_v53  ;;  %v2691_v46 = vpop.f32.mrf.mxu0 }
 0x3c7   :  { %v2690_v41 = vadd.f32 %v2689_v49, %v2521_v13 }
 0x3c8   :  { %v2860_v50 = vpop.f32.mrf.mxu1 }
 0x3c9   :  { %v2859_v31 = vadd.f32 %v2858_v63, %v2690_v41 }
 0x3cb   :  { %v4782_v12 = vpop.eup %4781  ;;  %v3028_v22 = vadd.f32 %v3027_v8, %v2859_v31  ;;  %v7068_v8 = vld [vmem:[#allocation20_spill] sm:$0xff] }
 0x3cc   :  { %v3172_v59 = vpack.c.bf16 %v4782_v12, %v4782_v12  ;;  %v2522_v17 = vpop.f32.mrf.mxu3 }
 0x3cd   :  { %4783 = vtanh.f32 %v3028_v22  ;;  %v2523_v54 = vadd.f32 %v2522_v17, %v7063_v45  ;;  %v3029_v44 = vpop.f32.mrf.mxu2 }
 0x3ce   :  { %3237 = vst.msk [vmem:[%s7025_s3 + $0xcc] sm:$0xf] %vm3185_vm0, %v3172_v59  ;;  %v2694_v36 = vpop.f32.mrf.mxu0 }
 0x3cf   :  { %v2692_v60 = vadd.f32 %v2691_v46, %v2523_v54 }
 0x3d0   :  { %v2863_v57 = vpop.f32.mrf.mxu1 }
 0x3d1   :  { %v2861_v14 = vadd.f32 %v2860_v50, %v2692_v60 }
 0x3d3   :  { %v4784_v39 = vpop.eup %4783  ;;  %v3030_v5 = vadd.f32 %v3029_v44, %v2861_v14  ;;  %v7069_v44 = vld [vmem:[#allocation21_spill] sm:$0xff] }
 0x3d4   :  { %v3173_v29 = vpack.c.bf16 %v4784_v39, %v4784_v39  ;;  %v2525_v23 = vpop.f32.mrf.mxu3 }
 0x3d5   :  { %4785 = vtanh.f32 %v3030_v5  ;;  %v2526_v52 = vadd.f32 %v2525_v23, %v7064_v37  ;;  %v3032_v58 = vpop.f32.mrf.mxu2 }
 0x3d6   :  { %3238 = vst.msk [vmem:[%s7025_s3 + $0xd0] sm:$0xf] %vm3185_vm0, %v3173_v29  ;;  %v2696_v6 = vpop.f32.mrf.mxu0 }
 0x3d7   :  { %v2695_v11 = vadd.f32 %v2694_v36, %v2526_v52 }
 0x3d8   :  { %v2865_v62 = vpop.f32.mrf.mxu1 }
 0x3d9   :  { %v2864_v30 = vadd.f32 %v2863_v57, %v2695_v11 }
 0x3db   :  { %v4786_v0 = vpop.eup %4785  ;;  %v3033_v9 = vadd.f32 %v3032_v58, %v2864_v30  ;;  %v7070_v58 = vld [vmem:[#allocation22_spill] sm:$0xff] }
 0x3dc   :  { %v3174_v48 = vpack.c.bf16 %v4786_v0, %v4786_v0  ;;  %v2527_v56 = vpop.f32.mrf.mxu3 }
 0x3dd   :  { %4787 = vtanh.f32 %v3033_v9  ;;  %v2528_v27 = vadd.f32 %v2527_v56, %v7065_v19  ;;  %v3034_v61 = vpop.f32.mrf.mxu2 }
 0x3de   :  { %3239 = vst.msk [vmem:[%s7025_s3 + $0xd4] sm:$0xf] %vm3185_vm0, %v3174_v48  ;;  %v2699_v33 = vpop.f32.mrf.mxu0 }
 0x3df   :  { %v2697_v20 = vadd.f32 %v2696_v6, %v2528_v27 }
 0x3e0   :  { %v2868_v40 = vpop.f32.mrf.mxu1 }
 0x3e1   :  { %v2866_v32 = vadd.f32 %v2865_v62, %v2697_v20 }
 0x3e3   :  { %v4788_v38 = vpop.eup %4787  ;;  %v3035_v55 = vadd.f32 %v3034_v61, %v2866_v32  ;;  %v7071_v61 = vld [vmem:[#allocation23_spill] sm:$0xff] }
 0x3e4   :  { %v3175_v10 = vpack.c.bf16 %v4788_v38, %v4788_v38  ;;  %v2530_v3 = vpop.f32.mrf.mxu3 }
 0x3e5   :  { %4789 = vtanh.f32 %v3035_v55  ;;  %v2531_v47 = vadd.f32 %v2530_v3, %v7066_v21  ;;  %v3037_v43 = vpop.f32.mrf.mxu2 }
 0x3e6   :  { %3240 = vst.msk [vmem:[%s7025_s3 + $0xd8] sm:$0xf] %vm3185_vm0, %v3175_v10  ;;  %v2701_v35 = vpop.f32.mrf.mxu0 }
 0x3e7   :  { %v2700_v7 = vadd.f32 %v2699_v33, %v2531_v47  ;;  %v7072_v47 = vld [vmem:[#allocation24_spill] sm:$0xff] }
 0x3e8   :  { %v2870_v42 = vpop.f32.mrf.mxu1 }
 0x3e9   :  { %v2869_v34 = vadd.f32 %v2868_v40, %v2700_v7 }
 0x3eb   :  { %v4790_v1 = vpop.eup %4789  ;;  %v3038_v51 = vadd.f32 %v3037_v43, %v2869_v34 }
 0x3ec   :  { %v3176_v2 = vpack.c.bf16 %v4790_v1, %v4790_v1  ;;  %v2532_v24 = vpop.f32.mrf.mxu3 }
 0x3ed   :  { %4791 = vtanh.f32 %v3038_v51  ;;  %v2533_v49 = vadd.f32 %v2532_v24, %v7067_v16  ;;  %v3039_v18 = vpop.f32.mrf.mxu2  ;;  %v7073_v16 = vld [vmem:[#allocation25_spill] sm:$0xff] }
 0x3ee   :  { %3241 = vst.msk [vmem:[%s7025_s3 + $0xdc] sm:$0xf] %vm3185_vm0, %v3176_v2  ;;  %v2704_v63 = vpop.f32.mrf.mxu0 }
 0x3ef   :  { %v2702_v28 = vadd.f32 %v2701_v35, %v2533_v49 }
 0x3f0   :  { %v2873_v26 = vpop.f32.mrf.mxu1 }
 0x3f1   :  { %v2871_v15 = vadd.f32 %v2870_v42, %v2702_v28 }
 0x3f3   :  { %v4792_v53 = vpop.eup %4791  ;;  %v3040_v25 = vadd.f32 %v3039_v18, %v2871_v15 }
 0x3f4   :  { %v3177_v4 = vpack.c.bf16 %v4792_v53, %v4792_v53  ;;  %v2535_v13 = vpop.f32.mrf.mxu3 }
 0x3f5   :  { %4793 = vtanh.f32 %v3040_v25  ;;  %v2536_v46 = vadd.f32 %v2535_v13, %v7068_v8  ;;  %v3042_v41 = vpop.f32.mrf.mxu2 }
 0x3f6   :  { %3242 = vst.msk [vmem:[%s7025_s3 + $0xe0] sm:$0xf] %vm3185_vm0, %v3177_v4  ;;  %v2706_v50 = vpop.f32.mrf.mxu0 }
 0x3f7   :  { %v2705_v31 = vadd.f32 %v2704_v63, %v2536_v46 }
 0x3f8   :  { %v2875_v12 = vpop.f32.mrf.mxu1 }
 0x3f9   :  { %v2874_v22 = vadd.f32 %v2873_v26, %v2705_v31 }
 0x3fb   :  { %v4794_v59 = vpop.eup %4793  ;;  %v3043_v17 = vadd.f32 %v3042_v41, %v2874_v22 }
 0x3fc   :  { %v3178_v45 = vpack.c.bf16 %v4794_v59, %v4794_v59  ;;  %v2537_v54 = vpop.f32.mrf.mxu3 }
 0x3fd   :  { %4795 = vtanh.f32 %v3043_v17  ;;  %v2538_v36 = vadd.f32 %v2537_v54, %v7069_v44  ;;  %v3044_v60 = vpop.f32.mrf.mxu2 }
 0x3fe   :  { %3243 = vst.msk [vmem:[%s7025_s3 + $0xe4] sm:$0xf] %vm3185_vm0, %v3178_v45  ;;  %v2709_v14 = vpop.f32.mrf.mxu0 }
 0x3ff   :  { %v2707_v57 = vadd.f32 %v2706_v50, %v2538_v36 }
 0x400   :  { %v2878_v5 = vpop.f32.mrf.mxu1 }
 0x401   :  { %v2876_v39 = vadd.f32 %v2875_v12, %v2707_v57 }
 0x403   :  { %v4796_v29 = vpop.eup %4795  ;;  %v3045_v23 = vadd.f32 %v3044_v60, %v2876_v39 }
 0x404   :  { %v3179_v37 = vpack.c.bf16 %v4796_v29, %v4796_v29  ;;  %v2540_v52 = vpop.f32.mrf.mxu3 }
 0x405   :  { %4797 = vtanh.f32 %v3045_v23  ;;  %v2541_v6 = vadd.f32 %v2540_v52, %v7070_v58  ;;  %v3047_v11 = vpop.f32.mrf.mxu2 }
 0x406   :  { %3244 = vst.msk [vmem:[%s7025_s3 + $0xe8] sm:$0xf] %vm3185_vm0, %v3179_v37  ;;  %v2711_v0 = vpop.f32.mrf.mxu0 }
 0x407   :  { %v2710_v62 = vadd.f32 %v2709_v14, %v2541_v6 }
 0x408   :  { %v2880_v19 = vpop.f32.mrf.mxu1 }
 0x409   :  { %v2879_v30 = vadd.f32 %v2878_v5, %v2710_v62 }
 0x40b   :  { %v4798_v9 = vpop.eup %4797  ;;  %v3048_v48 = vadd.f32 %v3047_v11, %v2879_v30 }
 0x40c   :  { %v3180_v56 = vpack.c.bf16 %v4798_v9, %v4798_v9  ;;  %v2542_v27 = vpop.f32.mrf.mxu3 }
 0x40d   :  { %4799 = vtanh.f32 %v3048_v48  ;;  %v2543_v33 = vadd.f32 %v2542_v27, %v7071_v61  ;;  %v3049_v20 = vpop.f32.mrf.mxu2 }
 0x40e   :  { %3245 = vst.msk [vmem:[%s7025_s3 + $0xec] sm:$0xf] %vm3185_vm0, %v3180_v56  ;;  %v2714_v3 = vpop.f32.mrf.mxu0 }
 0x40f   :  { %v2712_v40 = vadd.f32 %v2711_v0, %v2543_v33 }
 0x410   :  { %v2883_v35 = vpop.f32.mrf.mxu1 }
 0x411   :  { %v2881_v32 = vadd.f32 %v2880_v19, %v2712_v40 }
 0x413   :  { %v4800_v38 = vpop.eup %4799  ;;  %v3050_v55 = vadd.f32 %v3049_v20, %v2881_v32 }
 0x414   :  { %v3181_v10 = vpack.c.bf16 %v4800_v38, %v4800_v38  ;;  %v2545_v21 = vpop.f32.mrf.mxu3 }
 0x415   :  { %4801 = vtanh.f32 %v3050_v55  ;;  %v2546_v43 = vadd.f32 %v2545_v21, %v7072_v47  ;;  %v3052_v42 = vpop.f32.mrf.mxu2 }
 0x416   :  { %3246 = vst.msk [vmem:[%s7025_s3 + $0xf0] sm:$0xf] %vm3185_vm0, %v3181_v10  ;;  %v2716_v18 = vpop.f32.mrf.mxu0 }
 0x417   :  { %v2715_v7 = vadd.f32 %v2714_v3, %v2546_v43 }
 0x418   :  { %v2885_v28 = vpop.f32.mrf.mxu1 }
 0x419   :  { %v2884_v34 = vadd.f32 %v2883_v35, %v2715_v7 }
 0x41b   :  { %v4802_v1 = vpop.eup %4801  ;;  %v3053_v51 = vadd.f32 %v3052_v42, %v2884_v34 }
 0x41c   :  { %v3182_v2 = vpack.c.bf16 %v4802_v1, %v4802_v1  ;;  %v2547_v24 = vpop.f32.mrf.mxu3 }
 0x41d   :  { %4803 = vtanh.f32 %v3053_v51  ;;  %v2548_v49 = vadd.f32 %v2547_v24, %v7073_v16  ;;  %v3054_v15 = vpop.f32.mrf.mxu2 }
 0x41e   :  { %3247 = vst.msk [vmem:[%s7025_s3 + $0xf4] sm:$0xf] %vm3185_vm0, %v3182_v2 }
 0x41f   :  { %v2717_v63 = vadd.f32 %v2716_v18, %v2548_v49 }
 0x421   :  { %v2886_v26 = vadd.f32 %v2885_v28, %v2717_v63 }
 0x423   :  { %v4804_v53 = vpop.eup %4803  ;;  %v3055_v25 = vadd.f32 %v3054_v15, %v2886_v26 }
 0x424   :  { %v3183_v4 = vpack.c.bf16 %v4804_v53, %v4804_v53 }
 0x425   :  { %4805 = vtanh.f32 %v3055_v25 }
 0x426   :  { %3248 = vst.msk [vmem:[%s7025_s3 + $0xf8] sm:$0xf] %vm3185_vm0, %v3183_v4 }
 0x42b   :  { %v4806_v13 = vpop.eup %4805 }
 0x42c   :  { %v3184_v8 = vpack.c.bf16 %v4806_v13, %v4806_v13 }
 0x42e   :  { %3249 = vst.msk [vmem:[%s7025_s3 + $0xfc] sm:$0xf] %vm3185_vm0, %v3184_v8 }

</bundles_post_ra>
